<compile_context>
chip_gen: v5e
topology: v5e:2x2
jax: 0.10.0
libtpu: 0.0.40
codegen_flags: <defaults>
</compile_context>

<pallas_src>
import math

import jax
import jax.numpy as jnp
from jax.experimental import pallas as pl
from jax.experimental.pallas import tpu as pltpu


# ---------------------------------------------------------------------------
# Tuning constants
# ---------------------------------------------------------------------------
_SUBLANE = {4: 8, 2: 16, 1: 32}        # sublane multiple per dtype itemsize
_TARGET_BLOCK_BYTES = 4 << 20          # ~4 MiB blocks (v6e sweet spot; v7x wants >= 4 MiB)
_MAX_BLOCK_BYTES = 6 << 20             # per-block cap so 2x(in+out)+headroom <= 32 MiB
_VMEM_LIMIT_CAP = 32 << 20             # ~half of v7x's 64 MiB physical VMEM
DEFAULT_MIN_PALLAS_BYTES = 64 << 10    # below this, XLA-native transpose wins
                                       # TODO(synk): raise per-generation (v7x crossover is higher)


def _vmem_limit(in_out_block_bytes):
    """Derive vmem_limit_bytes from actual (double-buffered) block residency + headroom."""
    need = 2 * int(in_out_block_bytes) + (6 << 20)
    return int(min(max(need, 16 << 20), _VMEM_LIMIT_CAP))


def _cost(nbytes):
    """Pure data movement: tell XLA this custom call is memory-bound."""
    return pl.CostEstimate(flops=0, transcendentals=0, bytes_accessed=2 * int(nbytes))


def _round_tile(extent, want, sublane):
    """Tile size along a sublane-ish dim: a multiple of `sublane` or the full extent."""
    extent = int(extent)
    want = max(min(int(want), extent), 1)
    if want >= extent:
        return extent
    t = (want // sublane) * sublane
    if t >= sublane:
        return t
    return extent if extent <= sublane else sublane


def _pick_lane_factor(m, cap_elems):
    """Largest factor of m that is a multiple of 128 and <= cap_elems (lane-dense rows);
    falls back to m itself when m is small, else to the largest factor <= cap_elems."""
    m = int(m)
    cap = min(m, max(int(cap_elems), 128))
    best = 0
    k = 128
    while k <= cap:
        if m % k == 0:
            best = k
        k += 128
    if best:
        return best
    if m <= max(int(cap_elems), 128):
        return m
    for d in range(cap, 0, -1):
        if m % d == 0:
            return d
    return 1


def _simplify_permutation(shape, dims):
    """Drop size-1 axes and merge runs of input axes that remain adjacent and in-order in
    the output.  Returns (reduced_shape, reduced_dims).  Reshaping the input to
    reduced_shape, permuting with reduced_dims and reshaping to the permuted original
    shape equals the original permute, and all reshapes are free contiguous merges."""
    keep = [a for a in range(len(shape)) if shape[a] != 1]
    if not keep:
        return (), ()
    remap = {a: i for i, a in enumerate(keep)}
    shape1 = [int(shape[a]) for a in keep]
    dims1 = [remap[d] for d in dims if d in remap]
    groups = [[dims1[0]]]                    # listed in OUTPUT order
    for d in dims1[1:]:
        if d == groups[-1][-1] + 1:
            groups[-1].append(d)
        else:
            groups.append([d])
    order = sorted(range(len(groups)), key=lambda gi: groups[gi][0])   # input order
    rshape = tuple(math.prod(shape1[a] for a in groups[gi]) for gi in order)
    out_pos = {gi: i for i, gi in enumerate(order)}                    # group -> input axis
    rdims = tuple(out_pos[gi] for gi in range(len(groups)))
    return rshape, rdims


# ---------------------------------------------------------------------------
# Pallas path 1: batched swap of the last two reduced axes  (covers NCHW<->NHWC,
# plain 2-D transpose, (0,1,3,2), ... -- the heads.py usage)
# ---------------------------------------------------------------------------
def _batched_swap_last_two(xr):
    """(lead..., C, M) -> (lead..., M, C) with lane-dense loads and lane-dense stores.
    Returns an array whose row-major bytes equal the permuted result, or None."""
    *lead, C, M = (int(s) for s in xr.shape)
    G = math.prod(lead)
    itemsize = xr.dtype.itemsize
    sublane = _SUBLANE.get(itemsize, 8)

    # Factor M = M1 * M2: the input block (1, C, m1_tile, M2) keeps M2 (a multiple of 128
    # when possible) in lanes; the output block (1, m1_tile, M2*C) is one wide slab.
    M2 = _pick_lane_factor(M, _TARGET_BLOCK_BYTES // max(C * itemsize * sublane, 1))
    M1 = M // M2
    row_bytes = C * M2 * itemsize
    want = max(_TARGET_BLOCK_BYTES // row_bytes, 1)
    if G == 1 and M1 >= 2 * sublane:
        want = min(want, pl.cdiv(M1, 2))      # keep >= 2 tiles so both v7x cores get work
    m1_tile = _round_tile(M1, want, sublane)
    block_bytes = C * m1_tile * M2 * itemsize
    if block_bytes > _MAX_BLOCK_BYTES:
        # TODO(synk): also tile the channel axis (4-D output view) for very large C rows.
        return None
    n_m1 = pl.cdiv(M1, m1_tile)

    def kernel(x_ref, o_ref):
        # x_ref: (1, C, m1_tile, M2)  ->  o_ref: (1, m1_tile, M2*C)
        # TODO(synk): pack bf16/int8 lane pairs/quads via pltpu.bitcast around the
        # transpose to cut XLU relayout traffic when C is small.
        y = jnp.transpose(x_ref[...], (0, 2, 3, 1))           # (1, m1_tile, M2, C)
        o_ref[...] = y.reshape(o_ref.shape)                   # lane-dense store

    out_flat = pl.pallas_call(
        kernel,
        out_shape=jax.ShapeDtypeStruct((G, M1, M2 * C), xr.dtype),
        grid=(G, n_m1),
        in_specs=[pl.BlockSpec((1, C, m1_tile, M2), lambda g, j: (g, 0, j, 0))],
        out_specs=pl.BlockSpec((1, m1_tile, M2 * C), lambda g, j: (g, j, 0)),
        compiler_params=pltpu.CompilerParams(
            dimension_semantics=("parallel", "parallel"),
            vmem_limit_bytes=_vmem_limit(2 * block_bytes)),
        cost_estimate=_cost(xr.size * itemsize),
    )(xr.reshape(G, C, M1, M2))
    # (G, M1, M2*C) shares row-major bytes with the true (lead..., M, C) result.
    return out_flat


# ---------------------------------------------------------------------------
# Pallas path 2: reduced permutation keeps the merged trailing axis
# (pure BlockSpec re-indexing copy; zero XLU work, runs at HBM bandwidth)
# ---------------------------------------------------------------------------
def _leading_axes_copy(xr, rdims):
    r = len(rdims)
    rshape = tuple(int(s) for s in xr.shape)
    K_total = rshape[-1]
    itemsize = xr.dtype.itemsize
    sublane = _SUBLANE.get(itemsize, 8)

    # Split K_total = S2 * K: K wide (multiple of 128 when possible) in lanes, S2 tiled
    # in sublane multiples -> unmasked vld/vst and long contiguous DMA rows on BOTH sides.
    K = _pick_lane_factor(K_total, _TARGET_BLOCK_BYTES // max(itemsize * sublane, 1))
    S2 = K_total // K
    want = max(_TARGET_BLOCK_BYTES // (K * itemsize), 1)
    s_tile = _round_tile(S2, want, sublane)
    block_bytes = s_tile * K * itemsize
    if block_bytes > _MAX_BLOCK_BYTES:
        return None
    n_s = pl.cdiv(S2, s_tile)

    nl = r - 1                                  # leading (moved) axes
    lead_out = tuple(rdims[:-1])                # input axis at each output position
    pos_of = {a: p for p, a in enumerate(lead_out)}
    block = (1,) * nl + (s_tile, K)

    def in_index_map(*g):
        return tuple(g[pos_of[a]] for a in range(nl)) + (g[nl], 0)

    def out_index_map(*g):
        return tuple(g[:nl]) + (g[nl], 0)

    def kernel(x_ref, o_ref):
        o_ref[...] = x_ref[...]                 # permute == pure re-indexing here

    grid = tuple(rshape[a] for a in lead_out) + (n_s,)
    out_view_shape = tuple(rshape[a] for a in lead_out) + (S2, K)
    return pl.pallas_call(
        kernel,
        out_shape=jax.ShapeDtypeStruct(out_view_shape, xr.dtype),
        grid=grid,
        in_specs=[pl.BlockSpec(block, in_index_map)],
        out_specs=pl.BlockSpec(block, out_index_map),
        compiler_params=pltpu.CompilerParams(
            dimension_semantics=("parallel",) * len(grid),
            vmem_limit_bytes=_vmem_limit(2 * block_bytes)),
        cost_estimate=_cost(xr.size * itemsize),
    )(xr.reshape(rshape[:-1] + (S2, K)))


# ---------------------------------------------------------------------------
# Public entry point
# ---------------------------------------------------------------------------
def permute_pallas(x, dims, *, min_bytes=DEFAULT_MIN_PALLAS_BYTES):
    """Pallas equivalent of torch.Tensor.permute(*dims)."""
    n = x.ndim
    if n == 0:
        assert tuple(dims) == (), "dims must be a permutation of the axes"
        return x
    dims = tuple(int(d) % n for d in dims)
    assert sorted(dims) == list(range(n)), "dims must be a permutation of the axes"
    if dims == tuple(range(n)):
        return x                                           # identity permutation

    out_shape = tuple(int(x.shape[d]) for d in dims)
    nbytes = x.size * x.dtype.itemsize
    if x.size == 0 or nbytes < min_bytes:
        return jnp.transpose(x, dims)                      # KB-scale: launch overhead wins

    rshape, rdims = _simplify_permutation(x.shape, dims)
    r = len(rdims)
    if rdims == tuple(range(r)):
        return x.reshape(out_shape)                        # only size-1 axes moved: free

    xr = x.reshape(rshape)

    # Batched swap of the last two reduced axes (NCHW<->NHWC, 2-D transpose, ...).
    if rdims == tuple(range(r - 2)) + (r - 1, r - 2):
        out = _batched_swap_last_two(xr)
        if out is not None:
            return out.reshape(out_shape)

    # Trailing merged axis unchanged: pure re-indexing copy at HBM bandwidth.
    if r >= 3 and rdims[-1] == r - 1:
        out = _leading_axes_copy(xr, rdims)
        if out is not None:
            return out.reshape(out_shape)

    # TODO(synk): tiled Pallas path for reduced permutations that both move the trailing
    # axis and shuffle the leading axes (e.g. (2,1,0), (1,0,3,2)) -- needs two-sided
    # (8,128)-aligned tiling with an in-kernel relayout; fall back to XLA for now.
    return jnp.transpose(x, dims)


class Permute:
    """Mirror of the PyTorch module: Permute(*dims)(x) == x.permute(*dims)."""

    def __init__(self, *dims):
        self.dims = dims

    def __call__(self, x):
        return permute_pallas(x, self.dims)


# ---------------------------------------------------------------------------
# Demo / self-check
# ---------------------------------------------------------------------------
if __name__ == "__main__":
    root = jax.random.PRNGKey(0)
    k1, k2, k3 = jax.random.split(root, 3)

    # 1) heads.py pattern NCHW -> NHWC at the small reference shape, forced through the
    #    Pallas lane-dense batched-swap kernel (min_bytes=0).
    x = jax.random.normal(k1, (2, 4, 16, 16), dtype=jnp.float32)
    dims = (0, 2, 3, 1)
    y = jax.block_until_ready(permute_pallas(x, dims, min_bytes=0))
    ref = jnp.transpose(x, dims)
    assert y.shape == ref.shape, (y.shape, ref.shape)
    assert y.dtype == ref.dtype, (y.dtype, ref.dtype)
    assert bool(jnp.array_equal(y, ref)), "NCHW->NHWC permute mismatch"

    # Module wrapper with automatic dispatch (this 8 KiB input takes the XLA cutoff).
    y_mod = jax.block_until_ready(Permute(*dims)(x))
    assert bool(jnp.array_equal(y_mod, ref)), "module wrapper mismatch"

    # 2) 128 KiB input that auto-selects the tiled Pallas swap path.
    xb = jax.random.normal(k2, (2, 8, 32, 64), dtype=jnp.float32)
    yb = jax.block_until_ready(permute_pallas(xb, dims))
    assert bool(jnp.array_equal(yb, jnp.transpose(xb, dims))), "tiled NHWC mismatch"

    # 3) Leading-axes-only permute: pure BlockSpec re-indexing copy path.
    xc = jax.random.normal(k3, (2, 4, 16, 16), dtype=jnp.float32)
    dims_c = (1, 0, 2, 3)
    yc = jax.block_until_ready(permute_pallas(xc, dims_c, min_bytes=0))
    assert bool(jnp.array_equal(yc, jnp.transpose(xc, dims_c))), "copy-reindex mismatch"

    # 4) Plain 2-D transpose through the batched-swap path.
    xd = jax.random.normal(k1, (32, 128), dtype=jnp.float32)
    yd = jax.block_until_ready(permute_pallas(xd, (1, 0), min_bytes=0))
    assert bool(jnp.array_equal(yd, jnp.transpose(xd, (1, 0)))), "2-D transpose mismatch"

    print("KERNEL_OK")
</pallas_src>

<mosaic_0001>
module attributes {stable_mosaic.version = 11 : i64} {
  func.func @kernel(%arg0: i32, %arg1: i32, %arg2: memref<1x4x1x256xf32, #tpu.memory_space<vmem>>, %arg3: memref<1x1x1024xf32, #tpu.memory_space<vmem>>) attributes {dimension_semantics = [#tpu.dimension_semantics<parallel>, #tpu.dimension_semantics<parallel>], iteration_bounds = array<i64: 2, 1>, scalar_prefetch = 0 : i64, scratch_operands = 0 : i64, tpu.core_type = #tpu.core_type<tc>, window_params = [{transform_indices = @transform_0, window_bounds = array<i64: 1, 4, 1, 256>}, {transform_indices = @transform_1, window_bounds = array<i64: 1, 1, 1024>}]} {
    %c0 = arith.constant 0 : index
    %c0_0 = arith.constant 0 : index
    %c0_1 = arith.constant 0 : index
    %c0_2 = arith.constant 0 : index
    %0 = vector.load %arg2[%c0, %c0_0, %c0_1, %c0_2] : memref<1x4x1x256xf32, #tpu.memory_space<vmem>>, vector<1x4x1x256xf32>
    %1 = tpu.transpose %0, [0, 2, 3, 1] : vector<1x4x1x256xf32> -> vector<1x1x256x4xf32>
    %2 = vector.shape_cast %1 : vector<1x1x256x4xf32> to vector<1x1x1024xf32>
    %c0_3 = arith.constant 0 : index
    %c0_4 = arith.constant 0 : index
    %c0_5 = arith.constant 0 : index
    %3 = vector.load %arg3[%c0_3, %c0_4, %c0_5] : memref<1x1x1024xf32, #tpu.memory_space<vmem>>, vector<1x1x1024xf32>
    tpu.vector_store %arg3[%c0_3, %c0_4, %c0_5], %2 {strides = array<i32>} : memref<1x1x1024xf32, #tpu.memory_space<vmem>>, vector<1x1x1024xf32>,
    return
  }
  func.func @transform_0(%arg0: i32, %arg1: i32) -> (i32, i32, i32, i32) {
    %c0_i32 = arith.constant 0 : i32
    %c0_i32_0 = arith.constant 0 : i32
    %c0_i32_1 = arith.constant 0 : i32
    return %arg0, %c0_i32, %arg1, %c0_i32_0 : i32, i32, i32, i32
  }
  func.func @transform_1(%arg0: i32, %arg1: i32) -> (i32, i32, i32) {
    %c0_i32 = arith.constant 0 : i32
    %c0_i32_0 = arith.constant 0 : i32
    return %arg0, %arg1, %c0_i32 : i32, i32, i32
  }
}

</mosaic_0001>

<bundles_post_ra>
// kernel: tpu_custom_call.1
= control target key start
LH: loop header
LB: loop body
LE: loop exit
PB: predicated region body
PF: predicated region fallthrough
CT: control target
= control target key end

     0   :  { %s19052_s0 = inlined_call_operand.hbm [shape: f32[2,4,1,256], index: 0, kind: input, shape index: {}]   ;;  %s19053_s1 = inlined_call_operand.hbm [shape: f32[2,1,1024], index: 1, kind: output, shape index: {}]  }
   0x1   :  { %19216 = sst [smem:[#allocation190_spill]] %s19052_s0 }
   0x2   :  { %19217 = sst [smem:[#allocation191_spill]] %s19053_s1 }
   0x3   :  { %6 = vsyncpa [#allocation3], 0 }
   0x4   :  { %8 = vsyncpa [#allocation3 + $0x1], 0 }
   0x5   :  { %9 = vsyncpa [#allocation4], 0 }
   0x6   :  { %11 = vsyncpa [#allocation4 + $0x1], 0  ;;  %s14523_s6 = smov 0   ;;  %s14525_s7 = smov 0  }
   0x7   :  { %s14527_s8 = smov 0   ;;  %s14529_s9 = smov 0  }
   0x8   :  { %s14531_s10 = smov 0   ;;  %s14533_s11 = smov 0  }
   0x9 LB: > { %19218 = sst [smem:[#allocation8_spill]] %s14456_s6  ;;  %s14253_s12 = sadd.s32 4294967295, %s14476_s11   ;;  %s14476_s11 = sphi %s14533_s11, %s17_s11   ;;  %s14472_s10 = sphi %s14531_s10, %s20170_s10   ;;  %s14468_s9 = sphi %s14529_s9, %s20169_s9   ;;  %s14464_s8 = sphi %s14527_s8, %s20168_s8   ;;  %s14460_s7 = sphi %s14525_s7, %s20167_s7   ;;  %s14456_s6 = sphi %s14523_s6, %s20166_s6  }
   0xa   : > { %19219 = sst [smem:[#allocation9_spill]] %s14460_s7  ;;  %s14254_s13 = sadd.s32 4294967294, %s14476_s11  }
   0xb   : > { %19220 = sst [smem:[#allocation10_spill]] %s14464_s8  ;;  %s29_s14 = sadd.s32 1, %s14472_s10 }
   0xc   : > { %19221 = sst [smem:[#allocation11_spill]] %s14468_s9  ;;  %s38_s15 = sadd.s32 1, %s14464_s8 }
   0xd   : > { %19222 = sst [smem:[#allocation12_spill]] %s14472_s10  ;;  %p31_p0 = scmp.ge.s32.totalorder %s29_s14, 2 }
   0xe   : > { %19223 = sst [smem:[#allocation13_spill]] %s14476_s11  ;;  %p45_p1 = scmp.ne.s32.totalorder %s14464_s8, %s14460_s7 }
   0xf   : > { %p46_p2 = scmp.eq.s32.totalorder %s14476_s11, 0  ;;  %p51_p3 = scmp.ne.s32.totalorder %s14460_s7, %s14456_s6 }
  0x10   : > { %s20172_s14 = smov (%p31_p0, %s29_s14), 0  ;;  %p52_p5 = scmp.eq.s32.totalorder %s14253_s12, 0 }
  0x11   : > { %19224 = sst [smem:[#allocation14_spill]] %s20172_s14  ;;  %p14564_p4 = por %p46_p2, %p45_p1 }
  0x12   : > { %s33_s17 = ssub.s32 %s14472_s10, %s20172_s14  ;;  %p77_p6 = scmp.eq.s32.totalorder %s14253_s12, 1 }
  0x13   : > { %p36_p7 = scmp.eq.s32.totalorder %s33_s17, 0  ;;  %p14570_p8 = por %p52_p5, %p51_p3 }
  0x14   : > { %p14574_p9 = por %p77_p6, %p45_p1  ;;  %p83_p10 = scmp.eq.s32.totalorder %s14254_s13, 1 }
  0x15   : > { %s14579_s20 = scalar_select %p36_p7, %s14464_s8, %s38_s15  }
  0x16   : > { %s19227_s19 = scalar_select %p14574_p9, 1, 0 }
  0x17   : > { %19229 = sst [smem:[#allocation16_spill]] %s14579_s20  ;;  %p14581_p11 = por %p83_p10, %p51_p3 }
  0x18   : > { %19228 = sst [smem:[#allocation15_spill]] %s19227_s19  ;;  %p14256_p12 = scmp.ge.s32.totalorder %s14476_s11, 2 }
  0x19   : > { %s19230_s21 = scalar_select %p14581_p11, 1, 0 }
  0x1a   : > { %p14278_p13 = scmp.lt.s32.totalorder %s14476_s11, 2  ;;  %s103_s22 = sand.u32 1, %s14464_s8  }
  0x1b   : > { %19231 = sst [smem:[#allocation17_spill]] %s19230_s21  ;;  %s14257_s23 = sshll.u32 %s103_s22, 3 }
  0x1c   : > { %s14258_s24 = sshll.u32 %s14472_s10, 3  ;;  %s19232_s0 = sld [smem:[#allocation190_spill]] }
  0x1d   : > { %s107_s28 = scalar_lea.vmem [#allocation2], %s14257_s23  ;;  %p14271_p0 = pnand %p14278_p13, %p14564_p4 }
  0x1e   : > { %s116_s29 = sshll.u32 %s107_s28, 4  ;;  %p14259_p1 = scmp.ge.s32.totalorder %s14476_s11, 1  ;;  %s117_s29 = int_to_ptr.vmem [resolvable:$true] %s116_s29 }
  0x1f   : > { %s104_s2 = scalar_lea.sflag [#allocation3], %s103_s22  ;;  %s14478_s3 = smov 32  }
  0x20   : > { %s14479_s4 = smov 2   ;;  %p124_p2 = scmp.lt.s32.totalorder %s14476_s11, 3 }
  0x22   : > { %s113_s27 = scalar_lea.hbm %s19232_s0, %s14258_s24  ;;  %p125_p3 = pnand %p14259_p1, %p124_p2 }
  0x23   : > { %s114_s30 = sshll.u32 %s113_s27, 4  ;;  %s115_s30 = int_to_ptr.hbm [resolvable:$true] %s114_s30 }
  0x24   : > { %14273 = dma.hbm_to_vmem [thread:$0]  (!%p14271_p0), %s115_s30, 128, %s117_s29, %s104_s2, %s14478_s3, %s14478_s3, %s14479_s4  }
  0x25   : > { %128 = sbr.rel (%p125_p3) target bundleno = 2095 (0x82f), region = 24 }
  0x2a   : > { %s14597_s5 = sand.u32 1, %s14460_s7  }
  0x2b   : > { %19233 = sst [smem:[#allocation18_spill]] %s14597_s5  ;;  %s19110_s12 = sshll.u32 %s14597_s5, 3 }
  0x2c   : > { %s131_s13 = scalar_lea.sflag [#allocation3], %s14597_s5  ;;  %s14603_s15 = scalar_lea.vmem [#allocation2], %s19110_s12 }
  0x2d   : > { %14447 = dma.done.wait (%p14570_p8), %s131_s13, 128  }
  0x2e   : > { %14449 = vsyncadd (%p14570_p8), %s131_s13, 4294967168  ;;  %v155_v0 = vld [vmem:[%s14603_s15 + $0x2] sm:$0x3]  ;;  %v154_v1 = vld [vmem:[%s14603_s15] sm:$0x3]  ;;  %vm435_vm0 = vcmask 1047556  }
  0x2f   : > { %v156_v2 = vld [vmem:[%s14603_s15 + $0x4] sm:$0x3]  ;;  %v164_v3 = vperm.slane %v155_v0, 0  ;;  %v162_v4 = vperm.slane %v154_v1, 0  ;;  %v165_v6 = vperm.slane %v155_v0, 1  ;;  %v163_v7 = vperm.slane %v154_v1, 1 }
  0x30   : > { %v166_v5 = vperm.slane %v156_v2, 0  ;;  %v167_v8 = vperm.slane %v156_v2, 1  ;;  %v157_v31 = vld [vmem:[%s14603_s15 + $0x6] sm:$0x3]  ;;  %s19150_s16 = smov 8   ;;  %s19122_s17 = smov 16  }
  0x31   : > { %242 = vxpose.xlu1.b32.start.end [1/1] (short) %v164_v3, 128  ;;  %178 = vxpose.xlu0.b32.start.end [1/1] (short) %v162_v4, 128  ;;  %v169_v34 = vperm.slane %v157_v31, 1  ;;  %v168_v35 = vperm.slane %v157_v31, 0  ;;  %s19152_s18 = smov 20   ;;  %s19124_s22 = smov 28   ;;  %vm19212_vm1 = vcmask 31744   ;;  %vm19211_vm2 = vcmask 64512  }
  0x32   : > { %306 = vxpose.xlu2.b32.start.end [1/1] (short) %v166_v5, 128  ;;  %s19120_s23 = smov 4   ;;  %s19126_s24 = smov 40   ;;  %vm13847_vm3 = vcmask 97280   ;;  %vm13849_vm4 = vcmask 130048   ;;  %vm13851_vm5 = vcmask 162816   ;;  %vm13853_vm6 = vcmask 195584  }
  0x33   : > { %s19154_s25 = smov 32   ;;  %s19128_s26 = smov 52   ;;  %vm13855_vm7 = vcmask 228352   ;;  %vm13857_vm8 = vcmask 261120   ;;  %vm13859_vm9 = vcmask 293888   ;;  %vm13861_vm10 = vcmask 326656  }
  0x34   : > { %s19156_s27 = smov 44   ;;  %s19130_s28 = smov 64   ;;  %vm19213_vm11 = vcmask 359424   ;;  %vm19208_vm12 = vcmask 392192   ;;  %vm19194_vm13 = vcmask 424960   ;;  %vm19192_vm14 = vcmask 457728  }
  0x35   : > { %s19158_s29 = smov 56   ;;  %s19132_s30 = smov 76   ;;  %vm19191_vm15 = vcmask 490496  }
  0x36   : > { %s19160_s2 = smov 68   ;;  %s19134_s3 = smov 88  }
  0x37   : > { %s19115_s4 = smov 80   ;;  %s19136_s13 = smov 100  }
  0x38   : > { %s19111_s15 = smov 92   ;;  %s19166_s12 = smov 112  }
  0x39   : > { %s19800_s0 = smov 36   ;;  %s19803_s14 = smov 108  }
  0x3a   : > { %s19805_s10 = smov 120   ;;  %s19806_s20 = smov 112  }
  0x3b   : > { %s19808_s8 = smov 8   ;;  %s19809_s7 = smov 124  }
  0x3c   : > { %s19817_s11 = smov 20   ;;  %s19818_s21 = smov 12  }
  0x3d   : > { %s19821_s6 = smov 32   ;;  %s19822_s19 = smov 24  }
  0x3e   : > { %s19825_s1 = smov 44   ;;  %s19835_s5 = smov 56  }
  0x3f   : > { %s19839_s9 = smov 68  }
  0xb1   : > { %274 = vxpose.xlu1.b32.start.end [1/1] (short) %v165_v6, 128  ;;  %210 = vxpose.xlu0.b32.start.end [1/1] (short) %v163_v7, 128 }
  0xb2   : > { %338 = vxpose.xlu2.b32.start.end [1/1] (short) %v167_v8, 128 }
  0xcb   : > { %v14665_v38 = vpop.trf.xlu2 }
  0xd3   : > { %v14675_v43 = vpop.trf.xlu2 }
  0xd5   : > { %v14612_v9 = vpop.trf.xlu1  ;;  %v14614_v10 = vpop.trf.xlu0 }
  0xdb   : > { %v14681_v46 = vpop.trf.xlu2 }
  0xdd   : > { %v14616_v11 = vpop.trf.xlu1  ;;  %v14618_v12 = vpop.trf.xlu0 }
  0xe3   : > { %v14687_v49 = vpop.trf.xlu2 }
  0xe5   : > { %v14620_v13 = vpop.trf.xlu1  ;;  %v14622_v14 = vpop.trf.xlu0 }
  0xeb   : > { %v14693_v52 = vpop.trf.xlu2 }
  0xed   : > { %v14624_v15 = vpop.trf.xlu1  ;;  %v14626_v16 = vpop.trf.xlu0 }
  0xf3   : > { %v14703_v57 = vpop.trf.xlu2 }
  0xf5   : > { %v14628_v17 = vpop.trf.xlu1  ;;  %v14630_v18 = vpop.trf.xlu0 }
  0xfb   : > { %v14709_v60 = vpop.trf.xlu2 }
  0xfd   : > { %v14632_v19 = vpop.trf.xlu1  ;;  %v14634_v20 = vpop.trf.xlu0 }
 0x103   : > { %v14715_v63 = vpop.trf.xlu2 }
 0x105   : > { %v14636_v21 = vpop.trf.xlu1  ;;  %v14638_v22 = vpop.trf.xlu0 }
 0x10b   : > { %v14721_v2 = vpop.trf.xlu2 }
 0x10d   : > { %v14640_v23 = vpop.trf.xlu1  ;;  %v14642_v24 = vpop.trf.xlu0 }
 0x113   : > { %v14729_v6 = vpop.trf.xlu2 }
 0x115   : > { %v14644_v25 = vpop.trf.xlu1  ;;  %v14646_v26 = vpop.trf.xlu0 }
 0x11b   : > { %v14735_v31 = vpop.trf.xlu2 }
 0x11d   : > { %v14648_v27 = vpop.trf.xlu1  ;;  %v14650_v28 = vpop.trf.xlu0 }
 0x125   : > { %v14652_v29 = vpop.trf.xlu1  ;;  %v14654_v30 = vpop.trf.xlu0 }
 0x12d   : > { %v14657_v32 = vpop.trf.xlu1  ;;  %v14659_v33 = vpop.trf.xlu0 }
 0x131   : > { %402 = vxpose.xlu1.b32.start.end [1/1] (short) %v169_v34, 128  ;;  %370 = vxpose.xlu0.b32.start.end [1/1] (short) %v168_v35, 128 }
 0x135   : > { %v14661_v36 = vpop.trf.xlu1  ;;  %v14663_v37 = vpop.trf.xlu0 }
 0x13d   : > { %v14667_v39 = vpop.trf.xlu1  ;;  %v14669_v40 = vpop.trf.xlu0 }
 0x145   : > { %v14671_v41 = vpop.trf.xlu1  ;;  %v14673_v42 = vpop.trf.xlu0 }
 0x146   : > { %19234 = vst [vmem:[#allocation19_spill] sm:$0xff] %v14671_v41 }
 0x147   : > { %19235 = vst [vmem:[#allocation20_spill] sm:$0xff] %v14673_v42 }
 0x14d   : > { %v14677_v44 = vpop.trf.xlu1  ;;  %v14679_v45 = vpop.trf.xlu0 }
 0x14e   : > { %19236 = vst [vmem:[#allocation21_spill] sm:$0xff] %v14677_v44 }
 0x14f   : > { %19237 = vst [vmem:[#allocation22_spill] sm:$0xff] %v14679_v45  ;;  %v547_v45 = vrot.slane %v14681_v46, 4 }
 0x155   : > { %v14683_v47 = vpop.trf.xlu1  ;;  %v14685_v48 = vpop.trf.xlu0 }
 0x156   : > { %19238 = vst [vmem:[#allocation23_spill] sm:$0xff] %v14683_v47  ;;  %v549_v47 = vrot.slane %v14622_v14, 4 }
 0x157   : > { %19239 = vst [vmem:[#allocation24_spill] sm:$0xff] %v14685_v48 }
 0x15d   : > { %v14689_v50 = vpop.trf.xlu1  ;;  %v14691_v51 = vpop.trf.xlu0 }
 0x15e   : > { %19240 = vst [vmem:[#allocation25_spill] sm:$0xff] %v14689_v50 }
 0x15f   : > { %19241 = vst [vmem:[#allocation26_spill] sm:$0xff] %v14691_v51 }
 0x165   : > { %v14695_v53 = vpop.trf.xlu1  ;;  %v14697_v54 = vpop.trf.xlu0 }
 0x166   : > { %19242 = vst [vmem:[#allocation27_spill] sm:$0xff] %v14695_v53 }
 0x167   : > { %19243 = vst [vmem:[#allocation28_spill] sm:$0xff] %v14697_v54  ;;  %v14481_v54 = vmov 1934713408  }
 0x16d   : > { %v14699_v55 = vpop.trf.xlu1  ;;  %v14701_v56 = vpop.trf.xlu0 }
 0x16e   : > { %19244 = vst [vmem:[#allocation29_spill] sm:$0xff] %v14699_v55 }
 0x16f   : > { %19245 = vst [vmem:[#allocation30_spill] sm:$0xff] %v14701_v56 }
 0x175   : > { %v14705_v58 = vpop.trf.xlu0  ;;  %v14707_v59 = vpop.trf.xlu1 }
 0x176   : > { %19246 = vst [vmem:[#allocation31_spill] sm:$0xff] %v14705_v58  ;;  %v14480_v58 = vmov 1983009808  }
 0x177   : > { %19247 = vst [vmem:[#allocation32_spill] sm:$0xff] %v14707_v59 }
 0x17d   : > { %v14711_v61 = vpop.trf.xlu0  ;;  %v14713_v62 = vpop.trf.xlu1 }
 0x17e   : > { %19248 = vst [vmem:[#allocation33_spill] sm:$0xff] %v14711_v61 }
 0x17f   : > { %19249 = vst [vmem:[#allocation34_spill] sm:$0xff] %v14713_v62 }
 0x185   : > { %v14717_v0 = vpop.trf.xlu0  ;;  %v14719_v1 = vpop.trf.xlu1 }
 0x186   : > { %19250 = vst [vmem:[#allocation35_spill] sm:$0xff] %v14717_v0  ;;  %v14741_v0 = vpop.trf.xlu2 }
 0x187   : > { %19251 = vst [vmem:[#allocation36_spill] sm:$0xff] %v14719_v1 }
 0x18d   : > { %v14723_v3 = vpop.trf.xlu0  ;;  %v14725_v4 = vpop.trf.xlu1 }
 0x18e   : > { %19252 = vst [vmem:[#allocation37_spill] sm:$0xff] %v14723_v3 }
 0x18f   : > { %19253 = vst [vmem:[#allocation38_spill] sm:$0xff] %v14725_v4  ;;  %v14747_v4 = vpop.trf.xlu2 }
 0x195   : > { %v14727_v5 = vpop.trf.xlu0  ;;  %v14733_v8 = vpop.trf.xlu1 }
 0x196   : > { %19254 = vst [vmem:[#allocation39_spill] sm:$0xff] %v14727_v5 }
 0x197   : > { %19256 = vst [vmem:[#allocation41_spill] sm:$0xff] %v14733_v8  ;;  %v14755_v8 = vpop.trf.xlu2 }
 0x19d   : > { %v14731_v7 = vpop.trf.xlu0  ;;  %v14739_v35 = vpop.trf.xlu1 }
 0x19e   : > { %19255 = vst [vmem:[#allocation40_spill] sm:$0xff] %v14731_v7 }
 0x19f   : > { %19258 = vst [vmem:[#allocation43_spill] sm:$0xff] %v14739_v35  ;;  %v14761_v35 = vpop.trf.xlu2 }
 0x1a0   : > { %19266 = vst [vmem:[#allocation51_spill] sm:$0xff] %v14761_v35 }
 0x1a5   : > { %v14737_v34 = vpop.trf.xlu0  ;;  %v14745_v3 = vpop.trf.xlu1 }
 0x1a6   : > { %19257 = vst [vmem:[#allocation42_spill] sm:$0xff] %v14737_v34 }
 0x1a7   : > { %19260 = vst [vmem:[#allocation45_spill] sm:$0xff] %v14745_v3  ;;  %v434_v3 = vrot.slane %v14665_v38, 4  ;;  %v14772_v56 = vpop.trf.xlu2 }
 0x1a8   : > { %19269 = vst [vmem:[#allocation54_spill] sm:$0xff] %v14772_v56 }
 0x1ad   : > { %v14743_v1 = vpop.trf.xlu0  ;;  %v14751_v61 = vpop.trf.xlu1 }
 0x1ae   : > { %19259 = vst [vmem:[#allocation44_spill] sm:$0xff] %v14743_v1  ;;  %v440_v1 = vunpack.c.l.s4 %v14480_v58  ;;  %v464_v58 = vunpack.c.l.s4 %v14481_v54 }
 0x1af   : > { %19262 = vst [vmem:[#allocation47_spill] sm:$0xff] %v14751_v61  ;;  %v14783_v48 = vpop.trf.xlu2 }
 0x1b0   : > { %v14768_v61 = vunpack.c.0.s8 %v440_v1  ;;  %v14780_v1 = vunpack.c.0.s8 %v464_v58  ;;  %19271 = vst [vmem:[#allocation56_spill] sm:$0xff] %v14783_v48  ;;  %v437_v48 = vrot.slane %v14614_v10, 4 }
 0x1b5   : > { %v14749_v5 = vpop.trf.xlu0  ;;  %v14759_v34 = vpop.trf.xlu1 }
 0x1b6   : > { %19261 = vst [vmem:[#allocation46_spill] sm:$0xff] %v14749_v5 }
 0x1b7   : > { %19265 = vst [vmem:[#allocation50_spill] sm:$0xff] %v14759_v34 }
 0x1bd   : > { %v14753_v7 = vpop.trf.xlu0  ;;  %v14766_v5 = vpop.trf.xlu1 }
 0x1be   : > { %19263 = vst [vmem:[#allocation48_spill] sm:$0xff] %v14753_v7  ;;  %v436_v7 = vsel %vm435_vm0, %v434_v3, %v14614_v10 }
 0x1bf   : > { %19268 = vst [vmem:[#allocation53_spill] sm:$0xff] %v14766_v5 }
 0x1c5   : > { %v14757_v62 = vpop.trf.xlu0  ;;  %v14778_v5 = vpop.trf.xlu1 }
 0x1c6   : > { %19264 = vst [vmem:[#allocation49_spill] sm:$0xff] %v14757_v62  ;;  %v442_v62 = vperm.slane %v436_v7, %v14768_v61 }
 0x1c7   : > { %19270 = vst [vmem:[#allocation55_spill] sm:$0xff] %v14778_v5  ;;  %v548_v5 = vsel %vm435_vm0, %v547_v45, %v14622_v14  ;;  %v14810_v14 = vpop.trf.xlu2 }
 0x1c8   : > { %v461_v53 = vrot.slane %v442_v62, 4  ;;  %19273 = vst [vmem:[#allocation58_spill] sm:$0xff] %v14810_v14 }
 0x1cd   : > { %v14763_v59 = vpop.trf.xlu0  ;;  %v14802_v44 = vpop.trf.xlu1 }
 0x1ce   : > { %19267 = vst [vmem:[#allocation52_spill] sm:$0xff] %v14763_v59 }
 0x1cf   : > { %19272 = vst [vmem:[#allocation57_spill] sm:$0xff] %v14802_v44 }
 0x1d5   : > { %v386_v34 = vpop.trf.xlu0 }
 0x1d6   : > { %v447_v55 = vrot.slane %v386_v34, 4 }
 0x1d8   : > { %v448_v59 = vsel %vm435_vm0, %v447_v55, %v14612_v9 }
 0x1d9   : > { %v454_v51 = vperm.slane %v448_v59, %v14768_v61  ;;  %v449_v59 = vrot.slane %v14612_v9, 4 }
 0x1db   : > { %v462_v3 = vsel %vm435_vm0, %v454_v51, %v461_v53  ;;  %v459_v50 = vrot.slane %v454_v51, 4  ;;  %v550_v51 = vsel %vm435_vm0, %v14681_v46, %v549_v47  ;;  %v450_v53 = vsel %vm435_vm0, %v386_v34, %v449_v59 }
 0x1dc   : > { %v470_v7 = vperm.slane %v462_v3, %v14780_v1  ;;  %v558_v9 = vperm.slane %v550_v51, %v14768_v61  ;;  %v14808_v47 = vperm.slane %v548_v5, %v14768_v61 }
 0x1dd   : > { %v14787_v54 = vpop.trf.xlu0  ;;  %v460_v55 = vsel %vm435_vm0, %v459_v50, %v442_v62  ;;  %v561_v62 = vrot.slane %v14620_v13, 4 }
 0x1de   : > { %2291 = vxpose.xlu1.b32.start.end [1/1] (short) (narrow) %v470_v7, 8  ;;  %v466_v58 = vperm.slane %v460_v55, %v14780_v1  ;;  %v14805_v55 = vperm.slane %v450_v53, %v14768_v61  ;;  %v485_v46 = vrot.slane %v470_v7, 4  ;;  %v585_v51 = vrot.slane %v558_v9, 4 }
 0x1e0   : > { %2227 = vxpose.xlu2.b32.start.end [1/1] (short) (narrow) %v466_v58, 8  ;;  %v483_v3 = vrot.slane %v466_v58, 4  ;;  %v438_v58 = vsel %vm435_vm0, %v14665_v38, %v437_v48  ;;  %v471_v53 = vrot.slane %v14805_v55, 4  ;;  %v486_v5 = vsel %vm435_vm0, 0.0, %v485_v46 }
 0x1e2   : > { %v484_v50 = vsel %vm435_vm0, 0.0, %v483_v3  ;;  %v573_v3 = vrot.slane %v14808_v47, 4 }
 0x1e3   : > { %2259 = vxpose.xlu0.b32.start.end [1/1] (short) (narrow) %v484_v50, 8 }
 0x1e5   : > { %v388_v34 = vpop.trf.xlu0 }
 0x1e6   : > { %v559_v10 = vrot.slane %v388_v34, 4  ;;  %v562_v45 = vsel %vm435_vm0, %v388_v34, %v561_v62  ;;  %v446_v62 = vperm.slane %v438_v58, %v14768_v61 }
 0x1e7   : > { %v570_v59 = vperm.slane %v562_v45, %v14768_v61 }
 0x1e8   : > { %v560_v7 = vsel %vm435_vm0, %v559_v10, %v14620_v13  ;;  %2323 = vxpose.xlu2.b32.start.end [1/1] (short) (narrow) %v486_v5, 8  ;;  %v603_v13 = vrot.slane %v14687_v49, 4  ;;  %v472_v10 = vsel %vm435_vm0, %v471_v53, %v446_v62 }
 0x1e9   : > { %v14822_v50 = vperm.slane %v560_v7, %v14768_v61  ;;  %v583_v44 = vrot.slane %v570_v59, 4  ;;  %v586_v34 = vsel %vm435_vm0, %v570_v59, %v585_v51  ;;  %v617_v7 = vrot.slane %v14624_v15, 4  ;;  %v14839_v51 = vpop.trf.xlu1 }
 0x1ea   : > { %v594_v59 = vperm.slane %v586_v34, %v14780_v1  ;;  %19274 = vst [vmem:[#allocation59_spill] sm:$0xff] %v14839_v51  ;;  %v478_v5 = vperm.slane %v472_v10, %v14780_v1  ;;  %v604_v53 = vsel %vm435_vm0, %v603_v13, %v14626_v16  ;;  %v605_v34 = vrot.slane %v14626_v16, 4 }
 0x1eb   : > { %v584_v38 = vsel %vm435_vm0, %v583_v44, %v558_v9  ;;  %v574_v48 = vsel %vm435_vm0, %v14822_v50, %v573_v3 }
 0x1ec   : > { %v14831_v46 = vperm.slane %v584_v38, %v14780_v1  ;;  %v14835_v45 = vperm.slane %v574_v48, %v14780_v1  ;;  %v14847_v38 = vpop.trf.xlu2  ;;  %v601_v51 = vrot.slane %v594_v59, 4  ;;  %v487_v13 = vrot.slane %v478_v5, 4 }
 0x1ed   : > { %v389_v58 = vpop.trf.xlu0  ;;  %19275 = vst [vmem:[#allocation60_spill] sm:$0xff] %v14847_v38  ;;  %v606_v38 = vsel %vm435_vm0, %v14687_v49, %v605_v34  ;;  %v473_v34 = vrot.slane %v446_v62, 4 }
 0x1ee   : > { %v615_v44 = vrot.slane %v389_v58, 4  ;;  %2867 = vxpose.xlu1.b32.start.end [1/1] (short) (narrow) %v14831_v46, 8  ;;  %v618_v9 = vsel %vm435_vm0, %v389_v58, %v617_v7  ;;  %v597_v3 = vrot.slane %v14835_v45, 4  ;;  %v610_v58 = vperm.slane %v604_v53, %v14768_v61 }
 0x1ef   : > { %v626_v7 = vperm.slane %v618_v9, %v14768_v61  ;;  %v614_v9 = vperm.slane %v606_v38, %v14768_v61  ;;  %v474_v38 = vsel %vm435_vm0, %v14805_v55, %v473_v34 }
 0x1f0   : > { %v616_v48 = vsel %vm435_vm0, %v615_v44, %v14624_v15  ;;  %2355 = vxpose.xlu2.b32.start.end [1/1] (short) (narrow) %v478_v5, 8  ;;  %v598_v10 = vsel %vm435_vm0, 0.0, %v597_v3  ;;  %v602_v15 = vsel %vm435_vm0, 0.0, %v601_v51  ;;  %v629_v16 = vrot.slane %v610_v58, 4 }
 0x1f1   : > { %v622_v14 = vperm.slane %v616_v48, %v14768_v61  ;;  %2835 = vxpose.xlu0.b32.start.end [1/1] (short) (narrow) %v598_v10, 8  ;;  %v639_v44 = vrot.slane %v626_v7, 4  ;;  %v14861_v35 = vpop.trf.xlu1  ;;  %v488_v3 = vsel %vm435_vm0, 0.0, %v487_v13 }
 0x1f2   : > { %19276 = vst [vmem:[#allocation61_spill] sm:$0xff] %v14861_v35 }
 0x1f3   : > { %v627_v56 = vrot.slane %v622_v14, 4  ;;  %v630_v5 = vsel %vm435_vm0, %v622_v14, %v629_v16  ;;  %v640_v10 = vsel %vm435_vm0, %v639_v44, %v614_v9  ;;  %v503_v14 = vrot.slane %v14787_v54, 4 }
 0x1f4   : > { %v14865_v53 = vpop.trf.xlu2  ;;  %v646_v13 = vperm.slane %v640_v10, %v14780_v1 }
 0x1f5   : > { %v390_v48 = vpop.trf.xlu0  ;;  %v628_v42 = vsel %vm435_vm0, %v627_v56, %v610_v58  ;;  %19277 = vst [vmem:[#allocation62_spill] sm:$0xff] %v14865_v53  ;;  %v14872_v56 = vperm.slane %v630_v5, %v14780_v1  ;;  %v659_v58 = vrot.slane %v14693_v52, 4  ;;  %v504_v55 = vsel %vm435_vm0, %v503_v14, %v14616_v11 }
 0x1f6   : > { %2963 = vxpose.xlu1.b32.start.end [1/1] (short) (narrow) %v602_v15, 8  ;;  %v671_v49 = vrot.slane %v390_v48, 4  ;;  %v14868_v51 = vperm.slane %v628_v42, %v14780_v1  ;;  %v655_v16 = vrot.slane %v646_v13, 4  ;;  %v641_v53 = vrot.slane %v614_v9, 4 }
 0x1f7   : > { %v660_v15 = vsel %vm435_vm0, %v659_v58, %v14630_v18  ;;  %v510_v58 = vperm.slane %v504_v55, %v14768_v61  ;;  %v673_v9 = vrot.slane %v14628_v17, 4 }
 0x1f8   : > { %2387 = vxpose.xlu2.b32.start.end [1/1] (short) (narrow) %v488_v3, 8  ;;  %v672_v62 = vsel %vm435_vm0, %v671_v49, %v14628_v17  ;;  %v651_v42 = vrot.slane %v14868_v51, 4  ;;  %v491_v49 = vrot.slane %v14675_v43, 4  ;;  %v666_v34 = vperm.slane %v660_v15, %v14768_v61 }
 0x1f9   : > { %2931 = vxpose.xlu0.b32.start.end [1/1] (short) (narrow) %v594_v59, 8  ;;  %v482_v59 = vperm.slane %v474_v38, %v14780_v1  ;;  %v678_v44 = vperm.slane %v672_v62, %v14768_v61  ;;  %v14889_v3 = vpop.trf.xlu1  ;;  %v656_v14 = vsel %vm435_vm0, 0.0, %v655_v16  ;;  %v515_v15 = vrot.slane %v510_v58, 4 }
 0x1fa   : > { %19278 = vst [vmem:[#allocation63_spill] sm:$0xff] %v14889_v3  ;;  %v652_v5 = vsel %vm435_vm0, 0.0, %v651_v42  ;;  %v492_v3 = vsel %vm435_vm0, %v491_v49, %v14618_v12  ;;  %v642_v42 = vsel %vm435_vm0, %v626_v7, %v641_v53  ;;  %v685_v35 = vrot.slane %v666_v34, 4 }
 0x1fb   : > { %v489_v38 = vrot.slane %v482_v59, 4  ;;  %v683_v62 = vrot.slane %v678_v44, 4  ;;  %v498_v55 = vperm.slane %v492_v3, %v14768_v61  ;;  %v14906_v16 = vperm.slane %v642_v42, %v14780_v1 }
 0x1fc   : > { %v14894_v10 = vpop.trf.xlu2  ;;  %v661_v7 = vrot.slane %v14630_v18, 4 }
 0x1fd   : > { %19279 = vst [vmem:[#allocation64_spill] sm:$0xff] %v14894_v10  ;;  %v391_v41 = vpop.trf.xlu0  ;;  %v516_v3 = vsel %vm435_vm0, %v515_v15, %v498_v55 }
 0x1fe   : > { %3059 = vxpose.xlu1.b32.start.end [1/1] (short) (narrow) %v14872_v56, 8  ;;  %v727_v49 = vrot.slane %v391_v41, 4 }
 0x200   : > { %2419 = vxpose.xlu2.b32.start.end [1/1] (short) (narrow) %v482_v59, 8  ;;  %v684_v59 = vsel %vm435_vm0, %v683_v62, %v666_v34  ;;  %v728_v18 = vsel %vm435_vm0, %v727_v49, %v14632_v19  ;;  %v715_v62 = vrot.slane %v14703_v57, 4 }
 0x201   : > { %3027 = vxpose.xlu0.b32.start.end [1/1] (short) (narrow) %v652_v5, 8  ;;  %v490_v5 = vsel %vm435_vm0, 0.0, %v489_v38  ;;  %v14910_v53 = vpop.trf.xlu1  ;;  %v674_v38 = vsel %vm435_vm0, %v390_v48, %v673_v9  ;;  %v522_v48 = vperm.slane %v516_v3, %v14780_v1  ;;  %v734_v15 = vperm.slane %v728_v18, %v14768_v61 }
 0x202   : > { %v716_v49 = vsel %vm435_vm0, %v715_v62, %v14634_v20 }
 0x203   : > { %v722_v18 = vperm.slane %v716_v49, %v14768_v61  ;;  %v717_v49 = vrot.slane %v14634_v20, 4 }
 0x204   : > { %v14918_v34 = vpop.trf.xlu2 }
 0x205   : > { %19280 = vst [vmem:[#allocation65_spill] sm:$0xff] %v14918_v34 }
 0x206   : > { %3155 = vxpose.xlu1.b32.start.end [1/1] (short) (narrow) %v656_v14, 8  ;;  %v686_v14 = vsel %vm435_vm0, %v678_v44, %v685_v35  ;;  %v657_v35 = vrot.slane %v14906_v16, 4  ;;  %v662_v44 = vsel %vm435_vm0, %v14693_v52, %v661_v7  ;;  %v739_v52 = vrot.slane %v734_v15, 4 }
 0x207   : > { %v694_v17 = vperm.slane %v686_v14, %v14780_v1  ;;  %v670_v9 = vperm.slane %v662_v44, %v14768_v61 }
 0x208   : > { %2451 = vxpose.xlu2.b32.start.end [1/1] (short) (narrow) %v490_v5, 8  ;;  %v14914_v5 = vperm.slane %v684_v59, %v14780_v1  ;;  %v658_v59 = vsel %vm435_vm0, 0.0, %v657_v35 }
 0x209   : > { %3123 = vxpose.xlu0.b32.start.end [1/1] (short) (narrow) %v646_v13, 8  ;;  %v682_v13 = vperm.slane %v674_v38, %v14768_v61  ;;  %v709_v42 = vrot.slane %v694_v17, 4  ;;  %v539_v38 = vrot.slane %v522_v48, 4  ;;  %v14935_v34 = vpop.trf.xlu1  ;;  %v697_v7 = vrot.slane %v670_v9, 4 }
 0x20b   : > { %v695_v14 = vrot.slane %v682_v13, 4  ;;  %v710_v3 = vsel %vm435_vm0, 0.0, %v709_v42  ;;  %v540_v44 = vsel %vm435_vm0, 0.0, %v539_v38  ;;  %v740_v42 = vsel %vm435_vm0, %v739_v52, %v722_v18 }
 0x20c   : > { %v14939_v35 = vpop.trf.xlu2  ;;  %v746_v38 = vperm.slane %v740_v42, %v14780_v1  ;;  %v718_v52 = vsel %vm435_vm0, %v14703_v57, %v717_v49  ;;  %v741_v57 = vrot.slane %v722_v18, 4 }
 0x20d   : > { %v696_v10 = vsel %vm435_vm0, %v695_v14, %v670_v9 }
 0x20e   : > { %3251 = vxpose.xlu1.b32.start.end [1/1] (short) (narrow) %v14914_v5, 8  ;;  %v14944_v62 = vperm.slane %v696_v10, %v14780_v1 }
 0x210   : > { %2483 = vxpose.xlu2.b32.start.end [1/1] (short) (narrow) %v522_v48, 8  ;;  %v698_v48 = vsel %vm435_vm0, %v682_v13, %v697_v7  ;;  %v711_v10 = vrot.slane %v14944_v62, 4 }
 0x211   : > { %3219 = vxpose.xlu0.b32.start.end [1/1] (short) (narrow) %v658_v59, 8  ;;  %v517_v59 = vrot.slane %v498_v55, 4  ;;  %v14949_v9 = vperm.slane %v698_v48, %v14780_v1  ;;  %v505_v55 = vrot.slane %v14616_v11, 4  ;;  %v493_v11 = vrot.slane %v14618_v12, 4 }
 0x212   : > { %v726_v48 = vperm.slane %v718_v52, %v14768_v61 }
 0x213   : > { %v518_v14 = vsel %vm435_vm0, %v510_v58, %v517_v59  ;;  %v506_v20 = vsel %vm435_vm0, %v14787_v54, %v505_v55  ;;  %v494_v49 = vsel %vm435_vm0, %v14675_v43, %v493_v11  ;;  %v771_v43 = vrot.slane %v14709_v60, 4 }
 0x214   : > { %v14966_v7 = vpop.trf.xlu2  ;;  %v514_v59 = vperm.slane %v506_v20, %v14768_v61  ;;  %v502_v18 = vperm.slane %v494_v49, %v14768_v61 }
 0x215   : > { %19281 = vst [vmem:[#allocation66_spill] sm:$0xff] %v14966_v7 }
 0x216   : > { %3347 = vxpose.xlu1.b32.start.end [1/1] (short) (narrow) %v710_v3, 8  ;;  %v729_v3 = vrot.slane %v14632_v19, 4  ;;  %v14959_v19 = vpop.trf.xlu1  ;;  %v527_v55 = vrot.slane %v514_v59, 4  ;;  %v529_v7 = vrot.slane %v502_v18, 4 }
 0x218   : > { %2515 = vxpose.xlu2.b32.start.end [1/1] (short) (narrow) %v540_v44, 8  ;;  %v730_v13 = vsel %vm435_vm0, %v391_v41, %v729_v3  ;;  %v763_v41 = vrot.slane %v746_v38, 4  ;;  %v712_v44 = vsel %vm435_vm0, 0.0, %v711_v10  ;;  %v753_v10 = vrot.slane %v726_v48, 4 }
 0x219   : > { %3315 = vxpose.xlu0.b32.start.end [1/1] (short) (narrow) %v694_v17, 8  ;;  %v526_v17 = vperm.slane %v518_v14, %v14780_v1  ;;  %v738_v58 = vperm.slane %v730_v13, %v14768_v61  ;;  %v392_v14 = vpop.trf.xlu0  ;;  %v742_v13 = vsel %vm435_vm0, %v734_v15, %v741_v57  ;;  %v785_v57 = vrot.slane %v14636_v21, 4 }
 0x21a   : > { %v764_v54 = vsel %vm435_vm0, 0.0, %v763_v41  ;;  %v783_v12 = vrot.slane %v392_v14, 4  ;;  %v14982_v20 = vperm.slane %v742_v13, %v14780_v1  ;;  %v772_v13 = vsel %vm435_vm0, %v771_v43, %v14638_v22 }
 0x21b   : > { %v541_v42 = vrot.slane %v526_v17, 4  ;;  %v751_v3 = vrot.slane %v738_v58, 4  ;;  %v754_v41 = vsel %vm435_vm0, %v738_v58, %v753_v10  ;;  %v786_v58 = vsel %vm435_vm0, %v392_v14, %v785_v57 }
 0x21c   : > { %v14986_v15 = vpop.trf.xlu2  ;;  %v784_v11 = vsel %vm435_vm0, %v783_v12, %v14636_v21  ;;  %v773_v10 = vrot.slane %v14638_v22, 4  ;;  %v794_v21 = vperm.slane %v786_v58, %v14768_v61 }
 0x21d   : > { %v752_v52 = vsel %vm435_vm0, %v751_v3, %v726_v48  ;;  %19282 = vst [vmem:[#allocation67_spill] sm:$0xff] %v14986_v15  ;;  %v528_v48 = vsel %vm435_vm0, %v527_v55, %v502_v18  ;;  %v762_v3 = vperm.slane %v754_v41, %v14780_v1 }
 0x21e   : > { %3443 = vxpose.xlu1.b32.start.end [1/1] (short) (narrow) %v14949_v9, 8  ;;  %v534_v49 = vperm.slane %v528_v48, %v14780_v1  ;;  %v807_v22 = vrot.slane %v794_v21, 4 }
 0x21f   : > { %v769_v55 = vrot.slane %v762_v3, 4 }
 0x220   : > { %2547 = vxpose.xlu2.b32.start.end [1/1] (short) (narrow) %v526_v17, 8  ;;  %v14978_v17 = vpop.trf.xlu1  ;;  %v543_v41 = vrot.slane %v534_v49, 4 }
 0x221   : > { %3411 = vxpose.xlu0.b32.start.end [1/1] (short) (narrow) %v712_v44, 8  ;;  %v542_v44 = vsel %vm435_vm0, 0.0, %v541_v42  ;;  %v14991_v42 = vperm.slane %v752_v52, %v14780_v1  ;;  %v770_v43 = vsel %vm435_vm0, 0.0, %v769_v55  ;;  %v393_v58 = vpop.trf.xlu0 }
 0x222   : > { %v839_v15 = vrot.slane %v393_v58, 4 }
 0x224   : > { %v15012_v48 = vpop.trf.xlu2 }
 0x225   : > { %19283 = vst [vmem:[#allocation68_spill] sm:$0xff] %v15012_v48 }
 0x226   : > { %3539 = vxpose.xlu1.b32.start.end [1/1] (short) (narrow) %v764_v54, 8  ;;  %v790_v54 = vperm.slane %v784_v11, %v14768_v61  ;;  %v774_v11 = vsel %vm435_vm0, %v14709_v60, %v773_v10 }
 0x228   : > { %2579 = vxpose.xlu2.b32.start.end [1/1] (short) (narrow) %v542_v44, 8  ;;  %v778_v44 = vperm.slane %v772_v13, %v14768_v61  ;;  %v795_v52 = vrot.slane %v790_v54, 4  ;;  %v15007_v14 = vpop.trf.xlu1  ;;  %v782_v13 = vperm.slane %v774_v11, %v14768_v61 }
 0x229   : > { %3507 = vxpose.xlu0.b32.start.end [1/1] (short) (narrow) %v746_v38, 8  ;;  %v765_v38 = vrot.slane %v14982_v20, 4  ;;  %v394_v48 = vpop.trf.xlu0 }
 0x22a   : > { %v797_v57 = vrot.slane %v778_v44, 4  ;;  %v808_v10 = vsel %vm435_vm0, %v807_v22, %v782_v13 }
 0x22b   : > { %v766_v12 = vsel %vm435_vm0, 0.0, %v765_v38  ;;  %v796_v38 = vsel %vm435_vm0, %v795_v52, %v778_v44  ;;  %v530_v44 = vsel %vm435_vm0, %v514_v59, %v529_v7  ;;  %v827_v52 = vrot.slane %v14715_v63, 4 }
 0x22c   : > { %v15019_v60 = vperm.slane %v796_v38, %v14780_v1 }
 0x22d   : > { %v828_v7 = vsel %vm435_vm0, %v827_v52, %v14642_v24 }
 0x22e   : > { %3635 = vxpose.xlu1.b32.start.end [1/1] (short) (narrow) %v14991_v42, 8  ;;  %v819_v18 = vrot.slane %v15019_v60, 4 }
 0x230   : > { %2611 = vxpose.xlu2.b32.start.end [1/1] (short) (narrow) %v534_v49, 8  ;;  %v798_v49 = vsel %vm435_vm0, %v790_v54, %v797_v57  ;;  %v840_v54 = vsel %vm435_vm0, %v839_v15, %v14640_v23  ;;  %v15030_v11 = vpop.trf.xlu1  ;;  %v820_v57 = vsel %vm435_vm0, 0.0, %v819_v18  ;;  %v834_v15 = vperm.slane %v828_v7, %v14768_v61 }
 0x231   : > { %3603 = vxpose.xlu0.b32.start.end [1/1] (short) (narrow) %v766_v12, 8  ;;  %v544_v12 = vsel %vm435_vm0, 0.0, %v543_v41  ;;  %v15023_v55 = vperm.slane %v798_v49, %v14780_v1  ;;  %v814_v41 = vperm.slane %v808_v10, %v14780_v1  ;;  %19284 = vst [vmem:[#allocation69_spill] sm:$0xff] %v15030_v11  ;;  %v846_v59 = vperm.slane %v840_v54, %v14768_v61 }
 0x232   : > { %v571_v11 = vrot.slane %v14822_v50, 4 }
 0x233   : > { %v823_v22 = vrot.slane %v814_v41, 4  ;;  %v851_v10 = vrot.slane %v846_v59, 4 }
 0x235   : > { %v824_v49 = vsel %vm435_vm0, 0.0, %v823_v22  ;;  %v852_v18 = vsel %vm435_vm0, %v851_v10, %v834_v15  ;;  %v895_v22 = vrot.slane %v394_v48, 4 }
 0x236   : > { %3731 = vxpose.xlu1.b32.start.end [1/1] (short) (narrow) %v770_v43, 8  ;;  %v15035_v43 = vpop.trf.xlu2  ;;  %v15059_v50 = vperm.slane %v852_v18, %v14780_v1 }
 0x237   : > { %19285 = vst [vmem:[#allocation70_spill] sm:$0xff] %v15035_v43  ;;  %v853_v43 = vrot.slane %v834_v15, 4  ;;  %v572_v15 = vsel %vm435_vm0, %v571_v11, %v14808_v47 }
 0x238   : > { %2643 = vxpose.xlu2.b32.start.end [1/1] (short) (narrow) %v544_v12, 8  ;;  %v809_v12 = vrot.slane %v782_v13, 4  ;;  %v15044_v52 = vpop.trf.xlu1 }
 0x239   : > { %3699 = vxpose.xlu0.b32.start.end [1/1] (short) (narrow) %v762_v3, 8  ;;  %v538_v3 = vperm.slane %v530_v44, %v14780_v1 }
 0x23a   : > { %v810_v44 = vsel %vm435_vm0, %v794_v21, %v809_v12  ;;  %v854_v21 = vsel %vm435_vm0, %v846_v59, %v853_v43  ;;  %v883_v59 = vrot.slane %v14721_v2, 4 }
 0x23b   : > { %v545_v38 = vrot.slane %v538_v3, 4  ;;  %v15053_v7 = vperm.slane %v810_v44, %v14780_v1 }
 0x23d   : > { %v546_v54 = vsel %vm435_vm0, 0.0, %v545_v38  ;;  %v825_v12 = vrot.slane %v15053_v7, 4 }
 0x23e   : > { %3827 = vxpose.xlu1.b32.start.end [1/1] (short) (narrow) %v15023_v55, 8  ;;  %v15050_v13 = vpop.trf.xlu2 }
 0x23f   : > { %v826_v10 = vsel %vm435_vm0, 0.0, %v825_v12 }
 0x240   : > { %2675 = vxpose.xlu2.b32.start.end [1/1] (short) (narrow) %v538_v3, 8  ;;  %v841_v3 = vrot.slane %v14640_v23, 4  ;;  %v862_v23 = vperm.slane %v854_v21, %v14780_v1 }
 0x241   : > { %3795 = vxpose.xlu0.b32.start.end [1/1] (short) (narrow) %v820_v57, 8  ;;  %v829_v57 = vrot.slane %v14642_v24, 4  ;;  %v578_v24 = vperm.slane %v572_v15, %v14780_v1 }
 0x242   : > { %v842_v38 = vsel %vm435_vm0, %v393_v58, %v841_v3  ;;  %v877_v47 = vrot.slane %v862_v23, 4 }
 0x243   : > { %v850_v43 = vperm.slane %v842_v38, %v14768_v61  ;;  %v830_v58 = vsel %vm435_vm0, %v14715_v63, %v829_v57  ;;  %v595_v3 = vrot.slane %v578_v24, 4  ;;  %v884_v63 = vsel %vm435_vm0, %v883_v59, %v14646_v26 }
 0x244   : > { %v838_v44 = vperm.slane %v830_v58, %v14768_v61  ;;  %v878_v21 = vsel %vm435_vm0, 0.0, %v877_v47  ;;  %v890_v15 = vperm.slane %v884_v63, %v14768_v61  ;;  %v897_v59 = vrot.slane %v14644_v25, 4 }
 0x245   : > { %v596_v12 = vsel %vm435_vm0, 0.0, %v595_v3 }
 0x246   : > { %3923 = vxpose.xlu1.b32.start.end [1/1] (short) (narrow) %v824_v49, 8  ;;  %v15074_v49 = vpop.trf.xlu1  ;;  %v15078_v18 = vpop.trf.xlu2  ;;  %v865_v57 = vrot.slane %v838_v44, 4 }
 0x248   : > { %2707 = vxpose.xlu2.b32.start.end [1/1] (short) (narrow) %v546_v54, 8  ;;  %v863_v54 = vrot.slane %v850_v43, 4 }
 0x249   : > { %3891 = vxpose.xlu0.b32.start.end [1/1] (short) (narrow) %v814_v41, 8  ;;  %v896_v41 = vsel %vm435_vm0, %v895_v22, %v14644_v25 }
 0x24a   : > { %v902_v11 = vperm.slane %v896_v41, %v14768_v61  ;;  %v864_v38 = vsel %vm435_vm0, %v863_v54, %v838_v44  ;;  %v866_v41 = vsel %vm435_vm0, %v850_v43, %v865_v57  ;;  %v885_v44 = vrot.slane %v14646_v26, 4 }
 0x24b   : > { %v15088_v58 = vperm.slane %v864_v38, %v14780_v1  ;;  %v898_v43 = vsel %vm435_vm0, %v394_v48, %v897_v59  ;;  %v599_v48 = vrot.slane %v14831_v46, 4  ;;  %v909_v38 = vrot.slane %v890_v15, 4 }
 0x24c   : > { %v907_v22 = vrot.slane %v902_v11, 4  ;;  %v886_v25 = vsel %vm435_vm0, %v14721_v2, %v885_v44 }
 0x24d   : > { %v879_v63 = vrot.slane %v15088_v58, 4  ;;  %v894_v57 = vperm.slane %v886_v25, %v14768_v61  ;;  %v910_v2 = vsel %vm435_vm0, %v902_v11, %v909_v38 }
 0x24e   : > { %4019 = vxpose.xlu1.b32.start.end [1/1] (short) (narrow) %v15059_v50, 8  ;;  %v15092_v47 = vpop.trf.xlu1  ;;  %v15099_v3 = vpop.trf.xlu2 }
 0x24f   : > { %v880_v26 = vsel %vm435_vm0, 0.0, %v879_v63  ;;  %v921_v59 = vrot.slane %v894_v57, 4 }
 0x250   : > { %2739 = vxpose.xlu2.b32.start.end [1/1] (short) (narrow) %v578_v24, 8  ;;  %v908_v24 = vsel %vm435_vm0, %v907_v22, %v890_v15  ;;  %v15122_v15 = vperm.slane %v910_v2, %v14780_v1  ;;  %v941_v2 = vrot.slane %v14650_v28, 4 }
 0x251   : > { %3987 = vxpose.xlu0.b32.start.end [1/1] (short) (narrow) %v826_v10, 8  ;;  %v15095_v10 = vperm.slane %v866_v41, %v14780_v1  ;;  %v914_v54 = vperm.slane %v908_v24, %v14780_v1 }
 0x253   : > { %v931_v22 = vrot.slane %v914_v54, 4 }
 0x255   : > { %v932_v41 = vsel %vm435_vm0, 0.0, %v931_v22  ;;  %v939_v22 = vrot.slane %v14729_v6, 4 }
 0x256   : > { %4115 = vxpose.xlu1.b32.start.end [1/1] (short) (narrow) %v878_v21, 8  ;;  %v906_v21 = vperm.slane %v898_v43, %v14768_v61  ;;  %v15112_v24 = vpop.trf.xlu1  ;;  %v15115_v44 = vpop.trf.xlu2  ;;  %v600_v43 = vsel %vm435_vm0, 0.0, %v599_v48  ;;  %v953_v48 = vrot.slane %v14648_v27, 4 }
 0x257   : > { %19286 = vst [vmem:[#allocation71_spill] sm:$0xff] %v15115_v44 }
 0x258   : > { %2771 = vxpose.xlu2.b32.start.end [1/1] (short) (narrow) %v596_v12, 8  ;;  %v919_v12 = vrot.slane %v906_v21, 4  ;;  %v922_v25 = vsel %vm435_vm0, %v906_v21, %v921_v59  ;;  %v940_v21 = vsel %vm435_vm0, %v939_v22, %v14650_v28  ;;  %v653_v22 = vrot.slane %v14872_v56, 4 }
 0x259   : > { %4083 = vxpose.xlu0.b32.start.end [1/1] (short) (narrow) %v862_v23, 8  ;;  %v395_v23 = vpop.trf.xlu0  ;;  %v930_v38 = vperm.slane %v922_v25, %v14780_v1  ;;  %v942_v28 = vsel %vm435_vm0, %v14729_v6, %v941_v2 }
 0x25a   : > { %v920_v46 = vsel %vm435_vm0, %v919_v12, %v894_v57  ;;  %v933_v57 = vrot.slane %v15122_v15, 4  ;;  %v954_v12 = vsel %vm435_vm0, %v395_v23, %v953_v48 }
 0x25e   : > { %4211 = vxpose.xlu1.b32.start.end [1/1] (short) (narrow) %v15095_v10, 8  ;;  %v15143_v59 = vpop.trf.xlu2 }
 0x25f   : > { %19287 = vst [vmem:[#allocation72_spill] sm:$0xff] %v15143_v59 }
 0x260   : > { %2803 = vxpose.xlu2.b32.start.end [1/1] (short) (narrow) %v14835_v45, 8  ;;  %v951_v45 = vrot.slane %v395_v23, 4  ;;  %v946_v23 = vperm.slane %v940_v21, %v14768_v61  ;;  %v654_v21 = vsel %vm435_vm0, 0.0, %v653_v22 }
 0x261   : > { %4179 = vxpose.xlu0.b32.start.end [1/1] (short) (narrow) %v880_v26, 8  ;;  %v15118_v63 = vpop.trf.xlu0  ;;  %v15129_v26 = vperm.slane %v920_v46, %v14780_v1 }
 0x262   : > { %v952_v11 = vsel %vm435_vm0, %v951_v45, %v14648_v27  ;;  %v937_v27 = vrot.slane %v930_v38, 4  ;;  %v962_v45 = vperm.slane %v954_v12, %v14768_v61  ;;  %v965_v48 = vrot.slane %v946_v23, 4 }
 0x266   : > { %4307 = vxpose.xlu1.b32.start.end [1/1] (short) (narrow) %v932_v41, 8  ;;  %v15139_v41 = vpop.trf.xlu1 }
 0x268   : > { %2899 = vxpose.xlu2.b32.start.end [1/1] (short) (narrow) %v600_v43, 8  ;;  %v934_v43 = vsel %vm435_vm0, 0.0, %v933_v57  ;;  %v950_v57 = vperm.slane %v942_v28, %v14768_v61 }
 0x269   : > { %4275 = vxpose.xlu0.b32.start.end [1/1] (short) (narrow) %v914_v54, 8  ;;  %v958_v54 = vperm.slane %v952_v11, %v14768_v61  ;;  %v15148_v25 = vpop.trf.xlu0  ;;  %v975_v11 = vrot.slane %v962_v45, 4 }
 0x26b   : > { %v963_v46 = vrot.slane %v958_v54, 4  ;;  %v966_v59 = vsel %vm435_vm0, %v958_v54, %v965_v48  ;;  %v976_v2 = vsel %vm435_vm0, %v975_v11, %v950_v57 }
 0x26c   : > { %v982_v54 = vperm.slane %v976_v2, %v14780_v1  ;;  %v977_v2 = vrot.slane %v950_v57, 4 }
 0x26d   : > { %v964_v12 = vsel %vm435_vm0, %v963_v46, %v946_v23  ;;  %v995_v23 = vrot.slane %v14735_v31, 4 }
 0x26e   : > { %4403 = vxpose.xlu1.b32.start.end [1/1] (short) (narrow) %v15129_v26, 8  ;;  %v15159_v56 = vpop.trf.xlu1  ;;  %v15164_v6 = vperm.slane %v964_v12, %v14780_v1 }
 0x26f   : > { %19288 = vst [vmem:[#allocation73_spill] sm:$0xff] %v15159_v56 }
 0x270   : > { %2995 = vxpose.xlu2.b32.start.end [1/1] (short) (narrow) %v14868_v51, 8  ;;  %v938_v51 = vsel %vm435_vm0, 0.0, %v937_v27  ;;  %v15168_v27 = vperm.slane %v966_v59, %v14780_v1  ;;  %v987_v28 = vrot.slane %v15164_v6, 4  ;;  %v991_v59 = vrot.slane %v982_v54, 4 }
 0x271   : > { %4371 = vxpose.xlu0.b32.start.end [1/1] (short) (narrow) %v934_v43, 8  ;;  %v1007_v43 = vrot.slane %v15118_v63, 4  ;;  %v15171_v46 = vpop.trf.xlu0 }
 0x272   : > { %v988_v48 = vsel %vm435_vm0, 0.0, %v987_v28 }
 0x273   : > { %v1008_v22 = vsel %vm435_vm0, %v1007_v43, %v14652_v29  ;;  %v707_v43 = vrot.slane %v14914_v5, 4 }
 0x276   : > { %4499 = vxpose.xlu1.b32.start.end [1/1] (short) (narrow) %v938_v51, 8  ;;  %v996_v51 = vsel %vm435_vm0, %v995_v23, %v14654_v30 }
 0x277   : > { %v1002_v12 = vperm.slane %v996_v51, %v14768_v61  ;;  %v1009_v51 = vrot.slane %v14652_v29, 4 }
 0x278   : > { %3091 = vxpose.xlu2.b32.start.end [1/1] (short) (narrow) %v654_v21, 8  ;;  %v15186_v21 = vpop.trf.xlu1 }
 0x279   : > { %v15161_v44 = vpop.trf.xlu2  ;;  %4467 = vxpose.xlu0.b32.start.end [1/1] (short) (narrow) %v930_v38, 8  ;;  %v1014_v38 = vperm.slane %v1008_v22, %v14768_v61  ;;  %v15190_v22 = vpop.trf.xlu0  ;;  %v1021_v56 = vrot.slane %v1002_v12, 4 }
 0x27a   : > { %19289 = vst [vmem:[#allocation74_spill] sm:$0xff] %v15161_v44  ;;  %v992_v44 = vsel %vm435_vm0, 0.0, %v991_v59  ;;  %v1010_v59 = vsel %vm435_vm0, %v15118_v63, %v1009_v51  ;;  %v1051_v63 = vrot.slane %v14741_v0, 4 }
 0x27b   : > { %v1019_v23 = vrot.slane %v1014_v38, 4  ;;  %v1022_v57 = vsel %vm435_vm0, %v1014_v38, %v1021_v56  ;;  %v1018_v56 = vperm.slane %v1010_v59, %v14768_v61 }
 0x27c   : > { %v1030_v29 = vperm.slane %v1022_v57, %v14780_v1 }
 0x27d   : > { %v1020_v28 = vsel %vm435_vm0, %v1019_v23, %v1002_v12  ;;  %v1031_v57 = vrot.slane %v1018_v56, 4 }
 0x27e   : > { %4595 = vxpose.xlu1.b32.start.end [1/1] (short) (narrow) %v15168_v27, 8 }
 0x280   : > { %3187 = vxpose.xlu2.b32.start.end [1/1] (short) (narrow) %v14906_v16, 8  ;;  %v978_v16 = vsel %vm435_vm0, %v962_v45, %v977_v2  ;;  %v997_v45 = vrot.slane %v14654_v30, 4  ;;  %v1045_v2 = vrot.slane %v1030_v29, 4 }
 0x281   : > { %v15182_v11 = vpop.trf.xlu2  ;;  %4563 = vxpose.xlu0.b32.start.end [1/1] (short) (narrow) %v988_v48, 8  ;;  %v15199_v5 = vperm.slane %v978_v16, %v14780_v1  ;;  %v15220_v38 = vpop.trf.xlu0 }
 0x282   : > { %19290 = vst [vmem:[#allocation75_spill] sm:$0xff] %v15182_v11  ;;  %v708_v11 = vsel %vm435_vm0, 0.0, %v707_v43  ;;  %v15209_v12 = vpop.trf.xlu1  ;;  %v998_v30 = vsel %vm435_vm0, %v14735_v31, %v997_v45  ;;  %v1052_v45 = vsel %vm435_vm0, %v1051_v63, %v14659_v33 }
 0x283   : > { %19291 = vst [vmem:[#allocation76_spill] sm:$0xff] %v15209_v12  ;;  %v993_v43 = vrot.slane %v15199_v5, 4  ;;  %v1006_v51 = vperm.slane %v998_v30, %v14768_v61 }
 0x285   : > { %v1032_v12 = vsel %vm435_vm0, %v1031_v57, %v1006_v51  ;;  %v1053_v57 = vrot.slane %v14659_v33, 4 }
 0x286   : > { %4691 = vxpose.xlu1.b32.start.end [1/1] (short) (narrow) %v992_v44, 8  ;;  %v1063_v44 = vrot.slane %v15148_v25, 4 }
 0x288   : > { %3283 = vxpose.xlu2.b32.start.end [1/1] (short) (narrow) %v708_v11, 8  ;;  %v15207_v11 = vperm.slane %v1020_v28, %v14780_v1  ;;  %v994_v28 = vsel %vm435_vm0, 0.0, %v993_v43  ;;  %v1058_v43 = vperm.slane %v1052_v45, %v14768_v61 }
 0x289   : > { %v15196_v48 = vpop.trf.xlu2  ;;  %4659 = vxpose.xlu0.b32.start.end [1/1] (short) (narrow) %v982_v54, 8  ;;  %v1064_v54 = vsel %vm435_vm0, %v1063_v44, %v14657_v32  ;;  %v713_v44 = vrot.slane %v14949_v9, 4 }
 0x28a   : > { %v1070_v23 = vperm.slane %v1064_v54, %v14768_v61  ;;  %v1033_v54 = vrot.slane %v1006_v51, 4 }
 0x28b   : > { %v714_v30 = vsel %vm435_vm0, 0.0, %v713_v44 }
 0x28c   : > { %v1075_v59 = vrot.slane %v1070_v23, 4 }
 0x28e   : > { %4787 = vxpose.xlu1.b32.start.end [1/1] (short) (narrow) %v15207_v11, 8  ;;  %v1076_v63 = vsel %vm435_vm0, %v1075_v59, %v1058_v43 }
 0x28f   : > { %v1082_v44 = vperm.slane %v1076_v63, %v14780_v1  ;;  %v1077_v63 = vrot.slane %v1058_v43, 4 }
 0x290   : > { %3379 = vxpose.xlu2.b32.start.end [1/1] (short) (narrow) %v14944_v62, 8  ;;  %v1046_v62 = vsel %vm435_vm0, 0.0, %v1045_v2  ;;  %v15244_v2 = vpop.trf.xlu0 }
 0x291   : > { %v15224_v16 = vpop.trf.xlu2  ;;  %4755 = vxpose.xlu0.b32.start.end [1/1] (short) (narrow) %v994_v28, 8  ;;  %v1034_v28 = vsel %vm435_vm0, %v1018_v56, %v1033_v54  ;;  %v1099_v59 = vrot.slane %v1082_v44, 4 }
 0x292   : > { %v15229_v31 = vpop.trf.xlu1  ;;  %v15248_v51 = vperm.slane %v1034_v28, %v14780_v1  ;;  %v767_v28 = vrot.slane %v14991_v42, 4 }
 0x293   : > { %19292 = vst [vmem:[#allocation77_spill] sm:$0xff] %v15229_v31  ;;  %v15241_v31 = vperm.slane %v1032_v12, %v14780_v1 }
 0x295   : > { %v1047_v12 = vrot.slane %v15241_v31, 4 }
 0x296   : > { %4883 = vxpose.xlu1.b32.start.end [1/1] (short) (narrow) %v1046_v62, 8  ;;  %v1065_v62 = vrot.slane %v14657_v32, 4 }
 0x297   : > { %v1048_v54 = vsel %vm435_vm0, 0.0, %v1047_v12 }
 0x298   : > { %3475 = vxpose.xlu2.b32.start.end [1/1] (short) (narrow) %v714_v30, 8  ;;  %v1066_v56 = vsel %vm435_vm0, %v15148_v25, %v1065_v62  ;;  %v15265_v30 = vpop.trf.xlu0 }
 0x299   : > { %v15238_v9 = vpop.trf.xlu2  ;;  %4851 = vxpose.xlu0.b32.start.end [1/1] (short) (narrow) %v1030_v29, 8  ;;  %v1054_v29 = vsel %vm435_vm0, %v14741_v0, %v1053_v57  ;;  %v1074_v32 = vperm.slane %v1066_v56, %v14768_v61  ;;  %v1100_v0 = vsel %vm435_vm0, 0.0, %v1099_v59  ;;  %v1078_v57 = vsel %vm435_vm0, %v1070_v23, %v1077_v63 }
 0x29a   : > { %v15256_v45 = vpop.trf.xlu1  ;;  %v1062_v25 = vperm.slane %v1054_v29, %v14768_v61  ;;  %v1119_v56 = vrot.slane %v15171_v46, 4  ;;  %v15279_v42 = vperm.slane %v1078_v57, %v14780_v1  ;;  %v1107_v23 = vrot.slane %v14747_v4, 4 }
 0x29b   : > { %19293 = vst [vmem:[#allocation78_spill] sm:$0xff] %v15256_v45  ;;  %v1087_v62 = vrot.slane %v1074_v32, 4  ;;  %v768_v45 = vsel %vm435_vm0, 0.0, %v767_v28 }
 0x29c   : > { %v1120_v28 = vsel %vm435_vm0, %v1119_v56, %v14661_v36 }
 0x29e   : > { %4979 = vxpose.xlu1.b32.start.end [1/1] (short) (narrow) %v15248_v51, 8 }
 0x2a0   : > { %3571 = vxpose.xlu2.b32.start.end [1/1] (short) (narrow) %v14982_v20, 8  ;;  %v1089_v20 = vrot.slane %v1062_v25, 4  ;;  %v15282_v59 = vpop.trf.xlu0 }
 0x2a1   : > { %v15262_v33 = vpop.trf.xlu2  ;;  %4947 = vxpose.xlu0.b32.start.end [1/1] (short) (narrow) %v1048_v54, 8  ;;  %v1088_v54 = vsel %vm435_vm0, %v1087_v62, %v1062_v25  ;;  %19296 = vst [vmem:[#allocation81_spill] sm:$0xff] %v15282_v59  ;;  %v1101_v62 = vrot.slane %v15279_v42, 4 }
 0x2a2   : > { %v15273_v12 = vpop.trf.xlu1  ;;  %v1090_v43 = vsel %vm435_vm0, %v1074_v32, %v1089_v20  ;;  %v15288_v63 = vperm.slane %v1088_v54, %v14780_v1  ;;  %v1126_v32 = vperm.slane %v1120_v28, %v14768_v61  ;;  %v1109_v20 = vrot.slane %v14663_v37, 4 }
 0x2a3   : > { %19294 = vst [vmem:[#allocation79_spill] sm:$0xff] %v15273_v12  ;;  %v1098_v25 = vperm.slane %v1090_v43, %v14780_v1  ;;  %v1102_v43 = vsel %vm435_vm0, 0.0, %v1101_v62  ;;  %v821_v28 = vrot.slane %v15023_v55, 4 }
 0x2a6   : > { %5075 = vxpose.xlu1.b32.start.end [1/1] (short) (narrow) %v1100_v0, 8  ;;  %v1108_v0 = vsel %vm435_vm0, %v1107_v23, %v14663_v37  ;;  %v1110_v37 = vsel %vm435_vm0, %v14747_v4, %v1109_v20 }
 0x2a7   : > { %v1118_v62 = vperm.slane %v1110_v37, %v14768_v61 }
 0x2a8   : > { %3667 = vxpose.xlu2.b32.start.end [1/1] (short) (narrow) %v768_v45, 8  ;;  %v1121_v45 = vrot.slane %v14661_v36, 4  ;;  %v1105_v36 = vrot.slane %v1098_v25, 4  ;;  %v15309_v23 = vpop.trf.xlu0 }
 0x2a9   : > { %v15276_v29 = vpop.trf.xlu2  ;;  %5043 = vxpose.xlu0.b32.start.end [1/1] (short) (narrow) %v1082_v44, 8  ;;  %19299 = vst [vmem:[#allocation84_spill] sm:$0xff] %v15309_v23 }
 0x2aa   : > { %19295 = vst [vmem:[#allocation80_spill] sm:$0xff] %v15276_v29  ;;  %v1122_v44 = vsel %vm435_vm0, %v15171_v46, %v1121_v45  ;;  %v15299_v57 = vpop.trf.xlu1  ;;  %v1114_v46 = vperm.slane %v1108_v0, %v14768_v61  ;;  %v1131_v45 = vrot.slane %v1126_v32, 4  ;;  %v822_v0 = vsel %vm435_vm0, 0.0, %v821_v28 }
 0x2ab   : > { %19297 = vst [vmem:[#allocation82_spill] sm:$0xff] %v15299_v57  ;;  %v1130_v56 = vperm.slane %v1122_v44, %v14768_v61 }
 0x2ac   : > { %v1133_v44 = vrot.slane %v1114_v46, 4  ;;  %v1132_v57 = vsel %vm435_vm0, %v1131_v45, %v1114_v46  ;;  %v1163_v46 = vrot.slane %v14755_v8, 4 }
 0x2ad   : > { %v1143_v12 = vrot.slane %v1130_v56, 4  ;;  %v15324_v4 = vperm.slane %v1132_v57, %v14780_v1 }
 0x2ae   : > { %5171 = vxpose.xlu1.b32.start.end [1/1] (short) (narrow) %v15288_v63, 8  ;;  %v1134_v55 = vsel %vm435_vm0, %v1126_v32, %v1133_v44 }
 0x2af   : > { %v1144_v20 = vsel %vm435_vm0, %v1143_v12, %v1118_v62  ;;  %v1155_v28 = vrot.slane %v15324_v4, 4  ;;  %v1164_v12 = vsel %vm435_vm0, %v1163_v46, %v14669_v40 }
 0x2b0   : > { %3763 = vxpose.xlu2.b32.start.end [1/1] (short) (narrow) %v15019_v60, 8  ;;  %v1106_v60 = vsel %vm435_vm0, 0.0, %v1105_v36  ;;  %v15328_v36 = vperm.slane %v1134_v55, %v14780_v1  ;;  %v1150_v45 = vperm.slane %v1144_v20, %v14780_v1  ;;  %v15336_v37 = vpop.trf.xlu0  ;;  %v1170_v55 = vperm.slane %v1164_v12, %v14768_v61 }
 0x2b1   : > { %v15304_v54 = vpop.trf.xlu2  ;;  %5139 = vxpose.xlu0.b32.start.end [1/1] (short) (narrow) %v1102_v43, 8  ;;  %v1175_v43 = vrot.slane %v15190_v22, 4  ;;  %19302 = vst [vmem:[#allocation87_spill] sm:$0xff] %v15336_v37  ;;  %v1145_v20 = vrot.slane %v1118_v62, 4  ;;  %v1177_v12 = vrot.slane %v14667_v39, 4 }
 0x2b2   : > { %19298 = vst [vmem:[#allocation83_spill] sm:$0xff] %v15304_v54  ;;  %v15317_v59 = vpop.trf.xlu1 }
 0x2b3   : > { %19300 = vst [vmem:[#allocation85_spill] sm:$0xff] %v15317_v59  ;;  %v1176_v32 = vsel %vm435_vm0, %v1175_v43, %v14667_v39  ;;  %v875_v43 = vrot.slane %v15059_v50, 4  ;;  %v1146_v46 = vsel %vm435_vm0, %v1130_v56, %v1145_v20  ;;  %v1231_v56 = vrot.slane %v15220_v38, 4  ;;  %v19309_v20 = vld [vmem:[#allocation51_spill] sm:$0xff] }
 0x2b4   : > { %v15361_v62 = vperm.slane %v1146_v46, %v14780_v1  ;;  %v1219_v46 = vrot.slane %v19309_v20, 4 }
 0x2b5   : > { %v876_v37 = vsel %vm435_vm0, 0.0, %v875_v43 }
 0x2b6   : > { %5267 = vxpose.xlu1.b32.start.end [1/1] (short) (narrow) %v1106_v60, 8  ;;  %v1159_v60 = vrot.slane %v1150_v45, 4 }
 0x2b8   : > { %3859 = vxpose.xlu2.b32.start.end [1/1] (short) (narrow) %v822_v0, 8  ;;  %v1156_v0 = vsel %vm435_vm0, 0.0, %v1155_v28  ;;  %v1160_v59 = vsel %vm435_vm0, 0.0, %v1159_v60  ;;  %v1165_v60 = vrot.slane %v14669_v40, 4 }
 0x2b9   : > { %v15321_v23 = vpop.trf.xlu2  ;;  %5235 = vxpose.xlu0.b32.start.end [1/1] (short) (narrow) %v1098_v25, 8  ;;  %v1182_v25 = vperm.slane %v1176_v32, %v14768_v61  ;;  %v15351_v32 = vpop.trf.xlu0 }
 0x2ba   : > { %19301 = vst [vmem:[#allocation86_spill] sm:$0xff] %v15321_v23  ;;  %v15338_v57 = vpop.trf.xlu1  ;;  %v1166_v40 = vsel %vm435_vm0, %v14755_v8, %v1165_v60  ;;  %v19310_v8 = vld [vmem:[#allocation20_spill] sm:$0xff] }
 0x2bb   : > { %19303 = vst [vmem:[#allocation88_spill] sm:$0xff] %v15338_v57  ;;  %v1187_v57 = vrot.slane %v1182_v25, 4  ;;  %v1220_v60 = vsel %vm435_vm0, %v1219_v46, %v19310_v8 }
 0x2bc   : > { %19304 = vst [vmem:[#allocation89_spill] sm:$0xff] %v15351_v32 }
 0x2bd   : > { %v1188_v28 = vsel %vm435_vm0, %v1187_v57, %v1170_v55  ;;  %v1161_v57 = vrot.slane %v15361_v62, 4 }
 0x2be   : > { %5363 = vxpose.xlu1.b32.start.end [1/1] (short) (narrow) %v15328_v36, 8 }
 0x2c0   : > { %3955 = vxpose.xlu2.b32.start.end [1/1] (short) (narrow) %v15053_v7, 8  ;;  %v1189_v7 = vrot.slane %v1170_v55, 4 }
 0x2c1   : > { %v15344_v44 = vpop.trf.xlu2  ;;  %5331 = vxpose.xlu0.b32.start.end [1/1] (short) (narrow) %v1156_v0, 8  ;;  %v1178_v0 = vsel %vm435_vm0, %v15190_v22, %v1177_v12 }
 0x2c2   : > { %v15354_v29 = vpop.trf.xlu1  ;;  %v1186_v55 = vperm.slane %v1178_v0, %v14768_v61 }
 0x2c3   : > { %19305 = vst [vmem:[#allocation90_spill] sm:$0xff] %v15354_v29  ;;  %v881_v29 = vrot.slane %v15095_v10, 4 }
 0x2c4   : > { %v1199_v0 = vrot.slane %v1186_v55, 4 }
 0x2c6   : > { %5459 = vxpose.xlu1.b32.start.end [1/1] (short) (narrow) %v1160_v59, 8  ;;  %v1190_v59 = vsel %vm435_vm0, %v1182_v25, %v1189_v7  ;;  %v19306_v25 = vld [vmem:[#allocation19_spill] sm:$0xff] }
 0x2c7   : > { %v1198_v39 = vperm.slane %v1190_v59, %v14780_v1  ;;  %v1232_v43 = vsel %vm435_vm0, %v1231_v56, %v19306_v25  ;;  %v1162_v59 = vsel %vm435_vm0, 0.0, %v1161_v57  ;;  %v1174_v56 = vperm.slane %v1166_v40, %v14768_v61 }
 0x2c8   : > { %4051 = vxpose.xlu2.b32.start.end [1/1] (short) (narrow) %v876_v37, 8  ;;  %v15369_v37 = vperm.slane %v1188_v28, %v14780_v1  ;;  %v1238_v28 = vperm.slane %v1232_v43, %v14768_v61  ;;  %v1226_v57 = vperm.slane %v1220_v60, %v14768_v61  ;;  %v882_v40 = vsel %vm435_vm0, 0.0, %v881_v29 }
 0x2c9   : > { %v15358_v50 = vpop.trf.xlu2  ;;  %5427 = vxpose.xlu0.b32.start.end [1/1] (short) (narrow) %v1150_v45, 8  ;;  %v15377_v45 = vpop.trf.xlu0  ;;  %v1213_v7 = vrot.slane %v1198_v39, 4  ;;  %v1200_v43 = vsel %vm435_vm0, %v1199_v0, %v1174_v56  ;;  %v1221_v29 = vrot.slane %v19310_v8, 4 }
 0x2ca   : > { %19307 = vst [vmem:[#allocation19_spill] sm:$0xff] %v15377_v45  ;;  %v15381_v22 = vpop.trf.xlu1  ;;  %v1243_v32 = vrot.slane %v1238_v28, 4  ;;  %v15405_v46 = vperm.slane %v1200_v43, %v14780_v1 }
 0x2cb   : > { %19308 = vst [vmem:[#allocation91_spill] sm:$0xff] %v15381_v22  ;;  %v1214_v22 = vsel %vm435_vm0, 0.0, %v1213_v7  ;;  %v1233_v7 = vrot.slane %v19306_v25, 4 }
 0x2cc   : > { %v1215_v60 = vrot.slane %v15405_v46, 4 }
 0x2ce   : > { %5555 = vxpose.xlu1.b32.start.end [1/1] (short) (narrow) %v15369_v37, 8 }
 0x2d0   : > { %4147 = vxpose.xlu2.b32.start.end [1/1] (short) (narrow) %v15088_v58, 8  ;;  %v1201_v58 = vrot.slane %v1174_v56, 4 }
 0x2d1   : > { %v15386_v12 = vpop.trf.xlu2  ;;  %5523 = vxpose.xlu0.b32.start.end [1/1] (short) (narrow) %v1162_v59, 8  ;;  %v15395_v45 = vpop.trf.xlu0 }
 0x2d2   : > { %19311 = vst [vmem:[#allocation51_spill] sm:$0xff] %v15395_v45  ;;  %v15399_v54 = vpop.trf.xlu1  ;;  %v1202_v10 = vsel %vm435_vm0, %v1186_v55, %v1201_v58  ;;  %v1234_v55 = vsel %vm435_vm0, %v15220_v38, %v1233_v7  ;;  %v1216_v38 = vsel %vm435_vm0, 0.0, %v1215_v60 }
 0x2d3   : > { %19312 = vst [vmem:[#allocation20_spill] sm:$0xff] %v15399_v54  ;;  %v15410_v56 = vperm.slane %v1202_v10, %v14780_v1  ;;  %v1242_v25 = vperm.slane %v1234_v55, %v14768_v61  ;;  %v935_v10 = vrot.slane %v15129_v26, 4  ;;  %v1287_v55 = vrot.slane %v15244_v2, 4 }
 0x2d5   : > { %v1255_v7 = vrot.slane %v1242_v25, 4 }
 0x2d6   : > { %5651 = vxpose.xlu1.b32.start.end [1/1] (short) (narrow) %v1214_v22, 8  ;;  %v1244_v22 = vsel %vm435_vm0, %v1243_v32, %v1226_v57 }
 0x2d7   : > { %v1250_v0 = vperm.slane %v1244_v22, %v14780_v1  ;;  %v1245_v22 = vrot.slane %v1226_v57, 4 }
 0x2d8   : > { %4243 = vxpose.xlu2.b32.start.end [1/1] (short) (narrow) %v882_v40, 8 }
 0x2d9   : > { %v15402_v59 = vpop.trf.xlu2  ;;  %5619 = vxpose.xlu0.b32.start.end [1/1] (short) (narrow) %v1198_v39, 8  ;;  %v15418_v58 = vpop.trf.xlu0  ;;  %v1222_v39 = vsel %vm435_vm0, %v19309_v20, %v1221_v29  ;;  %v1267_v8 = vrot.slane %v1250_v0, 4  ;;  %v1246_v20 = vsel %vm435_vm0, %v1238_v28, %v1245_v22  ;;  %v19318_v28 = vld [vmem:[#allocation54_spill] sm:$0xff] }
 0x2da   : > { %19313 = vst [vmem:[#allocation92_spill] sm:$0xff] %v15418_v58  ;;  %v15420_v32 = vpop.trf.xlu1  ;;  %v1230_v40 = vperm.slane %v1222_v39, %v14768_v61  ;;  %v15443_v57 = vperm.slane %v1246_v20, %v14780_v1  ;;  %v19326_v58 = vld [vmem:[#allocation59_spill] sm:$0xff] }
 0x2db   : > { %19314 = vst [vmem:[#allocation93_spill] sm:$0xff] %v15420_v32  ;;  %v1268_v54 = vsel %vm435_vm0, 0.0, %v1267_v8  ;;  %v936_v32 = vsel %vm435_vm0, 0.0, %v935_v10  ;;  %v1275_v8 = vrot.slane %v19318_v28, 4 }
 0x2dc   : > { %v1256_v39 = vsel %vm435_vm0, %v1255_v7, %v1230_v40  ;;  %v1269_v7 = vrot.slane %v15443_v57, 4 }
 0x2dd   : > { %v15450_v10 = vperm.slane %v1256_v39, %v14780_v1 }
 0x2de   : > { %5747 = vxpose.xlu1.b32.start.end [1/1] (short) (narrow) %v15410_v56, 8 }
 0x2e0   : > { %4339 = vxpose.xlu2.b32.start.end [1/1] (short) (narrow) %v15122_v15, 8  ;;  %v1257_v15 = vrot.slane %v1230_v40, 4 }
 0x2e1   : > { %v15426_v43 = vpop.trf.xlu2  ;;  %5715 = vxpose.xlu0.b32.start.end [1/1] (short) (narrow) %v1216_v38, 8  ;;  %v15433_v29 = vpop.trf.xlu0  ;;  %v19319_v38 = vld [vmem:[#allocation21_spill] sm:$0xff] }
 0x2e2   : > { %19315 = vst [vmem:[#allocation94_spill] sm:$0xff] %v15433_v29  ;;  %v15437_v60 = vpop.trf.xlu1  ;;  %v1288_v22 = vsel %vm435_vm0, %v1287_v55, %v19319_v38 }
 0x2e3   : > { %19316 = vst [vmem:[#allocation95_spill] sm:$0xff] %v15437_v60 }
 0x2e6   : > { %5843 = vxpose.xlu1.b32.start.end [1/1] (short) (narrow) %v1268_v54, 8  ;;  %v1258_v54 = vsel %vm435_vm0, %v1242_v25, %v1257_v15  ;;  %v19321_v15 = vld [vmem:[#allocation22_spill] sm:$0xff] }
 0x2e7   : > { %v1266_v40 = vperm.slane %v1258_v54, %v14780_v1  ;;  %v1276_v55 = vsel %vm435_vm0, %v1275_v8, %v19321_v15 }
 0x2e8   : > { %4435 = vxpose.xlu2.b32.start.end [1/1] (short) (narrow) %v936_v32, 8  ;;  %v1289_v32 = vrot.slane %v19319_v38, 4  ;;  %v1277_v38 = vrot.slane %v19321_v15, 4 }
 0x2e9   : > { %v15440_v26 = vpop.trf.xlu2  ;;  %5811 = vxpose.xlu0.b32.start.end [1/1] (short) (narrow) %v1250_v0, 8  ;;  %v1294_v0 = vperm.slane %v1288_v22, %v14768_v61  ;;  %v15459_v20 = vpop.trf.xlu0  ;;  %v1273_v54 = vrot.slane %v1266_v40, 4  ;;  %v1282_v22 = vperm.slane %v1276_v55, %v14768_v61 }
 0x2ea   : > { %19317 = vst [vmem:[#allocation96_spill] sm:$0xff] %v15440_v26  ;;  %v1290_v25 = vsel %vm435_vm0, %v15244_v2, %v1289_v32  ;;  %v15463_v39 = vpop.trf.xlu1  ;;  %v1270_v2 = vsel %vm435_vm0, 0.0, %v1269_v7  ;;  %v1278_v8 = vsel %vm435_vm0, %v19318_v28, %v1277_v38  ;;  %v1343_v28 = vrot.slane %v19326_v58, 4 }
 0x2eb   : > { %19320 = vst [vmem:[#allocation54_spill] sm:$0xff] %v15459_v20  ;;  %v1298_v60 = vperm.slane %v1290_v25, %v14768_v61  ;;  %v1299_v32 = vrot.slane %v1294_v0, 4  ;;  %v989_v20 = vrot.slane %v15168_v27, 4  ;;  %v1274_v15 = vsel %vm435_vm0, 0.0, %v1273_v54 }
 0x2ec   : > { %19322 = vst [vmem:[#allocation21_spill] sm:$0xff] %v15463_v39  ;;  %v1286_v45 = vperm.slane %v1278_v8, %v14768_v61 }
 0x2ed   : > { %v1311_v39 = vrot.slane %v1298_v60, 4  ;;  %v1300_v25 = vsel %vm435_vm0, %v1299_v32, %v1282_v22  ;;  %v990_v7 = vsel %vm435_vm0, 0.0, %v989_v20  ;;  %v19328_v20 = vld [vmem:[#allocation56_spill] sm:$0xff] }
 0x2ee   : > { %5939 = vxpose.xlu1.b32.start.end [1/1] (short) (narrow) %v15450_v10, 8  ;;  %v15488_v54 = vperm.slane %v1300_v25, %v14780_v1  ;;  %v1331_v8 = vrot.slane %v19328_v20, 4 }
 0x2f0   : > { %4531 = vxpose.xlu2.b32.start.end [1/1] (short) (narrow) %v15164_v6, 8  ;;  %v1301_v6 = vrot.slane %v1282_v22, 4  ;;  %v1312_v22 = vsel %vm435_vm0, %v1311_v39, %v1286_v45 }
 0x2f1   : > { %v15468_v29 = vpop.trf.xlu2  ;;  %5907 = vxpose.xlu0.b32.start.end [1/1] (short) (narrow) %v1270_v2, 8  ;;  %v15480_v2 = vpop.trf.xlu0 }
 0x2f2   : > { %19323 = vst [vmem:[#allocation22_spill] sm:$0xff] %v15468_v29  ;;  %v1302_v55 = vsel %vm435_vm0, %v1294_v0, %v1301_v6  ;;  %v15482_v27 = vpop.trf.xlu1  ;;  %v1318_v0 = vperm.slane %v1312_v22, %v14780_v1  ;;  %v1313_v29 = vrot.slane %v1286_v45, 4  ;;  %v19335_v45 = vld [vmem:[#allocation61_spill] sm:$0xff] }
 0x2f3   : > { %19324 = vst [vmem:[#allocation97_spill] sm:$0xff] %v15480_v2  ;;  %v15492_v32 = vperm.slane %v1302_v55, %v14780_v1 }
 0x2f4   : > { %19325 = vst [vmem:[#allocation98_spill] sm:$0xff] %v15482_v27  ;;  %v19330_v27 = vld [vmem:[#allocation24_spill] sm:$0xff] }
 0x2f5   : > { %v1332_v25 = vsel %vm435_vm0, %v1331_v8, %v19330_v27 }
 0x2f6   : > { %6035 = vxpose.xlu1.b32.start.end [1/1] (short) (narrow) %v1274_v15, 8  ;;  %v19329_v15 = vld [vmem:[#allocation23_spill] sm:$0xff]  ;;  %v1338_v26 = vperm.slane %v1332_v25, %v14768_v61 }
 0x2f7   : > { %v1344_v6 = vsel %vm435_vm0, %v1343_v28, %v19329_v15 }
 0x2f8   : > { %4627 = vxpose.xlu2.b32.start.end [1/1] (short) (narrow) %v990_v7, 8  ;;  %v1323_v7 = vrot.slane %v15488_v54, 4  ;;  %v1350_v39 = vperm.slane %v1344_v6, %v14768_v61  ;;  %v1357_v23 = vrot.slane %v1338_v26, 4 }
 0x2f9   : > { %v15485_v38 = vpop.trf.xlu2  ;;  %6003 = vxpose.xlu0.b32.start.end [1/1] (short) (narrow) %v1266_v40, 8  ;;  %v1327_v40 = vrot.slane %v1318_v0, 4  ;;  %v15507_v22 = vpop.trf.xlu0 }
 0x2fa   : > { %19327 = vst [vmem:[#allocation59_spill] sm:$0xff] %v15485_v38  ;;  %v1324_v2 = vsel %vm435_vm0, 0.0, %v1323_v7  ;;  %v15509_v28 = vpop.trf.xlu1  ;;  %v1043_v38 = vrot.slane %v15207_v11, 4  ;;  %v1355_v6 = vrot.slane %v1350_v39, 4  ;;  %v1358_v11 = vsel %vm435_vm0, %v1350_v39, %v1357_v23  ;;  %v19338_v39 = vld [vmem:[#allocation25_spill] sm:$0xff] }
 0x2fb   : > { %19332 = vst [vmem:[#allocation23_spill] sm:$0xff] %v15507_v22  ;;  %v1328_v8 = vsel %vm435_vm0, 0.0, %v1327_v40  ;;  %v1399_v40 = vrot.slane %v19335_v45, 4 }
 0x2fc   : > { %19333 = vst [vmem:[#allocation24_spill] sm:$0xff] %v15509_v28  ;;  %v1356_v7 = vsel %vm435_vm0, %v1355_v6, %v1338_v26 }
 0x2fd   : > { %v15533_v26 = vperm.slane %v1356_v7, %v14780_v1  ;;  %v1400_v6 = vsel %vm435_vm0, %v1399_v40, %v19338_v39 }
 0x2fe   : > { %6131 = vxpose.xlu1.b32.start.end [1/1] (short) (narrow) %v15492_v32, 8 }
 0x300   : > { %4723 = vxpose.xlu2.b32.start.end [1/1] (short) (narrow) %v15199_v5, 8  ;;  %v1314_v5 = vsel %vm435_vm0, %v1298_v60, %v1313_v29  ;;  %v1333_v60 = vrot.slane %v19330_v27, 4 }
 0x301   : > { %v15504_v55 = vpop.trf.xlu2  ;;  %6099 = vxpose.xlu0.b32.start.end [1/1] (short) (narrow) %v1324_v2, 8  ;;  %v1044_v2 = vsel %vm435_vm0, 0.0, %v1043_v38  ;;  %v15521_v25 = vperm.slane %v1314_v5, %v14780_v1  ;;  %v19339_v5 = vld [vmem:[#allocation58_spill] sm:$0xff] }
 0x302   : > { %19331 = vst [vmem:[#allocation56_spill] sm:$0xff] %v15504_v55  ;;  %v1345_v55 = vrot.slane %v19329_v15, 4  ;;  %v15527_v29 = vpop.trf.xlu1  ;;  %v1366_v15 = vperm.slane %v1358_v11, %v14780_v1  ;;  %v1334_v27 = vsel %vm435_vm0, %v19328_v20, %v1333_v60  ;;  %v1049_v20 = vrot.slane %v15248_v51, 4  ;;  %v19342_v60 = vld [vmem:[#allocation26_spill] sm:$0xff] }
 0x303   : > { %19337 = vst [vmem:[#allocation100_spill] sm:$0xff] %v15527_v29  ;;  %v1329_v23 = vrot.slane %v15521_v25, 4  ;;  %v1342_v29 = vperm.slane %v1334_v27, %v14768_v61 }
 0x304   : > { %v1346_v38 = vsel %vm435_vm0, %v19326_v58, %v1345_v55  ;;  %v1381_v58 = vrot.slane %v1366_v15, 4  ;;  %v1406_v55 = vperm.slane %v1400_v6, %v14768_v61 }
 0x305   : > { %v1330_v11 = vsel %vm435_vm0, 0.0, %v1329_v23 }
 0x306   : > { %6227 = vxpose.xlu1.b32.start.end [1/1] (short) (narrow) %v1328_v8, 8  ;;  %v15525_v8 = vpop.trf.xlu0  ;;  %v1382_v22 = vsel %vm435_vm0, 0.0, %v1381_v58  ;;  %v1411_v6 = vrot.slane %v1406_v55, 4 }
 0x307   : > { %19336 = vst [vmem:[#allocation61_spill] sm:$0xff] %v15525_v8 }
 0x308   : > { %4819 = vxpose.xlu2.b32.start.end [1/1] (short) (narrow) %v1044_v2, 8  ;;  %v1387_v2 = vrot.slane %v19339_v5, 4 }
 0x309   : > { %v15518_v28 = vpop.trf.xlu2  ;;  %6195 = vxpose.xlu0.b32.start.end [1/1] (short) (narrow) %v1318_v0, 8  ;;  %v1354_v0 = vperm.slane %v1346_v38, %v14768_v61 }
 0x30a   : > { %19334 = vst [vmem:[#allocation99_spill] sm:$0xff] %v15518_v28  ;;  %v15552_v40 = vpop.trf.xlu1  ;;  %v1369_v28 = vrot.slane %v1342_v29, 4 }
 0x30b   : > { %v1367_v38 = vrot.slane %v1354_v0, 4  ;;  %19341 = vst [vmem:[#allocation58_spill] sm:$0xff] %v15552_v40  ;;  %v1401_v40 = vrot.slane %v19338_v39, 4 }
 0x30d   : > { %v1368_v23 = vsel %vm435_vm0, %v1367_v38, %v1342_v29  ;;  %v1389_v29 = vrot.slane %v19342_v60, 4 }
 0x30e   : > { %6323 = vxpose.xlu1.b32.start.end [1/1] (short) (narrow) %v15533_v26, 8  ;;  %v15550_v8 = vpop.trf.xlu0 }
 0x30f   : > { %19340 = vst [vmem:[#allocation25_spill] sm:$0xff] %v15550_v8  ;;  %v1370_v8 = vsel %vm435_vm0, %v1354_v0, %v1369_v28  ;;  %v1402_v0 = vsel %vm435_vm0, %v19335_v45, %v1401_v40  ;;  %v1103_v45 = vrot.slane %v15288_v63, 4 }
 0x310   : > { %4915 = vxpose.xlu2.b32.start.end [1/1] (short) (narrow) %v15241_v31, 8  ;;  %v1388_v31 = vsel %vm435_vm0, %v1387_v2, %v19342_v60  ;;  %v15566_v2 = vperm.slane %v1368_v23, %v14780_v1 }
 0x311   : > { %v15546_v7 = vpop.trf.xlu2  ;;  %6291 = vxpose.xlu0.b32.start.end [1/1] (short) (narrow) %v1330_v11, 8  ;;  %v1394_v27 = vperm.slane %v1388_v31, %v14768_v61  ;;  %v1050_v11 = vsel %vm435_vm0, 0.0, %v1049_v20 }
 0x312   : > { %v15576_v28 = vpop.trf.xlu1  ;;  %v1383_v39 = vrot.slane %v15566_v2, 4 }
 0x313   : > { %v1412_v58 = vsel %vm435_vm0, %v1411_v6, %v1394_v27  ;;  %19345 = vst [vmem:[#allocation102_spill] sm:$0xff] %v15576_v28  ;;  %v1413_v40 = vrot.slane %v1394_v27, 4 }
 0x314   : > { %v1418_v38 = vperm.slane %v1412_v58, %v14780_v1  ;;  %v1384_v6 = vsel %vm435_vm0, 0.0, %v1383_v39  ;;  %v1104_v39 = vsel %vm435_vm0, 0.0, %v1103_v45 }
 0x316   : > { %6419 = vxpose.xlu1.b32.start.end [1/1] (short) (narrow) %v1382_v22, 8  ;;  %v15570_v22 = vperm.slane %v1370_v8, %v14780_v1  ;;  %v15574_v20 = vpop.trf.xlu0  ;;  %v1410_v8 = vperm.slane %v1402_v0, %v14768_v61  ;;  %v1435_v60 = vrot.slane %v1418_v38, 4  ;;  %v19349_v0 = vld [vmem:[#allocation63_spill] sm:$0xff] }
 0x317   : > { %19344 = vst [vmem:[#allocation101_spill] sm:$0xff] %v15574_v20  ;;  %v1455_v20 = vrot.slane %v19349_v0, 4 }
 0x318   : > { %5011 = vxpose.xlu2.b32.start.end [1/1] (short) (narrow) %v1050_v11, 8  ;;  %v1423_v11 = vrot.slane %v1410_v8, 4  ;;  %v1436_v58 = vsel %vm435_vm0, 0.0, %v1435_v60 }
 0x319   : > { %v15563_v51 = vpop.trf.xlu2  ;;  %6387 = vxpose.xlu0.b32.start.end [1/1] (short) (narrow) %v1366_v15, 8  ;;  %v1390_v15 = vsel %vm435_vm0, %v19339_v5, %v1389_v29 }
 0x31a   : > { %19343 = vst [vmem:[#allocation26_spill] sm:$0xff] %v15563_v51  ;;  %v1398_v23 = vperm.slane %v1390_v15, %v14768_v61  ;;  %v15594_v5 = vpop.trf.xlu1 }
 0x31b   : > { %19348 = vst [vmem:[#allocation105_spill] sm:$0xff] %v15594_v5 }
 0x31c   : > { %v1425_v29 = vrot.slane %v1398_v23, 4  ;;  %v1424_v15 = vsel %vm435_vm0, %v1423_v11, %v1398_v23 }
 0x31d   : > { %v15611_v45 = vperm.slane %v1424_v15, %v14780_v1 }
 0x31e   : > { %6515 = vxpose.xlu1.b32.start.end [1/1] (short) (narrow) %v15570_v22, 8  ;;  %v15592_v28 = vpop.trf.xlu0  ;;  %v1426_v60 = vsel %vm435_vm0, %v1410_v8, %v1425_v29  ;;  %v19355_v29 = vld [vmem:[#allocation28_spill] sm:$0xff] }
 0x31f   : > { %19347 = vst [vmem:[#allocation104_spill] sm:$0xff] %v15592_v28  ;;  %v1434_v23 = vperm.slane %v1426_v60, %v14780_v1  ;;  %v1445_v15 = vrot.slane %v19355_v29, 4 }
 0x320   : > { %5107 = vxpose.xlu2.b32.start.end [1/1] (short) (narrow) %v15279_v42, 8  ;;  %v1414_v42 = vsel %vm435_vm0, %v1406_v55, %v1413_v40 }
 0x321   : > { %v15586_v31 = vpop.trf.xlu2  ;;  %6483 = vxpose.xlu0.b32.start.end [1/1] (short) (narrow) %v1384_v6, 8  ;;  %v15603_v27 = vperm.slane %v1414_v42, %v14780_v1  ;;  %v19351_v6 = vld [vmem:[#allocation27_spill] sm:$0xff]  ;;  %v1441_v60 = vrot.slane %v1434_v23, 4 }
 0x322   : > { %19346 = vst [vmem:[#allocation103_spill] sm:$0xff] %v15586_v31  ;;  %v1457_v5 = vrot.slane %v19351_v6, 4  ;;  %v1456_v40 = vsel %vm435_vm0, %v1455_v20, %v19351_v6 }
 0x323   : > { %v1437_v8 = vrot.slane %v15603_v27, 4  ;;  %v1462_v42 = vperm.slane %v1456_v40, %v14768_v61 }
 0x325   : > { %v1467_v31 = vrot.slane %v1462_v42, 4 }
 0x326   : > { %6611 = vxpose.xlu1.b32.start.end [1/1] (short) (narrow) %v1436_v58, 8  ;;  %v19352_v58 = vld [vmem:[#allocation60_spill] sm:$0xff]  ;;  %v15614_v11 = vpop.trf.xlu0 }
 0x327   : > { %v1443_v55 = vrot.slane %v19352_v58, 4  ;;  %19353 = vst [vmem:[#allocation27_spill] sm:$0xff] %v15614_v11  ;;  %v1438_v11 = vsel %vm435_vm0, 0.0, %v1437_v8 }
 0x328   : > { %5203 = vxpose.xlu2.b32.start.end [1/1] (short) (narrow) %v1104_v39, 8  ;;  %v15616_v39 = vpop.trf.xlu1 }
 0x329   : > { %v15600_v63 = vpop.trf.xlu2  ;;  %6579 = vxpose.xlu0.b32.start.end [1/1] (short) (narrow) %v1418_v38, 8  ;;  %19354 = vst [vmem:[#allocation60_spill] sm:$0xff] %v15616_v39  ;;  %v1458_v38 = vsel %vm435_vm0, %v19349_v0, %v1457_v5  ;;  %v1444_v20 = vsel %vm435_vm0, %v1443_v55, %v19355_v29  ;;  %v1157_v5 = vrot.slane %v15328_v36, 4  ;;  %v1446_v0 = vsel %vm435_vm0, %v19352_v58, %v1445_v15 }
 0x32a   : > { %19350 = vst [vmem:[#allocation63_spill] sm:$0xff] %v15600_v63  ;;  %v1466_v6 = vperm.slane %v1458_v38, %v14768_v61  ;;  %v1450_v28 = vperm.slane %v1444_v20, %v14768_v61  ;;  %v1442_v55 = vsel %vm435_vm0, 0.0, %v1441_v60  ;;  %v1454_v20 = vperm.slane %v1446_v0, %v14768_v61 }
 0x32b   : > { %v1511_v58 = vrot.slane %v14910_v53, 4 }
 0x32c   : > { %v1479_v38 = vrot.slane %v1466_v6, 4  ;;  %v1469_v29 = vrot.slane %v1450_v28, 4  ;;  %v1468_v8 = vsel %vm435_vm0, %v1467_v31, %v1450_v28  ;;  %v19360_v28 = vld [vmem:[#allocation62_spill] sm:$0xff] }
 0x32d   : > { %v15648_v60 = vperm.slane %v1468_v8, %v14780_v1  ;;  %v1499_v31 = vrot.slane %v19360_v28, 4 }
 0x32e   : > { %6707 = vxpose.xlu1.b32.start.end [1/1] (short) (narrow) %v15611_v45, 8  ;;  %v15636_v40 = vpop.trf.xlu0  ;;  %v1470_v36 = vsel %vm435_vm0, %v1462_v42, %v1469_v29  ;;  %v19363_v29 = vld [vmem:[#allocation29_spill] sm:$0xff] }
 0x32f   : > { %19357 = vst [vmem:[#allocation106_spill] sm:$0xff] %v15636_v40  ;;  %v1491_v8 = vrot.slane %v15648_v60, 4 }
 0x330   : > { %5299 = vxpose.xlu2.b32.start.end [1/1] (short) (narrow) %v15324_v4, 8  ;;  %v15638_v4 = vpop.trf.xlu1 }
 0x331   : > { %v15628_v39 = vpop.trf.xlu2  ;;  %6675 = vxpose.xlu0.b32.start.end [1/1] (short) (narrow) %v1438_v11, 8  ;;  %19358 = vst [vmem:[#allocation107_spill] sm:$0xff] %v15638_v4  ;;  %v1158_v11 = vsel %vm435_vm0, 0.0, %v1157_v5  ;;  %v1480_v4 = vsel %vm435_vm0, %v1479_v38, %v1454_v20  ;;  %v19364_v38 = vld [vmem:[#allocation30_spill] sm:$0xff] }
 0x332   : > { %19356 = vst [vmem:[#allocation28_spill] sm:$0xff] %v15628_v39  ;;  %v1486_v5 = vperm.slane %v1480_v4, %v14780_v1 }
 0x334   : > { %v1495_v40 = vrot.slane %v1486_v5, 4 }
 0x336   : > { %6803 = vxpose.xlu1.b32.start.end [1/1] (short) (narrow) %v1442_v55, 8  ;;  %v15652_v55 = vperm.slane %v1470_v36, %v14780_v1  ;;  %v15656_v0 = vpop.trf.xlu0  ;;  %v1496_v63 = vsel %vm435_vm0, 0.0, %v1495_v40 }
 0x337   : > { %19361 = vst [vmem:[#allocation62_spill] sm:$0xff] %v15656_v0  ;;  %v1492_v0 = vsel %vm435_vm0, 0.0, %v1491_v8 }
 0x338   : > { %5395 = vxpose.xlu2.b32.start.end [1/1] (short) (narrow) %v1158_v11, 8  ;;  %v15658_v42 = vpop.trf.xlu1  ;;  %v1512_v11 = vsel %vm435_vm0, %v1511_v58, %v19363_v29  ;;  %v1211_v58 = vrot.slane %v15369_v37, 4 }
 0x339   : > { %v15645_v15 = vpop.trf.xlu2  ;;  %6771 = vxpose.xlu0.b32.start.end [1/1] (short) (narrow) %v1434_v23, 8  ;;  %19362 = vst [vmem:[#allocation109_spill] sm:$0xff] %v15658_v42  ;;  %v1500_v23 = vsel %vm435_vm0, %v1499_v31, %v19364_v38  ;;  %v1518_v36 = vperm.slane %v1512_v11, %v14768_v61  ;;  %v1513_v11 = vrot.slane %v19363_v29, 4 }
 0x33a   : > { %19359 = vst [vmem:[#allocation108_spill] sm:$0xff] %v15645_v15  ;;  %v1506_v42 = vperm.slane %v1500_v23, %v14768_v61  ;;  %v1481_v15 = vrot.slane %v1454_v20, 4  ;;  %v1567_v23 = vrot.slane %v14935_v34, 4 }
 0x33b   : > { %v1523_v39 = vrot.slane %v1518_v36, 4 }
 0x33d   : > { %v1524_v8 = vsel %vm435_vm0, %v1523_v39, %v1506_v42 }
 0x33e   : > { %6899 = vxpose.xlu1.b32.start.end [1/1] (short) (narrow) %v15652_v55, 8  ;;  %v15674_v51 = vpop.trf.xlu0 }
 0x33f   : > { %19366 = vst [vmem:[#allocation30_spill] sm:$0xff] %v15674_v51 }
 0x340   : > { %5491 = vxpose.xlu2.b32.start.end [1/1] (short) (narrow) %v15361_v62, 8  ;;  %v15676_v31 = vpop.trf.xlu1  ;;  %v1482_v62 = vsel %vm435_vm0, %v1466_v6, %v1481_v15  ;;  %v1514_v6 = vsel %vm435_vm0, %v14910_v53, %v1513_v11  ;;  %v15693_v15 = vperm.slane %v1524_v8, %v14780_v1 }
 0x341   : > { %v15668_v4 = vpop.trf.xlu2  ;;  %6867 = vxpose.xlu0.b32.start.end [1/1] (short) (narrow) %v1492_v0, 8  ;;  %19367 = vst [vmem:[#allocation110_spill] sm:$0xff] %v15676_v31  ;;  %v1212_v0 = vsel %vm435_vm0, 0.0, %v1211_v58  ;;  %v15685_v40 = vperm.slane %v1482_v62, %v14780_v1  ;;  %v19372_v58 = vld [vmem:[#allocation64_spill] sm:$0xff] }
 0x342   : > { %19365 = vst [vmem:[#allocation29_spill] sm:$0xff] %v15668_v4  ;;  %v1525_v4 = vrot.slane %v1506_v42, 4  ;;  %v1555_v62 = vrot.slane %v19372_v58, 4 }
 0x344   : > { %v1526_v20 = vsel %vm435_vm0, %v1518_v36, %v1525_v4  ;;  %v1497_v36 = vrot.slane %v15685_v40, 4  ;;  %v19371_v4 = vld [vmem:[#allocation32_spill] sm:$0xff] }
 0x345   : > { %v1534_v39 = vperm.slane %v1526_v20, %v14780_v1 }
 0x346   : > { %6995 = vxpose.xlu1.b32.start.end [1/1] (short) (narrow) %v1496_v63, 8  ;;  %v1501_v63 = vrot.slane %v19364_v38, 4  ;;  %v15696_v42 = vpop.trf.xlu0  ;;  %v1568_v38 = vsel %vm435_vm0, %v1567_v23, %v19371_v4  ;;  %v1498_v20 = vsel %vm435_vm0, 0.0, %v1497_v36  ;;  %v1217_v23 = vrot.slane %v15410_v56, 4 }
 0x347   : > { %19369 = vst [vmem:[#allocation112_spill] sm:$0xff] %v15696_v42  ;;  %v1549_v11 = vrot.slane %v1534_v39, 4 }
 0x348   : > { %5587 = vxpose.xlu2.b32.start.end [1/1] (short) (narrow) %v1212_v0, 8  ;;  %v15698_v29 = vpop.trf.xlu1  ;;  %v1502_v53 = vsel %vm435_vm0, %v19360_v28, %v1501_v63  ;;  %v1574_v0 = vperm.slane %v1568_v38, %v14768_v61 }
 0x349   : > { %v15682_v37 = vpop.trf.xlu2  ;;  %6963 = vxpose.xlu0.b32.start.end [1/1] (short) (narrow) %v1486_v5, 8  ;;  %19370 = vst [vmem:[#allocation113_spill] sm:$0xff] %v15698_v29  ;;  %v1522_v5 = vperm.slane %v1514_v6, %v14768_v61  ;;  %v1510_v31 = vperm.slane %v1502_v53, %v14768_v61  ;;  %v19373_v29 = vld [vmem:[#allocation31_spill] sm:$0xff]  ;;  %v1550_v63 = vsel %vm435_vm0, 0.0, %v1549_v11 }
 0x34a   : > { %19368 = vst [vmem:[#allocation111_spill] sm:$0xff] %v15682_v37  ;;  %v1556_v28 = vsel %vm435_vm0, %v1555_v62, %v19373_v29  ;;  %v1579_v38 = vrot.slane %v1574_v0, 4  ;;  %v1569_v62 = vrot.slane %v19371_v4, 4 }
 0x34b   : > { %v1535_v6 = vrot.slane %v1522_v5, 4  ;;  %v1537_v51 = vrot.slane %v1510_v31, 4  ;;  %v1562_v53 = vperm.slane %v1556_v28, %v14768_v61 }
 0x34d   : > { %v1536_v36 = vsel %vm435_vm0, %v1535_v6, %v1510_v31  ;;  %v1538_v56 = vsel %vm435_vm0, %v1522_v5, %v1537_v51  ;;  %v1557_v31 = vrot.slane %v19373_v29, 4  ;;  %v1570_v5 = vsel %vm435_vm0, %v14935_v34, %v1569_v62 }
 0x34e   : > { %7091 = vxpose.xlu1.b32.start.end [1/1] (short) (narrow) %v15693_v15, 8  ;;  %v15718_v42 = vpop.trf.xlu0  ;;  %v15730_v11 = vperm.slane %v1536_v36, %v14780_v1  ;;  %v1578_v28 = vperm.slane %v1570_v5, %v14768_v61  ;;  %v1271_v34 = vrot.slane %v15450_v10, 4  ;;  %v1623_v5 = vrot.slane %v14959_v19, 4 }
 0x34f   : > { %19374 = vst [vmem:[#allocation32_spill] sm:$0xff] %v15718_v42 }
 0x350   : > { %5683 = vxpose.xlu2.b32.start.end [1/1] (short) (narrow) %v15405_v46, 8  ;;  %v15720_v46 = vpop.trf.xlu1  ;;  %v1551_v4 = vrot.slane %v15730_v11, 4 }
 0x351   : > { %v15710_v8 = vpop.trf.xlu2  ;;  %7059 = vxpose.xlu0.b32.start.end [1/1] (short) (narrow) %v1498_v20, 8  ;;  %19375 = vst [vmem:[#allocation64_spill] sm:$0xff] %v15720_v46  ;;  %v1218_v20 = vsel %vm435_vm0, 0.0, %v1217_v23  ;;  %v1580_v46 = vsel %vm435_vm0, %v1579_v38, %v1562_v53 }
 0x352   : > { %v1586_v6 = vperm.slane %v1580_v46, %v14780_v1  ;;  %v1552_v38 = vsel %vm435_vm0, 0.0, %v1551_v4  ;;  %v1272_v4 = vsel %vm435_vm0, 0.0, %v1271_v34 }
 0x354   : > { %v1603_v29 = vrot.slane %v1586_v6, 4 }
 0x356   : > { %7187 = vxpose.xlu1.b32.start.end [1/1] (short) (narrow) %v1550_v63, 8  ;;  %v15734_v63 = vperm.slane %v1538_v56, %v14780_v1  ;;  %v15738_v23 = vpop.trf.xlu0  ;;  %v1591_v56 = vrot.slane %v1578_v28, 4  ;;  %v1604_v62 = vsel %vm435_vm0, 0.0, %v1603_v29 }
 0x357   : > { %19376 = vst [vmem:[#allocation31_spill] sm:$0xff] %v15738_v23 }
 0x358   : > { %5779 = vxpose.xlu2.b32.start.end [1/1] (short) (narrow) %v1218_v20, 8  ;;  %v15740_v51 = vpop.trf.xlu1  ;;  %v1581_v20 = vrot.slane %v1562_v53, 4 }
 0x359   : > { %v15727_v37 = vpop.trf.xlu2  ;;  %7155 = vxpose.xlu0.b32.start.end [1/1] (short) (narrow) %v1534_v39, 8  ;;  %19377 = vst [vmem:[#allocation114_spill] sm:$0xff] %v15740_v51  ;;  %v1558_v39 = vsel %vm435_vm0, %v19372_v58, %v1557_v31 }
 0x35a   : > { %v1566_v36 = vperm.slane %v1558_v39, %v14768_v61 }
 0x35c   : > { %v1593_v31 = vrot.slane %v1566_v36, 4  ;;  %v1592_v39 = vsel %vm435_vm0, %v1591_v56, %v1566_v36 }
 0x35d   : > { %v15775_v34 = vperm.slane %v1592_v39, %v14780_v1 }
 0x35e   : > { %7283 = vxpose.xlu1.b32.start.end [1/1] (short) (narrow) %v15734_v63, 8  ;;  %v15756_v51 = vpop.trf.xlu0  ;;  %v1594_v29 = vsel %vm435_vm0, %v1578_v28, %v1593_v31  ;;  %v19385_v31 = vld [vmem:[#allocation33_spill] sm:$0xff] }
 0x35f   : > { %19379 = vst [vmem:[#allocation116_spill] sm:$0xff] %v15756_v51  ;;  %v1602_v36 = vperm.slane %v1594_v29, %v14780_v1  ;;  %v1613_v39 = vrot.slane %v19385_v31, 4 }
 0x360   : > { %5875 = vxpose.xlu2.b32.start.end [1/1] (short) (narrow) %v15443_v57, 8  ;;  %v15758_v58 = vpop.trf.xlu1  ;;  %v1582_v57 = vsel %vm435_vm0, %v1574_v0, %v1581_v20 }
 0x361   : > { %v15750_v46 = vpop.trf.xlu2  ;;  %7251 = vxpose.xlu0.b32.start.end [1/1] (short) (narrow) %v1552_v38, 8  ;;  %19380 = vst [vmem:[#allocation117_spill] sm:$0xff] %v15758_v58  ;;  %v15767_v53 = vperm.slane %v1582_v57, %v14780_v1  ;;  %v19381_v38 = vld [vmem:[#allocation34_spill] sm:$0xff]  ;;  %v1609_v29 = vrot.slane %v1602_v36, 4 }
 0x362   : > { %19378 = vst [vmem:[#allocation115_spill] sm:$0xff] %v15750_v46  ;;  %v1625_v58 = vrot.slane %v19381_v38, 4  ;;  %v1624_v20 = vsel %vm435_vm0, %v1623_v5, %v19381_v38 }
 0x363   : > { %v1605_v28 = vrot.slane %v15767_v53, 4  ;;  %v1630_v57 = vperm.slane %v1624_v20, %v14768_v61 }
 0x365   : > { %v1635_v51 = vrot.slane %v1630_v57, 4 }
 0x366   : > { %7379 = vxpose.xlu1.b32.start.end [1/1] (short) (narrow) %v1604_v62, 8  ;;  %v19382_v62 = vld [vmem:[#allocation65_spill] sm:$0xff]  ;;  %v15778_v56 = vpop.trf.xlu0 }
 0x367   : > { %v1611_v0 = vrot.slane %v19382_v62, 4  ;;  %19383 = vst [vmem:[#allocation34_spill] sm:$0xff] %v15778_v56  ;;  %v1606_v56 = vsel %vm435_vm0, 0.0, %v1605_v28 }
 0x368   : > { %5971 = vxpose.xlu2.b32.start.end [1/1] (short) (narrow) %v1272_v4, 8  ;;  %v15780_v4 = vpop.trf.xlu1 }
 0x369   : > { %v15764_v10 = vpop.trf.xlu2  ;;  %7347 = vxpose.xlu0.b32.start.end [1/1] (short) (narrow) %v1586_v6, 8  ;;  %19384 = vst [vmem:[#allocation65_spill] sm:$0xff] %v15780_v4  ;;  %v1626_v6 = vsel %vm435_vm0, %v14959_v19, %v1625_v58  ;;  %v1612_v5 = vsel %vm435_vm0, %v1611_v0, %v19385_v31  ;;  %v1325_v19 = vrot.slane %v15492_v32, 4  ;;  %v1614_v58 = vsel %vm435_vm0, %v19382_v62, %v1613_v39 }
 0x36a   : > { %v1634_v38 = vperm.slane %v1626_v6, %v14768_v61  ;;  %v1618_v23 = vperm.slane %v1612_v5, %v14768_v61  ;;  %v1610_v0 = vsel %vm435_vm0, 0.0, %v1609_v29  ;;  %v1622_v5 = vperm.slane %v1614_v58, %v14768_v61  ;;  %v19391_v58 = vld [vmem:[#allocation36_spill] sm:$0xff] }
 0x36b   : > { %v1679_v62 = vrot.slane %v14978_v17, 4 }
 0x36c   : > { %v1647_v6 = vrot.slane %v1634_v38, 4  ;;  %v1637_v31 = vrot.slane %v1618_v23, 4  ;;  %v1636_v28 = vsel %vm435_vm0, %v1635_v51, %v1618_v23  ;;  %v1667_v23 = vrot.slane %v14939_v35, 4 }
 0x36d   : > { %v15812_v29 = vperm.slane %v1636_v28, %v14780_v1 }
 0x36e   : > { %7475 = vxpose.xlu1.b32.start.end [1/1] (short) (narrow) %v15775_v34, 8  ;;  %v15800_v20 = vpop.trf.xlu0  ;;  %v1638_v32 = vsel %vm435_vm0, %v1630_v57, %v1637_v31  ;;  %v1680_v31 = vsel %vm435_vm0, %v1679_v62, %v19391_v58  ;;  %v1379_v62 = vrot.slane %v15533_v26, 4 }
 0x36f   : > { %19386 = vst [vmem:[#allocation33_spill] sm:$0xff] %v15800_v20  ;;  %v1659_v28 = vrot.slane %v15812_v29, 4  ;;  %v1649_v20 = vrot.slane %v1622_v5, 4 }
 0x370   : > { %6067 = vxpose.xlu2.b32.start.end [1/1] (short) (narrow) %v15488_v54, 8  ;;  %v15802_v54 = vpop.trf.xlu1 }
 0x371   : > { %v15792_v4 = vpop.trf.xlu2  ;;  %7443 = vxpose.xlu0.b32.start.end [1/1] (short) (narrow) %v1606_v56, 8  ;;  %19387 = vst [vmem:[#allocation118_spill] sm:$0xff] %v15802_v54  ;;  %v1326_v56 = vsel %vm435_vm0, 0.0, %v1325_v19  ;;  %v1648_v54 = vsel %vm435_vm0, %v1647_v6, %v1622_v5  ;;  %v19392_v6 = vld [vmem:[#allocation35_spill] sm:$0xff] }
 0x372   : > { %v1654_v51 = vperm.slane %v1648_v54, %v14780_v1 }
 0x376   : > { %7571 = vxpose.xlu1.b32.start.end [1/1] (short) (narrow) %v1610_v0, 8  ;;  %v15816_v0 = vperm.slane %v1638_v32, %v14780_v1  ;;  %v15820_v19 = vpop.trf.xlu0  ;;  %v1663_v32 = vrot.slane %v1654_v51, 4 }
 0x377   : > { %19389 = vst [vmem:[#allocation120_spill] sm:$0xff] %v15820_v19  ;;  %v1660_v19 = vsel %vm435_vm0, 0.0, %v1659_v28 }
 0x378   : > { %6163 = vxpose.xlu2.b32.start.end [1/1] (short) (narrow) %v1326_v56, 8  ;;  %v15822_v57 = vpop.trf.xlu1  ;;  %v1686_v56 = vperm.slane %v1680_v31, %v14768_v61  ;;  %v1664_v42 = vsel %vm435_vm0, 0.0, %v1663_v32  ;;  %v1681_v31 = vrot.slane %v19391_v58, 4  ;;  %v1735_v32 = vrot.slane %v15007_v14, 4 }
 0x379   : > { %v15809_v39 = vpop.trf.xlu2  ;;  %7539 = vxpose.xlu0.b32.start.end [1/1] (short) (narrow) %v1602_v36, 8  ;;  %19390 = vst [vmem:[#allocation121_spill] sm:$0xff] %v15822_v57  ;;  %v1668_v36 = vsel %vm435_vm0, %v1667_v23, %v19392_v6 }
 0x37a   : > { %19388 = vst [vmem:[#allocation119_spill] sm:$0xff] %v15809_v39  ;;  %v1674_v57 = vperm.slane %v1668_v36, %v14768_v61  ;;  %v1691_v39 = vrot.slane %v1686_v56, 4 }
 0x37c   : > { %v1692_v28 = vsel %vm435_vm0, %v1691_v39, %v1674_v57 }
 0x37e   : > { %7667 = vxpose.xlu1.b32.start.end [1/1] (short) (narrow) %v15816_v0, 8  ;;  %v15838_v46 = vpop.trf.xlu0 }
 0x37f   : > { %19394 = vst [vmem:[#allocation35_spill] sm:$0xff] %v15838_v46 }
 0x380   : > { %6259 = vxpose.xlu2.b32.start.end [1/1] (short) (narrow) %v15521_v25, 8  ;;  %v15840_v23 = vpop.trf.xlu1  ;;  %v1650_v25 = vsel %vm435_vm0, %v1634_v38, %v1649_v20  ;;  %v1682_v38 = vsel %vm435_vm0, %v14978_v17, %v1681_v31  ;;  %v15857_v20 = vperm.slane %v1692_v28, %v14780_v1 }
 0x381   : > { %v15832_v54 = vpop.trf.xlu2  ;;  %7635 = vxpose.xlu0.b32.start.end [1/1] (short) (narrow) %v1660_v19, 8  ;;  %19395 = vst [vmem:[#allocation122_spill] sm:$0xff] %v15840_v23  ;;  %v1380_v19 = vsel %vm435_vm0, 0.0, %v1379_v62  ;;  %v15849_v5 = vperm.slane %v1650_v25, %v14780_v1  ;;  %v19400_v62 = vld [vmem:[#allocation66_spill] sm:$0xff] }
 0x382   : > { %19393 = vst [vmem:[#allocation36_spill] sm:$0xff] %v15832_v54  ;;  %v1693_v54 = vrot.slane %v1674_v57, 4  ;;  %v1723_v25 = vrot.slane %v19400_v62, 4 }
 0x384   : > { %v1694_v36 = vsel %vm435_vm0, %v1686_v56, %v1693_v54  ;;  %v1665_v56 = vrot.slane %v15849_v5, 4  ;;  %v19399_v54 = vld [vmem:[#allocation38_spill] sm:$0xff] }
 0x385   : > { %v1702_v39 = vperm.slane %v1694_v36, %v14780_v1 }
 0x386   : > { %7763 = vxpose.xlu1.b32.start.end [1/1] (short) (narrow) %v1664_v42, 8  ;;  %v1669_v42 = vrot.slane %v19392_v6, 4  ;;  %v15860_v57 = vpop.trf.xlu0  ;;  %v1736_v6 = vsel %vm435_vm0, %v1735_v32, %v19399_v54  ;;  %v1666_v36 = vsel %vm435_vm0, 0.0, %v1665_v56  ;;  %v1385_v32 = vrot.slane %v15570_v22, 4 }
 0x387   : > { %19397 = vst [vmem:[#allocation124_spill] sm:$0xff] %v15860_v57  ;;  %v1717_v31 = vrot.slane %v1702_v39, 4 }
 0x388   : > { %6355 = vxpose.xlu2.b32.start.end [1/1] (short) (narrow) %v1380_v19, 8  ;;  %v15862_v58 = vpop.trf.xlu1  ;;  %v1670_v17 = vsel %vm435_vm0, %v14939_v35, %v1669_v42  ;;  %v1742_v19 = vperm.slane %v1736_v6, %v14768_v61 }
 0x389   : > { %v15846_v26 = vpop.trf.xlu2  ;;  %7731 = vxpose.xlu0.b32.start.end [1/1] (short) (narrow) %v1654_v51, 8  ;;  %19398 = vst [vmem:[#allocation125_spill] sm:$0xff] %v15862_v58  ;;  %v1690_v51 = vperm.slane %v1682_v38, %v14768_v61  ;;  %v1678_v23 = vperm.slane %v1670_v17, %v14768_v61  ;;  %v19401_v58 = vld [vmem:[#allocation37_spill] sm:$0xff]  ;;  %v1718_v42 = vsel %vm435_vm0, 0.0, %v1717_v31 }
 0x38a   : > { %19396 = vst [vmem:[#allocation123_spill] sm:$0xff] %v15846_v26  ;;  %v1724_v35 = vsel %vm435_vm0, %v1723_v25, %v19401_v58  ;;  %v1747_v6 = vrot.slane %v1742_v19, 4  ;;  %v1737_v25 = vrot.slane %v19399_v54, 4 }
 0x38b   : > { %v1703_v38 = vrot.slane %v1690_v51, 4  ;;  %v1705_v46 = vrot.slane %v1678_v23, 4  ;;  %v1730_v17 = vperm.slane %v1724_v35, %v14768_v61 }
 0x38d   : > { %v1704_v56 = vsel %vm435_vm0, %v1703_v38, %v1678_v23  ;;  %v1706_v22 = vsel %vm435_vm0, %v1690_v51, %v1705_v46  ;;  %v1725_v23 = vrot.slane %v19401_v58, 4  ;;  %v1738_v51 = vsel %vm435_vm0, %v15007_v14, %v1737_v25 }
 0x38e   : > { %7859 = vxpose.xlu1.b32.start.end [1/1] (short) (narrow) %v15857_v20, 8  ;;  %v15882_v57 = vpop.trf.xlu0  ;;  %v15894_v31 = vperm.slane %v1704_v56, %v14780_v1  ;;  %v1746_v35 = vperm.slane %v1738_v51, %v14768_v61  ;;  %v1439_v14 = vrot.slane %v15611_v45, 4  ;;  %v19409_v51 = vld [vmem:[#allocation69_spill] sm:$0xff] }
 0x38f   : > { %19402 = vst [vmem:[#allocation38_spill] sm:$0xff] %v15882_v57 }
 0x390   : > { %6451 = vxpose.xlu2.b32.start.end [1/1] (short) (narrow) %v15566_v2, 8  ;;  %v15884_v2 = vpop.trf.xlu1  ;;  %v1719_v54 = vrot.slane %v15894_v31, 4 }
 0x391   : > { %v15874_v28 = vpop.trf.xlu2  ;;  %7827 = vxpose.xlu0.b32.start.end [1/1] (short) (narrow) %v1666_v36, 8  ;;  %19403 = vst [vmem:[#allocation66_spill] sm:$0xff] %v15884_v2  ;;  %v1386_v36 = vsel %vm435_vm0, 0.0, %v1385_v32  ;;  %v1748_v2 = vsel %vm435_vm0, %v1747_v6, %v1730_v17 }
 0x392   : > { %v1754_v38 = vperm.slane %v1748_v2, %v14780_v1  ;;  %v1720_v6 = vsel %vm435_vm0, 0.0, %v1719_v54  ;;  %v1440_v54 = vsel %vm435_vm0, 0.0, %v1439_v14 }
 0x394   : > { %v1771_v58 = vrot.slane %v1754_v38, 4 }
 0x396   : > { %7955 = vxpose.xlu1.b32.start.end [1/1] (short) (narrow) %v1718_v42, 8  ;;  %v15898_v42 = vperm.slane %v1706_v22, %v14780_v1  ;;  %v15902_v32 = vpop.trf.xlu0  ;;  %v1759_v22 = vrot.slane %v1746_v35, 4  ;;  %v1772_v25 = vsel %vm435_vm0, 0.0, %v1771_v58 }
 0x397   : > { %19404 = vst [vmem:[#allocation37_spill] sm:$0xff] %v15902_v32  ;;  %v1791_v32 = vrot.slane %v19409_v51, 4 }
 0x398   : > { %6547 = vxpose.xlu2.b32.start.end [1/1] (short) (narrow) %v1386_v36, 8  ;;  %v15904_v46 = vpop.trf.xlu1  ;;  %v1749_v36 = vrot.slane %v1730_v17, 4 }
 0x399   : > { %v15891_v26 = vpop.trf.xlu2  ;;  %7923 = vxpose.xlu0.b32.start.end [1/1] (short) (narrow) %v1702_v39, 8  ;;  %19405 = vst [vmem:[#allocation126_spill] sm:$0xff] %v15904_v46  ;;  %v1726_v39 = vsel %vm435_vm0, %v19400_v62, %v1725_v23 }
 0x39a   : > { %v1734_v56 = vperm.slane %v1726_v39, %v14768_v61 }
 0x39c   : > { %v1761_v23 = vrot.slane %v1734_v56, 4  ;;  %v1760_v39 = vsel %vm435_vm0, %v1759_v22, %v1734_v56 }
 0x39d   : > { %v15939_v14 = vperm.slane %v1760_v39, %v14780_v1 }
 0x39e   : > { %8051 = vxpose.xlu1.b32.start.end [1/1] (short) (narrow) %v15898_v42, 8  ;;  %v15920_v46 = vpop.trf.xlu0  ;;  %v1762_v58 = vsel %vm435_vm0, %v1746_v35, %v1761_v23  ;;  %v19415_v23 = vld [vmem:[#allocation39_spill] sm:$0xff] }
 0x39f   : > { %19407 = vst [vmem:[#allocation128_spill] sm:$0xff] %v15920_v46  ;;  %v1770_v56 = vperm.slane %v1762_v58, %v14780_v1  ;;  %v1781_v39 = vrot.slane %v19415_v23, 4 }
 0x3a0   : > { %6643 = vxpose.xlu2.b32.start.end [1/1] (short) (narrow) %v15603_v27, 8  ;;  %v15922_v62 = vpop.trf.xlu1  ;;  %v1750_v27 = vsel %vm435_vm0, %v1742_v19, %v1749_v36 }
 0x3a1   : > { %v15914_v2 = vpop.trf.xlu2  ;;  %8019 = vxpose.xlu0.b32.start.end [1/1] (short) (narrow) %v1720_v6, 8  ;;  %19408 = vst [vmem:[#allocation129_spill] sm:$0xff] %v15922_v62  ;;  %v15931_v17 = vperm.slane %v1750_v27, %v14780_v1  ;;  %v19411_v6 = vld [vmem:[#allocation41_spill] sm:$0xff]  ;;  %v1777_v58 = vrot.slane %v1770_v56, 4 }
 0x3a2   : > { %19406 = vst [vmem:[#allocation127_spill] sm:$0xff] %v15914_v2  ;;  %v1793_v62 = vrot.slane %v19411_v6, 4  ;;  %v1792_v36 = vsel %vm435_vm0, %v1791_v32, %v19411_v6 }
 0x3a3   : > { %v1773_v35 = vrot.slane %v15931_v17, 4  ;;  %v1798_v27 = vperm.slane %v1792_v36, %v14768_v61 }
 0x3a5   : > { %v1803_v57 = vrot.slane %v1798_v27, 4 }
 0x3a6   : > { %8147 = vxpose.xlu1.b32.start.end [1/1] (short) (narrow) %v1772_v25, 8  ;;  %v19412_v25 = vld [vmem:[#allocation67_spill] sm:$0xff]  ;;  %v15942_v22 = vpop.trf.xlu0 }
 0x3a7   : > { %v1779_v19 = vrot.slane %v19412_v25, 4  ;;  %19413 = vst [vmem:[#allocation41_spill] sm:$0xff] %v15942_v22  ;;  %v1774_v22 = vsel %vm435_vm0, 0.0, %v1773_v35 }
 0x3a8   : > { %6739 = vxpose.xlu2.b32.start.end [1/1] (short) (narrow) %v1440_v54, 8  ;;  %v15944_v54 = vpop.trf.xlu1 }
 0x3a9   : > { %v15928_v45 = vpop.trf.xlu2  ;;  %8115 = vxpose.xlu0.b32.start.end [1/1] (short) (narrow) %v1754_v38, 8  ;;  %19414 = vst [vmem:[#allocation67_spill] sm:$0xff] %v15944_v54  ;;  %v1794_v38 = vsel %vm435_vm0, %v19409_v51, %v1793_v62  ;;  %v1780_v32 = vsel %vm435_vm0, %v1779_v19, %v19415_v23  ;;  %v1493_v62 = vrot.slane %v15652_v55, 4  ;;  %v1782_v51 = vsel %vm435_vm0, %v19412_v25, %v1781_v39 }
 0x3aa   : > { %19410 = vst [vmem:[#allocation69_spill] sm:$0xff] %v15928_v45  ;;  %v1802_v6 = vperm.slane %v1794_v38, %v14768_v61  ;;  %v1786_v46 = vperm.slane %v1780_v32, %v14768_v61  ;;  %v1778_v19 = vsel %vm435_vm0, 0.0, %v1777_v58  ;;  %v1790_v32 = vperm.slane %v1782_v51, %v14768_v61 }
 0x3ab   : > { %v1847_v25 = vrot.slane %v15044_v52, 4 }
 0x3ac   : > { %v1815_v38 = vrot.slane %v1802_v6, 4  ;;  %v1805_v23 = vrot.slane %v1786_v46, 4  ;;  %v1804_v35 = vsel %vm435_vm0, %v1803_v57, %v1786_v46  ;;  %v19420_v57 = vld [vmem:[#allocation68_spill] sm:$0xff] }
 0x3ad   : > { %v15976_v58 = vperm.slane %v1804_v35, %v14780_v1  ;;  %v1835_v46 = vrot.slane %v19420_v57, 4 }
 0x3ae   : > { %8243 = vxpose.xlu1.b32.start.end [1/1] (short) (narrow) %v15939_v14, 8  ;;  %v15964_v36 = vpop.trf.xlu0  ;;  %v1806_v55 = vsel %vm435_vm0, %v1798_v27, %v1805_v23  ;;  %v19423_v23 = vld [vmem:[#allocation43_spill] sm:$0xff] }
 0x3af   : > { %19417 = vst [vmem:[#allocation130_spill] sm:$0xff] %v15964_v36  ;;  %v1827_v35 = vrot.slane %v15976_v58, 4 }
 0x3b0   : > { %6835 = vxpose.xlu2.b32.start.end [1/1] (short) (narrow) %v15648_v60, 8  ;;  %v15966_v60 = vpop.trf.xlu1 }
 0x3b1   : > { %v15956_v54 = vpop.trf.xlu2  ;;  %8211 = vxpose.xlu0.b32.start.end [1/1] (short) (narrow) %v1774_v22, 8  ;;  %19418 = vst [vmem:[#allocation131_spill] sm:$0xff] %v15966_v60  ;;  %v1494_v22 = vsel %vm435_vm0, 0.0, %v1493_v62  ;;  %v1816_v60 = vsel %vm435_vm0, %v1815_v38, %v1790_v32  ;;  %v19424_v38 = vld [vmem:[#allocation40_spill] sm:$0xff] }
 0x3b2   : > { %19416 = vst [vmem:[#allocation39_spill] sm:$0xff] %v15956_v54  ;;  %v1822_v62 = vperm.slane %v1816_v60, %v14780_v1 }
 0x3b4   : > { %v1831_v36 = vrot.slane %v1822_v62, 4 }
 0x3b6   : > { %8339 = vxpose.xlu1.b32.start.end [1/1] (short) (narrow) %v1778_v19, 8  ;;  %v15980_v19 = vperm.slane %v1806_v55, %v14780_v1  ;;  %v15984_v51 = vpop.trf.xlu0  ;;  %v1832_v2 = vsel %vm435_vm0, 0.0, %v1831_v36 }
 0x3b7   : > { %19421 = vst [vmem:[#allocation68_spill] sm:$0xff] %v15984_v51  ;;  %v1828_v51 = vsel %vm435_vm0, 0.0, %v1827_v35 }
 0x3b8   : > { %6931 = vxpose.xlu2.b32.start.end [1/1] (short) (narrow) %v1494_v22, 8  ;;  %v15986_v27 = vpop.trf.xlu1  ;;  %v1848_v22 = vsel %vm435_vm0, %v1847_v25, %v19423_v23  ;;  %v1547_v25 = vrot.slane %v15693_v15, 4 }
 0x3b9   : > { %v15973_v39 = vpop.trf.xlu2  ;;  %8307 = vxpose.xlu0.b32.start.end [1/1] (short) (narrow) %v1770_v56, 8  ;;  %19422 = vst [vmem:[#allocation133_spill] sm:$0xff] %v15986_v27  ;;  %v1836_v56 = vsel %vm435_vm0, %v1835_v46, %v19424_v38  ;;  %v1854_v55 = vperm.slane %v1848_v22, %v14768_v61  ;;  %v1849_v22 = vrot.slane %v19423_v23, 4 }
 0x3ba   : > { %19419 = vst [vmem:[#allocation132_spill] sm:$0xff] %v15973_v39  ;;  %v1842_v27 = vperm.slane %v1836_v56, %v14768_v61  ;;  %v1817_v39 = vrot.slane %v1790_v32, 4  ;;  %v1903_v56 = vrot.slane %v15074_v49, 4 }
 0x3bb   : > { %v1859_v45 = vrot.slane %v1854_v55, 4 }
 0x3bd   : > { %v1860_v35 = vsel %vm435_vm0, %v1859_v45, %v1842_v27 }
 0x3be   : > { %8435 = vxpose.xlu1.b32.start.end [1/1] (short) (narrow) %v15980_v19, 8  ;;  %v16002_v54 = vpop.trf.xlu0 }
 0x3bf   : > { %19426 = vst [vmem:[#allocation40_spill] sm:$0xff] %v16002_v54 }
 0x3c0   : > { %7027 = vxpose.xlu2.b32.start.end [1/1] (short) (narrow) %v15685_v40, 8  ;;  %v16004_v46 = vpop.trf.xlu1  ;;  %v1818_v40 = vsel %vm435_vm0, %v1802_v6, %v1817_v39  ;;  %v1850_v6 = vsel %vm435_vm0, %v15044_v52, %v1849_v22  ;;  %v16021_v39 = vperm.slane %v1860_v35, %v14780_v1 }
 0x3c1   : > { %v15996_v60 = vpop.trf.xlu2  ;;  %8403 = vxpose.xlu0.b32.start.end [1/1] (short) (narrow) %v1828_v51, 8  ;;  %19427 = vst [vmem:[#allocation134_spill] sm:$0xff] %v16004_v46  ;;  %v1548_v51 = vsel %vm435_vm0, 0.0, %v1547_v25  ;;  %v16013_v36 = vperm.slane %v1818_v40, %v14780_v1  ;;  %v19432_v25 = vld [vmem:[#allocation70_spill] sm:$0xff] }
 0x3c2   : > { %19425 = vst [vmem:[#allocation43_spill] sm:$0xff] %v15996_v60  ;;  %v1861_v60 = vrot.slane %v1842_v27, 4  ;;  %v1891_v40 = vrot.slane %v19432_v25, 4 }
 0x3c4   : > { %v1862_v32 = vsel %vm435_vm0, %v1854_v55, %v1861_v60  ;;  %v1833_v55 = vrot.slane %v16013_v36, 4  ;;  %v19431_v60 = vld [vmem:[#allocation45_spill] sm:$0xff] }
 0x3c5   : > { %v1870_v45 = vperm.slane %v1862_v32, %v14780_v1 }
 0x3c6   : > { %8531 = vxpose.xlu1.b32.start.end [1/1] (short) (narrow) %v1832_v2, 8  ;;  %v1837_v2 = vrot.slane %v19424_v38, 4  ;;  %v16024_v27 = vpop.trf.xlu0  ;;  %v1904_v38 = vsel %vm435_vm0, %v1903_v56, %v19431_v60  ;;  %v1834_v32 = vsel %vm435_vm0, 0.0, %v1833_v55  ;;  %v1553_v56 = vrot.slane %v15734_v63, 4 }
 0x3c7   : > { %19429 = vst [vmem:[#allocation136_spill] sm:$0xff] %v16024_v27  ;;  %v1885_v22 = vrot.slane %v1870_v45, 4 }
 0x3c8   : > { %7123 = vxpose.xlu2.b32.start.end [1/1] (short) (narrow) %v1548_v51, 8  ;;  %v16026_v23 = vpop.trf.xlu1  ;;  %v1838_v52 = vsel %vm435_vm0, %v19420_v57, %v1837_v2  ;;  %v1910_v51 = vperm.slane %v1904_v38, %v14768_v61 }
 0x3c9   : > { %v16010_v15 = vpop.trf.xlu2  ;;  %8499 = vxpose.xlu0.b32.start.end [1/1] (short) (narrow) %v1822_v62, 8  ;;  %19430 = vst [vmem:[#allocation137_spill] sm:$0xff] %v16026_v23  ;;  %v1858_v62 = vperm.slane %v1850_v6, %v14768_v61  ;;  %v1846_v46 = vperm.slane %v1838_v52, %v14768_v61  ;;  %v19433_v23 = vld [vmem:[#allocation42_spill] sm:$0xff]  ;;  %v1886_v2 = vsel %vm435_vm0, 0.0, %v1885_v22 }
 0x3ca   : > { %19428 = vst [vmem:[#allocation135_spill] sm:$0xff] %v16010_v15  ;;  %v1892_v57 = vsel %vm435_vm0, %v1891_v40, %v19433_v23  ;;  %v1915_v38 = vrot.slane %v1910_v51, 4  ;;  %v1905_v40 = vrot.slane %v19431_v60, 4 }
 0x3cb   : > { %v1871_v6 = vrot.slane %v1858_v62, 4  ;;  %v1873_v54 = vrot.slane %v1846_v46, 4  ;;  %v1898_v52 = vperm.slane %v1892_v57, %v14768_v61 }
 0x3cd   : > { %v1872_v55 = vsel %vm435_vm0, %v1871_v6, %v1846_v46  ;;  %v1874_v63 = vsel %vm435_vm0, %v1858_v62, %v1873_v54  ;;  %v1893_v46 = vrot.slane %v19433_v23, 4  ;;  %v1906_v62 = vsel %vm435_vm0, %v15074_v49, %v1905_v40 }
 0x3ce   : > { %8627 = vxpose.xlu1.b32.start.end [1/1] (short) (narrow) %v16021_v39, 8  ;;  %v16046_v27 = vpop.trf.xlu0  ;;  %v16058_v22 = vperm.slane %v1872_v55, %v14780_v1  ;;  %v1914_v57 = vperm.slane %v1906_v62, %v14768_v61  ;;  %v1607_v49 = vrot.slane %v15775_v34, 4  ;;  %v1959_v62 = vrot.slane %v15092_v47, 4 }
 0x3cf   : > { %19434 = vst [vmem:[#allocation45_spill] sm:$0xff] %v16046_v27 }
 0x3d0   : > { %7219 = vxpose.xlu2.b32.start.end [1/1] (short) (narrow) %v15730_v11, 8  ;;  %v16048_v11 = vpop.trf.xlu1  ;;  %v1887_v60 = vrot.slane %v16058_v22, 4 }
 0x3d1   : > { %v16038_v35 = vpop.trf.xlu2  ;;  %8595 = vxpose.xlu0.b32.start.end [1/1] (short) (narrow) %v1834_v32, 8  ;;  %19435 = vst [vmem:[#allocation70_spill] sm:$0xff] %v16048_v11  ;;  %v1554_v32 = vsel %vm435_vm0, 0.0, %v1553_v56  ;;  %v1916_v11 = vsel %vm435_vm0, %v1915_v38, %v1898_v52 }
 0x3d2   : > { %v1922_v6 = vperm.slane %v1916_v11, %v14780_v1  ;;  %v1888_v38 = vsel %vm435_vm0, 0.0, %v1887_v60  ;;  %v1608_v60 = vsel %vm435_vm0, 0.0, %v1607_v49 }
 0x3d4   : > { %v1939_v23 = vrot.slane %v1922_v6, 4 }
 0x3d6   : > { %8723 = vxpose.xlu1.b32.start.end [1/1] (short) (narrow) %v1886_v2, 8  ;;  %v16062_v2 = vperm.slane %v1874_v63, %v14780_v1  ;;  %v16066_v56 = vpop.trf.xlu0  ;;  %v1927_v63 = vrot.slane %v1914_v57, 4  ;;  %v1940_v40 = vsel %vm435_vm0, 0.0, %v1939_v23 }
 0x3d7   : > { %19436 = vst [vmem:[#allocation42_spill] sm:$0xff] %v16066_v56 }
 0x3d8   : > { %7315 = vxpose.xlu2.b32.start.end [1/1] (short) (narrow) %v1554_v32, 8  ;;  %v16068_v54 = vpop.trf.xlu1  ;;  %v1917_v32 = vrot.slane %v1898_v52, 4 }
 0x3d9   : > { %v16055_v15 = vpop.trf.xlu2  ;;  %8691 = vxpose.xlu0.b32.start.end [1/1] (short) (narrow) %v1870_v45, 8  ;;  %19437 = vst [vmem:[#allocation138_spill] sm:$0xff] %v16068_v54  ;;  %v1894_v45 = vsel %vm435_vm0, %v19432_v25, %v1893_v46 }
 0x3da   : > { %v1902_v55 = vperm.slane %v1894_v45, %v14768_v61 }
 0x3dc   : > { %v1929_v46 = vrot.slane %v1902_v55, 4  ;;  %v1928_v45 = vsel %vm435_vm0, %v1927_v63, %v1902_v55 }
 0x3dd   : > { %v16103_v49 = vperm.slane %v1928_v45, %v14780_v1 }
 0x3de   : > { %8819 = vxpose.xlu1.b32.start.end [1/1] (short) (narrow) %v16062_v2, 8  ;;  %v16084_v54 = vpop.trf.xlu0  ;;  %v1930_v23 = vsel %vm435_vm0, %v1914_v57, %v1929_v46  ;;  %v19443_v46 = vld [vmem:[#allocation44_spill] sm:$0xff] }
 0x3df   : > { %19438 = vst [vmem:[#allocation139_spill] sm:$0xff] %v16084_v54  ;;  %v1938_v55 = vperm.slane %v1930_v23, %v14780_v1 }
 0x3e0   : > { %7411 = vxpose.xlu2.b32.start.end [1/1] (short) (narrow) %v15767_v53, 8  ;;  %v16086_v25 = vpop.trf.xlu1  ;;  %v1918_v53 = vsel %vm435_vm0, %v1910_v51, %v1917_v32  ;;  %v1947_v51 = vrot.slane %v15050_v13, 4 }
 0x3e1   : > { %v16078_v11 = vpop.trf.xlu2  ;;  %8787 = vxpose.xlu0.b32.start.end [1/1] (short) (narrow) %v1888_v38, 8  ;;  %19439 = vst [vmem:[#allocation140_spill] sm:$0xff] %v16086_v25  ;;  %v16095_v52 = vperm.slane %v1918_v53, %v14780_v1  ;;  %v19440_v38 = vld [vmem:[#allocation47_spill] sm:$0xff]  ;;  %v1945_v45 = vrot.slane %v1938_v55, 4 }
 0x3e2   : > { %v1961_v25 = vrot.slane %v19440_v38, 4  ;;  %v1960_v32 = vsel %vm435_vm0, %v1959_v62, %v19440_v38  ;;  %v1948_v62 = vsel %vm435_vm0, %v1947_v51, %v19443_v46 }
 0x3e3   : > { %v1941_v57 = vrot.slane %v16095_v52, 4  ;;  %v1966_v53 = vperm.slane %v1960_v32, %v14768_v61  ;;  %v1946_v51 = vsel %vm435_vm0, 0.0, %v1945_v45 }
 0x3e5   : > { %v1971_v56 = vrot.slane %v1966_v53, 4 }
 0x3e6   : > { %8915 = vxpose.xlu1.b32.start.end [1/1] (short) (narrow) %v1940_v40, 8  ;;  %v16106_v63 = vpop.trf.xlu0 }
 0x3e7   : > { %19441 = vst [vmem:[#allocation47_spill] sm:$0xff] %v16106_v63  ;;  %v1954_v63 = vperm.slane %v1948_v62, %v14768_v61 }
 0x3e8   : > { %7507 = vxpose.xlu2.b32.start.end [1/1] (short) (narrow) %v1608_v60, 8  ;;  %v16108_v40 = vpop.trf.xlu1  ;;  %v1949_v60 = vrot.slane %v19443_v46, 4 }
 0x3e9   : > { %v16092_v34 = vpop.trf.xlu2  ;;  %8883 = vxpose.xlu0.b32.start.end [1/1] (short) (narrow) %v1922_v6, 8  ;;  %19442 = vst [vmem:[#allocation141_spill] sm:$0xff] %v16108_v40  ;;  %v1962_v6 = vsel %vm435_vm0, %v15092_v47, %v1961_v25  ;;  %v1942_v40 = vsel %vm435_vm0, 0.0, %v1941_v57  ;;  %v1661_v47 = vrot.slane %v15816_v0, 4  ;;  %v1973_v46 = vrot.slane %v1954_v63, 4 }
 0x3ea   : > { %v1970_v23 = vperm.slane %v1962_v6, %v14768_v61  ;;  %v1950_v25 = vsel %vm435_vm0, %v15050_v13, %v1949_v60  ;;  %v1972_v57 = vsel %vm435_vm0, %v1971_v56, %v1954_v63  ;;  %v2015_v13 = vrot.slane %v15112_v24, 4 }
 0x3eb   : > { %v1958_v62 = vperm.slane %v1950_v25, %v14768_v61  ;;  %v1974_v0 = vsel %vm435_vm0, %v1966_v53, %v1973_v46  ;;  %v16140_v45 = vperm.slane %v1972_v57, %v14780_v1  ;;  %v2003_v56 = vrot.slane %v15078_v18, 4  ;;  %v19449_v25 = vld [vmem:[#allocation50_spill] sm:$0xff] }
 0x3ec   : > { %v1983_v6 = vrot.slane %v1970_v23, 4  ;;  %v2016_v46 = vsel %vm435_vm0, %v2015_v13, %v19449_v25  ;;  %v1715_v13 = vrot.slane %v15857_v20, 4 }
 0x3ed   : > { %v1995_v57 = vrot.slane %v16140_v45, 4 }
 0x3ee   : > { %9011 = vxpose.xlu1.b32.start.end [1/1] (short) (narrow) %v16103_v49, 8  ;;  %v16128_v32 = vpop.trf.xlu0 }
 0x3ef   : > { %19444 = vst [vmem:[#allocation44_spill] sm:$0xff] %v16128_v32  ;;  %v1985_v32 = vrot.slane %v1958_v62, 4 }
 0x3f0   : > { %7603 = vxpose.xlu2.b32.start.end [1/1] (short) (narrow) %v15812_v29, 8  ;;  %v16130_v29 = vpop.trf.xlu1 }
 0x3f1   : > { %v16120_v38 = vpop.trf.xlu2  ;;  %8979 = vxpose.xlu0.b32.start.end [1/1] (short) (narrow) %v1942_v40, 8  ;;  %19445 = vst [vmem:[#allocation142_spill] sm:$0xff] %v16130_v29  ;;  %v1662_v40 = vsel %vm435_vm0, 0.0, %v1661_v47  ;;  %v1984_v29 = vsel %vm435_vm0, %v1983_v6, %v1958_v62  ;;  %v19450_v6 = vld [vmem:[#allocation46_spill] sm:$0xff] }
 0x3f2   : > { %v1990_v63 = vperm.slane %v1984_v29, %v14780_v1 }
 0x3f6   : > { %9107 = vxpose.xlu1.b32.start.end [1/1] (short) (narrow) %v1946_v51, 8  ;;  %v16144_v51 = vperm.slane %v1974_v0, %v14780_v1  ;;  %v16148_v47 = vpop.trf.xlu0  ;;  %v1999_v0 = vrot.slane %v1990_v63, 4 }
 0x3f7   : > { %19447 = vst [vmem:[#allocation144_spill] sm:$0xff] %v16148_v47  ;;  %v1996_v47 = vsel %vm435_vm0, 0.0, %v1995_v57 }
 0x3f8   : > { %7699 = vxpose.xlu2.b32.start.end [1/1] (short) (narrow) %v1662_v40, 8  ;;  %v16150_v53 = vpop.trf.xlu1  ;;  %v2022_v40 = vperm.slane %v2016_v46, %v14768_v61  ;;  %v2000_v54 = vsel %vm435_vm0, 0.0, %v1999_v0  ;;  %v2017_v46 = vrot.slane %v19449_v25, 4  ;;  %v2071_v0 = vrot.slane %v15139_v41, 4 }
 0x3f9   : > { %v16137_v60 = vpop.trf.xlu2  ;;  %9075 = vxpose.xlu0.b32.start.end [1/1] (short) (narrow) %v1938_v55, 8  ;;  %19448 = vst [vmem:[#allocation145_spill] sm:$0xff] %v16150_v53  ;;  %v2004_v55 = vsel %vm435_vm0, %v2003_v56, %v19450_v6 }
 0x3fa   : > { %19446 = vst [vmem:[#allocation143_spill] sm:$0xff] %v16137_v60  ;;  %v2010_v53 = vperm.slane %v2004_v55, %v14768_v61  ;;  %v2027_v27 = vrot.slane %v2022_v40, 4 }
 0x3fc   : > { %v2028_v57 = vsel %vm435_vm0, %v2027_v27, %v2010_v53 }
 0x3fe   : > { %9203 = vxpose.xlu1.b32.start.end [1/1] (short) (narrow) %v16144_v51, 8  ;;  %v16166_v60 = vpop.trf.xlu0 }
 0x3ff   : > { %19452 = vst [vmem:[#allocation46_spill] sm:$0xff] %v16166_v60 }
 0x400   : > { %7795 = vxpose.xlu2.b32.start.end [1/1] (short) (narrow) %v15849_v5, 8  ;;  %v16168_v56 = vpop.trf.xlu1  ;;  %v1986_v5 = vsel %vm435_vm0, %v1970_v23, %v1985_v32  ;;  %v2018_v23 = vsel %vm435_vm0, %v15112_v24, %v2017_v46  ;;  %v16185_v32 = vperm.slane %v2028_v57, %v14780_v1 }
 0x401   : > { %v16160_v29 = vpop.trf.xlu2  ;;  %9171 = vxpose.xlu0.b32.start.end [1/1] (short) (narrow) %v1996_v47, 8  ;;  %19453 = vst [vmem:[#allocation146_spill] sm:$0xff] %v16168_v56  ;;  %v1716_v47 = vsel %vm435_vm0, 0.0, %v1715_v13  ;;  %v16177_v62 = vperm.slane %v1986_v5, %v14780_v1  ;;  %v2059_v13 = vrot.slane %v15099_v3, 4  ;;  %v19457_v56 = vld [vmem:[#allocation48_spill] sm:$0xff] }
 0x402   : > { %19451 = vst [vmem:[#allocation50_spill] sm:$0xff] %v16160_v29  ;;  %v2029_v29 = vrot.slane %v2010_v53, 4 }
 0x404   : > { %v2030_v55 = vsel %vm435_vm0, %v2022_v40, %v2029_v29  ;;  %v2001_v40 = vrot.slane %v16177_v62, 4  ;;  %v19456_v29 = vld [vmem:[#allocation53_spill] sm:$0xff] }
 0x405   : > { %v2038_v27 = vperm.slane %v2030_v55, %v14780_v1 }
 0x406   : > { %9299 = vxpose.xlu1.b32.start.end [1/1] (short) (narrow) %v2000_v54, 8  ;;  %v2005_v54 = vrot.slane %v19450_v6, 4  ;;  %v16188_v53 = vpop.trf.xlu0  ;;  %v2072_v6 = vsel %vm435_vm0, %v2071_v0, %v19456_v29  ;;  %v2002_v57 = vsel %vm435_vm0, 0.0, %v2001_v40  ;;  %v1721_v0 = vrot.slane %v15898_v42, 4 }
 0x407   : > { %19454 = vst [vmem:[#allocation147_spill] sm:$0xff] %v16188_v53  ;;  %v2053_v5 = vrot.slane %v2038_v27, 4  ;;  %v2078_v46 = vperm.slane %v2072_v6, %v14768_v61 }
 0x408   : > { %7891 = vxpose.xlu2.b32.start.end [1/1] (short) (narrow) %v1716_v47, 8  ;;  %v16190_v25 = vpop.trf.xlu1  ;;  %v2006_v24 = vsel %vm435_vm0, %v15078_v18, %v2005_v54  ;;  %v2060_v18 = vsel %vm435_vm0, %v2059_v13, %v19457_v56  ;;  %v2073_v13 = vrot.slane %v19456_v29, 4 }
 0x409   : > { %v16174_v20 = vpop.trf.xlu2  ;;  %9267 = vxpose.xlu0.b32.start.end [1/1] (short) (narrow) %v1990_v63, 8  ;;  %19455 = vst [vmem:[#allocation148_spill] sm:$0xff] %v16190_v25  ;;  %v2026_v63 = vperm.slane %v2018_v23, %v14768_v61  ;;  %v2014_v55 = vperm.slane %v2006_v24, %v14768_v61  ;;  %v2054_v54 = vsel %vm435_vm0, 0.0, %v2053_v5  ;;  %v2083_v6 = vrot.slane %v2078_v46, 4 }
 0x40a   : > { %v2066_v24 = vperm.slane %v2060_v18, %v14768_v61 }
 0x40b   : > { %v2039_v23 = vrot.slane %v2026_v63, 4  ;;  %v2041_v53 = vrot.slane %v2014_v55, 4 }
 0x40d   : > { %v2040_v40 = vsel %vm435_vm0, %v2039_v23, %v2014_v55  ;;  %v2042_v42 = vsel %vm435_vm0, %v2026_v63, %v2041_v53  ;;  %v2061_v55 = vrot.slane %v19457_v56, 4  ;;  %v2074_v63 = vsel %vm435_vm0, %v15139_v41, %v2073_v13 }
 0x40e   : > { %9395 = vxpose.xlu1.b32.start.end [1/1] (short) (narrow) %v16185_v32, 8  ;;  %v16210_v25 = vpop.trf.xlu0  ;;  %v16222_v5 = vperm.slane %v2040_v40, %v14780_v1  ;;  %v2082_v18 = vperm.slane %v2074_v63, %v14768_v61  ;;  %v1775_v41 = vrot.slane %v15939_v14, 4  ;;  %v19465_v63 = vld [vmem:[#allocation73_spill] sm:$0xff] }
 0x40f   : > { %19458 = vst [vmem:[#allocation53_spill] sm:$0xff] %v16210_v25 }
 0x410   : > { %7987 = vxpose.xlu2.b32.start.end [1/1] (short) (narrow) %v15894_v31, 8  ;;  %v16212_v31 = vpop.trf.xlu1  ;;  %v2055_v29 = vrot.slane %v16222_v5, 4 }
 0x411   : > { %v16202_v47 = vpop.trf.xlu2  ;;  %9363 = vxpose.xlu0.b32.start.end [1/1] (short) (narrow) %v2002_v57, 8  ;;  %19459 = vst [vmem:[#allocation48_spill] sm:$0xff] %v16212_v31  ;;  %v1722_v57 = vsel %vm435_vm0, 0.0, %v1721_v0  ;;  %v2084_v31 = vsel %vm435_vm0, %v2083_v6, %v2066_v24 }
 0x412   : > { %v2090_v23 = vperm.slane %v2084_v31, %v14780_v1  ;;  %v2056_v6 = vsel %vm435_vm0, 0.0, %v2055_v29  ;;  %v1776_v29 = vsel %vm435_vm0, 0.0, %v1775_v41 }
 0x414   : > { %v2107_v56 = vrot.slane %v2090_v23, 4 }
 0x416   : > { %9491 = vxpose.xlu1.b32.start.end [1/1] (short) (narrow) %v2054_v54, 8  ;;  %v16226_v54 = vperm.slane %v2042_v42, %v14780_v1  ;;  %v16230_v0 = vpop.trf.xlu0  ;;  %v2095_v42 = vrot.slane %v2082_v18, 4  ;;  %v2108_v13 = vsel %vm435_vm0, 0.0, %v2107_v56 }
 0x417   : > { %19460 = vst [vmem:[#allocation149_spill] sm:$0xff] %v16230_v0  ;;  %v2127_v0 = vrot.slane %v19465_v63, 4 }
 0x418   : > { %8083 = vxpose.xlu2.b32.start.end [1/1] (short) (narrow) %v1722_v57, 8  ;;  %v16232_v53 = vpop.trf.xlu1  ;;  %v2085_v57 = vrot.slane %v2066_v24, 4 }
 0x419   : > { %v16219_v60 = vpop.trf.xlu2  ;;  %9459 = vxpose.xlu0.b32.start.end [1/1] (short) (narrow) %v2038_v27, 8  ;;  %19461 = vst [vmem:[#allocation150_spill] sm:$0xff] %v16232_v53  ;;  %v2062_v27 = vsel %vm435_vm0, %v15099_v3, %v2061_v55 }
 0x41a   : > { %v2070_v40 = vperm.slane %v2062_v27, %v14768_v61 }
 0x41c   : > { %v2097_v55 = vrot.slane %v2070_v40, 4  ;;  %v2096_v27 = vsel %vm435_vm0, %v2095_v42, %v2070_v40 }
 0x41d   : > { %v16267_v41 = vperm.slane %v2096_v27, %v14780_v1 }
 0x41e   : > { %9587 = vxpose.xlu1.b32.start.end [1/1] (short) (narrow) %v16226_v54, 8  ;;  %v16248_v53 = vpop.trf.xlu0  ;;  %v2098_v56 = vsel %vm435_vm0, %v2082_v18, %v2097_v55  ;;  %v19471_v55 = vld [vmem:[#allocation49_spill] sm:$0xff] }
 0x41f   : > { %19463 = vst [vmem:[#allocation152_spill] sm:$0xff] %v16248_v53  ;;  %v2106_v40 = vperm.slane %v2098_v56, %v14780_v1  ;;  %v2117_v27 = vrot.slane %v19471_v55, 4 }
 0x420   : > { %8179 = vxpose.xlu2.b32.start.end [1/1] (short) (narrow) %v15931_v17, 8  ;;  %v16250_v3 = vpop.trf.xlu1  ;;  %v2086_v17 = vsel %vm435_vm0, %v2078_v46, %v2085_v57 }
 0x421   : > { %v16242_v31 = vpop.trf.xlu2  ;;  %9555 = vxpose.xlu0.b32.start.end [1/1] (short) (narrow) %v2056_v6, 8  ;;  %19464 = vst [vmem:[#allocation153_spill] sm:$0xff] %v16250_v3  ;;  %v16259_v24 = vperm.slane %v2086_v17, %v14780_v1  ;;  %v19467_v6 = vld [vmem:[#allocation55_spill] sm:$0xff]  ;;  %v2113_v56 = vrot.slane %v2106_v40, 4 }
 0x422   : > { %19462 = vst [vmem:[#allocation151_spill] sm:$0xff] %v16242_v31  ;;  %v2129_v3 = vrot.slane %v19467_v6, 4  ;;  %v2128_v57 = vsel %vm435_vm0, %v2127_v0, %v19467_v6 }
 0x423   : > { %v2109_v18 = vrot.slane %v16259_v24, 4  ;;  %v2134_v17 = vperm.slane %v2128_v57, %v14768_v61 }
 0x425   : > { %v2139_v25 = vrot.slane %v2134_v17, 4 }
 0x426   : > { %9683 = vxpose.xlu1.b32.start.end [1/1] (short) (narrow) %v2108_v13, 8  ;;  %v19468_v13 = vld [vmem:[#allocation71_spill] sm:$0xff]  ;;  %v16270_v42 = vpop.trf.xlu0 }
 0x427   : > { %v2115_v46 = vrot.slane %v19468_v13, 4  ;;  %19469 = vst [vmem:[#allocation55_spill] sm:$0xff] %v16270_v42  ;;  %v2110_v42 = vsel %vm435_vm0, 0.0, %v2109_v18 }
 0x428   : > { %8275 = vxpose.xlu2.b32.start.end [1/1] (short) (narrow) %v1776_v29, 8  ;;  %v16272_v29 = vpop.trf.xlu1 }
 0x429   : > { %v16256_v14 = vpop.trf.xlu2  ;;  %9651 = vxpose.xlu0.b32.start.end [1/1] (short) (narrow) %v2090_v23, 8  ;;  %19470 = vst [vmem:[#allocation71_spill] sm:$0xff] %v16272_v29  ;;  %v2130_v23 = vsel %vm435_vm0, %v19465_v63, %v2129_v3  ;;  %v2116_v0 = vsel %vm435_vm0, %v2115_v46, %v19471_v55  ;;  %v1829_v3 = vrot.slane %v15980_v19, 4  ;;  %v2118_v63 = vsel %vm435_vm0, %v19468_v13, %v2117_v27 }
 0x42a   : > { %19466 = vst [vmem:[#allocation73_spill] sm:$0xff] %v16256_v14  ;;  %v2138_v6 = vperm.slane %v2130_v23, %v14768_v61  ;;  %v2122_v53 = vperm.slane %v2116_v0, %v14768_v61  ;;  %v2114_v46 = vsel %vm435_vm0, 0.0, %v2113_v56  ;;  %v2126_v0 = vperm.slane %v2118_v63, %v14768_v61 }
 0x42b   : > { %v2183_v13 = vrot.slane %v15186_v21, 4 }
 0x42c   : > { %v2151_v23 = vrot.slane %v2138_v6, 4  ;;  %v2141_v55 = vrot.slane %v2122_v53, 4  ;;  %v2140_v18 = vsel %vm435_vm0, %v2139_v25, %v2122_v53  ;;  %v19476_v25 = vld [vmem:[#allocation72_spill] sm:$0xff] }
 0x42d   : > { %v16304_v56 = vperm.slane %v2140_v18, %v14780_v1  ;;  %v2171_v53 = vrot.slane %v19476_v25, 4 }
 0x42e   : > { %9779 = vxpose.xlu1.b32.start.end [1/1] (short) (narrow) %v16267_v41, 8  ;;  %v16292_v57 = vpop.trf.xlu0  ;;  %v2142_v19 = vsel %vm435_vm0, %v2134_v17, %v2141_v55  ;;  %v19479_v55 = vld [vmem:[#allocation57_spill] sm:$0xff] }
 0x42f   : > { %19473 = vst [vmem:[#allocation154_spill] sm:$0xff] %v16292_v57  ;;  %v2163_v18 = vrot.slane %v16304_v56, 4 }
 0x430   : > { %8371 = vxpose.xlu2.b32.start.end [1/1] (short) (narrow) %v15976_v58, 8  ;;  %v16294_v58 = vpop.trf.xlu1 }
 0x431   : > { %v16284_v29 = vpop.trf.xlu2  ;;  %9747 = vxpose.xlu0.b32.start.end [1/1] (short) (narrow) %v2110_v42, 8  ;;  %19474 = vst [vmem:[#allocation155_spill] sm:$0xff] %v16294_v58  ;;  %v1830_v42 = vsel %vm435_vm0, 0.0, %v1829_v3  ;;  %v2152_v58 = vsel %vm435_vm0, %v2151_v23, %v2126_v0  ;;  %v19480_v23 = vld [vmem:[#allocation52_spill] sm:$0xff] }
 0x432   : > { %19472 = vst [vmem:[#allocation49_spill] sm:$0xff] %v16284_v29  ;;  %v2158_v3 = vperm.slane %v2152_v58, %v14780_v1 }
 0x434   : > { %v2167_v57 = vrot.slane %v2158_v3, 4 }
 0x436   : > { %9875 = vxpose.xlu1.b32.start.end [1/1] (short) (narrow) %v2114_v46, 8  ;;  %v16308_v46 = vperm.slane %v2142_v19, %v14780_v1  ;;  %v16312_v63 = vpop.trf.xlu0  ;;  %v2168_v31 = vsel %vm435_vm0, 0.0, %v2167_v57 }
 0x437   : > { %19477 = vst [vmem:[#allocation72_spill] sm:$0xff] %v16312_v63  ;;  %v2164_v63 = vsel %vm435_vm0, 0.0, %v2163_v18 }
 0x438   : > { %8467 = vxpose.xlu2.b32.start.end [1/1] (short) (narrow) %v1830_v42, 8  ;;  %v16314_v17 = vpop.trf.xlu1  ;;  %v2184_v42 = vsel %vm435_vm0, %v2183_v13, %v19479_v55  ;;  %v1883_v13 = vrot.slane %v16021_v39, 4 }
 0x439   : > { %v16301_v27 = vpop.trf.xlu2  ;;  %9843 = vxpose.xlu0.b32.start.end [1/1] (short) (narrow) %v2106_v40, 8  ;;  %19478 = vst [vmem:[#allocation157_spill] sm:$0xff] %v16314_v17  ;;  %v2172_v40 = vsel %vm435_vm0, %v2171_v53, %v19480_v23  ;;  %v2190_v19 = vperm.slane %v2184_v42, %v14768_v61  ;;  %v2185_v42 = vrot.slane %v19479_v55, 4 }
 0x43a   : > { %19475 = vst [vmem:[#allocation156_spill] sm:$0xff] %v16301_v27  ;;  %v2178_v17 = vperm.slane %v2172_v40, %v14768_v61  ;;  %v2153_v27 = vrot.slane %v2126_v0, 4 }
 0x43b   : > { %v2195_v14 = vrot.slane %v2190_v19, 4 }
 0x43d   : > { %v2196_v18 = vsel %vm435_vm0, %v2195_v14, %v2178_v17 }
 0x43e   : > { %9971 = vxpose.xlu1.b32.start.end [1/1] (short) (narrow) %v16308_v46, 8  ;;  %v16330_v29 = vpop.trf.xlu0 }
 0x440   : > { %8563 = vxpose.xlu2.b32.start.end [1/1] (short) (narrow) %v16013_v36, 8  ;;  %v16332_v53 = vpop.trf.xlu1  ;;  %v2154_v36 = vsel %vm435_vm0, %v2138_v6, %v2153_v27  ;;  %v2186_v6 = vsel %vm435_vm0, %v15186_v21, %v2185_v42  ;;  %v16348_v27 = vperm.slane %v2196_v18, %v14780_v1  ;;  %v1889_v42 = vrot.slane %v16062_v2, 4 }
 0x441   : > { %v16324_v58 = vpop.trf.xlu2  ;;  %9939 = vxpose.xlu0.b32.start.end [1/1] (short) (narrow) %v2164_v63, 8  ;;  %19482 = vst [vmem:[#allocation52_spill] sm:$0xff] %v16332_v53  ;;  %v1884_v63 = vsel %vm435_vm0, 0.0, %v1883_v13  ;;  %v16341_v57 = vperm.slane %v2154_v36, %v14780_v1  ;;  %v19613_v53 = vld [vmem:[#allocation102_spill] sm:$0xff] }
 0x442   : > { %19481 = vst [vmem:[#allocation57_spill] sm:$0xff] %v16324_v58  ;;  %v2197_v58 = vrot.slane %v2178_v17, 4 }
 0x443   : > { %v2169_v17 = vrot.slane %v16341_v57, 4 }
 0x444   : > { %v2198_v0 = vsel %vm435_vm0, %v2190_v19, %v2197_v58 }
 0x445   : > { %v2206_v55 = vperm.slane %v2198_v0, %v14780_v1  ;;  %v2170_v58 = vsel %vm435_vm0, 0.0, %v2169_v17 }
 0x446   : > { %10067 = vxpose.xlu1.b32.start.end [1/1] (short) (narrow) %v2168_v31, 8  ;;  %v2173_v31 = vrot.slane %v19480_v23, 4  ;;  %v16351_v40 = vpop.trf.xlu0 }
 0x447   : > { %v2221_v21 = vrot.slane %v2206_v55, 4 }
 0x448   : > { %8659 = vxpose.xlu2.b32.start.end [1/1] (short) (narrow) %v1884_v63, 8  ;;  %v16353_v14 = vpop.trf.xlu1  ;;  %v2174_v23 = vsel %vm435_vm0, %v19476_v25, %v2173_v31  ;;  %v1890_v31 = vsel %vm435_vm0, 0.0, %v1889_v42 }
 0x449   : > { %v16338_v39 = vpop.trf.xlu2  ;;  %10035 = vxpose.xlu0.b32.start.end [1/1] (short) (narrow) %v2158_v3, 8  ;;  %19483 = vst [vmem:[#allocation158_spill] sm:$0xff] %v16353_v14  ;;  %v2194_v3 = vperm.slane %v2186_v6, %v14768_v61  ;;  %v2182_v13 = vperm.slane %v2174_v23, %v14768_v61  ;;  %v2222_v63 = vsel %vm435_vm0, 0.0, %v2221_v21 }
 0x44b   : > { %v2207_v36 = vrot.slane %v2194_v3, 4  ;;  %v2209_v25 = vrot.slane %v2182_v13, 4 }
 0x44d   : > { %v2210_v6 = vsel %vm435_vm0, %v2194_v3, %v2209_v25 }
 0x44e   : > { %10163 = vxpose.xlu1.b32.start.end [1/1] (short) (narrow) %v16348_v27, 8  ;;  %v16367_v18 = vpop.trf.xlu0  ;;  %v16380_v2 = vperm.slane %v2210_v6, %v14780_v1 }
 0x450   : > { %8755 = vxpose.xlu2.b32.start.end [1/1] (short) (narrow) %v16058_v22, 8  ;;  %v16369_v0 = vpop.trf.xlu1  ;;  %v2208_v22 = vsel %vm435_vm0, %v2207_v36, %v2182_v13 }
 0x451   : > { %v16361_v19 = vpop.trf.xlu2  ;;  %10131 = vxpose.xlu0.b32.start.end [1/1] (short) (narrow) %v2170_v58, 8  ;;  %19484 = vst [vmem:[#allocation159_spill] sm:$0xff] %v16369_v0  ;;  %v16377_v23 = vperm.slane %v2208_v22, %v14780_v1 }
 0x453   : > { %v2223_v13 = vrot.slane %v16377_v23, 4 }
 0x455   : > { %v2224_v36 = vsel %vm435_vm0, 0.0, %v2223_v13  ;;  %v1997_v13 = vrot.slane %v16144_v51, 4 }
 0x456   : > { %10259 = vxpose.xlu1.b32.start.end [1/1] (short) (narrow) %v2222_v63, 8  ;;  %v16382_v21 = vpop.trf.xlu0 }
 0x457   : > { %19485 = vst [vmem:[#allocation160_spill] sm:$0xff] %v16382_v21 }
 0x458   : > { %8851 = vxpose.xlu2.b32.start.end [1/1] (short) (narrow) %v1890_v31, 8  ;;  %v16384_v58 = vpop.trf.xlu1 }
 0x459   : > { %v16374_v17 = vpop.trf.xlu2  ;;  %10227 = vxpose.xlu0.b32.start.end [1/1] (short) (narrow) %v2206_v55, 8  ;;  %19486 = vst [vmem:[#allocation161_spill] sm:$0xff] %v16384_v58  ;;  %v1943_v55 = vrot.slane %v16103_v49, 4  ;;  %v1998_v58 = vsel %vm435_vm0, 0.0, %v1997_v13 }
 0x45b   : > { %v1944_v25 = vsel %vm435_vm0, 0.0, %v1943_v55 }
 0x45e   : > { %10355 = vxpose.xlu1.b32.start.end [1/1] (short) (narrow) %v16380_v2, 8  ;;  %v16393_v42 = vpop.trf.xlu0 }
 0x45f   : > { %19487 = vst [vmem:[#allocation162_spill] sm:$0xff] %v16393_v42 }
 0x460   : > { %8947 = vxpose.xlu2.b32.start.end [1/1] (short) (narrow) %v16095_v52, 8  ;;  %v16395_v63 = vpop.trf.xlu1 }
 0x461   : > { %v16389_v3 = vpop.trf.xlu2  ;;  %10323 = vxpose.xlu0.b32.start.end [1/1] (short) (narrow) %v2224_v36, 8  ;;  %19488 = vst [vmem:[#allocation163_spill] sm:$0xff] %v16395_v63 }
 0x466   : > { %v16400_v31 = vpop.trf.xlu0 }
 0x467   : > { %19489 = vst [vmem:[#allocation164_spill] sm:$0xff] %v16400_v31 }
 0x468   : > { %9043 = vxpose.xlu2.b32.start.end [1/1] (short) (narrow) %v1944_v25, 8  ;;  %v16402_v6 = vpop.trf.xlu1 }
 0x469   : > { %v16398_v22 = vpop.trf.xlu2  ;;  %19490 = vst [vmem:[#allocation165_spill] sm:$0xff] %v16402_v6  ;;  %v2051_v6 = vrot.slane %v16185_v32, 4 }
 0x46e   : > { %v16408_v49 = vpop.trf.xlu0 }
 0x46f   : > { %19491 = vst [vmem:[#allocation166_spill] sm:$0xff] %v16408_v49 }
 0x470   : > { %9139 = vxpose.xlu2.b32.start.end [1/1] (short) (narrow) %v16140_v45, 8  ;;  %v16410_v36 = vpop.trf.xlu1 }
 0x471   : > { %v16405_v52 = vpop.trf.xlu2  ;;  %19492 = vst [vmem:[#allocation167_spill] sm:$0xff] %v16410_v36  ;;  %v2052_v36 = vsel %vm435_vm0, 0.0, %v2051_v6 }
 0x476   : > { %v16415_v25 = vpop.trf.xlu0 }
 0x477   : > { %19493 = vst [vmem:[#allocation168_spill] sm:$0xff] %v16415_v25 }
 0x478   : > { %9235 = vxpose.xlu2.b32.start.end [1/1] (short) (narrow) %v1998_v58, 8  ;;  %v16417_v31 = vpop.trf.xlu1 }
 0x479   : > { %v16413_v55 = vpop.trf.xlu2  ;;  %19494 = vst [vmem:[#allocation169_spill] sm:$0xff] %v16417_v31  ;;  %v10437_v31 = vrot.slane %v15262_v33, 4 }
 0x47b   : > { %v10438_v32 = vsel %vm435_vm0, %v10437_v31, %v15224_v16 }
 0x47c   : > { %v10442_v49 = vperm.slane %v10438_v32, %v14768_v61 }
 0x47e   : > { %v16423_v51 = vpop.trf.xlu0  ;;  %v10449_v63 = vrot.slane %v10442_v49, 4 }
 0x47f   : > { %19495 = vst [vmem:[#allocation170_spill] sm:$0xff] %v16423_v51 }
 0x480   : > { %9331 = vxpose.xlu2.b32.start.end [1/1] (short) (narrow) %v16177_v62, 8  ;;  %v16425_v0 = vpop.trf.xlu1  ;;  %v10431_v62 = vrot.slane %v15238_v9, 4 }
 0x481   : > { %v16420_v45 = vpop.trf.xlu2  ;;  %19496 = vst [vmem:[#allocation171_spill] sm:$0xff] %v16425_v0  ;;  %v19499_v0 = vld [vmem:[#allocation75_spill] sm:$0xff] }
 0x482   : > { %v10425_v6 = vrot.slane %v19499_v0, 4  ;;  %v10432_v33 = vsel %vm435_vm0, %v10431_v62, %v15196_v48 }
 0x483   : > { %v10436_v0 = vperm.slane %v10432_v33, %v14768_v61 }
 0x484   : > { %v10426_v16 = vsel %vm435_vm0, %v10425_v6, %v15265_v30 }
 0x485   : > { %v10430_v32 = vperm.slane %v10426_v16, %v14768_v61  ;;  %v10450_v48 = vsel %vm435_vm0, %v10449_v63, %v10436_v0 }
 0x486   : > { %v16430_v13 = vpop.trf.xlu0 }
 0x487   : > { %19497 = vst [vmem:[#allocation172_spill] sm:$0xff] %v16430_v13  ;;  %v10443_v6 = vrot.slane %v10430_v32, 4 }
 0x488   : > { %9427 = vxpose.xlu2.b32.start.end [1/1] (short) (narrow) %v2052_v36, 8  ;;  %v16432_v25 = vpop.trf.xlu1  ;;  %v2057_v36 = vrot.slane %v16226_v54, 4 }
 0x489   : > { %v16428_v58 = vpop.trf.xlu2  ;;  %19498 = vst [vmem:[#allocation173_spill] sm:$0xff] %v16432_v25 }
 0x48a   : > { %v2058_v31 = vsel %vm435_vm0, 0.0, %v2057_v36  ;;  %v10454_v36 = vperm.slane %v10450_v48, %v14780_v1 }
 0x48c   : > { %v10455_v16 = vrot.slane %v10454_v36, 4  ;;  %v10469_v36 = vrot.slane %v15402_v59, 4 }
 0x48e   : > { %v16444_v13 = vpop.trf.xlu0  ;;  %v10470_v59 = vsel %vm435_vm0, %v10469_v36, %v15358_v50 }
 0x48f   : > { %19500 = vst [vmem:[#allocation75_spill] sm:$0xff] %v16444_v13  ;;  %v19503_v13 = vld [vmem:[#allocation74_spill] sm:$0xff] }
 0x490   : > { %9523 = vxpose.xlu2.b32.start.end [1/1] (short) (narrow) %v16222_v5, 8  ;;  %v16446_v25 = vpop.trf.xlu1  ;;  %v19502_v5 = vld [vmem:[#allocation76_spill] sm:$0xff] }
 0x491   : > { %v16439_v51 = vpop.trf.xlu2  ;;  %19501 = vst [vmem:[#allocation174_spill] sm:$0xff] %v16446_v25  ;;  %v10419_v9 = vrot.slane %v19502_v5, 4 }
 0x493   : > { %v10420_v25 = vsel %vm435_vm0, %v10419_v9, %v19503_v13  ;;  %v2111_v13 = vrot.slane %v16267_v41, 4  ;;  %v10475_v41 = vrot.slane %v15426_v43, 4 }
 0x494   : > { %v10424_v30 = vperm.slane %v10420_v25, %v14768_v61 }
 0x495   : > { %v2112_v25 = vsel %vm435_vm0, 0.0, %v2111_v13 }
 0x496   : > { %v16461_v62 = vpop.trf.xlu0  ;;  %v10444_v33 = vsel %vm435_vm0, %v10443_v6, %v10424_v30 }
 0x497   : > { %19504 = vst [vmem:[#allocation76_spill] sm:$0xff] %v16461_v62 }
 0x498   : > { %9619 = vxpose.xlu2.b32.start.end [1/1] (short) (narrow) %v2058_v31, 8  ;;  %v16463_v5 = vpop.trf.xlu1  ;;  %v10448_v31 = vperm.slane %v10444_v33, %v14780_v1  ;;  %v10476_v33 = vsel %vm435_vm0, %v10475_v41, %v15386_v12  ;;  %v19514_v41 = vld [vmem:[#allocation86_spill] sm:$0xff] }
 0x499   : > { %v16455_v54 = vpop.trf.xlu2  ;;  %19505 = vst [vmem:[#allocation74_spill] sm:$0xff] %v16463_v5  ;;  %v10480_v43 = vperm.slane %v10476_v33, %v14768_v61  ;;  %v10474_v33 = vperm.slane %v10470_v59, %v14768_v61  ;;  %v19520_v59 = vld [vmem:[#allocation78_spill] sm:$0xff] }
 0x49a   : > { %v10456_v0 = vsel %vm435_vm0, %v10455_v16, %v10448_v31 }
 0x49b   : > { %v11635_v31 = vrot.slane %v10456_v0, 4 }
 0x49e   : > { %v16472_v9 = vpop.trf.xlu0 }
 0x49f   : > { %19507 = vst [vmem:[#allocation176_spill] sm:$0xff] %v16472_v9 }
 0x4a0   : > { %9715 = vxpose.xlu2.b32.start.end [1/1] (short) (narrow) %v16259_v24, 8  ;;  %v16474_v63 = vpop.trf.xlu1  ;;  %v16482_v24 = vperm.slane %v10456_v0, %v14768_v61  ;;  %v10457_v0 = vrot.slane %v19514_v41, 4 }
 0x4a1   : > { %v16468_v49 = vpop.trf.xlu2  ;;  %19508 = vst [vmem:[#allocation177_spill] sm:$0xff] %v16474_v63 }
 0x4a2   : > { %19506 = vst [vmem:[#allocation175_spill] sm:$0xff] %v16468_v49  ;;  %v11645_v6 = vrot.slane %v16482_v24, 4 }
 0x4a4   : > { %v11646_v13 = vsel %vm435_vm0, 0.0, %v11645_v6  ;;  %v19515_v6 = vld [vmem:[#allocation83_spill] sm:$0xff] }
 0x4a5   : > { %v16507_v12 = vperm.slane %v11646_v13, %v14780_v1 }
 0x4a6   : > { %v16484_v48 = vpop.trf.xlu0 }
 0x4a7   : > { %19510 = vst [vmem:[#allocation179_spill] sm:$0xff] %v16484_v48 }
 0x4a8   : > { %9811 = vxpose.xlu2.b32.start.end [1/1] (short) (narrow) %v2112_v25, 8  ;;  %v16486_v30 = vpop.trf.xlu1  ;;  %v10463_v25 = vrot.slane %v15344_v44, 4 }
 0x4a9   : > { %v16479_v32 = vpop.trf.xlu2  ;;  %19511 = vst [vmem:[#allocation180_spill] sm:$0xff] %v16486_v30  ;;  %v2165_v30 = vrot.slane %v16308_v46, 4 }
 0x4aa   : > { %19509 = vst [vmem:[#allocation178_spill] sm:$0xff] %v16479_v32  ;;  %v10464_v44 = vsel %vm435_vm0, %v10463_v25, %v19515_v6 }
 0x4ab   : > { %v2166_v46 = vsel %vm435_vm0, 0.0, %v2165_v30  ;;  %v10468_v13 = vperm.slane %v10464_v44, %v14768_v61 }
 0x4ad   : > { %v10481_v63 = vrot.slane %v10468_v13, 4 }
 0x4ae   : > { %v16500_v48 = vpop.trf.xlu0 }
 0x4af   : > { %19512 = vst [vmem:[#allocation181_spill] sm:$0xff] %v16500_v48 }
 0x4b0   : > { %9907 = vxpose.xlu2.b32.start.end [1/1] (short) (narrow) %v16304_v56, 8  ;;  %v16502_v5 = vpop.trf.xlu1  ;;  %v11636_v56 = vsel %vm435_vm0, 0.0, %v11635_v31  ;;  %v19517_v31 = vld [vmem:[#allocation80_spill] sm:$0xff] }
 0x4b1   : > { %v16494_v16 = vpop.trf.xlu2  ;;  %19513 = vst [vmem:[#allocation182_spill] sm:$0xff] %v16502_v5  ;;  %v10487_v5 = vrot.slane %v10480_v43, 4  ;;  %v11644_v36 = vperm.slane %v11636_v56, %v14768_v61  ;;  %v10458_v41 = vsel %vm435_vm0, %v10457_v0, %v19517_v31 }
 0x4b2   : > { %v10462_v43 = vperm.slane %v10458_v41, %v14768_v61  ;;  %v19524_v41 = vld [vmem:[#allocation56_spill] sm:$0xff] }
 0x4b3   : > { %v10488_v25 = vsel %vm435_vm0, %v10487_v5, %v10474_v33  ;;  %v11660_v48 = vperm.slane %v11644_v36, %v14780_v1  ;;  %v11655_v44 = vrot.slane %v11644_v36, 4  ;;  %v19521_v5 = vld [vmem:[#allocation84_spill] sm:$0xff] }
 0x4b4   : > { %v10492_v56 = vperm.slane %v10488_v25, %v14780_v1  ;;  %v10507_v0 = vrot.slane %v19521_v5, 4  ;;  %v10482_v31 = vsel %vm435_vm0, %v10481_v63, %v10462_v43  ;;  %v2219_v25 = vrot.slane %v16348_v27, 4  ;;  %v19526_v5 = vld [vmem:[#allocation77_spill] sm:$0xff] }
 0x4b5   : > { %v11669_v13 = vrot.slane %v11660_v48, 4  ;;  %v11656_v9 = vsel %vm435_vm0, 0.0, %v11655_v44 }
 0x4b6   : > { %v16524_v30 = vpop.trf.xlu0  ;;  %v10493_v62 = vrot.slane %v10492_v56, 4  ;;  %v16556_v44 = vperm.slane %v11656_v9, %v14780_v1  ;;  %v19532_v9 = vld [vmem:[#allocation96_spill] sm:$0xff] }
 0x4b7   : > { %19518 = vst [vmem:[#allocation83_spill] sm:$0xff] %v16524_v30  ;;  %v11670_v27 = vsel %vm435_vm0, 0.0, %v11669_v13 }
 0x4b8   : > { %12856 = vrot.lane.b32.xlu1 %v16507_v12, %s19150_s16  ;;  %10003 = vxpose.xlu2.b32.start.end [1/1] (short) (narrow) %v2166_v46, 8  ;;  %v16526_v6 = vpop.trf.xlu1  ;;  %v10513_v46 = vrot.slane %v19520_v59, 4 }
 0x4b9   : > { %v16517_v50 = vpop.trf.xlu2  ;;  %19519 = vst [vmem:[#allocation80_spill] sm:$0xff] %v16526_v6  ;;  %v19523_v6 = vld [vmem:[#allocation81_spill] sm:$0xff] }
 0x4ba   : > { %19516 = vst [vmem:[#allocation86_spill] sm:$0xff] %v16517_v50  ;;  %v10501_v30 = vrot.slane %v19523_v6, 4  ;;  %v10514_v59 = vsel %vm435_vm0, %v10513_v46, %v19524_v41  ;;  %v10508_v50 = vsel %vm435_vm0, %v10507_v0, %v19526_v5  ;;  %v19528_v6 = vld [vmem:[#allocation22_spill] sm:$0xff]  ;;  %v2220_v41 = vsel %vm435_vm0, 0.0, %v2219_v25 }
 0x4bb   : > { %v10518_v63 = vperm.slane %v10514_v59, %v14768_v61  ;;  %v16562_v0 = vperm.slane %v16482_v24, %v14780_v1 }
 0x4bc   : > { %v10502_v46 = vsel %vm435_vm0, %v10501_v30, %v19528_v6  ;;  %v10512_v30 = vperm.slane %v10508_v50, %v14768_v61  ;;  %v11671_v6 = vrot.slane %v16556_v44, 4 }
 0x4bd   : > { %19530 = vst [vmem:[#allocation56_spill] sm:$0xff] %v16562_v0  ;;  %v10506_v59 = vperm.slane %v10502_v46, %v14768_v61  ;;  %v10525_v13 = vrot.slane %v10518_v63, 4  ;;  %v11665_v24 = vrot.slane %v16562_v0, 4 }
 0x4be   : > { %v16543_v36 = vpop.trf.xlu0  ;;  %v11672_v63 = vsel %vm435_vm0, 0.0, %v11671_v6  ;;  %v2225_v6 = vrot.slane %v16380_v2, 4 }
 0x4bf   : > { %19525 = vst [vmem:[#allocation84_spill] sm:$0xff] %v16543_v36  ;;  %v19542_v36 = vld [vmem:[#allocation79_spill] sm:$0xff] }
 0x4c0   : > { %12864 = vrot.lane.b32.xlu1 %v11660_v48, %s19122_s17  ;;  %10099 = vxpose.xlu2.b32.start.end [1/1] (short) (narrow) %v16341_v57, 8  ;;  %v10486_v57 = vperm.slane %v10482_v31, %v14780_v1  ;;  %v16549_v43 = vpop.trf.xlu1  ;;  %v19529_v48 = vld [vmem:[#allocation59_spill] sm:$0xff] }
 0x4c1   : > { %v16535_v33 = vpop.trf.xlu2  ;;  %19527 = vst [vmem:[#allocation81_spill] sm:$0xff] %v16549_v43  ;;  %v10495_v56 = vrot.slane %v19529_v48, 4 }
 0x4c2   : > { %19522 = vst [vmem:[#allocation78_spill] sm:$0xff] %v16535_v33  ;;  %v10494_v31 = vsel %vm435_vm0, %v10493_v62, %v10486_v57  ;;  %v10519_v62 = vrot.slane %v10506_v59, 4  ;;  %v10526_v57 = vsel %vm435_vm0, %v10525_v13, %v10512_v30 }
 0x4c3   : > { %v10496_v25 = vsel %vm435_vm0, %v10495_v56, %v19532_v9  ;;  %v11678_v48 = vperm.slane %v10494_v31, %v14768_v61 }
 0x4c4   : > { %v10500_v50 = vperm.slane %v10496_v25, %v14768_v61 }
 0x4c5   : > { %v11683_v46 = vrot.slane %v11678_v48, 4 }
 0x4c6   : > { %v16574_v43 = vpop.trf.xlu0  ;;  %v10520_v30 = vsel %vm435_vm0, %v10519_v62, %v10500_v50  ;;  %v2226_v50 = vsel %vm435_vm0, 0.0, %v2225_v6 }
 0x4c7   : > { %19533 = vst [vmem:[#allocation22_spill] sm:$0xff] %v16574_v43  ;;  %v11684_v13 = vsel %vm435_vm0, 0.0, %v11683_v46  ;;  %v19538_v46 = vld [vmem:[#allocation82_spill] sm:$0xff] }
 0x4c8   : > { %12868 = vrot.lane.b32.xlu1 %v11670_v27, %s19152_s18  ;;  %10195 = vxpose.xlu2.b32.start.end [1/1] (short) (narrow) %v2220_v41, 8  ;;  %v11673_v27 = vrot.slane %v10494_v31, 4  ;;  %v11666_v41 = vsel %vm435_vm0, 0.0, %v11665_v24  ;;  %v16582_v9 = vpop.trf.xlu1  ;;  %v10530_v31 = vperm.slane %v10526_v57, %v14780_v1  ;;  %v10524_v24 = vperm.slane %v10520_v30, %v14780_v1  ;;  %v19537_v57 = vld [vmem:[#allocation19_spill] sm:$0xff] }
 0x4c9   : > { %v16567_v5 = vpop.trf.xlu2  ;;  %19534 = vst [vmem:[#allocation59_spill] sm:$0xff] %v16582_v9  ;;  %v10551_v0 = vrot.slane %v19537_v57, 4 }
 0x4ca   : > { %19531 = vst [vmem:[#allocation77_spill] sm:$0xff] %v16567_v5  ;;  %v11674_v56 = vsel %vm435_vm0, 0.0, %v11673_v27  ;;  %v10531_v27 = vrot.slane %v10530_v31, 4  ;;  %v19539_v31 = vld [vmem:[#allocation26_spill] sm:$0xff] }
 0x4cb   : > { %v11682_v25 = vperm.slane %v11674_v56, %v14768_v61  ;;  %v10552_v56 = vsel %vm435_vm0, %v10551_v0, %v19538_v46  ;;  %v10545_v30 = vrot.slane %v19539_v31, 4  ;;  %v19544_v46 = vld [vmem:[#allocation89_spill] sm:$0xff] }
 0x4cc   : > { %v10532_v2 = vsel %vm435_vm0, %v10531_v27, %v10524_v24  ;;  %v10533_v24 = vrot.slane %v19542_v36, 4  ;;  %v19543_v27 = vld [vmem:[#allocation87_spill] sm:$0xff] }
 0x4cd   : > { %v16602_v62 = vperm.slane %v11682_v25, %v14780_v1  ;;  %v11716_v43 = vperm.slane %v10532_v2, %v14768_v61 }
 0x4cf   : > { %12852 = vrot.lane.b32.xlu0 %v11666_v41, %s19120_s23  ;;  %v11692_v41 = vperm.slane %v11684_v13, %v14780_v1  ;;  %v11707_v57 = vrot.slane %v16602_v62, 4  ;;  %v11721_v5 = vrot.slane %v11716_v43, 4 }
 0x4d0   : > { %12876 = vrot.lane.b32.xlu1 %v11672_v63, %s19124_s22  ;;  %10291 = vxpose.xlu2.b32.start.end [1/1] (short) (narrow) %v16377_v23, 8  ;;  %v16594_v63 = vpop.trf.xlu0  ;;  %v16599_v23 = vperm.slane %v11678_v48, %v14780_v1  ;;  %v10539_v48 = vrot.slane %v15546_v7, 4  ;;  %v16615_v6 = vpop.trf.xlu1  ;;  %v10546_v7 = vsel %vm435_vm0, %v10545_v30, %v19544_v46 }
 0x4d1   : > { %v16588_v59 = vpop.trf.xlu2  ;;  %19536 = vst [vmem:[#allocation183_spill] sm:$0xff] %v16594_v63  ;;  %v11705_v9 = vrot.slane %v11692_v41, 4  ;;  %v11708_v31 = vsel %vm435_vm0, 0.0, %v11707_v57  ;;  %v11722_v46 = vsel %vm435_vm0, 0.0, %v11721_v5 }
 0x4d2   : > { %19535 = vst [vmem:[#allocation96_spill] sm:$0xff] %v16588_v59  ;;  %v10540_v0 = vsel %vm435_vm0, %v10539_v48, %v19543_v27  ;;  %v19546_v48 = vld [vmem:[#allocation99_spill] sm:$0xff]  ;;  %v11711_v27 = vrot.slane %v10532_v2, 4 }
 0x4d3   : > { %19541 = vst [vmem:[#allocation82_spill] sm:$0xff] %v16615_v6  ;;  %v11706_v6 = vsel %vm435_vm0, 0.0, %v11705_v9  ;;  %v10544_v36 = vperm.slane %v10540_v0, %v14768_v61  ;;  %v10534_v30 = vsel %vm435_vm0, %v10533_v24, %v19546_v48  ;;  %v16649_v48 = vperm.slane %v11722_v46, %v14780_v1 }
 0x4d4   : > { %v11712_v5 = vsel %vm435_vm0, 0.0, %v11711_v27 }
 0x4d5   : > { %v10557_v0 = vrot.slane %v10544_v36, 4  ;;  %v11743_v46 = vrot.slane %v16649_v48, 4 }
 0x4d7   : > { %12880 = vrot.lane.b32.xlu0 %v16599_v23, %s19154_s25  ;;  %v11744_v59 = vsel %vm435_vm0, 0.0, %v11743_v46 }
 0x4d8   : > { %12888 = vrot.lane.b32.xlu1 %v11692_v41, %s19126_s24  ;;  %10387 = vxpose.xlu2.b32.start.end [1/1] (short) (narrow) %v2226_v50, 8  ;;  %v10556_v50 = vperm.slane %v10552_v56, %v14768_v61  ;;  %v16626_v63 = vpop.trf.xlu0  ;;  %v11693_v41 = vrot.slane %v11682_v25, 4  ;;  %v16639_v25 = vpop.trf.xlu1 }
 0x4d9   : > { %v16613_v13 = vpop.trf.xlu2  ;;  %19545 = vst [vmem:[#allocation26_spill] sm:$0xff] %v16626_v63 }
 0x4da   : > { %19540 = vst [vmem:[#allocation19_spill] sm:$0xff] %v16613_v13  ;;  %v10563_v56 = vrot.slane %v10556_v50, 4  ;;  %v10550_v13 = vperm.slane %v10546_v7, %v14768_v61  ;;  %v11694_v9 = vsel %vm435_vm0, 0.0, %v11693_v41  ;;  %v10538_v50 = vperm.slane %v10534_v30, %v14768_v61  ;;  %v19553_v30 = vld [vmem:[#allocation92_spill] sm:$0xff] }
 0x4db   : > { %19548 = vst [vmem:[#allocation87_spill] sm:$0xff] %v16639_v25  ;;  %v16646_v24 = vperm.slane %v11694_v9, %v14780_v1 }
 0x4dc   : > { %v10564_v7 = vsel %vm435_vm0, %v10563_v56, %v10550_v13  ;;  %v10558_v41 = vsel %vm435_vm0, %v10557_v0, %v10538_v50  ;;  %v19552_v56 = vld [vmem:[#allocation90_spill] sm:$0xff] }
 0x4dd   : > { %v10568_v2 = vperm.slane %v10564_v7, %v14780_v1  ;;  %v10583_v36 = vrot.slane %v19552_v56, 4  ;;  %v11720_v7 = vperm.slane %v11712_v5, %v14768_v61  ;;  %v10562_v27 = vperm.slane %v10558_v41, %v14780_v1  ;;  %v19558_v41 = vld [vmem:[#allocation103_spill] sm:$0xff] }
 0x4df   : > { %12892 = vrot.lane.b32.xlu0 %v11706_v6, %s19156_s27  ;;  %v19549_v6 = vld [vmem:[#allocation28_spill] sm:$0xff]  ;;  %v10569_v50 = vrot.slane %v10568_v2, 4 }
 0x4e0   : > { %12900 = vrot.lane.b32.xlu1 %v11708_v31, %s19128_s26  ;;  %v11726_v31 = vperm.slane %v11716_v43, %v14780_v1  ;;  %v10589_v63 = vrot.slane %v19549_v6, 4  ;;  %v16657_v43 = vpop.trf.xlu0  ;;  %v19554_v6 = vld [vmem:[#allocation88_spill] sm:$0xff] }
 0x4e1   : > { %v16635_v57 = vpop.trf.xlu2  ;;  %19550 = vst [vmem:[#allocation89_spill] sm:$0xff] %v16657_v43  ;;  %v10577_v25 = vrot.slane %v19554_v6, 4  ;;  %v16669_v43 = vpop.trf.xlu1  ;;  %v10570_v2 = vsel %vm435_vm0, %v10569_v50, %v10562_v27  ;;  %v19561_v50 = vld [vmem:[#allocation85_spill] sm:$0xff] }
 0x4e2   : > { %19547 = vst [vmem:[#allocation79_spill] sm:$0xff] %v16635_v57  ;;  %v10590_v9 = vsel %vm435_vm0, %v10589_v63, %v19553_v30  ;;  %v11741_v0 = vrot.slane %v11726_v31, 4  ;;  %v11731_v63 = vrot.slane %v11720_v7, 4 }
 0x4e3   : > { %v10594_v57 = vperm.slane %v10590_v9, %v14768_v61  ;;  %19555 = vst [vmem:[#allocation28_spill] sm:$0xff] %v16669_v43  ;;  %v10578_v9 = vsel %vm435_vm0, %v10577_v25, %v19558_v41  ;;  %v11749_v25 = vrot.slane %v10570_v2, 4 }
 0x4e4   : > { %v11742_v30 = vsel %vm435_vm0, 0.0, %v11741_v0  ;;  %v11732_v46 = vsel %vm435_vm0, 0.0, %v11731_v63  ;;  %v11754_v0 = vperm.slane %v10570_v2, %v14768_v61 }
 0x4e7   : > { %12904 = vrot.lane.b32.xlu0 %v16646_v24, %s19158_s29 }
 0x4e8   : > { %12912 = vrot.lane.b32.xlu1 %v11726_v31, %s19130_s28  ;;  %v19557_v31 = vld [vmem:[#allocation51_spill] sm:$0xff]  ;;  %v16684_v6 = vpop.trf.xlu0 }
 0x4e9   : > { %v16659_v13 = vpop.trf.xlu2  ;;  %v10571_v5 = vrot.slane %v19557_v31, 4  ;;  %19559 = vst [vmem:[#allocation90_spill] sm:$0xff] %v16684_v6 }
 0x4ea   : > { %19551 = vst [vmem:[#allocation99_spill] sm:$0xff] %v16659_v13  ;;  %v19556_v13 = vld [vmem:[#allocation63_spill] sm:$0xff] }
 0x4eb   : > { %v10584_v56 = vsel %vm435_vm0, %v10583_v36, %v19556_v13  ;;  %v10601_v36 = vrot.slane %v10594_v57, 4  ;;  %v10572_v31 = vsel %vm435_vm0, %v10571_v5, %v19561_v50  ;;  %v16694_v57 = vperm.slane %v11720_v7, %v14780_v1 }
 0x4ec   : > { %v10588_v13 = vperm.slane %v10584_v56, %v14768_v61  ;;  %v16697_v56 = vperm.slane %v11754_v0, %v14780_v1  ;;  %v10576_v63 = vperm.slane %v10572_v31, %v14768_v61  ;;  %v11750_v7 = vsel %vm435_vm0, 0.0, %v11749_v25  ;;  %v19564_v31 = vld [vmem:[#allocation93_spill] sm:$0xff] }
 0x4ee   : > { %v10602_v41 = vsel %vm435_vm0, %v10601_v36, %v10588_v13  ;;  %v11779_v5 = vrot.slane %v16697_v56, 4 }
 0x4ef   : > { %12916 = vrot.lane.b32.xlu0 %v11742_v30, %s19160_s2  ;;  %v11740_v30 = vperm.slane %v11732_v46, %v14780_v1  ;;  %v10606_v2 = vperm.slane %v10602_v41, %v14780_v1  ;;  %v11758_v46 = vperm.slane %v11750_v7, %v14768_v61 }
 0x4f0   : > { %12924 = vrot.lane.b32.xlu1 %v11744_v59, %s19132_s30  ;;  %v10582_v59 = vperm.slane %v10578_v9, %v14768_v61  ;;  %v16701_v9 = vpop.trf.xlu1  ;;  %v16710_v50 = vpop.trf.xlu0 }
 0x4f1   : > { %v16687_v27 = vpop.trf.xlu2  ;;  %19562 = vst [vmem:[#allocation88_spill] sm:$0xff] %v16701_v9  ;;  %v11747_v36 = vrot.slane %v11740_v30, 4  ;;  %v10627_v9 = vrot.slane %v19564_v31, 4  ;;  %v19567_v31 = vld [vmem:[#allocation97_spill] sm:$0xff] }
 0x4f2   : > { %19560 = vst [vmem:[#allocation92_spill] sm:$0xff] %v16687_v27  ;;  %v10595_v6 = vrot.slane %v10582_v59, 4  ;;  %v10607_v59 = vrot.slane %v10606_v2, 4  ;;  %v11780_v27 = vsel %vm435_vm0, 0.0, %v11779_v5  ;;  %v19566_v2 = vld [vmem:[#allocation54_spill] sm:$0xff] }
 0x4f3   : > { %19563 = vst [vmem:[#allocation63_spill] sm:$0xff] %v16710_v50  ;;  %v11748_v25 = vsel %vm435_vm0, 0.0, %v11747_v36  ;;  %v10615_v7 = vrot.slane %v19566_v2, 4  ;;  %v10621_v50 = vrot.slane %v19567_v31, 4  ;;  %v19572_v31 = vld [vmem:[#allocation108_spill] sm:$0xff] }
 0x4f4   : > { %v10596_v13 = vsel %vm435_vm0, %v10595_v6, %v10576_v63  ;;  %v11759_v6 = vrot.slane %v11754_v0, 4  ;;  %v10609_v49 = vrot.slane %v19572_v31, 4 }
 0x4f5   : > { %v10600_v41 = vperm.slane %v10596_v13, %v14780_v1 }
 0x4f6   : > { %v11760_v36 = vsel %vm435_vm0, 0.0, %v11759_v6 }
 0x4f7   : > { %12928 = vrot.lane.b32.xlu0 %v16694_v57, %s19115_s4  ;;  %v10608_v63 = vsel %vm435_vm0, %v10607_v59, %v10600_v41  ;;  %v19571_v41 = vld [vmem:[#allocation20_spill] sm:$0xff]  ;;  %s19117_s4 = smov 116  }
 0x4f8   : > { %12936 = vrot.lane.b32.xlu1 %v11740_v30, %s19134_s3  ;;  %v11769_v30 = vrot.slane %v11758_v46, 4  ;;  %v16725_v5 = vpop.trf.xlu1  ;;  %v11792_v0 = vperm.slane %v10608_v63, %v14768_v61  ;;  %v10622_v2 = vsel %vm435_vm0, %v10621_v50, %v19571_v41 }
 0x4f9   : > { %v16713_v43 = vpop.trf.xlu2  ;;  %19569 = vst [vmem:[#allocation103_spill] sm:$0xff] %v16725_v5 }
 0x4fa   : > { %19565 = vst [vmem:[#allocation51_spill] sm:$0xff] %v16713_v43  ;;  %v19568_v43 = vld [vmem:[#allocation29_spill] sm:$0xff] }
 0x4fb   : > { %v10628_v13 = vsel %vm435_vm0, %v10627_v9, %v19568_v43  ;;  %v11774_v43 = vperm.slane %v11758_v46, %v14780_v1  ;;  %v16738_v9 = vperm.slane %v11760_v36, %v14780_v1  ;;  %v19575_v46 = vld [vmem:[#allocation94_spill] sm:$0xff] }
 0x4fc   : > { %v10632_v33 = vperm.slane %v10628_v13, %v14768_v61  ;;  %v10626_v13 = vperm.slane %v10622_v2, %v14768_v61  ;;  %v10610_v36 = vsel %vm435_vm0, %v10609_v49, %v19575_v46 }
 0x4fd   : > { %v11783_v41 = vrot.slane %v11774_v43, 4 }
 0x4ff   : > { %12940 = vrot.lane.b32.xlu0 %v11748_v25, %s19111_s15  ;;  %v19570_v25 = vld [vmem:[#allocation91_spill] sm:$0xff]  ;;  %s19113_s15 = smov 104   ;;  %v11784_v46 = vsel %vm435_vm0, 0.0, %v11783_v41  ;;  %v19580_v41 = vld [vmem:[#allocation25_spill] sm:$0xff] }
 0x500   : > { %12948 = vrot.lane.b32.xlu1 %v11780_v27, %s19136_s13  ;;  %v11770_v27 = vsel %vm435_vm0, 0.0, %v11769_v30  ;;  %v10616_v59 = vsel %vm435_vm0, %v10615_v7, %v19570_v25  ;;  %v16743_v30 = vpop.trf.xlu0  ;;  %v11797_v7 = vrot.slane %v11792_v0, 4  ;;  %v10639_v25 = vrot.slane %v10632_v33, 4  ;;  %v16755_v31 = vpop.trf.xlu1 }
 0x501   : > { %v16741_v6 = vperm.slane %v11770_v27, %v14780_v1  ;;  %19573 = vst [vmem:[#allocation85_spill] sm:$0xff] %v16743_v30  ;;  %v16745_v5 = vpop.trf.xlu2  ;;  %v10620_v50 = vperm.slane %v10616_v59, %v14768_v61  ;;  %v11787_v30 = vrot.slane %v10608_v63, 4  ;;  %v10614_v59 = vperm.slane %v10610_v36, %v14768_v61 }
 0x502   : > { %19574 = vst [vmem:[#allocation93_spill] sm:$0xff] %v16745_v5  ;;  %v11798_v5 = vsel %vm435_vm0, 0.0, %v11797_v7  ;;  %v10640_v33 = vsel %vm435_vm0, %v10639_v25, %v10626_v13  ;;  %v16768_v63 = vperm.slane %v11792_v0, %v14780_v1 }
 0x503   : > { %v11785_v27 = vrot.slane %v16741_v6, 4  ;;  %19576 = vst [vmem:[#allocation54_spill] sm:$0xff] %v16755_v31  ;;  %v10633_v21 = vrot.slane %v10620_v50, 4  ;;  %v16762_v32 = vperm.slane %v11798_v5, %v14780_v1  ;;  %v10644_v49 = vperm.slane %v10640_v33, %v14780_v1 }
 0x504   : > { %19577 = vst [vmem:[#allocation97_spill] sm:$0xff] %v16768_v63  ;;  %v11817_v0 = vrot.slane %v16768_v63, 4 }
 0x505   : > { %v11786_v2 = vsel %vm435_vm0, 0.0, %v11785_v27  ;;  %v10634_v7 = vsel %vm435_vm0, %v10633_v21, %v10614_v59  ;;  %v11819_v13 = vrot.slane %v16762_v32, 4  ;;  %v10645_v27 = vrot.slane %v10644_v49, 4 }
 0x506   : > { %v10638_v36 = vperm.slane %v10634_v7, %v14780_v1  ;;  %v10653_v7 = vrot.slane %v15710_v8, 4 }
 0x507   : > { %12952 = vrot.lane.b32.xlu0 %v16738_v9, %s19113_s15  ;;  %s19168_s15 = smov 124   ;;  %v11820_v21 = vsel %vm435_vm0, 0.0, %v11819_v13 }
 0x508   : > { %12960 = vrot.lane.b32.xlu1 %v11774_v43, %s19166_s12  ;;  %v11788_v43 = vsel %vm435_vm0, 0.0, %v11787_v30  ;;  %v16773_v50 = vpop.trf.xlu0  ;;  %v10665_v30 = vrot.slane %v19580_v41, 4  ;;  %v16782_v33 = vpop.trf.xlu1  ;;  %v10659_v41 = vrot.slane %v15727_v37, 4 }
 0x509   : > { %19578 = vst [vmem:[#allocation29_spill] sm:$0xff] %v16773_v50  ;;  %v16775_v5 = vpop.trf.xlu2  ;;  %v11796_v25 = vperm.slane %v11788_v43, %v14768_v61  ;;  %v19582_v43 = vld [vmem:[#allocation21_spill] sm:$0xff] }
 0x50a   : > { %19579 = vst [vmem:[#allocation91_spill] sm:$0xff] %v16775_v5  ;;  %v10666_v49 = vsel %vm435_vm0, %v10665_v30, %v19582_v43  ;;  %v19587_v43 = vld [vmem:[#allocation61_spill] sm:$0xff] }
 0x50b   : > { %19581 = vst [vmem:[#allocation20_spill] sm:$0xff] %v16782_v33  ;;  %v11807_v59 = vrot.slane %v11796_v25, 4  ;;  %v19586_v33 = vld [vmem:[#allocation23_spill] sm:$0xff]  ;;  %v10660_v8 = vsel %vm435_vm0, %v10659_v41, %v19587_v43 }
 0x50c   : > { %v10654_v30 = vsel %vm435_vm0, %v10653_v7, %v19586_v33  ;;  %v10664_v33 = vperm.slane %v10660_v8, %v14768_v61 }
 0x50d   : > { %v11808_v63 = vsel %vm435_vm0, 0.0, %v11807_v59  ;;  %v16807_v59 = vperm.slane %v11796_v25, %v14780_v1  ;;  %v19589_v25 = vld [vmem:[#allocation111_spill] sm:$0xff] }
 0x50e   : > { %v11816_v37 = vperm.slane %v11808_v63, %v14780_v1 }
 0x50f   : > { %12964 = vrot.lane.b32.xlu0 %v11784_v46, %s19117_s4  ;;  %s19170_s4 = smov 12   ;;  %v10646_v46 = vsel %vm435_vm0, %v10645_v27, %v10638_v36  ;;  %v19585_v27 = vld [vmem:[#allocation95_spill] sm:$0xff] }
 0x510   : > { %12972 = vrot.lane.b32.xlu1 %v11786_v2, %s19168_s15  ;;  %v11818_v2 = vsel %vm435_vm0, 0.0, %v11817_v0  ;;  %v16794_v13 = vpop.trf.xlu0  ;;  %v11830_v0 = vperm.slane %v10646_v46, %v14768_v61  ;;  %v11825_v36 = vrot.slane %v10646_v46, 4  ;;  %v16813_v46 = vpop.trf.xlu1  ;;  %v11823_v43 = vrot.slane %v11816_v37, 4 }
 0x511   : > { %19583 = vst [vmem:[#allocation108_spill] sm:$0xff] %v16794_v13  ;;  %v16797_v31 = vpop.trf.xlu2 }
 0x512   : > { %19584 = vst [vmem:[#allocation94_spill] sm:$0xff] %v16797_v31  ;;  %v16810_v13 = vperm.slane %v11830_v0, %v14780_v1  ;;  %v11826_v63 = vsel %vm435_vm0, 0.0, %v11825_v36  ;;  %v10703_v31 = vrot.slane %v15792_v4, 4  ;;  %v19594_v4 = vld [vmem:[#allocation104_spill] sm:$0xff] }
 0x513   : > { %19588 = vst [vmem:[#allocation25_spill] sm:$0xff] %v16813_v46  ;;  %v11834_v50 = vperm.slane %v11826_v63, %v14768_v61 }
 0x514   : > { %v11855_v41 = vrot.slane %v16810_v13, 4 }
 0x515   : > { %v11845_v63 = vrot.slane %v11834_v50, 4 }
 0x516   : > { %v11856_v36 = vsel %vm435_vm0, 0.0, %v11855_v41  ;;  %v10704_v41 = vsel %vm435_vm0, %v10703_v31, %v19594_v4  ;;  %v19599_v4 = vld [vmem:[#allocation115_spill] sm:$0xff] }
 0x517   : > { %12976 = vrot.lane.b32.xlu0 %v11818_v2, %s19120_s23  ;;  %v10647_v2 = vrot.slane %v19585_v27, 4  ;;  %s19172_s23 = smov 24   ;;  %v10658_v27 = vperm.slane %v10654_v30, %v14768_v61 }
 0x518   : > { %12984 = vrot.lane.b32.xlu1 %v11820_v21, %s19170_s4  ;;  %v10670_v21 = vperm.slane %v10666_v49, %v14768_v61  ;;  %v16826_v5 = vpop.trf.xlu0 }
 0x519   : > { %v10648_v7 = vsel %vm435_vm0, %v10647_v2, %v19589_v25  ;;  %19590 = vst [vmem:[#allocation21_spill] sm:$0xff] %v16826_v5  ;;  %v16828_v8 = vpop.trf.xlu2  ;;  %v11824_v25 = vsel %vm435_vm0, 0.0, %v11823_v43 }
 0x51a   : > { %v10677_v49 = vrot.slane %v10670_v21, 4  ;;  %v10652_v46 = vperm.slane %v10648_v7, %v14768_v61  ;;  %v10671_v21 = vrot.slane %v10658_v27, 4  ;;  %19591 = vst [vmem:[#allocation95_spill] sm:$0xff] %v16828_v8 }
 0x51c   : > { %v10678_v30 = vsel %vm435_vm0, %v10677_v49, %v10664_v33  ;;  %v10672_v27 = vsel %vm435_vm0, %v10671_v21, %v10652_v46  ;;  %v19593_v33 = vld [vmem:[#allocation100_spill] sm:$0xff]  ;;  %v10708_v46 = vperm.slane %v10704_v41, %v14768_v61  ;;  %v11850_v21 = vperm.slane %v11834_v50, %v14780_v1 }
 0x51d   : > { %v10682_v2 = vperm.slane %v10678_v30, %v14780_v1  ;;  %v10697_v7 = vrot.slane %v19593_v33, 4  ;;  %v10676_v30 = vperm.slane %v10672_v27, %v14780_v1  ;;  %v19598_v27 = vld [vmem:[#allocation101_spill] sm:$0xff] }
 0x51e   : > { %v10685_v50 = vrot.slane %v19598_v27, 4  ;;  %v10715_v41 = vrot.slane %v10708_v46, 4  ;;  %v19601_v27 = vld [vmem:[#allocation98_spill] sm:$0xff] }
 0x51f   : > { %12988 = vrot.lane.b32.xlu0 %v16807_v59, %s19122_s17  ;;  %s19164_s17 = smov 36   ;;  %v10683_v5 = vrot.slane %v10682_v2, 4 }
 0x520   : > { %12996 = vrot.lane.b32.xlu1 %v11816_v37, %s19172_s23  ;;  %v11835_v37 = vrot.slane %v11830_v0, 4  ;;  %v19595_v0 = vld [vmem:[#allocation24_spill] sm:$0xff]  ;;  %v16853_v31 = vpop.trf.xlu0 }
 0x521   : > { %v10691_v8 = vrot.slane %v19595_v0, 4  ;;  %19596 = vst [vmem:[#allocation61_spill] sm:$0xff] %v16853_v31  ;;  %v10686_v31 = vsel %vm435_vm0, %v10685_v50, %v19601_v27 }
 0x522   : > { %v11836_v43 = vsel %vm435_vm0, 0.0, %v11835_v37  ;;  %v16858_v37 = vpop.trf.xlu2  ;;  %v10690_v46 = vperm.slane %v10686_v31, %v14768_v61 }
 0x523   : > { %v16851_v33 = vperm.slane %v11836_v43, %v14780_v1  ;;  %19597 = vst [vmem:[#allocation111_spill] sm:$0xff] %v16858_v37 }
 0x527   : > { %13000 = vrot.lane.b32.xlu0 %v11824_v25, %s19124_s22  ;;  %v10698_v25 = vsel %vm435_vm0, %v10697_v7, %v15764_v10  ;;  %s19162_s22 = smov 48   ;;  %v10692_v10 = vsel %vm435_vm0, %v10691_v8, %v19599_v4 }
 0x528   : > { %13008 = vrot.lane.b32.xlu1 %v11856_v36, %s19164_s17  ;;  %v11846_v36 = vsel %vm435_vm0, 0.0, %v11845_v63  ;;  %v10684_v63 = vsel %vm435_vm0, %v10683_v5, %v10676_v30  ;;  %v10702_v7 = vperm.slane %v10698_v25, %v14768_v61  ;;  %v11859_v5 = vrot.slane %v11850_v21, 4 }
 0x529   : > { %v16856_v2 = vperm.slane %v11846_v36, %v14780_v1  ;;  %v11868_v0 = vperm.slane %v10684_v63, %v14768_v61  ;;  %v11863_v30 = vrot.slane %v10684_v63, 4  ;;  %v16883_v63 = vpop.trf.xlu0 }
 0x52a   : > { %v16837_v49 = vpop.permute.xlu1 %12856  ;;  %v10716_v8 = vsel %vm435_vm0, %v10715_v41, %v10702_v7  ;;  %19602 = vst [vmem:[#allocation104_spill] sm:$0xff] %v16883_v63  ;;  %v16885_v50 = vpop.trf.xlu2 }
 0x52b   : > { %19592 = vst [vmem:[#allocation23_spill] sm:$0xff] %v16837_v49  ;;  %v11861_v36 = vrot.slane %v16856_v2, 4  ;;  %v10696_v49 = vperm.slane %v10692_v10, %v14768_v61  ;;  %v11873_v37 = vrot.slane %v11868_v0, 4  ;;  %v11864_v10 = vsel %vm435_vm0, 0.0, %v11863_v30  ;;  %v19605_v30 = vld [vmem:[#allocation105_spill] sm:$0xff] }
 0x52c   : > { %19603 = vst [vmem:[#allocation24_spill] sm:$0xff] %v16885_v50  ;;  %v10741_v27 = vrot.slane %v19605_v30, 4 }
 0x52d   : > { %v11862_v4 = vsel %vm435_vm0, 0.0, %v11861_v36  ;;  %v10709_v25 = vrot.slane %v10696_v49, 4  ;;  %v11874_v31 = vsel %vm435_vm0, 0.0, %v11873_v37  ;;  %v11872_v49 = vperm.slane %v11864_v10, %v14768_v61  ;;  %v19607_v10 = vld [vmem:[#allocation62_spill] sm:$0xff] }
 0x52f   : > { %13012 = vrot.lane.b32.xlu0 %v16851_v33, %s19126_s24  ;;  %s19138_s24 = smov 60   ;;  %v10710_v41 = vsel %vm435_vm0, %v10709_v25, %v10690_v46  ;;  %v19606_v46 = vld [vmem:[#allocation106_spill] sm:$0xff] }
 0x530   : > { %13020 = vrot.lane.b32.xlu1 %v11850_v21, %s19162_s22  ;;  %v10720_v21 = vperm.slane %v10716_v8, %v14780_v1  ;;  %v11882_v8 = vperm.slane %v11874_v31, %v14780_v1  ;;  %v10729_v25 = vrot.slane %v19606_v46, 4  ;;  %v19608_v31 = vld [vmem:[#allocation36_spill] sm:$0xff]  ;;  %v19612_v46 = vld [vmem:[#allocation58_spill] sm:$0xff] }
 0x532   : > { %v16868_v43 = vpop.permute.xlu1 %12864  ;;  %v10721_v36 = vrot.slane %v10720_v21, 4  ;;  %v10735_v21 = vrot.slane %v19607_v10, 4  ;;  %v16917_v50 = vpop.trf.xlu2  ;;  %v10730_v10 = vsel %vm435_vm0, %v10729_v25, %v19612_v46  ;;  %v19615_v25 = vld [vmem:[#allocation27_spill] sm:$0xff] }
 0x533   : > { %19600 = vst [vmem:[#allocation100_spill] sm:$0xff] %v16868_v43  ;;  %v11860_v43 = vsel %vm435_vm0, 0.0, %v11859_v5  ;;  %v11667_v5 = vrot.slane %v16507_v12, 4  ;;  %v10734_v42 = vperm.slane %v10730_v10, %v14768_v61  ;;  %v11703_v10 = vrot.slane %v16599_v23, 4 }
 0x534   : > { %19611 = vst [vmem:[#allocation105_spill] sm:$0xff] %v16917_v50 }
 0x535   : > { %v11668_v12 = vsel %vm435_vm0, 0.0, %v11667_v5  ;;  %v11895_v5 = vrot.slane %v11882_v8, 4  ;;  %v10747_v46 = vrot.slane %v10734_v42, 4 }
 0x537   : > { %13024 = vrot.lane.b32.xlu0 %v11860_v43, %s19128_s26  ;;  %v10714_v43 = vperm.slane %v10710_v41, %v14780_v1  ;;  %s19140_s26 = smov 72  }
 0x538   : > { %13032 = vrot.lane.b32.xlu1 %v11862_v4, %s19138_s24  ;;  %v16897_v4 = vperm.slane %v11868_v0, %v14780_v1  ;;  %v10742_v0 = vsel %vm435_vm0, %v10741_v27, %v19608_v31  ;;  %v10736_v27 = vsel %vm435_vm0, %v10735_v21, %v19613_v53 }
 0x539   : > { %v10722_v37 = vsel %vm435_vm0, %v10721_v36, %v10714_v43  ;;  %v10746_v43 = vperm.slane %v10742_v0, %v14768_v61  ;;  %v10740_v0 = vperm.slane %v10736_v27, %v14768_v61  ;;  %v19618_v27 = vld [vmem:[#allocation32_spill] sm:$0xff] }
 0x53a   : > { %v16887_v7 = vpop.permute.xlu1 %12868  ;;  %v11906_v36 = vperm.slane %v10722_v37, %v14768_v61 }
 0x53b   : > { %19604 = vst [vmem:[#allocation101_spill] sm:$0xff] %v16887_v7  ;;  %v16900_v7 = vperm.slane %v11872_v49, %v14780_v1  ;;  %v10753_v14 = vrot.slane %v10746_v43, 4 }
 0x53c   : > { %v11911_v50 = vrot.slane %v11906_v36, 4 }
 0x53d   : > { %v11897_v63 = vrot.slane %v16900_v7, 4 }
 0x53f   : > { %13036 = vrot.lane.b32.xlu0 %v16897_v4, %s19130_s28  ;;  %s19142_s28 = smov 84  }
 0x540   : > { %13044 = vrot.lane.b32.xlu1 %v11882_v8, %s19140_s26  ;;  %v11883_v8 = vrot.slane %v11872_v49, 4 }
 0x541   : > { %12860 = vrot.lane.b32.xlu2 %v11668_v12, %s19170_s4  ;;  %v16914_v30 = vpop.permute.xlu0 %12852  ;;  %v19614_v12 = vld [vmem:[#allocation119_spill] sm:$0xff] }
 0x542   : > { %v16912_v41 = vpop.permute.xlu1 %12876  ;;  %19610 = vst [vmem:[#allocation98_spill] sm:$0xff] %v16914_v30  ;;  %v10723_v31 = vrot.slane %v19614_v12, 4  ;;  %v11896_v30 = vsel %vm435_vm0, 0.0, %v11895_v5  ;;  %v11884_v49 = vsel %vm435_vm0, 0.0, %v11883_v8  ;;  %v11912_v5 = vsel %vm435_vm0, 0.0, %v11911_v50 }
 0x543   : > { %19609 = vst [vmem:[#allocation115_spill] sm:$0xff] %v16912_v41  ;;  %v11898_v41 = vsel %vm435_vm0, 0.0, %v11897_v63  ;;  %v10779_v12 = vrot.slane %v19618_v27, 4  ;;  %v11704_v50 = vsel %vm435_vm0, 0.0, %v11703_v10  ;;  %v19623_v27 = vld [vmem:[#allocation60_spill] sm:$0xff] }
 0x544   : > { %v10724_v53 = vsel %vm435_vm0, %v10723_v31, %v19615_v25  ;;  %v16946_v31 = vpop.trf.xlu2  ;;  %v16950_v25 = vperm.slane %v11884_v49, %v14780_v1  ;;  %v10773_v49 = vrot.slane %v15891_v26, 4 }
 0x545   : > { %v10728_v43 = vperm.slane %v10724_v53, %v14768_v61  ;;  %19619 = vst [vmem:[#allocation36_spill] sm:$0xff] %v16946_v31  ;;  %v10767_v53 = vrot.slane %v15874_v28, 4  ;;  %v19625_v28 = vld [vmem:[#allocation112_spill] sm:$0xff] }
 0x546   : > { %v10774_v26 = vsel %vm435_vm0, %v10773_v49, %v19625_v28  ;;  %v19627_v49 = vld [vmem:[#allocation123_spill] sm:$0xff] }
 0x547   : > { %13048 = vrot.lane.b32.xlu0 %v11896_v30, %s19132_s30  ;;  %v10754_v30 = vsel %vm435_vm0, %v10753_v14, %v10740_v0  ;;  %s19144_s30 = smov 96   ;;  %v10748_v23 = vsel %vm435_vm0, %v10747_v46, %v10728_v43 }
 0x548   : > { %13056 = vrot.lane.b32.xlu1 %v11898_v41, %s19142_s28  ;;  %v11901_v41 = vrot.slane %v10722_v37, 4  ;;  %v16953_v37 = vperm.slane %v11912_v5, %v14780_v1  ;;  %v10758_v42 = vperm.slane %v10754_v30, %v14780_v1  ;;  %v10752_v43 = vperm.slane %v10748_v23, %v14780_v1 }
 0x549   : > { %12872 = vrot.lane.b32.xlu2 %v16556_v44, %s19172_s23  ;;  %v16938_v21 = vpop.permute.xlu0 %12880  ;;  %v11916_v44 = vperm.slane %v11906_v36, %v14780_v1  ;;  %v19620_v36 = vld [vmem:[#allocation107_spill] sm:$0xff] }
 0x54a   : > { %v16936_v63 = vpop.permute.xlu1 %12888  ;;  %19617 = vst [vmem:[#allocation62_spill] sm:$0xff] %v16938_v21  ;;  %v11902_v14 = vsel %vm435_vm0, 0.0, %v11901_v41  ;;  %v10780_v8 = vsel %vm435_vm0, %v10779_v12, %v19620_v36  ;;  %v11933_v41 = vrot.slane %v16953_v37, 4  ;;  %v10759_v30 = vrot.slane %v10758_v42, 4  ;;  %v19624_v36 = vld [vmem:[#allocation30_spill] sm:$0xff] }
 0x54b   : > { %19616 = vst [vmem:[#allocation106_spill] sm:$0xff] %v16936_v63  ;;  %v11910_v46 = vperm.slane %v11902_v14, %v14768_v61  ;;  %v11931_v10 = vrot.slane %v11916_v44, 4  ;;  %v10761_v12 = vrot.slane %v19623_v27, 4 }
 0x54c   : > { %v16981_v21 = vpop.trf.xlu2 }
 0x54d   : > { %v11921_v63 = vrot.slane %v11910_v46, 4  ;;  %v11932_v14 = vsel %vm435_vm0, 0.0, %v11931_v10  ;;  %v17006_v28 = vperm.slane %v11910_v46, %v14780_v1 }
 0x54f   : > { %13060 = vrot.lane.b32.xlu0 %v16950_v25, %s19134_s3  ;;  %s19146_s3 = smov 108  }
 0x550   : > { %13068 = vrot.lane.b32.xlu1 %v11916_v44, %s19144_s30  ;;  %v10760_v44 = vsel %vm435_vm0, %v10759_v30, %v10752_v43 }
 0x551   : > { %12884 = vrot.lane.b32.xlu2 %v11704_v50, %s19164_s17  ;;  %v16969_v5 = vpop.permute.xlu0 %12892  ;;  %v10784_v50 = vperm.slane %v10780_v8, %v14768_v61  ;;  %v10778_v8 = vperm.slane %v10774_v26, %v14768_v61  ;;  %v16999_v43 = vperm.slane %v10760_v44, %v14768_v61  ;;  %v11939_v30 = vrot.slane %v10760_v44, 4 }
 0x552   : > { %v16965_v0 = vpop.permute.xlu1 %12900  ;;  %19622 = vst [vmem:[#allocation102_spill] sm:$0xff] %v16969_v5  ;;  %v11934_v5 = vsel %vm435_vm0, 0.0, %v11933_v41  ;;  %v10762_v41 = vsel %vm435_vm0, %v10761_v12, %v19627_v49 }
 0x553   : > { %19621 = vst [vmem:[#allocation58_spill] sm:$0xff] %v16965_v0  ;;  %v10768_v0 = vsel %vm435_vm0, %v10767_v53, %v19624_v36  ;;  %v10791_v42 = vrot.slane %v10784_v50, 4  ;;  %v10766_v27 = vperm.slane %v10762_v41, %v14768_v61  ;;  %v11949_v12 = vrot.slane %v16999_v43, 4 }
 0x554   : > { %v10772_v23 = vperm.slane %v10768_v0, %v14768_v61  ;;  %v11709_v0 = vrot.slane %v16646_v24, 4  ;;  %v17016_v44 = vpop.trf.xlu2 }
 0x555   : > { %19629 = vst [vmem:[#allocation32_spill] sm:$0xff] %v17016_v44 }
 0x556   : > { %v10785_v50 = vrot.slane %v10772_v23, 4  ;;  %v11710_v24 = vsel %vm435_vm0, 0.0, %v11709_v0  ;;  %v11950_v23 = vsel %vm435_vm0, 0.0, %v11949_v12 }
 0x557   : > { %13072 = vrot.lane.b32.xlu0 %v11932_v14, %s19136_s13  ;;  %s19148_s13 = smov 120  }
 0x558   : > { %13080 = vrot.lane.b32.xlu1 %v11934_v5, %s19146_s3  ;;  %v11922_v5 = vsel %vm435_vm0, 0.0, %v11921_v63  ;;  %v11940_v63 = vsel %vm435_vm0, 0.0, %v11939_v30  ;;  %v10786_v14 = vsel %vm435_vm0, %v10785_v50, %v10766_v27  ;;  %v19632_v30 = vld [vmem:[#allocation39_spill] sm:$0xff]  ;;  %v11958_v27 = vperm.slane %v11950_v23, %v14780_v1 }
 0x559   : > { %12896 = vrot.lane.b32.xlu2 %v16602_v62, %s19162_s22  ;;  %v16995_v10 = vpop.permute.xlu0 %12904  ;;  %v10792_v62 = vsel %vm435_vm0, %v10791_v42, %v10778_v8  ;;  %v11930_v36 = vperm.slane %v11922_v5, %v14780_v1  ;;  %v11948_v8 = vperm.slane %v11940_v63, %v14768_v61  ;;  %v10790_v41 = vperm.slane %v10786_v14, %v14780_v1  ;;  %v19633_v63 = vld [vmem:[#allocation113_spill] sm:$0xff] }
 0x55a   : > { %v16991_v53 = vpop.permute.xlu1 %12912  ;;  %19628 = vst [vmem:[#allocation27_spill] sm:$0xff] %v16995_v10  ;;  %v10796_v26 = vperm.slane %v10792_v62, %v14780_v1  ;;  %v10817_v0 = vrot.slane %v19632_v30, 4  ;;  %v19637_v30 = vld [vmem:[#allocation110_spill] sm:$0xff] }
 0x55b   : > { %19626 = vst [vmem:[#allocation119_spill] sm:$0xff] %v16991_v53  ;;  %v11937_v49 = vrot.slane %v11930_v36, 4  ;;  %v17029_v50 = vperm.slane %v11948_v8, %v14780_v1  ;;  %v19641_v53 = vld [vmem:[#allocation127_spill] sm:$0xff] }
 0x55c   : > { %v10797_v5 = vrot.slane %v10796_v26, 4 }
 0x55d   : > { %v11938_v62 = vsel %vm435_vm0, 0.0, %v11937_v49  ;;  %v11973_v49 = vrot.slane %v17029_v50, 4 }
 0x55e   : > { %v10798_v12 = vsel %vm435_vm0, %v10797_v5, %v10790_v41 }
 0x55f   : > { %13084 = vrot.lane.b32.xlu0 %v17006_v28, %s19166_s12  ;;  %v11982_v41 = vperm.slane %v10798_v12, %v14768_v61 }
 0x560   : > { %13092 = vrot.lane.b32.xlu1 %v11930_v36, %s19148_s13  ;;  %v10811_v36 = vrot.slane %v19633_v63, 4  ;;  %v19639_v63 = vld [vmem:[#allocation69_spill] sm:$0xff] }
 0x561   : > { %12908 = vrot.lane.b32.xlu2 %v11710_v24, %s19138_s24  ;;  %v17021_v42 = vpop.permute.xlu0 %12916  ;;  %v19634_v24 = vld [vmem:[#allocation116_spill] sm:$0xff]  ;;  %v11987_v44 = vrot.slane %v11982_v41, 4 }
 0x562   : > { %v17019_v46 = vpop.permute.xlu1 %12924  ;;  %19631 = vst [vmem:[#allocation60_spill] sm:$0xff] %v17021_v42  ;;  %v10818_v26 = vsel %vm435_vm0, %v10817_v0, %v19634_v24  ;;  %v17046_v42 = vpop.trf.xlu2  ;;  %v11745_v0 = vrot.slane %v16694_v57, 4  ;;  %v19640_v24 = vld [vmem:[#allocation31_spill] sm:$0xff] }
 0x563   : > { %19630 = vst [vmem:[#allocation107_spill] sm:$0xff] %v17019_v46  ;;  %v10805_v46 = vrot.slane %v19637_v30, 4  ;;  %v10822_v5 = vperm.slane %v10818_v26, %v14768_v61 }
 0x564   : > { %19638 = vst [vmem:[#allocation123_spill] sm:$0xff] %v17046_v42  ;;  %v11746_v57 = vsel %vm435_vm0, 0.0, %v11745_v0  ;;  %v11992_v0 = vperm.slane %v11982_v41, %v14780_v1 }
 0x565   : > { %v10806_v10 = vsel %vm435_vm0, %v10805_v46, %v19641_v53  ;;  %v10829_v42 = vrot.slane %v10822_v5, 4  ;;  %v19644_v46 = vld [vmem:[#allocation109_spill] sm:$0xff]  ;;  %v11988_v5 = vsel %vm435_vm0, 0.0, %v11987_v44 }
 0x567   : > { %13096 = vrot.lane.b32.xlu0 %v11938_v62, %s19168_s15  ;;  %v11971_v62 = vrot.slane %v11958_v27, 4 }
 0x568   : > { %13104 = vrot.lane.b32.xlu1 %v11958_v27, %s19150_s16  ;;  %v11959_v27 = vrot.slane %v11948_v8, 4 }
 0x569   : > { %12920 = vrot.lane.b32.xlu2 %v16649_v48, %s19140_s26  ;;  %v17042_v23 = vpop.permute.xlu0 %12928  ;;  %v10812_v48 = vsel %vm435_vm0, %v10811_v36, %v19639_v63  ;;  %v11972_v30 = vsel %vm435_vm0, 0.0, %v11971_v62  ;;  %v11977_v62 = vrot.slane %v10798_v12, 4 }
 0x56a   : > { %v17040_v14 = vpop.permute.xlu1 %12936  ;;  %19636 = vst [vmem:[#allocation112_spill] sm:$0xff] %v17042_v23  ;;  %v11974_v23 = vsel %vm435_vm0, 0.0, %v11973_v49  ;;  %v10816_v26 = vperm.slane %v10812_v48, %v14768_v61  ;;  %v10810_v49 = vperm.slane %v10806_v10, %v14768_v61  ;;  %v11960_v8 = vsel %vm435_vm0, 0.0, %v11959_v27  ;;  %v17073_v48 = vpop.trf.xlu2 }
 0x56b   : > { %19635 = vst [vmem:[#allocation30_spill] sm:$0xff] %v17040_v14  ;;  %v10799_v14 = vrot.slane %v19640_v24, 4  ;;  %v17078_v10 = vperm.slane %v11960_v8, %v14780_v1  ;;  %v11978_v44 = vsel %vm435_vm0, 0.0, %v11977_v62  ;;  %v19648_v8 = vld [vmem:[#allocation117_spill] sm:$0xff] }
 0x56c   : > { %v10830_v63 = vsel %vm435_vm0, %v10829_v42, %v10816_v26  ;;  %19645 = vst [vmem:[#allocation116_spill] sm:$0xff] %v17073_v48  ;;  %v11986_v26 = vperm.slane %v11978_v44, %v14768_v61  ;;  %v10855_v62 = vrot.slane %v19648_v8, 4  ;;  %v19651_v44 = vld [vmem:[#allocation120_spill] sm:$0xff] }
 0x56d   : > { %v10849_v8 = vrot.slane %v19651_v44, 4  ;;  %v19656_v44 = vld [vmem:[#allocation114_spill] sm:$0xff] }
 0x56f   : > { %13108 = vrot.lane.b32.xlu0 %v11972_v30, %s19170_s4  ;;  %v10823_v30 = vrot.slane %v10810_v49, 4 }
 0x570   : > { %13116 = vrot.lane.b32.xlu1 %v11974_v23, %s19152_s18  ;;  %v10800_v23 = vsel %vm435_vm0, %v10799_v14, %v19644_v46  ;;  %v10834_v14 = vperm.slane %v10830_v63, %v14780_v1  ;;  %v12007_v46 = vrot.slane %v11992_v0, 4  ;;  %v11997_v63 = vrot.slane %v11986_v26, 4 }
 0x571   : > { %12932 = vrot.lane.b32.xlu2 %v11746_v57, %s19142_s28  ;;  %v17066_v53 = vpop.permute.xlu0 %12940  ;;  %v10804_v24 = vperm.slane %v10800_v23, %v14768_v61  ;;  %v17081_v57 = vperm.slane %v11988_v5, %v14780_v1  ;;  %v11781_v23 = vrot.slane %v16738_v9, 4  ;;  %v19650_v9 = vld [vmem:[#allocation33_spill] sm:$0xff] }
 0x572   : > { %v17063_v36 = vpop.permute.xlu1 %12948  ;;  %19643 = vst [vmem:[#allocation113_spill] sm:$0xff] %v17066_v53  ;;  %v10835_v49 = vrot.slane %v10834_v14, 4  ;;  %v10843_v14 = vrot.slane %v19650_v9, 4 }
 0x573   : > { %19642 = vst [vmem:[#allocation39_spill] sm:$0xff] %v17063_v36  ;;  %v10824_v12 = vsel %vm435_vm0, %v10823_v30, %v10804_v24  ;;  %v12009_v27 = vrot.slane %v17081_v57, 4  ;;  %v12008_v24 = vsel %vm435_vm0, 0.0, %v12007_v46  ;;  %v10850_v36 = vsel %vm435_vm0, %v10849_v8, %v19656_v44 }
 0x574   : > { %v10828_v5 = vperm.slane %v10824_v12, %v14780_v1  ;;  %v19652_v12 = vld [vmem:[#allocation43_spill] sm:$0xff] }
 0x576   : > { %v10836_v30 = vsel %vm435_vm0, %v10835_v49, %v10828_v5 }
 0x577   : > { %13120 = vrot.lane.b32.xlu0 %v17078_v10, %s19172_s23  ;;  %v12020_v49 = vperm.slane %v10836_v30, %v14768_v61 }
 0x578   : > { %13128 = vrot.lane.b32.xlu1 %v11992_v0, %s19154_s25  ;;  %v11782_v0 = vsel %vm435_vm0, 0.0, %v11781_v23  ;;  %v12015_v23 = vrot.slane %v10836_v30, 4 }
 0x579   : > { %12944 = vrot.lane.b32.xlu2 %v16697_v56, %s19144_s30  ;;  %v17093_v41 = vpop.permute.xlu0 %12952  ;;  %v12010_v56 = vsel %vm435_vm0, 0.0, %v12009_v27  ;;  %v10856_v27 = vsel %vm435_vm0, %v10855_v62, %v19652_v12  ;;  %v19657_v62 = vld [vmem:[#allocation132_spill] sm:$0xff] }
 0x57a   : > { %v17090_v42 = vpop.permute.xlu1 %12960  ;;  %19647 = vst [vmem:[#allocation69_spill] sm:$0xff] %v17093_v41  ;;  %v10860_v5 = vperm.slane %v10856_v27, %v14768_v61  ;;  %v10837_v12 = vrot.slane %v19657_v62, 4  ;;  %v10854_v27 = vperm.slane %v10850_v36, %v14768_v61  ;;  %v12016_v8 = vsel %vm435_vm0, 0.0, %v12015_v23 }
 0x57b   : > { %19646 = vst [vmem:[#allocation110_spill] sm:$0xff] %v17090_v42  ;;  %v17101_v42 = vpop.trf.xlu2 }
 0x57c   : > { %19649 = vst [vmem:[#allocation31_spill] sm:$0xff] %v17101_v42 }
 0x57f   : > { %13132 = vrot.lane.b32.xlu0 %v12008_v24, %s19164_s17  ;;  %v19655_v24 = vld [vmem:[#allocation64_spill] sm:$0xff] }
 0x580   : > { %13140 = vrot.lane.b32.xlu1 %v12010_v56, %s19156_s27  ;;  %v11998_v56 = vsel %vm435_vm0, 0.0, %v11997_v63  ;;  %v10844_v9 = vsel %vm435_vm0, %v10843_v14, %v19655_v24  ;;  %v17130_v63 = vperm.slane %v12020_v49, %v14780_v1  ;;  %v10867_v14 = vrot.slane %v10860_v5, 4  ;;  %v19658_v24 = vld [vmem:[#allocation34_spill] sm:$0xff] }
 0x581   : > { %12956 = vrot.lane.b32.xlu2 %v11782_v0, %s19146_s3  ;;  %v17115_v46 = vpop.permute.xlu0 %12964  ;;  %v12006_v0 = vperm.slane %v11998_v56, %v14780_v1  ;;  %v10848_v30 = vperm.slane %v10844_v9, %v14768_v61  ;;  %v10838_v56 = vsel %vm435_vm0, %v10837_v12, %v19658_v24  ;;  %v12024_v9 = vperm.slane %v12016_v8, %v14768_v61  ;;  %v19662_v12 = vld [vmem:[#allocation38_spill] sm:$0xff] }
 0x582   : > { %v17113_v41 = vpop.permute.xlu1 %12972  ;;  %19654 = vst [vmem:[#allocation109_spill] sm:$0xff] %v17115_v46  ;;  %v12045_v36 = vrot.slane %v17130_v63, 4  ;;  %v10842_v23 = vperm.slane %v10838_v56, %v14768_v61  ;;  %v10868_v53 = vsel %vm435_vm0, %v10867_v14, %v10854_v27  ;;  %v10893_v24 = vrot.slane %v19662_v12, 4 }
 0x583   : > { %19653 = vst [vmem:[#allocation127_spill] sm:$0xff] %v17113_v41  ;;  %v17127_v41 = vperm.slane %v11986_v26, %v14780_v1  ;;  %v17140_v26 = vpop.trf.xlu2  ;;  %v12013_v5 = vrot.slane %v12006_v0, 4  ;;  %v10861_v46 = vrot.slane %v10848_v30, 4  ;;  %v19663_v30 = vld [vmem:[#allocation118_spill] sm:$0xff]  ;;  %v10881_v27 = vrot.slane %v16038_v35, 4 }
 0x584   : > { %19659 = vst [vmem:[#allocation117_spill] sm:$0xff] %v17140_v26  ;;  %v12046_v42 = vsel %vm435_vm0, 0.0, %v12045_v36  ;;  %v12035_v26 = vrot.slane %v12024_v9, 4  ;;  %v10894_v8 = vsel %vm435_vm0, %v10893_v24, %v19663_v30  ;;  %v10887_v14 = vrot.slane %v16055_v15, 4  ;;  %v19669_v24 = vld [vmem:[#allocation124_spill] sm:$0xff] }
 0x585   : > { %v10898_v35 = vperm.slane %v10894_v8, %v14768_v61  ;;  %v11821_v15 = vrot.slane %v16807_v59, 4 }
 0x586   : > { %v12036_v36 = vsel %vm435_vm0, 0.0, %v12035_v26  ;;  %v10888_v30 = vsel %vm435_vm0, %v10887_v14, %v19669_v24  ;;  %v19671_v14 = vld [vmem:[#allocation135_spill] sm:$0xff] }
 0x587   : > { %13144 = vrot.lane.b32.xlu0 %v17127_v41, %s19162_s22  ;;  %v10905_v26 = vrot.slane %v10898_v35, 4  ;;  %s19747_s22 = smov 100  }
 0x588   : > { %13152 = vrot.lane.b32.xlu1 %v12006_v0, %s19158_s29  ;;  %v10862_v0 = vsel %vm435_vm0, %v10861_v46, %v10842_v23 }
 0x589   : > { %12968 = vrot.lane.b32.xlu2 %v16741_v6, %s19148_s13  ;;  %v17146_v62 = vpop.permute.xlu0 %12976  ;;  %v10872_v6 = vperm.slane %v10868_v53, %v14780_v1 }
 0x58a   : > { %v17144_v44 = vpop.permute.xlu1 %12984  ;;  %19661 = vst [vmem:[#allocation120_spill] sm:$0xff] %v17146_v62  ;;  %v12025_v62 = vrot.slane %v12020_v49, 4 }
 0x58b   : > { %19660 = vst [vmem:[#allocation33_spill] sm:$0xff] %v17144_v44  ;;  %v12014_v44 = vsel %vm435_vm0, 0.0, %v12013_v5  ;;  %v10873_v49 = vrot.slane %v10872_v6, 4  ;;  %v17170_v46 = vpop.trf.xlu2  ;;  %v19667_v5 = vld [vmem:[#allocation65_spill] sm:$0xff]  ;;  %v12040_v6 = vperm.slane %v12024_v9, %v14780_v1  ;;  %v11822_v9 = vsel %vm435_vm0, 0.0, %v11821_v15 }
 0x58c   : > { %19666 = vst [vmem:[#allocation114_spill] sm:$0xff] %v17170_v46  ;;  %v10875_v23 = vrot.slane %v19667_v5, 4 }
 0x58f   : > { %13156 = vrot.lane.b32.xlu0 %v12014_v44, %s19138_s24  ;;  %v12026_v44 = vsel %vm435_vm0, 0.0, %v12025_v62  ;;  %v17186_v62 = vperm.slane %v12036_v36, %v14780_v1  ;;  %s19670_s24 = smov 80  }
 0x590   : > { %13164 = vrot.lane.b32.xlu1 %v12046_v42, %s19160_s2  ;;  %v10866_v42 = vperm.slane %v10862_v0, %v14780_v1  ;;  %v17183_v0 = vperm.slane %v12026_v44, %v14780_v1  ;;  %v10876_v44 = vsel %vm435_vm0, %v10875_v23, %v19671_v14 }
 0x591   : > { %12980 = vrot.lane.b32.xlu2 %v16762_v32, %s19150_s16  ;;  %v17167_v56 = vpop.permute.xlu0 %12988  ;;  %v19668_v32 = vld [vmem:[#allocation35_spill] sm:$0xff]  ;;  %v10880_v24 = vperm.slane %v10876_v44, %v14768_v61 }
 0x592   : > { %v17165_v53 = vpop.permute.xlu1 %12996  ;;  %19665 = vst [vmem:[#allocation64_spill] sm:$0xff] %v17167_v56  ;;  %v10882_v12 = vsel %vm435_vm0, %v10881_v27, %v19668_v32  ;;  %v10874_v59 = vsel %vm435_vm0, %v10873_v49, %v10866_v42  ;;  %v10892_v27 = vperm.slane %v10888_v30, %v14768_v61  ;;  %v12051_v42 = vrot.slane %v17186_v62, 4  ;;  %v19816_v56 = vld [vmem:[#allocation175_spill] sm:$0xff] }
 0x593   : > { %19664 = vst [vmem:[#allocation43_spill] sm:$0xff] %v17165_v53  ;;  %v10886_v8 = vperm.slane %v10882_v12, %v14768_v61  ;;  %v12058_v49 = vperm.slane %v10874_v59, %v14768_v61  ;;  %v12049_v32 = vrot.slane %v12040_v6, 4  ;;  %v12053_v12 = vrot.slane %v10874_v59, 4 }
 0x594   : > { %v10906_v30 = vsel %vm435_vm0, %v10905_v26, %v10892_v27  ;;  %v12052_v23 = vsel %vm435_vm0, 0.0, %v12051_v42 }
 0x595   : > { %v10899_v15 = vrot.slane %v10886_v8, 4  ;;  %v10910_v14 = vperm.slane %v10906_v30, %v14780_v1 }
 0x597   : > { %13168 = vrot.lane.b32.xlu0 %v17183_v0, %s19140_s26  ;;  %s19675_s26 = smov 92   ;;  %v10900_v53 = vsel %vm435_vm0, %v10899_v15, %v10880_v24  ;;  %v10911_v44 = vrot.slane %v10910_v14, 4 }
 0x598   : > { %13176 = vrot.lane.b32.xlu1 %v12040_v6, %s19670_s24  ;;  %v10904_v27 = vperm.slane %v10900_v53, %v14780_v1 }
 0x599   : > { %12992 = vrot.lane.b32.xlu2 %v11822_v9, %s19152_s18  ;;  %v17200_v5 = vpop.permute.xlu0 %13000  ;;  %v12063_v9 = vrot.slane %v12058_v49, 4 }
 0x59a   : > { %v17198_v36 = vpop.permute.xlu1 %13008  ;;  %19673 = vst [vmem:[#allocation34_spill] sm:$0xff] %v17200_v5  ;;  %v12054_v5 = vsel %vm435_vm0, 0.0, %v12053_v12 }
 0x59b   : > { %19672 = vst [vmem:[#allocation132_spill] sm:$0xff] %v17198_v36  ;;  %v17204_v35 = vpop.permute.xlu2 %12860  ;;  %v12050_v36 = vsel %vm435_vm0, 0.0, %v12049_v32  ;;  %v12064_v26 = vsel %vm435_vm0, 0.0, %v12063_v9  ;;  %v12062_v8 = vperm.slane %v12054_v5, %v14768_v61  ;;  %v11857_v32 = vrot.slane %v16851_v33, 4  ;;  %v19680_v33 = vld [vmem:[#allocation125_spill] sm:$0xff] }
 0x59c   : > { %19674 = vst [vmem:[#allocation38_spill] sm:$0xff] %v17204_v35  ;;  %v12072_v12 = vperm.slane %v12064_v26, %v14780_v1  ;;  %v10912_v5 = vsel %vm435_vm0, %v10911_v44, %v10904_v27  ;;  %v10925_v15 = vrot.slane %v19680_v33, 4  ;;  %v19684_v26 = vld [vmem:[#allocation122_spill] sm:$0xff]  ;;  %v19750_v35 = vld [vmem:[#allocation57_spill] sm:$0xff] }
 0x59d   : > { %v17233_v24 = vperm.slane %v12062_v8, %v14780_v1  ;;  %v11858_v53 = vsel %vm435_vm0, 0.0, %v11857_v32  ;;  %v12096_v14 = vperm.slane %v10912_v5, %v14768_v61  ;;  %v10919_v27 = vrot.slane %v19684_v26, 4 }
 0x59e   : > { %v12085_v32 = vrot.slane %v12072_v12, 4 }
 0x59f   : > { %13180 = vrot.lane.b32.xlu0 %v12050_v36, %s19142_s28  ;;  %v10931_v36 = vrot.slane %v16120_v38, 4  ;;  %s19679_s28 = smov 104   ;;  %v19681_v38 = vld [vmem:[#allocation128_spill] sm:$0xff]  ;;  %v12087_v9 = vrot.slane %v17233_v24, 4 }
 0x5a0   : > { %13188 = vrot.lane.b32.xlu1 %v12052_v23, %s19675_s26  ;;  %v12086_v26 = vsel %vm435_vm0, 0.0, %v12085_v32 }
 0x5a1   : > { %13004 = vrot.lane.b32.xlu2 %v16810_v13, %s19154_s25  ;;  %v17219_v59 = vpop.permute.xlu0 %13012  ;;  %v17230_v13 = vperm.slane %v12058_v49, %v14780_v1  ;;  %v10932_v30 = vsel %vm435_vm0, %v10931_v36, %v19681_v38  ;;  %v10926_v36 = vsel %vm435_vm0, %v10925_v15, %v16092_v34 }
 0x5a2   : > { %v17217_v6 = vpop.permute.xlu1 %13020  ;;  %19677 = vst [vmem:[#allocation65_spill] sm:$0xff] %v17219_v59  ;;  %v10936_v33 = vperm.slane %v10932_v30, %v14768_v61  ;;  %v10920_v59 = vsel %vm435_vm0, %v10919_v27, %v16078_v11 }
 0x5a3   : > { %19676 = vst [vmem:[#allocation118_spill] sm:$0xff] %v17217_v6  ;;  %v17224_v42 = vpop.permute.xlu2 %12872  ;;  %v12091_v6 = vrot.slane %v10912_v5, 4  ;;  %v10930_v5 = vperm.slane %v10926_v36, %v14768_v61  ;;  %v10924_v27 = vperm.slane %v10920_v59, %v14768_v61 }
 0x5a4   : > { %19678 = vst [vmem:[#allocation35_spill] sm:$0xff] %v17224_v42  ;;  %v10943_v30 = vrot.slane %v10936_v33, 4 }
 0x5a5   : > { %v12092_v34 = vsel %vm435_vm0, 0.0, %v12091_v6 }
 0x5a6   : > { %v12100_v6 = vperm.slane %v12092_v34, %v14768_v61  ;;  %v10944_v36 = vsel %vm435_vm0, %v10943_v30, %v10930_v5  ;;  %v19694_v5 = vld [vmem:[#allocation130_spill] sm:$0xff] }
 0x5a7   : > { %13192 = vrot.lane.b32.xlu0 %v17230_v13, %s19144_s30  ;;  %s19687_s30 = smov 116   ;;  %v10957_v30 = vrot.slane %v19694_v5, 4 }
 0x5a8   : > { %13200 = vrot.lane.b32.xlu1 %v12072_v12, %s19679_s28  ;;  %v12073_v12 = vrot.slane %v12062_v8, 4  ;;  %v12111_v34 = vrot.slane %v12100_v6, 4 }
 0x5a9   : > { %13016 = vrot.lane.b32.xlu2 %v11858_v53, %s19156_s27  ;;  %v17246_v23 = vpop.permute.xlu0 %13024  ;;  %v19686_v53 = vld [vmem:[#allocation37_spill] sm:$0xff] }
 0x5aa   : > { %v17244_v49 = vpop.permute.xlu1 %13032  ;;  %19683 = vst [vmem:[#allocation135_spill] sm:$0xff] %v17246_v23  ;;  %v10913_v38 = vrot.slane %v19686_v53, 4  ;;  %v17259_v23 = vperm.slane %v12096_v14, %v14780_v1  ;;  %v12074_v33 = vsel %vm435_vm0, 0.0, %v12073_v12  ;;  %v12101_v12 = vrot.slane %v12096_v14, 4 }
 0x5ab   : > { %19682 = vst [vmem:[#allocation124_spill] sm:$0xff] %v17244_v49  ;;  %v17251_v44 = vpop.permute.xlu2 %12884  ;;  %v12088_v49 = vsel %vm435_vm0, 0.0, %v12087_v9  ;;  %v19689_v9 = vld [vmem:[#allocation121_spill] sm:$0xff]  ;;  %v17287_v59 = vperm.slane %v12074_v33, %v14780_v1  ;;  %v12112_v5 = vsel %vm435_vm0, 0.0, %v12111_v34 }
 0x5ac   : > { %19685 = vst [vmem:[#allocation125_spill] sm:$0xff] %v17251_v44  ;;  %v10914_v11 = vsel %vm435_vm0, %v10913_v38, %v19689_v9  ;;  %v12121_v8 = vrot.slane %v17259_v23, 4  ;;  %v10937_v9 = vrot.slane %v10924_v27, 4  ;;  %v19696_v27 = vld [vmem:[#allocation68_spill] sm:$0xff]  ;;  %v19700_v44 = vld [vmem:[#allocation66_spill] sm:$0xff] }
 0x5ad   : > { %v10918_v53 = vperm.slane %v10914_v11, %v14768_v61  ;;  %v10963_v33 = vrot.slane %v19696_v27, 4 }
 0x5af   : > { %13204 = vrot.lane.b32.xlu0 %v12086_v26, %s19146_s3  ;;  %v19692_v26 = vld [vmem:[#allocation129_spill] sm:$0xff]  ;;  %s19693_s3 = smov 4  }
 0x5b0   : > { %13212 = vrot.lane.b32.xlu1 %v12088_v49, %s19687_s30  ;;  %v10969_v38 = vrot.slane %v19692_v26, 4 }
 0x5b1   : > { %13028 = vrot.lane.b32.xlu2 %v16856_v2, %s19158_s29  ;;  %v17275_v32 = vpop.permute.xlu0 %13036  ;;  %v11893_v2 = vrot.slane %v16897_v4, 4 }
 0x5b2   : > { %v17270_v15 = vpop.permute.xlu1 %13044  ;;  %19690 = vst [vmem:[#allocation122_spill] sm:$0xff] %v17275_v32  ;;  %v10948_v32 = vperm.slane %v10944_v36, %v14780_v1  ;;  %v19697_v36 = vld [vmem:[#allocation50_spill] sm:$0xff] }
 0x5b3   : > { %19688 = vst [vmem:[#allocation128_spill] sm:$0xff] %v17270_v15  ;;  %v17278_v49 = vpop.permute.xlu2 %12896  ;;  %v12122_v15 = vsel %vm435_vm0, 0.0, %v12121_v8  ;;  %v11894_v4 = vsel %vm435_vm0, 0.0, %v11893_v2  ;;  %v10938_v8 = vsel %vm435_vm0, %v10937_v9, %v10918_v53  ;;  %v12102_v2 = vsel %vm435_vm0, 0.0, %v12101_v12  ;;  %v19701_v9 = vld [vmem:[#allocation126_spill] sm:$0xff] }
 0x5b4   : > { %19691 = vst [vmem:[#allocation37_spill] sm:$0xff] %v17278_v49  ;;  %v10949_v26 = vrot.slane %v10948_v32, 4  ;;  %v12116_v53 = vperm.slane %v12100_v6, %v14780_v1  ;;  %v17321_v12 = vperm.slane %v12112_v5, %v14780_v1 }
 0x5b7   : > { %13216 = vrot.lane.b32.xlu0 %v17287_v59, %s19148_s13  ;;  %s19703_s13 = smov 16  }
 0x5b8   : > { %13224 = vrot.lane.b32.xlu1 %v12122_v15, %s19693_s3  ;;  %v10970_v15 = vsel %vm435_vm0, %v10969_v38, %v19697_v36  ;;  %v10964_v38 = vsel %vm435_vm0, %v10963_v33, %v19701_v9  ;;  %v19702_v36 = vld [vmem:[#allocation143_spill] sm:$0xff] }
 0x5b9   : > { %13040 = vrot.lane.b32.xlu2 %v11894_v4, %s19160_s2  ;;  %v17303_v14 = vpop.permute.xlu0 %13048  ;;  %v10958_v4 = vsel %vm435_vm0, %v10957_v30, %v19700_v44  ;;  %v10974_v27 = vperm.slane %v10970_v15, %v14768_v61  ;;  %v10951_v32 = vrot.slane %v19702_v36, 4  ;;  %v10968_v34 = vperm.slane %v10964_v38, %v14768_v61 }
 0x5ba   : > { %v17297_v11 = vpop.permute.xlu1 %13056  ;;  %19698 = vst [vmem:[#allocation129_spill] sm:$0xff] %v17303_v14  ;;  %v17318_v14 = vperm.slane %v12102_v2, %v14780_v1  ;;  %v10962_v6 = vperm.slane %v10958_v4, %v14768_v61  ;;  %v12125_v4 = vrot.slane %v12116_v53, 4 }
 0x5bb   : > { %19695 = vst [vmem:[#allocation121_spill] sm:$0xff] %v17297_v11  ;;  %v17305_v49 = vpop.permute.xlu2 %12908  ;;  %v10942_v11 = vperm.slane %v10938_v8, %v14780_v1  ;;  %v10981_v30 = vrot.slane %v10974_v27, 4  ;;  %v19705_v8 = vld [vmem:[#allocation41_spill] sm:$0xff]  ;;  %v11899_v27 = vrot.slane %v16950_v25, 4 }
 0x5bc   : > { %19699 = vst [vmem:[#allocation130_spill] sm:$0xff] %v17305_v49  ;;  %v10952_v15 = vsel %vm435_vm0, %v10951_v32, %v19705_v8  ;;  %v10975_v38 = vrot.slane %v10962_v6, 4  ;;  %v12126_v8 = vsel %vm435_vm0, 0.0, %v12125_v4 }
 0x5bd   : > { %v10950_v44 = vsel %vm435_vm0, %v10949_v26, %v10942_v11  ;;  %v12127_v11 = vrot.slane %v17321_v12, 4  ;;  %v10982_v36 = vsel %vm435_vm0, %v10981_v30, %v10968_v34  ;;  %v11900_v25 = vsel %vm435_vm0, 0.0, %v11899_v27 }
 0x5be   : > { %v12134_v26 = vperm.slane %v10950_v44, %v14768_v61  ;;  %v12129_v9 = vrot.slane %v10950_v44, 4 }
 0x5bf   : > { %13228 = vrot.lane.b32.xlu0 %v17318_v14, %s19150_s16  ;;  %s19708_s16 = smov 28  }
 0x5c0   : > { %13236 = vrot.lane.b32.xlu1 %v12116_v53, %s19703_s13  ;;  %v12139_v32 = vrot.slane %v12134_v26, 4 }
 0x5c1   : > { %13052 = vrot.lane.b32.xlu2 %v16900_v7, %s19670_s24  ;;  %v17335_v2 = vpop.permute.xlu0 %13060  ;;  %v10956_v7 = vperm.slane %v10952_v15, %v14768_v61  ;;  %v19712_v15 = vld [vmem:[#allocation45_spill] sm:$0xff] }
 0x5c2   : > { %v17331_v33 = vpop.permute.xlu1 %13068  ;;  %19706 = vst [vmem:[#allocation50_spill] sm:$0xff] %v17335_v2  ;;  %v12130_v2 = vsel %vm435_vm0, 0.0, %v12129_v9  ;;  %v12140_v34 = vsel %vm435_vm0, 0.0, %v12139_v32 }
 0x5c3   : > { %19704 = vst [vmem:[#allocation68_spill] sm:$0xff] %v17331_v33  ;;  %v17339_v5 = vpop.permute.xlu2 %12920  ;;  %v12128_v33 = vsel %vm435_vm0, 0.0, %v12127_v11  ;;  %v10976_v53 = vsel %vm435_vm0, %v10975_v38, %v10956_v7  ;;  %v12138_v30 = vperm.slane %v12130_v2, %v14768_v61  ;;  %v11007_v11 = vrot.slane %v19712_v15, 4 }
 0x5c4   : > { %19707 = vst [vmem:[#allocation66_spill] sm:$0xff] %v17339_v5  ;;  %v10986_v5 = vperm.slane %v10982_v36, %v14780_v1  ;;  %v10980_v4 = vperm.slane %v10976_v53, %v14780_v1  ;;  %v12148_v27 = vperm.slane %v12140_v34, %v14780_v1  ;;  %v17365_v38 = vperm.slane %v12134_v26, %v14780_v1  ;;  %v19714_v36 = vld [vmem:[#allocation131_spill] sm:$0xff] }
 0x5c5   : > { %v17368_v7 = vperm.slane %v12138_v30, %v14780_v1  ;;  %v11008_v2 = vsel %vm435_vm0, %v11007_v11, %v19714_v36  ;;  %v19719_v36 = vld [vmem:[#allocation40_spill] sm:$0xff] }
 0x5c6   : > { %v10987_v9 = vrot.slane %v10986_v5, 4  ;;  %v10995_v5 = vrot.slane %v16202_v47, 4  ;;  %v11012_v34 = vperm.slane %v11008_v2, %v14768_v61  ;;  %v12161_v11 = vrot.slane %v12148_v27, 4 }
 0x5c7   : > { %13240 = vrot.lane.b32.xlu0 %v12126_v8, %s19152_s18  ;;  %s19713_s18 = smov 40   ;;  %v11001_v8 = vrot.slane %v16219_v60, 4  ;;  %v12163_v53 = vrot.slane %v17368_v7, 4  ;;  %v11935_v47 = vrot.slane %v17006_v28, 4 }
 0x5c8   : > { %13248 = vrot.lane.b32.xlu1 %v12128_v33, %s19708_s16  ;;  %v10988_v32 = vsel %vm435_vm0, %v10987_v9, %v10980_v4  ;;  %v19718_v9 = vld [vmem:[#allocation67_spill] sm:$0xff]  ;;  %v12162_v2 = vsel %vm435_vm0, 0.0, %v12161_v11 }
 0x5c9   : > { %13064 = vrot.lane.b32.xlu2 %v11900_v25, %s19675_s26  ;;  %v17355_v6 = vpop.permute.xlu0 %13072  ;;  %v12172_v4 = vperm.slane %v10988_v32, %v14768_v61  ;;  %v10989_v60 = vrot.slane %v19718_v9, 4 }
 0x5ca   : > { %v17353_v44 = vpop.permute.xlu1 %13080  ;;  %19710 = vst [vmem:[#allocation143_spill] sm:$0xff] %v17355_v6  ;;  %v11019_v6 = vrot.slane %v11012_v34, 4  ;;  %v12167_v34 = vrot.slane %v10988_v32, 4 }
 0x5cb   : > { %19709 = vst [vmem:[#allocation126_spill] sm:$0xff] %v17353_v44  ;;  %v17359_v33 = vpop.permute.xlu2 %12932  ;;  %v19720_v44 = vld [vmem:[#allocation136_spill] sm:$0xff] }
 0x5cc   : > { %19711 = vst [vmem:[#allocation41_spill] sm:$0xff] %v17359_v33 }
 0x5cf   : > { %13252 = vrot.lane.b32.xlu0 %v17365_v38, %s19154_s25  ;;  %s19721_s25 = smov 52  }
 0x5d0   : > { %13260 = vrot.lane.b32.xlu1 %v12148_v27, %s19713_s18  ;;  %v12149_v27 = vrot.slane %v12138_v30, 4 }
 0x5d1   : > { %13076 = vrot.lane.b32.xlu2 %v16953_v37, %s19679_s28  ;;  %v17382_v25 = vpop.permute.xlu0 %13084  ;;  %v10996_v37 = vsel %vm435_vm0, %v10995_v5, %v19719_v36  ;;  %v11936_v5 = vsel %vm435_vm0, 0.0, %v11935_v47  ;;  %v19726_v36 = vld [vmem:[#allocation49_spill] sm:$0xff] }
 0x5d2   : > { %v17380_v26 = vpop.permute.xlu1 %13092  ;;  %19716 = vst [vmem:[#allocation131_spill] sm:$0xff] %v17382_v25  ;;  %v12164_v25 = vsel %vm435_vm0, 0.0, %v12163_v53  ;;  %v11000_v33 = vperm.slane %v10996_v37, %v14768_v61  ;;  %v11045_v37 = vrot.slane %v19726_v36, 4 }
 0x5d3   : > { %19715 = vst [vmem:[#allocation45_spill] sm:$0xff] %v17380_v26  ;;  %v17386_v15 = vpop.permute.xlu2 %12944  ;;  %v11002_v26 = vsel %vm435_vm0, %v11001_v8, %v19720_v44  ;;  %v17404_v44 = vperm.slane %v16999_v43, %v14780_v1  ;;  %v10990_v8 = vsel %vm435_vm0, %v10989_v60, %v16174_v20  ;;  %v12182_v60 = vperm.slane %v12172_v4, %v14780_v1 }
 0x5d4   : > { %19717 = vst [vmem:[#allocation184_spill] sm:$0xff] %v17386_v15  ;;  %v12177_v15 = vrot.slane %v12172_v4, 4  ;;  %v11006_v28 = vperm.slane %v11002_v26, %v14768_v61  ;;  %v12150_v26 = vsel %vm435_vm0, 0.0, %v12149_v27  ;;  %v10994_v47 = vperm.slane %v10990_v8, %v14768_v61  ;;  %v19729_v27 = vld [vmem:[#allocation137_spill] sm:$0xff]  ;;  %v19730_v8 = vld [vmem:[#allocation139_spill] sm:$0xff] }
 0x5d5   : > { %19722 = vst [vmem:[#allocation67_spill] sm:$0xff] %v17404_v44  ;;  %v11013_v43 = vrot.slane %v11000_v33, 4  ;;  %v11969_v20 = vrot.slane %v17404_v44, 4  ;;  %v12168_v33 = vsel %vm435_vm0, 0.0, %v12167_v34 }
 0x5d6   : > { %v12178_v11 = vsel %vm435_vm0, 0.0, %v12177_v15  ;;  %v11020_v9 = vsel %vm435_vm0, %v11019_v6, %v11006_v28  ;;  %v11039_v28 = vrot.slane %v19729_v27, 4  ;;  %v19734_v27 = vld [vmem:[#allocation73_spill] sm:$0xff] }
 0x5d7   : > { %13264 = vrot.lane.b32.xlu0 %v12162_v2, %s19156_s27  ;;  %v17423_v2 = vperm.slane %v12150_v26, %v14780_v1  ;;  %v11024_v32 = vperm.slane %v11020_v9, %v14780_v1  ;;  %s19727_s27 = smov 64   ;;  %v11014_v6 = vsel %vm435_vm0, %v11013_v43, %v10994_v47  ;;  %v11970_v15 = vsel %vm435_vm0, 0.0, %v11969_v20 }
 0x5d8   : > { %13272 = vrot.lane.b32.xlu1 %v12164_v25, %s19721_s25  ;;  %v11046_v26 = vsel %vm435_vm0, %v11045_v37, %v19730_v8  ;;  %v12176_v47 = vperm.slane %v12168_v33, %v14768_v61  ;;  %v11018_v43 = vperm.slane %v11014_v6, %v14780_v1  ;;  %v12197_v20 = vrot.slane %v12182_v60, 4 }
 0x5d9   : > { %13088 = vrot.lane.b32.xlu2 %v11936_v5, %s19687_s30  ;;  %v17411_v30 = vpop.permute.xlu0 %13096  ;;  %v17426_v5 = vperm.slane %v12178_v11, %v14780_v1  ;;  %v11025_v9 = vrot.slane %v11024_v32, 4  ;;  %v11040_v49 = vsel %vm435_vm0, %v11039_v28, %v19734_v27  ;;  %v19736_v32 = vld [vmem:[#allocation42_spill] sm:$0xff] }
 0x5da   : > { %v17409_v25 = vpop.permute.xlu1 %13104  ;;  %19724 = vst [vmem:[#allocation136_spill] sm:$0xff] %v17411_v30  ;;  %v12187_v8 = vrot.slane %v12176_v47, 4  ;;  %v12198_v42 = vsel %vm435_vm0, 0.0, %v12197_v20  ;;  %v11027_v6 = vrot.slane %v19736_v32, 4 }
 0x5db   : > { %19723 = vst [vmem:[#allocation40_spill] sm:$0xff] %v17409_v25  ;;  %v17413_v53 = vpop.permute.xlu2 %12956  ;;  %v12199_v34 = vrot.slane %v17426_v5, 4  ;;  %v11026_v33 = vsel %vm435_vm0, %v11025_v9, %v11018_v43  ;;  %v19832_v25 = vld [vmem:[#allocation161_spill] sm:$0xff] }
 0x5dc   : > { %19725 = vst [vmem:[#allocation185_spill] sm:$0xff] %v17413_v53  ;;  %v11050_v53 = vperm.slane %v11046_v26, %v14768_v61  ;;  %v11044_v26 = vperm.slane %v11040_v49, %v14768_v61  ;;  %v12188_v20 = vsel %vm435_vm0, 0.0, %v12187_v8  ;;  %v12210_v43 = vperm.slane %v11026_v33, %v14768_v61 }
 0x5dd   : > { %v12200_v37 = vsel %vm435_vm0, 0.0, %v12199_v34  ;;  %v11975_v49 = vrot.slane %v17078_v10, 4 }
 0x5de   : > { %v17481_v8 = vperm.slane %v12210_v43, %v14780_v1 }
 0x5df   : > { %13276 = vrot.lane.b32.xlu0 %v17423_v2, %s19158_s29  ;;  %s19735_s29 = smov 76   ;;  %v11976_v10 = vsel %vm435_vm0, 0.0, %v11975_v49 }
 0x5e0   : > { %13284 = vrot.lane.b32.xlu1 %v12182_v60, %s19727_s27 }
 0x5e1   : > { %13100 = vrot.lane.b32.xlu2 %v11970_v15, %s19693_s3  ;;  %v17441_v11 = vpop.permute.xlu0 %13108  ;;  %v19733_v15 = vld [vmem:[#allocation134_spill] sm:$0xff] }
 0x5e2   : > { %v17436_v4 = vpop.permute.xlu1 %13116  ;;  %19731 = vst [vmem:[#allocation137_spill] sm:$0xff] %v17441_v11  ;;  %v11033_v30 = vrot.slane %v19733_v15, 4  ;;  %v11057_v15 = vrot.slane %v11050_v53, 4  ;;  %v12205_v53 = vrot.slane %v11026_v33, 4 }
 0x5e3   : > { %19728 = vst [vmem:[#allocation49_spill] sm:$0xff] %v17436_v4  ;;  %v17446_v36 = vpop.permute.xlu2 %12968 }
 0x5e4   : > { %19732 = vst [vmem:[#allocation139_spill] sm:$0xff] %v17446_v36  ;;  %v19737_v36 = vld [vmem:[#allocation151_spill] sm:$0xff]  ;;  %v12206_v33 = vsel %vm435_vm0, 0.0, %v12205_v53 }
 0x5e5   : > { %v11034_v60 = vsel %vm435_vm0, %v11033_v30, %v19737_v36  ;;  %v19741_v30 = vld [vmem:[#allocation133_spill] sm:$0xff]  ;;  %v12196_v36 = vperm.slane %v12188_v20, %v14780_v1 }
 0x5e6   : > { %v11038_v9 = vperm.slane %v11034_v60, %v14768_v61 }
 0x5e7   : > { %13288 = vrot.lane.b32.xlu0 %v12198_v42, %s19160_s2  ;;  %v11028_v42 = vsel %vm435_vm0, %v11027_v6, %v19741_v30  ;;  %s19742_s2 = smov 88   ;;  %v12203_v30 = vrot.slane %v12196_v36, 4 }
 0x5e8   : > { %13296 = vrot.lane.b32.xlu1 %v12200_v37, %s19735_s29  ;;  %v17478_v37 = vperm.slane %v12176_v47, %v14780_v1  ;;  %v11032_v32 = vperm.slane %v11028_v42, %v14768_v61  ;;  %v11051_v60 = vrot.slane %v11038_v9, 4  ;;  %v12214_v42 = vperm.slane %v12206_v33, %v14768_v61  ;;  %v19749_v33 = vld [vmem:[#allocation144_spill] sm:$0xff] }
 0x5e9   : > { %13112 = vrot.lane.b32.xlu2 %v17029_v50, %s19703_s13  ;;  %v17465_v34 = vpop.permute.xlu0 %13120  ;;  %v11058_v50 = vsel %vm435_vm0, %v11057_v15, %v11044_v26  ;;  %v12235_v15 = vrot.slane %v17481_v8, 4 }
 0x5ea   : > { %v17463_v28 = vpop.permute.xlu1 %13128  ;;  %19739 = vst [vmem:[#allocation73_spill] sm:$0xff] %v17465_v34  ;;  %v11062_v6 = vperm.slane %v11058_v50, %v14780_v1  ;;  %v11052_v20 = vsel %vm435_vm0, %v11051_v60, %v11032_v32  ;;  %v12225_v34 = vrot.slane %v12214_v42, 4 }
 0x5eb   : > { %19738 = vst [vmem:[#allocation134_spill] sm:$0xff] %v17463_v28  ;;  %v17470_v27 = vpop.permute.xlu2 %12980  ;;  %v19746_v28 = vld [vmem:[#allocation140_spill] sm:$0xff]  ;;  %v11056_v53 = vperm.slane %v11052_v20, %v14780_v1 }
 0x5ec   : > { %19740 = vst [vmem:[#allocation42_spill] sm:$0xff] %v17470_v27  ;;  %v11063_v50 = vrot.slane %v11062_v6, 4  ;;  %v11083_v49 = vrot.slane %v19746_v28, 4  ;;  %v11077_v6 = vrot.slane %v19749_v33, 4  ;;  %v19756_v33 = vld [vmem:[#allocation156_spill] sm:$0xff] }
 0x5ee   : > { %v11064_v32 = vsel %vm435_vm0, %v11063_v50, %v11056_v53  ;;  %v11084_v28 = vsel %vm435_vm0, %v11083_v49, %v19750_v35  ;;  %v19754_v35 = vld [vmem:[#allocation70_spill] sm:$0xff] }
 0x5ef   : > { %13300 = vrot.lane.b32.xlu0 %v17478_v37, %s19670_s24  ;;  %v12248_v50 = vperm.slane %v11064_v32, %v14768_v61  ;;  %v11088_v53 = vperm.slane %v11084_v28, %v14768_v61 }
 0x5f0   : > { %13308 = vrot.lane.b32.xlu1 %v12196_v36, %s19742_s2  ;;  %v19748_v36 = vld [vmem:[#allocation44_spill] sm:$0xff] }
 0x5f1   : > { %13124 = vrot.lane.b32.xlu2 %v11976_v10, %s19708_s16  ;;  %v17493_v26 = vpop.permute.xlu0 %13132  ;;  %v12236_v10 = vsel %vm435_vm0, 0.0, %v12235_v15  ;;  %v11071_v60 = vrot.slane %v19748_v36, 4  ;;  %v12253_v28 = vrot.slane %v12248_v50, 4 }
 0x5f2   : > { %v17491_v47 = vpop.permute.xlu1 %13140  ;;  %19744 = vst [vmem:[#allocation133_spill] sm:$0xff] %v17493_v26  ;;  %v12215_v26 = vrot.slane %v12210_v43, 4 }
 0x5f3   : > { %19743 = vst [vmem:[#allocation151_spill] sm:$0xff] %v17491_v47  ;;  %v17497_v9 = vpop.permute.xlu2 %12992  ;;  %v12204_v47 = vsel %vm435_vm0, 0.0, %v12203_v30  ;;  %v12226_v30 = vsel %vm435_vm0, 0.0, %v12225_v34  ;;  %v11072_v49 = vsel %vm435_vm0, %v11071_v60, %v19754_v35  ;;  %v11095_v35 = vrot.slane %v11088_v53, 4 }
 0x5f4   : > { %19745 = vst [vmem:[#allocation186_spill] sm:$0xff] %v17497_v9  ;;  %v17534_v34 = vperm.slane %v12226_v30, %v14780_v1  ;;  %v12243_v53 = vrot.slane %v11064_v32, 4  ;;  %v17563_v32 = vperm.slane %v12248_v50, %v14780_v1 }
 0x5f7   : > { %13312 = vrot.lane.b32.xlu0 %v12204_v47, %s19675_s26  ;;  %v12216_v47 = vsel %vm435_vm0, 0.0, %v12215_v26 }
 0x5f8   : > { %13320 = vrot.lane.b32.xlu1 %v12236_v10, %s19747_s22  ;;  %v12011_v10 = vrot.slane %v17127_v41, 4  ;;  %v17531_v26 = vperm.slane %v12216_v47, %v14780_v1  ;;  %v11076_v41 = vperm.slane %v11072_v49, %v14768_v61 }
 0x5f9   : > { %13136 = vrot.lane.b32.xlu2 %v17081_v57, %s19713_s18  ;;  %v17515_v20 = vpop.permute.xlu0 %13144  ;;  %v19755_v57 = vld [vmem:[#allocation138_spill] sm:$0xff] }
 0x5fa   : > { %v17513_v15 = vpop.permute.xlu1 %13152  ;;  %19752 = vst [vmem:[#allocation44_spill] sm:$0xff] %v17515_v20  ;;  %v11078_v36 = vsel %vm435_vm0, %v11077_v6, %v19755_v57  ;;  %v12230_v20 = vperm.slane %v12214_v42, %v14780_v1  ;;  %v12012_v6 = vsel %vm435_vm0, 0.0, %v12011_v10  ;;  %v19757_v42 = vld [vmem:[#allocation47_spill] sm:$0xff]  ;;  %v11089_v4 = vrot.slane %v11076_v41, 4 }
 0x5fb   : > { %19751 = vst [vmem:[#allocation140_spill] sm:$0xff] %v17513_v15  ;;  %v17517_v43 = vpop.permute.xlu2 %13004  ;;  %v11065_v15 = vrot.slane %v19756_v33, 4  ;;  %v11082_v60 = vperm.slane %v11078_v36, %v14768_v61  ;;  %v12241_v33 = vrot.slane %v17534_v34, 4 }
 0x5fc   : > { %19753 = vst [vmem:[#allocation144_spill] sm:$0xff] %v17517_v43  ;;  %v12239_v36 = vrot.slane %v12230_v20, 4  ;;  %v12254_v43 = vsel %vm435_vm0, 0.0, %v12253_v28 }
 0x5fd   : > { %v11066_v47 = vsel %vm435_vm0, %v11065_v15, %v19757_v42  ;;  %v11096_v9 = vsel %vm435_vm0, %v11095_v35, %v11082_v60  ;;  %v12242_v15 = vsel %vm435_vm0, 0.0, %v12241_v33  ;;  %v19764_v33 = vld [vmem:[#allocation53_spill] sm:$0xff] }
 0x5fe   : > { %v11070_v10 = vperm.slane %v11066_v47, %v14768_v61  ;;  %v11100_v42 = vperm.slane %v11096_v9, %v14780_v1 }
 0x5ff   : > { %13324 = vrot.lane.b32.xlu0 %v17531_v26, %s19679_s28 }
 0x600   : > { %13332 = vrot.lane.b32.xlu1 %v12230_v20, %s19166_s12  ;;  %v12244_v20 = vsel %vm435_vm0, 0.0, %v12243_v53  ;;  %v11090_v28 = vsel %vm435_vm0, %v11089_v4, %v11070_v10  ;;  %v11101_v35 = vrot.slane %v11100_v42, 4  ;;  %v12273_v4 = vrot.slane %v17563_v32, 4 }
 0x601   : > { %13148 = vrot.lane.b32.xlu2 %v12012_v6, %s19721_s25  ;;  %v17547_v57 = vpop.permute.xlu0 %13156  ;;  %v17557_v6 = vperm.slane %v12254_v43, %v14780_v1  ;;  %v12252_v60 = vperm.slane %v12244_v20, %v14768_v61  ;;  %v11094_v50 = vperm.slane %v11090_v28, %v14780_v1  ;;  %v19765_v20 = vld [vmem:[#allocation142_spill] sm:$0xff] }
 0x602   : > { %v17545_v30 = vpop.permute.xlu1 %13164  ;;  %19759 = vst [vmem:[#allocation70_spill] sm:$0xff] %v17547_v57  ;;  %v12274_v10 = vsel %vm435_vm0, 0.0, %v12273_v4 }
 0x603   : > { %19758 = vst [vmem:[#allocation57_spill] sm:$0xff] %v17545_v30  ;;  %v17550_v49 = vpop.permute.xlu2 %13016  ;;  %v12240_v30 = vsel %vm435_vm0, 0.0, %v12239_v36  ;;  %v12275_v9 = vrot.slane %v17557_v6, 4  ;;  %v11121_v36 = vrot.slane %v19764_v33, 4  ;;  %v12263_v53 = vrot.slane %v12252_v60, 4 }
 0x604   : > { %19760 = vst [vmem:[#allocation138_spill] sm:$0xff] %v17550_v49  ;;  %v11115_v33 = vrot.slane %v16374_v17, 4 }
 0x605   : > { %v11122_v28 = vsel %vm435_vm0, %v11121_v36, %v19765_v20  ;;  %v19769_v36 = vld [vmem:[#allocation141_spill] sm:$0xff] }
 0x606   : > { %v11103_v20 = vrot.slane %v19769_v36, 4 }
 0x607   : > { %13336 = vrot.lane.b32.xlu0 %v12240_v30, %s19687_s30  ;;  %v12047_v30 = vrot.slane %v17183_v0, 4  ;;  %v11109_v0 = vrot.slane %v16361_v19, 4  ;;  %v19770_v19 = vld [vmem:[#allocation46_spill] sm:$0xff] }
 0x608   : > { %13344 = vrot.lane.b32.xlu1 %v12242_v15, %s19168_s15  ;;  %v11102_v15 = vsel %vm435_vm0, %v11101_v35, %v11094_v50 }
 0x609   : > { %13160 = vrot.lane.b32.xlu2 %v17130_v63, %s19727_s27  ;;  %v17572_v41 = vpop.permute.xlu0 %13168  ;;  %v12276_v63 = vsel %vm435_vm0, 0.0, %v12275_v9  ;;  %v12048_v42 = vsel %vm435_vm0, 0.0, %v12047_v30  ;;  %v12286_v50 = vperm.slane %v11102_v15, %v14768_v61  ;;  %v11126_v30 = vperm.slane %v11122_v28, %v14768_v61 }
 0x60a   : > { %v17570_v43 = vpop.permute.xlu1 %13176  ;;  %19762 = vst [vmem:[#allocation47_spill] sm:$0xff] %v17572_v41  ;;  %v11110_v17 = vsel %vm435_vm0, %v11109_v0, %v19770_v19  ;;  %v11104_v0 = vsel %vm435_vm0, %v11103_v20, %v16338_v39  ;;  %v12083_v39 = vrot.slane %v17230_v13, 4 }
 0x60b   : > { %19761 = vst [vmem:[#allocation156_spill] sm:$0xff] %v17570_v43  ;;  %v17577_v47 = vpop.permute.xlu2 %13028  ;;  %v19771_v43 = vld [vmem:[#allocation147_spill] sm:$0xff]  ;;  %v11133_v28 = vrot.slane %v11126_v30, 4 }
 0x60c   : > { %19763 = vst [vmem:[#allocation187_spill] sm:$0xff] %v17577_v47 }
 0x60f   : > { %13348 = vrot.lane.b32.xlu0 %v12274_v10, %s19693_s3  ;;  %v12281_v10 = vrot.slane %v11102_v15, 4  ;;  %v11114_v15 = vperm.slane %v11110_v17, %v14768_v61 }
 0x610   : > { %13356 = vrot.lane.b32.xlu1 %v12276_v63, %s19170_s4  ;;  %v12264_v63 = vsel %vm435_vm0, 0.0, %v12263_v53  ;;  %v17612_v53 = vperm.slane %v12286_v50, %v14780_v1 }
 0x611   : > { %13172 = vrot.lane.b32.xlu2 %v12048_v42, %s19735_s29  ;;  %v17595_v4 = vpop.permute.xlu0 %13180  ;;  %v11116_v42 = vsel %vm435_vm0, %v11115_v33, %v19771_v43  ;;  %v12282_v43 = vsel %vm435_vm0, 0.0, %v12281_v10  ;;  %v11127_v10 = vrot.slane %v11114_v15, 4 }
 0x612   : > { %v17593_v9 = vpop.permute.xlu1 %13188  ;;  %19767 = vst [vmem:[#allocation142_spill] sm:$0xff] %v17595_v4  ;;  %v17609_v4 = vperm.slane %v12252_v60, %v14780_v1  ;;  %v11120_v36 = vperm.slane %v11116_v42, %v14768_v61  ;;  %v12290_v17 = vperm.slane %v12282_v43, %v14768_v61  ;;  %v11108_v42 = vperm.slane %v11104_v0, %v14768_v61 }
 0x613   : > { %19766 = vst [vmem:[#allocation53_spill] sm:$0xff] %v17593_v9  ;;  %v17599_v35 = vpop.permute.xlu2 %13040  ;;  %v12272_v9 = vperm.slane %v12264_v63, %v14780_v1  ;;  %v12311_v63 = vrot.slane %v17612_v53, 4 }
 0x614   : > { %19768 = vst [vmem:[#allocation188_spill] sm:$0xff] %v17599_v35  ;;  %v11134_v41 = vsel %vm435_vm0, %v11133_v28, %v11120_v36  ;;  %v11128_v43 = vsel %vm435_vm0, %v11127_v10, %v11108_v42  ;;  %v12084_v28 = vsel %vm435_vm0, 0.0, %v12083_v39  ;;  %v19777_v36 = vld [vmem:[#allocation152_spill] sm:$0xff]  ;;  %v19780_v10 = vld [vmem:[#allocation146_spill] sm:$0xff] }
 0x615   : > { %v12279_v19 = vrot.slane %v12272_v9, 4  ;;  %v12312_v20 = vsel %vm435_vm0, 0.0, %v12311_v63  ;;  %v11147_v39 = vrot.slane %v19780_v10, 4 }
 0x617   : > { %13360 = vrot.lane.b32.xlu0 %v17609_v4, %s19703_s13 }
 0x618   : > { %13368 = vrot.lane.b32.xlu1 %v12272_v9, %s19172_s23  ;;  %v12291_v9 = vrot.slane %v12286_v50, 4  ;;  %v11132_v50 = vperm.slane %v11128_v43, %v14780_v1 }
 0x619   : > { %13184 = vrot.lane.b32.xlu2 %v17186_v62, %s19742_s2  ;;  %v17626_v33 = vpop.permute.xlu0 %13192  ;;  %v11159_v62 = vrot.slane %v16405_v52, 4  ;;  %v19776_v52 = vld [vmem:[#allocation148_spill] sm:$0xff] }
 0x61a   : > { %v17624_v60 = vpop.permute.xlu1 %13200  ;;  %19773 = vst [vmem:[#allocation46_spill] sm:$0xff] %v17626_v33  ;;  %v12280_v33 = vsel %vm435_vm0, 0.0, %v12279_v19  ;;  %v11153_v15 = vrot.slane %v19776_v52, 4 }
 0x61b   : > { %19772 = vst [vmem:[#allocation141_spill] sm:$0xff] %v17624_v60  ;;  %v17629_v30 = vpop.permute.xlu2 %13052  ;;  %v11138_v60 = vperm.slane %v11134_v41, %v14780_v1  ;;  %v11160_v41 = vsel %vm435_vm0, %v11159_v62, %v19777_v36  ;;  %v11148_v36 = vsel %vm435_vm0, %v11147_v39, %v16389_v3  ;;  %v19785_v39 = vld [vmem:[#allocation145_spill] sm:$0xff] }
 0x61c   : > { %19774 = vst [vmem:[#allocation147_spill] sm:$0xff] %v17629_v30  ;;  %v12301_v30 = vrot.slane %v12290_v17, 4  ;;  %v11154_v62 = vsel %vm435_vm0, %v11153_v15, %v16398_v22 }
 0x61d   : > { %v11139_v63 = vrot.slane %v11138_v60, 4  ;;  %v11158_v22 = vperm.slane %v11154_v62, %v14768_v61  ;;  %v12089_v62 = vrot.slane %v17287_v59, 4 }
 0x61e   : > { %v12302_v42 = vsel %vm435_vm0, 0.0, %v12301_v30  ;;  %v19782_v30 = vld [vmem:[#allocation149_spill] sm:$0xff] }
 0x61f   : > { %13372 = vrot.lane.b32.xlu0 %v12280_v33, %s19708_s16  ;;  %v12292_v33 = vsel %vm435_vm0, 0.0, %v12291_v9  ;;  %v17665_v60 = vperm.slane %v12302_v42, %v14780_v1  ;;  %v11140_v9 = vsel %vm435_vm0, %v11139_v63, %v11132_v50  ;;  %v11141_v43 = vrot.slane %v19782_v30, 4 }
 0x620   : > { %13380 = vrot.lane.b32.xlu1 %v12312_v20, %s19164_s17  ;;  %v11164_v20 = vperm.slane %v11160_v41, %v14768_v61  ;;  %v17662_v52 = vperm.slane %v12292_v33, %v14780_v1  ;;  %s19781_s17 = smov 48   ;;  %v12324_v63 = vperm.slane %v11140_v9, %v14768_v61  ;;  %v11152_v33 = vperm.slane %v11148_v36, %v14768_v61 }
 0x621   : > { %13196 = vrot.lane.b32.xlu2 %v12084_v28, %s19747_s22  ;;  %v17649_v0 = vpop.permute.xlu0 %13204  ;;  %v12306_v28 = vperm.slane %v12290_v17, %v14780_v1  ;;  %v12317_v50 = vrot.slane %v17665_v60, 4  ;;  %v12319_v10 = vrot.slane %v11140_v9, 4  ;;  %v12090_v59 = vsel %vm435_vm0, 0.0, %v12089_v62 }
 0x622   : > { %v17644_v13 = vpop.permute.xlu1 %13212  ;;  %19778 = vst [vmem:[#allocation148_spill] sm:$0xff] %v17649_v0  ;;  %v11171_v17 = vrot.slane %v11164_v20, 4  ;;  %v11142_v20 = vsel %vm435_vm0, %v11141_v43, %v19785_v39  ;;  %v11165_v0 = vrot.slane %v11152_v33, 4 }
 0x623   : > { %19775 = vst [vmem:[#allocation189_spill] sm:$0xff] %v17644_v13  ;;  %v17652_v19 = vpop.permute.xlu2 %13064  ;;  %v12315_v42 = vrot.slane %v12306_v28, 4  ;;  %v12318_v30 = vsel %vm435_vm0, 0.0, %v12317_v50  ;;  %v11146_v13 = vperm.slane %v11142_v20, %v14768_v61 }
 0x624   : > { %19779 = vst [vmem:[#allocation152_spill] sm:$0xff] %v17652_v19 }
 0x625   : > { %v12316_v19 = vsel %vm435_vm0, 0.0, %v12315_v42  ;;  %v11166_v50 = vsel %vm435_vm0, %v11165_v0, %v11146_v13  ;;  %v19790_v0 = vld [vmem:[#allocation154_spill] sm:$0xff] }
 0x626   : > { %v11170_v62 = vperm.slane %v11166_v50, %v14780_v1 }
 0x627   : > { %13384 = vrot.lane.b32.xlu0 %v17662_v52, %s19713_s18 }
 0x628   : > { %13392 = vrot.lane.b32.xlu1 %v12306_v28, %s19781_s17  ;;  %v12320_v28 = vsel %vm435_vm0, 0.0, %v12319_v10  ;;  %v12123_v10 = vrot.slane %v17318_v14, 4 }
 0x629   : > { %13208 = vrot.lane.b32.xlu2 %v17233_v24, %s19166_s12  ;;  %v17679_v41 = vpop.permute.xlu0 %13216  ;;  %v11172_v24 = vsel %vm435_vm0, %v11171_v17, %v11158_v22  ;;  %s19786_s12 = smov 60   ;;  %v12328_v17 = vperm.slane %v12320_v28, %v14768_v61  ;;  %v19791_v28 = vld [vmem:[#allocation72_spill] sm:$0xff] }
 0x62a   : > { %v17677_v15 = vpop.permute.xlu1 %13224  ;;  %19783 = vst [vmem:[#allocation146_spill] sm:$0xff] %v17679_v41  ;;  %v12329_v41 = vrot.slane %v12324_v63, 4  ;;  %v11176_v9 = vperm.slane %v11172_v24, %v14780_v1  ;;  %v17713_v24 = vperm.slane %v12324_v63, %v14780_v1  ;;  %v12124_v13 = vsel %vm435_vm0, 0.0, %v12123_v10 }
 0x62b   : > { %v17684_v3 = vpop.permute.xlu2 %13076  ;;  %v12339_v35 = vrot.slane %v12328_v17, 4 }
 0x62c   : > { %19784 = vst [vmem:[#allocation149_spill] sm:$0xff] %v17684_v3  ;;  %v12330_v22 = vsel %vm435_vm0, 0.0, %v12329_v41  ;;  %v11177_v42 = vrot.slane %v11176_v9, 4  ;;  %v17716_v41 = vperm.slane %v12328_v17, %v14780_v1  ;;  %v11191_v9 = vrot.slane %v19791_v28, 4 }
 0x62d   : > { %v12338_v20 = vperm.slane %v12330_v22, %v14780_v1  ;;  %v12340_v17 = vsel %vm435_vm0, 0.0, %v12339_v35 }
 0x62e   : > { %v11178_v14 = vsel %vm435_vm0, %v11177_v42, %v11170_v62  ;;  %v12353_v50 = vrot.slane %v17716_v41, 4 }
 0x62f   : > { %13396 = vrot.lane.b32.xlu0 %v12316_v19, %s19721_s25  ;;  %v19788_v19 = vld [vmem:[#allocation153_spill] sm:$0xff]  ;;  %v12351_v10 = vrot.slane %v12338_v20, 4  ;;  %v12362_v42 = vperm.slane %v11178_v14, %v14768_v61 }
 0x630   : > { %13404 = vrot.lane.b32.xlu1 %v12318_v30, %s19786_s12  ;;  %v11197_v39 = vrot.slane %v19788_v19, 4  ;;  %v11185_v30 = vrot.slane %v19790_v0, 4  ;;  %v19793_v0 = vld [vmem:[#allocation48_spill] sm:$0xff] }
 0x631   : > { %13220 = vrot.lane.b32.xlu2 %v12090_v59, %s19168_s15  ;;  %v17701_v36 = vpop.permute.xlu0 %13228  ;;  %s19789_s15 = smov 72   ;;  %v12352_v3 = vsel %vm435_vm0, 0.0, %v12351_v10  ;;  %v12357_v10 = vrot.slane %v11178_v14, 4 }
 0x632   : > { %v17699_v43 = vpop.permute.xlu1 %13236  ;;  %v11198_v63 = vsel %vm435_vm0, %v11197_v39, %v16420_v45  ;;  %v11186_v28 = vsel %vm435_vm0, %v11185_v30, %v19793_v0  ;;  %v11179_v39 = vrot.slane %v16413_v55, 4  ;;  %v19796_v30 = vld [vmem:[#allocation55_spill] sm:$0xff] }
 0x633   : > { %v17706_v33 = vpop.permute.xlu2 %13088  ;;  %v11202_v62 = vperm.slane %v11198_v63, %v14768_v61  ;;  %v11190_v57 = vperm.slane %v11186_v28, %v14768_v61 }
 0x634   : > { %19787 = vst [vmem:[#allocation145_spill] sm:$0xff] %v17706_v33  ;;  %v19794_v33 = vld [vmem:[#allocation150_spill] sm:$0xff] }
 0x635   : > { %v11192_v45 = vsel %vm435_vm0, %v11191_v9, %v19794_v33  ;;  %v11209_v47 = vrot.slane %v11202_v62, 4  ;;  %v11180_v33 = vsel %vm435_vm0, %v11179_v39, %v19796_v30  ;;  %v11203_v62 = vrot.slane %v11190_v57, 4 }
 0x636   : > { %v11196_v63 = vperm.slane %v11192_v45, %v14768_v61  ;;  %v12159_v45 = vrot.slane %v17365_v38, 4  ;;  %v12372_v39 = vperm.slane %v12362_v42, %v14780_v1  ;;  %v12358_v57 = vsel %vm435_vm0, 0.0, %v12357_v10  ;;  %v19799_v38 = vld [vmem:[#allocation155_spill] sm:$0xff] }
 0x637   : > { %13408 = vrot.lane.b32.xlu0 %v17713_v24, %s19727_s27  ;;  %v12366_v10 = vperm.slane %v12358_v57, %v14768_v61 }
 0x638   : > { %13416 = vrot.lane.b32.xlu1 %v12338_v20, %s19789_s15  ;;  %v12367_v20 = vrot.slane %v12362_v42, 4  ;;  %v11210_v28 = vsel %vm435_vm0, %v11209_v47, %v11196_v63  ;;  %v11229_v63 = vrot.slane %v16455_v54, 4 }
 0x639   : > { %13232 = vrot.lane.b32.xlu2 %v12124_v13, %s19170_s4  ;;  %v17730_v22 = vpop.permute.xlu0 %13240  ;;  %v12354_v13 = vsel %vm435_vm0, 0.0, %v12353_v50  ;;  %s19795_s4 = smov 84   ;;  %v11214_v35 = vperm.slane %v11210_v28, %v14780_v1  ;;  %v12387_v28 = vrot.slane %v12372_v39, 4  ;;  %v12377_v49 = vrot.slane %v12366_v10, 4 }
 0x63a   : > { %v17728_v59 = vpop.permute.xlu1 %13248  ;;  %v12368_v0 = vsel %vm435_vm0, 0.0, %v12367_v20  ;;  %v11223_v20 = vrot.slane %v16439_v51, 4  ;;  %v11230_v54 = vsel %vm435_vm0, %v11229_v63, %v16351_v40 }
 0x63b   : > { %v17733_v19 = vpop.permute.xlu2 %13100  ;;  %v17769_v30 = vperm.slane %v12368_v0, %v14780_v1  ;;  %v12388_v57 = vsel %vm435_vm0, 0.0, %v12387_v28  ;;  %v12378_v63 = vsel %vm435_vm0, 0.0, %v12377_v49  ;;  %v12165_v28 = vrot.slane %v17423_v2, 4 }
 0x63c   : > { %19792 = vst [vmem:[#allocation153_spill] sm:$0xff] %v17733_v19  ;;  %v11224_v51 = vsel %vm435_vm0, %v11223_v20, %v16330_v29 }
 0x63d   : > { %v12166_v2 = vsel %vm435_vm0, 0.0, %v12165_v28 }
 0x63f   : > { %13420 = vrot.lane.b32.xlu0 %v12352_v3, %s19735_s29  ;;  %v11184_v3 = vperm.slane %v11180_v33, %v14768_v61 }
 0x640   : > { %13428 = vrot.lane.b32.xlu1 %v12354_v13, %s19795_s4  ;;  %v17766_v13 = vperm.slane %v12340_v17, %v14780_v1  ;;  %v12389_v17 = vrot.slane %v17769_v30, 4 }
 0x641   : > { %13244 = vrot.lane.b32.xlu2 %v17321_v12, %s19172_s23  ;;  %v17754_v9 = vpop.permute.xlu0 %13252  ;;  %v11235_v12 = vrot.slane %v16367_v18, 4  ;;  %s19798_s23 = smov 96   ;;  %v11204_v47 = vsel %vm435_vm0, %v11203_v62, %v11184_v3  ;;  %v12160_v18 = vsel %vm435_vm0, 0.0, %v12159_v45  ;;  %v11215_v62 = vrot.slane %v11214_v35, 4  ;;  %v19802_v45 = vld [vmem:[#allocation71_spill] sm:$0xff] }
 0x642   : > { %v17752_v55 = vpop.permute.xlu1 %13260  ;;  %v11208_v0 = vperm.slane %v11204_v47, %v14780_v1  ;;  %v11228_v47 = vperm.slane %v11224_v51, %v14768_v61  ;;  %v12386_v51 = vperm.slane %v12378_v63, %v14780_v1 }
 0x643   : > { %v17756_v50 = vpop.permute.xlu2 %13112  ;;  %v11236_v14 = vsel %vm435_vm0, %v11235_v12, %v19799_v38  ;;  %v11217_v12 = vrot.slane %v19802_v45, 4  ;;  %v12390_v38 = vsel %vm435_vm0, 0.0, %v12389_v17 }
 0x644   : > { %19797 = vst [vmem:[#allocation154_spill] sm:$0xff] %v17756_v50  ;;  %v11216_v35 = vsel %vm435_vm0, %v11215_v62, %v11208_v0 }
 0x645   : > { %v11218_v40 = vsel %vm435_vm0, %v11217_v12, %v16428_v58  ;;  %v17815_v17 = vperm.slane %v11216_v35, %v14768_v61  ;;  %v12395_v62 = vrot.slane %v11216_v35, 4  ;;  %v17824_v58 = vperm.slane %v12366_v10, %v14780_v1 }
 0x646   : > { %v11222_v45 = vperm.slane %v11218_v40, %v14768_v61 }
 0x647   : > { %13432 = vrot.lane.b32.xlu0 %v17766_v13, %s19742_s2  ;;  %v12405_v49 = vrot.slane %v17815_v17, 4  ;;  %v12396_v12 = vsel %vm435_vm0, 0.0, %v12395_v62  ;;  %v11273_v62 = vrot.slane %v16494_v16, 4 }
 0x648   : > { %13440 = vrot.lane.b32.xlu1 %v12372_v39, %s19798_s23 }
 0x649   : > { %13256 = vrot.lane.b32.xlu2 %v12160_v18, %s19800_s0  ;;  %v17785_v33 = vpop.permute.xlu0 %13264  ;;  %v11240_v18 = vperm.slane %v11236_v14, %v14768_v61  ;;  %v11234_v14 = vperm.slane %v11230_v54, %v14768_v61  ;;  %v12406_v35 = vsel %vm435_vm0, 0.0, %v12405_v49  ;;  %v19810_v49 = vld [vmem:[#allocation158_spill] sm:$0xff] }
 0x64a   : > { %v17781_v42 = vpop.permute.xlu1 %13272  ;;  %v12414_v28 = vperm.slane %v12406_v35, %v14780_v1  ;;  %v19812_v35 = vld [vmem:[#allocation52_spill] sm:$0xff] }
 0x64b   : > { %v17790_v3 = vpop.permute.xlu2 %13124  ;;  %v11247_v39 = vrot.slane %v11240_v18, 4 }
 0x64c   : > { %19801 = vst [vmem:[#allocation72_spill] sm:$0xff] %v17790_v3 }
 0x64d   : > { %v11248_v18 = vsel %vm435_vm0, %v11247_v39, %v11234_v14  ;;  %v12404_v39 = vperm.slane %v12396_v12, %v14768_v61  ;;  %v12393_v14 = vrot.slane %v12386_v51, 4  ;;  %v19811_v12 = vld [vmem:[#allocation162_spill] sm:$0xff] }
 0x64e   : > { %v11252_v54 = vperm.slane %v11248_v18, %v14780_v1 }
 0x64f   : > { %13444 = vrot.lane.b32.xlu0 %v12388_v57, %s19747_s22 }
 0x650   : > { %13452 = vrot.lane.b32.xlu1 %v12390_v38, %s19803_s14  ;;  %v11253_v63 = vrot.slane %v11252_v54, 4  ;;  %v11274_v54 = vsel %vm435_vm0, %v11273_v62, %v19811_v12  ;;  %v12201_v62 = vrot.slane %v17478_v37, 4  ;;  %v19815_v12 = vld [vmem:[#allocation160_spill] sm:$0xff] }
 0x651   : > { %13268 = vrot.lane.b32.xlu2 %v17368_v7, %s19781_s17  ;;  %v17811_v20 = vpop.permute.xlu0 %13276  ;;  %v11241_v7 = vrot.slane %v11228_v47, 4 }
 0x652   : > { %v17807_v29 = vpop.permute.xlu1 %13284  ;;  %v12202_v37 = vsel %vm435_vm0, 0.0, %v12201_v62 }
 0x653   : > { %v17817_v0 = vpop.permute.xlu2 %13136  ;;  %v11242_v38 = vsel %vm435_vm0, %v11241_v7, %v11222_v45  ;;  %v17847_v45 = vperm.slane %v12404_v39, %v14780_v1  ;;  %v12394_v7 = vsel %vm435_vm0, 0.0, %v12393_v14  ;;  %v11261_v14 = vrot.slane %v19812_v35, 4 }
 0x654   : > { %19804 = vst [vmem:[#allocation48_spill] sm:$0xff] %v17817_v0  ;;  %v11246_v40 = vperm.slane %v11242_v38, %v14780_v1  ;;  %v11255_v0 = vrot.slane %v19815_v12, 4 }
 0x655   : > { %v12429_v38 = vrot.slane %v17847_v45, 4  ;;  %v11262_v50 = vsel %vm435_vm0, %v11261_v14, %v19816_v56  ;;  %v19819_v14 = vld [vmem:[#allocation157_spill] sm:$0xff] }
 0x656   : > { %v11254_v18 = vsel %vm435_vm0, %v11253_v63, %v11246_v40  ;;  %v11278_v63 = vperm.slane %v11274_v54, %v14768_v61 }
 0x657   : > { %13456 = vrot.lane.b32.xlu0 %v17824_v58, %s19806_s20  ;;  %v12438_v40 = vperm.slane %v11254_v18, %v14768_v61  ;;  %v12430_v3 = vsel %vm435_vm0, 0.0, %v12429_v38  ;;  %v11266_v38 = vperm.slane %v11262_v50, %v14768_v61 }
 0x658   : > { %13464 = vrot.lane.b32.xlu1 %v12386_v51, %s19805_s10  ;;  %v11267_v51 = vrot.slane %v19810_v49, 4  ;;  %v19814_v49 = vld [vmem:[#allocation178_spill] sm:$0xff]  ;;  %v11285_v11 = vrot.slane %v11278_v63, 4  ;;  %v12433_v63 = vrot.slane %v11254_v18, 4 }
 0x659   : > { %13280 = vrot.lane.b32.xlu2 %v12166_v2, %s19786_s12  ;;  %v17837_v10 = vpop.permute.xlu0 %13288 }
 0x65a   : > { %v17835_v57 = vpop.permute.xlu1 %13296  ;;  %v12434_v18 = vsel %vm435_vm0, 0.0, %v12433_v63  ;;  %v19824_v63 = vld [vmem:[#allocation163_spill] sm:$0xff] }
 0x65b   : > { %v17841_v47 = vpop.permute.xlu2 %13148 }
 0x65c   : > { %19807 = vst [vmem:[#allocation150_spill] sm:$0xff] %v17841_v47 }
 0x65f   : > { %13468 = vrot.lane.b32.xlu0 %v12394_v7, %s19809_s7  ;;  %v12427_v7 = vrot.slane %v12414_v28, 4 }
 0x660   : > { %13476 = vrot.lane.b32.xlu1 %v12414_v28, %s19808_s8  ;;  %v12415_v28 = vrot.slane %v12404_v39, 4 }
 0x661   : > { %13292 = vrot.lane.b32.xlu2 %v17426_v5, %s19789_s15  ;;  %v17860_v2 = vpop.permute.xlu0 %13300  ;;  %v11268_v5 = vsel %vm435_vm0, %v11267_v51, %v19814_v49  ;;  %v12428_v35 = vsel %vm435_vm0, 0.0, %v12427_v7 }
 0x662   : > { %v17858_v16 = vpop.permute.xlu1 %13308  ;;  %v11272_v54 = vperm.slane %v11268_v5, %v14768_v61  ;;  %v12416_v7 = vsel %vm435_vm0, 0.0, %v12415_v28  ;;  %v12448_v5 = vperm.slane %v12438_v40, %v14780_v1 }
 0x663   : > { %v17864_v47 = vpop.permute.xlu2 %13160  ;;  %v17896_v50 = vperm.slane %v12416_v7, %v14780_v1  ;;  %v12237_v7 = vrot.slane %v17531_v26, 4  ;;  %v19827_v26 = vld [vmem:[#allocation168_spill] sm:$0xff] }
 0x664   : > { %19813 = vst [vmem:[#allocation55_spill] sm:$0xff] %v17864_v47  ;;  %v12443_v47 = vrot.slane %v12438_v40, 4  ;;  %v11286_v62 = vsel %vm435_vm0, %v11285_v11, %v11272_v54  ;;  %v12442_v54 = vperm.slane %v12434_v18, %v14768_v61 }
 0x666   : > { %v12444_v49 = vsel %vm435_vm0, 0.0, %v12443_v47  ;;  %v17947_v27 = vperm.slane %v12442_v54, %v14780_v1 }
 0x667   : > { %13480 = vrot.lane.b32.xlu0 %v12428_v35, %s19818_s21  ;;  %v11279_v35 = vrot.slane %v11266_v38, 4 }
 0x668   : > { %13488 = vrot.lane.b32.xlu1 %v12430_v3, %s19817_s11  ;;  %v11256_v3 = vsel %vm435_vm0, %v11255_v0, %v19819_v14  ;;  %v11290_v0 = vperm.slane %v11286_v62, %v14780_v1 }
 0x669   : > { %13304 = vrot.lane.b32.xlu2 %v12202_v37, %s19795_s4  ;;  %v17884_v56 = vpop.permute.xlu0 %13312  ;;  %v11260_v12 = vperm.slane %v11256_v3, %v14768_v61  ;;  %v17899_v37 = vperm.slane %v12444_v49, %v14780_v1  ;;  %v12463_v3 = vrot.slane %v12448_v5, 4  ;;  %v11311_v49 = vrot.slane %v19824_v63, 4  ;;  %v19828_v63 = vld [vmem:[#allocation78_spill] sm:$0xff] }
 0x66a   : > { %v17881_v51 = vpop.permute.xlu1 %13320  ;;  %v11291_v38 = vrot.slane %v11290_v0, 4  ;;  %v12238_v0 = vsel %vm435_vm0, 0.0, %v12237_v7 }
 0x66b   : > { %v17888_v39 = vpop.permute.xlu2 %13172  ;;  %v11280_v47 = vsel %vm435_vm0, %v11279_v35, %v11260_v12  ;;  %v12465_v28 = vrot.slane %v17899_v37, 4  ;;  %v12464_v12 = vsel %vm435_vm0, 0.0, %v12463_v3 }
 0x66c   : > { %19820 = vst [vmem:[#allocation155_spill] sm:$0xff] %v17888_v39  ;;  %v12453_v39 = vrot.slane %v12442_v54, 4 }
 0x66d   : > { %v12466_v62 = vsel %vm435_vm0, 0.0, %v12465_v28 }
 0x66f   : > { %13492 = vrot.lane.b32.xlu0 %v17896_v50, %s19822_s19 }
 0x670   : > { %13500 = vrot.lane.b32.xlu1 %v12448_v5, %s19821_s6  ;;  %v19826_v5 = vld [vmem:[#allocation166_spill] sm:$0xff] }
 0x671   : > { %13316 = vrot.lane.b32.xlu2 %v17481_v8, %s19798_s23  ;;  %v17911_v40 = vpop.permute.xlu0 %13324  ;;  %v11284_v8 = vperm.slane %v11280_v47, %v14780_v1  ;;  %v11299_v18 = vrot.slane %v19826_v5, 4  ;;  %v11312_v47 = vsel %vm435_vm0, %v11311_v49, %v19828_v63  ;;  %v19831_v5 = vld [vmem:[#allocation159_spill] sm:$0xff] }
 0x672   : > { %v17908_v11 = vpop.permute.xlu1 %13332  ;;  %v11316_v7 = vperm.slane %v11312_v47, %v14768_v61 }
 0x673   : > { %v17915_v14 = vpop.permute.xlu2 %13184  ;;  %v11292_v35 = vsel %vm435_vm0, %v11291_v38, %v11284_v8 }
 0x674   : > { %19823 = vst [vmem:[#allocation71_spill] sm:$0xff] %v17915_v14  ;;  %v11305_v14 = vrot.slane %v19827_v26, 4  ;;  %v12476_v38 = vperm.slane %v11292_v35, %v14768_v61  ;;  %v11300_v26 = vsel %vm435_vm0, %v11299_v18, %v19831_v5  ;;  %v11323_v18 = vrot.slane %v11316_v7, 4 }
 0x676   : > { %v11306_v49 = vsel %vm435_vm0, %v11305_v14, %v19832_v25  ;;  %v19836_v14 = vld [vmem:[#allocation164_spill] sm:$0xff]  ;;  %v12481_v48 = vrot.slane %v12476_v38, 4 }
 0x677   : > { %13504 = vrot.lane.b32.xlu0 %v12464_v12, %s19800_s0  ;;  %v12471_v12 = vrot.slane %v11292_v35, 4  ;;  %v11304_v35 = vperm.slane %v11300_v26, %v14768_v61  ;;  %v11310_v47 = vperm.slane %v11306_v49, %v14768_v61 }
 0x678   : > { %13512 = vrot.lane.b32.xlu1 %v12466_v62, %s19825_s1  ;;  %v12454_v62 = vsel %vm435_vm0, 0.0, %v12453_v39  ;;  %v17950_v39 = vperm.slane %v12476_v38, %v14780_v1 }
 0x679   : > { %13328 = vrot.lane.b32.xlu2 %v12238_v0, %s19803_s14  ;;  %v17933_v3 = vpop.permute.xlu0 %13336  ;;  %v19833_v0 = vld [vmem:[#allocation86_spill] sm:$0xff]  ;;  %v12472_v25 = vsel %vm435_vm0, 0.0, %v12471_v12  ;;  %v11324_v44 = vsel %vm435_vm0, %v11323_v18, %v11310_v47  ;;  %v19841_v47 = vld [vmem:[#allocation96_spill] sm:$0xff] }
 0x67a   : > { %v17931_v28 = vpop.permute.xlu1 %13344  ;;  %v11293_v63 = vrot.slane %v19833_v0, 4  ;;  %19834 = vst [vmem:[#allocation52_spill] sm:$0xff] %v17950_v39  ;;  %v12501_v26 = vrot.slane %v17950_v39, 4  ;;  %v12480_v49 = vperm.slane %v12472_v25, %v14768_v61  ;;  %v11328_v19 = vperm.slane %v11324_v44, %v14780_v1  ;;  %v19846_v39 = vld [vmem:[#allocation172_spill] sm:$0xff] }
 0x67b   : > { %19829 = vst [vmem:[#allocation158_spill] sm:$0xff] %v17931_v28  ;;  %v17937_v8 = vpop.permute.xlu2 %13196  ;;  %v12462_v28 = vperm.slane %v12454_v62, %v14780_v1  ;;  %v11337_v18 = vrot.slane %v19841_v47, 4 }
 0x67c   : > { %19830 = vst [vmem:[#allocation162_spill] sm:$0xff] %v17937_v8  ;;  %v11294_v62 = vsel %vm435_vm0, %v11293_v63, %v19836_v14  ;;  %v11317_v8 = vrot.slane %v11304_v35, 4  ;;  %v19838_v63 = vld [vmem:[#allocation75_spill] sm:$0xff] }
 0x67d   : > { %v12469_v7 = vrot.slane %v12462_v28, 4  ;;  %v11298_v12 = vperm.slane %v11294_v62, %v14768_v61  ;;  %v11349_v14 = vrot.slane %v19838_v63, 4  ;;  %v19840_v35 = vld [vmem:[#allocation167_spill] sm:$0xff] }
 0x67e   : > { %v19842_v62 = vld [vmem:[#allocation19_spill] sm:$0xff] }
 0x67f   : > { %13516 = vrot.lane.b32.xlu0 %v17947_v27, %s19781_s17  ;;  %v12470_v46 = vsel %vm435_vm0, 0.0, %v12469_v7  ;;  %v11350_v25 = vsel %vm435_vm0, %v11349_v14, %v19840_v35  ;;  %v11343_v63 = vrot.slane %v19842_v62, 4  ;;  %v11329_v7 = vrot.slane %v11328_v19, 4  ;;  %v19844_v35 = vld [vmem:[#allocation165_spill] sm:$0xff] }
 0x680   : > { %13524 = vrot.lane.b32.xlu1 %v12462_v28, %s19835_s5  ;;  %v11318_v28 = vsel %vm435_vm0, %v11317_v8, %v11298_v12  ;;  %v11354_v14 = vperm.slane %v11350_v25, %v14768_v61  ;;  %v11331_v47 = vrot.slane %v19844_v35, 4  ;;  %v12496_v19 = vperm.slane %v12480_v49, %v14780_v1 }
 0x681   : > { %13340 = vrot.lane.b32.xlu2 %v17534_v34, %s19805_s10  ;;  %v17964_v5 = vpop.permute.xlu0 %13348  ;;  %v12502_v34 = vsel %vm435_vm0, 0.0, %v12501_v26  ;;  %v11322_v38 = vperm.slane %v11318_v28, %v14780_v1  ;;  %v11344_v31 = vsel %vm435_vm0, %v11343_v63, %v19846_v39 }
 0x682   : > { %v17962_v54 = vpop.permute.xlu1 %13356 }
 0x683   : > { %v17967_v0 = vpop.permute.xlu2 %13208 }
 0x684   : > { %19837 = vst [vmem:[#allocation178_spill] sm:$0xff] %v17967_v0  ;;  %v12491_v0 = vrot.slane %v12480_v49, 4  ;;  %v19847_v49 = vld [vmem:[#allocation77_spill] sm:$0xff] }
 0x685   : > { %v11332_v63 = vsel %vm435_vm0, %v11331_v47, %v19847_v49  ;;  %v13967_v47 = vsel %vm19212_vm1, %v17259_v23, %v17677_v15 }
 0x686   : > { %v12492_v12 = vsel %vm435_vm0, 0.0, %v12491_v0  ;;  %v11361_v0 = vrot.slane %v11354_v14, 4 }
 0x687   : > { %13528 = vrot.lane.b32.xlu0 %v12470_v46, %s19786_s12  ;;  %v12482_v46 = vsel %vm435_vm0, 0.0, %v12481_v48  ;;  %v18006_v48 = vperm.slane %v12492_v12, %v14780_v1 }
 0x688   : > { %13536 = vrot.lane.b32.xlu1 %v12502_v34, %s19839_s9  ;;  %v12277_v34 = vrot.slane %v17609_v4, 4  ;;  %v18003_v28 = vperm.slane %v12482_v46, %v14780_v1  ;;  %v11330_v4 = vsel %vm435_vm0, %v11329_v7, %v11322_v38 }
 0x689   : > { %13352 = vrot.lane.b32.xlu2 %v17557_v6, %s19808_s8  ;;  %v17987_v26 = vpop.permute.xlu0 %13360  ;;  %v19845_v6 = vld [vmem:[#allocation170_spill] sm:$0xff]  ;;  %v12507_v38 = vrot.slane %v18006_v48, 4  ;;  %v12514_v7 = vperm.slane %v11330_v4, %v14768_v61  ;;  %v12509_v35 = vrot.slane %v11330_v4, 4 }
 0x68a   : > { %v17985_v44 = vpop.permute.xlu1 %13368  ;;  %v11338_v62 = vsel %vm435_vm0, %v11337_v18, %v19845_v6  ;;  %v11348_v18 = vperm.slane %v11344_v31, %v14768_v61  ;;  %v12278_v39 = vsel %vm435_vm0, 0.0, %v12277_v34  ;;  %v12505_v31 = vrot.slane %v12496_v19, 4 }
 0x68b   : > { %v17990_v8 = vpop.permute.xlu2 %13220  ;;  %v11342_v25 = vperm.slane %v11338_v62, %v14768_v61  ;;  %v11336_v6 = vperm.slane %v11332_v63, %v14768_v61  ;;  %v12508_v49 = vsel %vm435_vm0, 0.0, %v12507_v38 }
 0x68c   : > { %19843 = vst [vmem:[#allocation160_spill] sm:$0xff] %v17990_v8  ;;  %v11362_v34 = vsel %vm435_vm0, %v11361_v0, %v11348_v18  ;;  %v12519_v8 = vrot.slane %v12514_v7, 4  ;;  %v12510_v0 = vsel %vm435_vm0, 0.0, %v12509_v35  ;;  %v19848_v35 = vld [vmem:[#allocation92_spill] sm:$0xff] }
 0x68d   : > { %v11355_v62 = vrot.slane %v11342_v25, 4  ;;  %v12506_v25 = vsel %vm435_vm0, 0.0, %v12505_v31  ;;  %v12518_v38 = vperm.slane %v12510_v0, %v14768_v61 }
 0x68e   : > { %v12520_v63 = vsel %vm435_vm0, 0.0, %v12519_v8  ;;  %v18057_v8 = vperm.slane %v12514_v7, %v14780_v1 }
 0x68f   : > { %13540 = vrot.lane.b32.xlu0 %v18003_v28, %s19789_s15  ;;  %v11356_v18 = vsel %vm435_vm0, %v11355_v62, %v11336_v6  ;;  %v11387_v6 = vrot.slane %v19848_v35, 4 }
 0x690   : > { %13548 = vrot.lane.b32.xlu1 %v12496_v19, %s19670_s24  ;;  %v11366_v19 = vperm.slane %v11362_v34, %v14780_v1 }
 0x691   : > { %13364 = vrot.lane.b32.xlu2 %v12278_v39, %s19817_s11  ;;  %v18020_v12 = vpop.permute.xlu0 %13372  ;;  %v13968_v39 = vsel %vm19211_vm2, %v13967_v47, %v17701_v36 }
 0x692   : > { %v18018_v46 = vpop.permute.xlu1 %13380  ;;  %v11367_v31 = vrot.slane %v11366_v19, 4 }
 0x693   : > { %v13233_v14 = vpop.permute.xlu2 %13232 }
 0x694   : > { %v13969_v4 = vsel %vm13847_vm3, %v13968_v39, %v13233_v14  ;;  %v11360_v14 = vperm.slane %v11356_v18, %v14780_v1  ;;  %v18060_v39 = vperm.slane %v12518_v38, %v14780_v1 }
 0x695   : > { %v13970_v15 = vsel %vm13849_vm4, %v13969_v4, %v17699_v43  ;;  %v12528_v43 = vperm.slane %v12520_v63, %v14780_v1  ;;  %v19851_v4 = vld [vmem:[#allocation176_spill] sm:$0xff] }
 0x696   : > { %v13971_v34 = vsel %vm13851_vm5, %v13970_v15, %v17730_v22  ;;  %19849 = vst [vmem:[#allocation175_spill] sm:$0xff] %v18060_v39  ;;  %v12543_v63 = vrot.slane %v18060_v39, 4 }
 0x697   : > { %13552 = vrot.lane.b32.xlu0 %v12506_v25, %s19795_s4  ;;  %v11388_v25 = vsel %vm435_vm0, %v11387_v6, %v19851_v4  ;;  %v19853_v6 = vld [vmem:[#allocation99_spill] sm:$0xff] }
 0x698   : > { %13560 = vrot.lane.b32.xlu1 %v12508_v49, %s19675_s26  ;;  %v19850_v49 = vld [vmem:[#allocation173_spill] sm:$0xff]  ;;  %v11392_v18 = vperm.slane %v11388_v25, %v14768_v61 }
 0x699   : > { %13376 = vrot.lane.b32.xlu2 %v17612_v53, %s19821_s6  ;;  %v18045_v36 = vpop.permute.xlu0 %13384  ;;  %v12313_v53 = vrot.slane %v17662_v52, 4  ;;  %v11381_v19 = vrot.slane %v19850_v49, 4  ;;  %v11368_v52 = vsel %vm435_vm0, %v11367_v31, %v11360_v14  ;;  %v19852_v31 = vld [vmem:[#allocation171_spill] sm:$0xff]  ;;  %v19854_v49 = vld [vmem:[#allocation76_spill] sm:$0xff] }
 0x69a   : > { %v18041_v23 = vpop.permute.xlu1 %13392  ;;  %v18080_v14 = vperm.slane %v11368_v52, %v14768_v61  ;;  %v11375_v35 = vrot.slane %v19852_v31, 4  ;;  %v11369_v4 = vrot.slane %v19854_v49, 4  ;;  %v11399_v39 = vrot.slane %v11392_v18, 4 }
 0x69b   : > { %v13245_v62 = vpop.permute.xlu2 %13244  ;;  %v12314_v22 = vsel %vm435_vm0, 0.0, %v12313_v53  ;;  %v12541_v53 = vrot.slane %v12528_v43, 4  ;;  %v12544_v31 = vsel %vm435_vm0, 0.0, %v12543_v63  ;;  %v19857_v63 = vld [vmem:[#allocation169_spill] sm:$0xff] }
 0x69c   : > { %v13972_v47 = vsel %vm13853_vm6, %v13971_v34, %v13245_v62  ;;  %v11382_v62 = vsel %vm435_vm0, %v11381_v19, %v19853_v6  ;;  %v18093_v19 = vperm.slane %v18080_v14, %v14780_v1  ;;  %v19856_v6 = vld [vmem:[#allocation79_spill] sm:$0xff] }
 0x69d   : > { %v13973_v7 = vsel %vm13855_vm7, %v13972_v47, %v17728_v59  ;;  %v12547_v47 = vrot.slane %v11368_v52, 4  ;;  %v12529_v52 = vrot.slane %v12518_v38, 4 }
 0x69e   : > { %v13974_v34 = vsel %vm13857_vm8, %v13973_v7, %v17754_v9  ;;  %19855 = vst [vmem:[#allocation157_spill] sm:$0xff] %v18093_v19  ;;  %v12542_v9 = vsel %vm435_vm0, 0.0, %v12541_v53 }
 0x69f   : > { %13564 = vrot.lane.b32.xlu0 %v18057_v8, %s19798_s23  ;;  %v12548_v18 = vsel %vm435_vm0, 0.0, %v12547_v47  ;;  %v12530_v49 = vsel %vm435_vm0, 0.0, %v12529_v52  ;;  %v12557_v52 = vrot.slane %v18080_v14, 4 }
 0x6a0   : > { %13572 = vrot.lane.b32.xlu1 %v12528_v43, %s19679_s28  ;;  %v11376_v43 = vsel %vm435_vm0, %v11375_v35, %v19856_v6 }
 0x6a1   : > { %13388 = vrot.lane.b32.xlu2 %v12314_v22, %s19825_s1  ;;  %v18076_v15 = vpop.permute.xlu0 %13396  ;;  %v11386_v22 = vperm.slane %v11382_v62, %v14768_v61  ;;  %v11370_v62 = vsel %vm435_vm0, %v11369_v4, %v19857_v63  ;;  %v19859_v63 = vld [vmem:[#allocation181_spill] sm:$0xff] }
 0x6a2   : > { %v18073_v0 = vpop.permute.xlu1 %13404 }
 0x6a3   : > { %v13257_v59 = vpop.permute.xlu2 %13256  ;;  %v11400_v53 = vsel %vm435_vm0, %v11399_v39, %v11386_v22  ;;  %v11374_v39 = vperm.slane %v11370_v62, %v14768_v61  ;;  %v19858_v22 = vld [vmem:[#allocation177_spill] sm:$0xff]  ;;  %v11413_v62 = vrot.slane %v19859_v63, 4  ;;  %v19862_v63 = vld [vmem:[#allocation174_spill] sm:$0xff] }
 0x6a4   : > { %v13975_v25 = vsel %vm13859_vm9, %v13974_v34, %v13257_v59  ;;  %v11380_v59 = vperm.slane %v11376_v43, %v14768_v61  ;;  %v11404_v43 = vperm.slane %v11400_v53, %v14780_v1 }
 0x6a5   : > { %v13976_v7 = vsel %vm13861_vm10, %v13975_v25, %v17752_v55  ;;  %v12577_v55 = vrot.slane %v18093_v19, 4  ;;  %v12349_v25 = vrot.slane %v17713_v24, 4  ;;  %v19864_v19 = vld [vmem:[#allocation51_spill] sm:$0xff] }
 0x6a6   : > { %v13977_v47 = vsel %vm19213_vm11, %v13976_v7, %v17785_v33  ;;  %v11393_v6 = vrot.slane %v11380_v59, 4  ;;  %v19860_v59 = vld [vmem:[#allocation83_spill] sm:$0xff]  ;;  %v11405_v14 = vrot.slane %v11404_v43, 4 }
 0x6a7   : > { %13576 = vrot.lane.b32.xlu0 %v12542_v9, %s19803_s14  ;;  %v18124_v9 = vperm.slane %v12530_v49, %v14780_v1  ;;  %v12578_v33 = vsel %vm435_vm0, 0.0, %v12577_v55  ;;  %v11419_v53 = vrot.slane %v19860_v59, 4  ;;  %v19863_v59 = vld [vmem:[#allocation74_spill] sm:$0xff] }
 0x6a8   : > { %13584 = vrot.lane.b32.xlu1 %v12544_v31, %s19687_s30  ;;  %v11425_v31 = vrot.slane %v19858_v22, 4  ;;  %v12558_v22 = vsel %vm435_vm0, 0.0, %v12557_v52 }
 0x6a9   : > { %13400 = vrot.lane.b32.xlu2 %v17665_v60, %s19835_s5  ;;  %v18111_v38 = vpop.permute.xlu0 %13408  ;;  %v12556_v60 = vperm.slane %v12548_v18, %v14768_v61  ;;  %v12350_v18 = vsel %vm435_vm0, 0.0, %v12349_v25  ;;  %v18158_v52 = vperm.slane %v12558_v22, %v14780_v1 }
 0x6aa   : > { %v18107_v35 = vpop.permute.xlu1 %13416 }
 0x6ab   : > { %v13269_v34 = vpop.permute.xlu2 %13268  ;;  %v12567_v7 = vrot.slane %v12556_v60, 4  ;;  %v12572_v43 = vperm.slane %v12556_v60, %v14780_v1 }
 0x6ac   : > { %v13978_v4 = vsel %vm19208_vm12, %v13977_v47, %v13269_v34  ;;  %v11394_v34 = vsel %vm435_vm0, %v11393_v6, %v11374_v39  ;;  %v19861_v47 = vld [vmem:[#allocation93_spill] sm:$0xff]  ;;  %v11414_v39 = vsel %vm435_vm0, %v11413_v62, %v19862_v63 }
 0x6ad   : > { %v13979_v24 = vsel %vm19194_vm13, %v13978_v4, %v17781_v42  ;;  %v11426_v49 = vsel %vm435_vm0, %v11425_v31, %v19861_v47  ;;  %v11398_v6 = vperm.slane %v11394_v34, %v14780_v1  ;;  %v11420_v47 = vsel %vm435_vm0, %v11419_v53, %v19863_v59 }
 0x6ae   : > { %v13980_v25 = vsel %vm19192_vm14, %v13979_v24, %v17811_v20  ;;  %v11430_v31 = vperm.slane %v11426_v49, %v14768_v61  ;;  %v11407_v20 = vrot.slane %v19864_v19, 4  ;;  %v11418_v60 = vperm.slane %v11414_v39, %v14768_v61  ;;  %v19865_v49 = vld [vmem:[#allocation179_spill] sm:$0xff] }
 0x6af   : > { %13588 = vrot.lane.b32.xlu0 %v18124_v9, %s19805_s10  ;;  %v11406_v24 = vsel %vm435_vm0, %v11405_v14, %v11398_v6  ;;  %v11424_v19 = vperm.slane %v11420_v47, %v14768_v61  ;;  %vm19197_vm14 = vcmask 556032   ;;  %v12355_v39 = vrot.slane %v17766_v13, 4 }
 0x6b0   : > { %13596 = vrot.lane.b32.xlu1 %v12578_v33, %s19693_s3  ;;  %v12568_v33 = vsel %vm435_vm0, 0.0, %v12567_v7  ;;  %v11437_v53 = vrot.slane %v11430_v31, 4  ;;  %v12585_v63 = vrot.slane %v11406_v24, 4  ;;  %v11431_v6 = vrot.slane %v11418_v60, 4 }
 0x6b1   : > { %13412 = vrot.lane.b32.xlu2 %v12350_v18, %s19839_s9  ;;  %v18142_v42 = vpop.permute.xlu0 %13420  ;;  %v18161_v7 = vperm.slane %v12568_v33, %v14780_v1  ;;  %vm19196_vm13 = vcmask 621568  }
 0x6b2   : > { %v18137_v55 = vpop.permute.xlu1 %13428  ;;  %v11438_v59 = vsel %vm435_vm0, %v11437_v53, %v11424_v19 }
 0x6b3   : > { %v13281_v4 = vpop.permute.xlu2 %13280 }
 0x6b4   : > { %v13981_v18 = vsel %vm19191_vm15, %v13980_v25, %v13281_v4  ;;  %vm19193_vm15 = vcmask 523264   ;;  %v11408_v4 = vsel %vm435_vm0, %v11407_v20, %v19865_v49  ;;  %v12590_v25 = vperm.slane %v11406_v24, %v14768_v61 }
 0x6b5   : > { %v13982_v62 = vsel %vm19193_vm15, %v13981_v18, %v17807_v29  ;;  %v12583_v29 = vrot.slane %v18161_v7, 4  ;;  %vm19195_vm15 = vcmask 588800   ;;  %v12581_v18 = vrot.slane %v12572_v43, 4 }
 0x6b6   : > { %v13983_v33 = vsel %vm19197_vm14, %v13982_v62, %v17837_v10  ;;  %v11412_v31 = vperm.slane %v11408_v4, %v14768_v61  ;;  %v12595_v20 = vrot.slane %v12590_v25, 4  ;;  %v12586_v10 = vsel %vm435_vm0, 0.0, %v12585_v63 }
 0x6b7   : > { %13600 = vrot.lane.b32.xlu0 %v18158_v52, %s19808_s8  ;;  %v12584_v47 = vsel %vm435_vm0, 0.0, %v12583_v29  ;;  %v12582_v49 = vsel %vm435_vm0, 0.0, %v12581_v18  ;;  %v12356_v24 = vsel %vm435_vm0, 0.0, %v12355_v39  ;;  %v12594_v4 = vperm.slane %v12586_v10, %v14768_v61  ;;  %v19866_v29 = vld [vmem:[#allocation183_spill] sm:$0xff] }
 0x6b8   : > { %13608 = vrot.lane.b32.xlu1 %v12572_v43, %s19703_s13  ;;  %v11442_v43 = vperm.slane %v11438_v59, %v14780_v1  ;;  %v11432_v62 = vsel %vm435_vm0, %v11431_v6, %v11412_v31  ;;  %v12596_v53 = vsel %vm435_vm0, 0.0, %v12595_v20  ;;  %v19867_v6 = vld [vmem:[#allocation94_spill] sm:$0xff]  ;;  %v18212_v59 = vperm.slane %v12590_v25, %v14780_v1 }
 0x6b9   : > { %13424 = vrot.lane.b32.xlu2 %v17716_v41, %s19670_s24  ;;  %v18177_v14 = vpop.permute.xlu0 %13432  ;;  %v11436_v18 = vperm.slane %v11432_v62, %v14780_v1  ;;  %v12604_v39 = vperm.slane %v12596_v53, %v14780_v1  ;;  %v11451_v31 = vrot.slane %v19867_v6, 4  ;;  %v19869_v20 = vld [vmem:[#allocation182_spill] sm:$0xff]  ;;  %vm19198_vm14 = vcmask 719872  }
 0x6ba   : > { %v18173_v34 = vpop.permute.xlu1 %13440  ;;  %v11443_v63 = vrot.slane %v11442_v43, 4  ;;  %v19870_v43 = vld [vmem:[#allocation180_spill] sm:$0xff]  ;;  %v12391_v6 = vrot.slane %v17824_v58, 4 }
 0x6bb   : > { %v13293_v22 = vpop.permute.xlu2 %13292  ;;  %v11445_v25 = vrot.slane %v19870_v43, 4 }
 0x6bc   : > { %v13984_v41 = vsel %vm19195_vm15, %v13983_v33, %v13293_v22  ;;  %vm19214_vm15 = vcmask 654336   ;;  %v11463_v22 = vrot.slane %v19866_v29, 4  ;;  %v11444_v10 = vsel %vm435_vm0, %v11443_v63, %v11436_v18  ;;  %v19873_v29 = vld [vmem:[#allocation84_spill] sm:$0xff] }
 0x6bd   : > { %v13985_v13 = vsel %vm19196_vm13, %v13984_v41, %v17835_v57  ;;  %vm19199_vm13 = vcmask 687104   ;;  %v12617_v63 = vrot.slane %v12604_v39, 4 }
 0x6be   : > { %v13986_v33 = vsel %vm19214_vm15, %v13985_v13, %v17860_v2  ;;  %v19871_v13 = vld [vmem:[#allocation95_spill] sm:$0xff] }
 0x6bf   : > { %13612 = vrot.lane.b32.xlu0 %v12582_v49, %s19817_s11  ;;  %v11464_v49 = vsel %vm435_vm0, %v11463_v22, %v19869_v20  ;;  %v11452_v22 = vsel %vm435_vm0, %v11451_v31, %v19873_v29  ;;  %v19874_v20 = vld [vmem:[#allocation22_spill] sm:$0xff]  ;;  %v12605_v29 = vrot.slane %v12594_v4, 4 }
 0x6c0   : > { %13620 = vrot.lane.b32.xlu1 %v12584_v47, %s19708_s16  ;;  %v18215_v47 = vperm.slane %v12594_v4, %v14780_v1  ;;  %v11468_v53 = vperm.slane %v11464_v49, %v14768_v61  ;;  %v11456_v43 = vperm.slane %v11452_v22, %v14768_v61  ;;  %v18257_v4 = vperm.slane %v17815_v17, %v14780_v1 }
 0x6c1   : > { %13436 = vrot.lane.b32.xlu2 %v12356_v24, %s19675_s26  ;;  %v18200_v19 = vpop.permute.xlu0 %13444  ;;  %v11457_v24 = vrot.slane %v19871_v13, 4 }
 0x6c2   : > { %v18198_v60 = vpop.permute.xlu1 %13452  ;;  %19868 = vst [vmem:[#allocation163_spill] sm:$0xff] %v18215_v47  ;;  %v11475_v49 = vrot.slane %v11468_v53, 4  ;;  %v11469_v53 = vrot.slane %v11456_v43, 4 }
 0x6c3   : > { %v13305_v57 = vpop.permute.xlu2 %13304  ;;  %v11458_v31 = vsel %vm435_vm0, %v11457_v24, %v19874_v20  ;;  %v12392_v24 = vsel %vm435_vm0, 0.0, %v12391_v6 }
 0x6c4   : > { %v13987_v41 = vsel %vm19199_vm13, %v13986_v33, %v13305_v57  ;;  %v12619_v57 = vrot.slane %v18215_v47, 4  ;;  %vm19202_vm13 = vcmask 785408   ;;  %v11462_v58 = vperm.slane %v11458_v31, %v14768_v61  ;;  %v19876_v31 = vld [vmem:[#allocation105_spill] sm:$0xff] }
 0x6c5   : > { %v13988_v2 = vsel %vm19198_vm14, %v13987_v41, %v17858_v16  ;;  %vm19201_vm14 = vcmask 752640   ;;  %v11501_v43 = vrot.slane %v19876_v31, 4  ;;  %v19881_v31 = vld [vmem:[#allocation24_spill] sm:$0xff] }
 0x6c6   : > { %v13989_v18 = vsel %vm19201_vm14, %v13988_v2, %v17884_v56  ;;  %v12620_v13 = vsel %vm435_vm0, 0.0, %v12619_v57  ;;  %vm19203_vm14 = vcmask 818176   ;;  %v12618_v56 = vsel %vm435_vm0, 0.0, %v12617_v63 }
 0x6c7   : > { %13624 = vrot.lane.b32.xlu0 %v18212_v59, %s19821_s6  ;;  %v11476_v63 = vsel %vm435_vm0, %v11475_v49, %v11462_v58 }
 0x6c8   : > { %13632 = vrot.lane.b32.xlu1 %v12604_v39, %s19713_s18 }
 0x6c9   : > { %13448 = vrot.lane.b32.xlu2 %v17769_v30, %s19679_s28  ;;  %v18234_v16 = vpop.permute.xlu0 %13456  ;;  %v12628_v30 = vperm.slane %v11444_v10, %v14768_v61 }
 0x6ca   : > { %v18229_v62 = vpop.permute.xlu1 %13464 }
 0x6cb   : > { %19872 = vst [vmem:[#allocation166_spill] sm:$0xff] %v18229_v62  ;;  %v13317_v33 = vpop.permute.xlu2 %13316  ;;  %v19875_v62 = vld [vmem:[#allocation91_spill] sm:$0xff]  ;;  %v12633_v39 = vrot.slane %v12628_v30, 4  ;;  %v12638_v6 = vperm.slane %v12628_v30, %v14780_v1 }
 0x6cc   : > { %v13990_v41 = vsel %vm19202_vm13, %v13989_v18, %v13317_v33  ;;  %v11446_v47 = vsel %vm435_vm0, %v11445_v25, %v19875_v62  ;;  %vm19204_vm13 = vcmask 850944   ;;  %v12623_v18 = vrot.slane %v11444_v10, 4 }
 0x6cd   : > { %v13991_v2 = vsel %vm19203_vm14, %v13990_v41, %v17881_v51  ;;  %v11450_v62 = vperm.slane %v11446_v47, %v14768_v61  ;;  %v12606_v51 = vsel %vm435_vm0, 0.0, %v12605_v29  ;;  %vm19205_vm14 = vcmask 883712  }
 0x6ce   : > { %v13992_v33 = vsel %vm19204_vm13, %v13991_v2, %v17911_v40  ;;  %v12634_v17 = vsel %vm435_vm0, 0.0, %v12633_v39  ;;  %v12425_v47 = vrot.slane %v18257_v4, 4  ;;  %v11480_v10 = vperm.slane %v11476_v63, %v14780_v1  ;;  %v19879_v63 = vld [vmem:[#allocation81_spill] sm:$0xff] }
 0x6cf   : > { %13636 = vrot.lane.b32.xlu0 %v12618_v56, %s19825_s1  ;;  %v11470_v20 = vsel %vm435_vm0, %v11469_v53, %v11450_v62  ;;  %v18279_v40 = vperm.slane %v12634_v17, %v14780_v1  ;;  %vm19206_vm13 = vcmask 916480   ;;  %v12624_v49 = vsel %vm435_vm0, 0.0, %v12623_v18  ;;  %v19877_v56 = vld [vmem:[#allocation59_spill] sm:$0xff] }
 0x6d0   : > { %13644 = vrot.lane.b32.xlu1 %v12620_v13, %s19721_s25  ;;  %v18276_v13 = vperm.slane %v12606_v51, %v14780_v1  ;;  %v12426_v29 = vsel %vm435_vm0, 0.0, %v12425_v47  ;;  %v11495_v39 = vrot.slane %v19877_v56, 4  ;;  %v11474_v58 = vperm.slane %v11470_v20, %v14780_v1  ;;  %v19883_v56 = vld [vmem:[#allocation111_spill] sm:$0xff] }
 0x6d1   : > { %13460 = vrot.lane.b32.xlu2 %v12392_v24, %s19687_s30  ;;  %v18263_v22 = vpop.permute.xlu0 %13468  ;;  %v19878_v24 = vld [vmem:[#allocation89_spill] sm:$0xff]  ;;  %v12632_v51 = vperm.slane %v12624_v49, %v14768_v61  ;;  %v12653_v17 = vrot.slane %v12638_v6, 4 }
 0x6d2   : > { %v18260_v25 = vpop.permute.xlu1 %13476  ;;  %v11502_v62 = vsel %vm435_vm0, %v11501_v43, %v19878_v24  ;;  %v11496_v43 = vsel %vm435_vm0, %v11495_v39, %v19881_v31  ;;  %v12431_v31 = vrot.slane %v17896_v50, 4 }
 0x6d3   : > { %v13329_v57 = vpop.permute.xlu2 %13328  ;;  %v11506_v20 = vperm.slane %v11502_v62, %v14768_v61  ;;  %v12643_v49 = vrot.slane %v12632_v51, 4  ;;  %v11500_v62 = vperm.slane %v11496_v43, %v14768_v61 }
 0x6d4   : > { %v13993_v41 = vsel %vm19205_vm14, %v13992_v33, %v13329_v57  ;;  %vm13899_vm14 = vcmask 949248   ;;  %v11481_v57 = vrot.slane %v11480_v10, 4  ;;  %v12654_v10 = vsel %vm435_vm0, 0.0, %v12653_v17 }
 0x6d5   : > { %v13994_v30 = vsel %vm19206_vm13, %v13993_v41, %v17908_v11  ;;  %v12655_v11 = vrot.slane %v18279_v40, 4  ;;  %vm19207_vm13 = vcmask 982016   ;;  %v11489_v41 = vrot.slane %v19879_v63, 4 }
 0x6d6   : > { %v13995_v18 = vsel %vm13899_vm14, %v13994_v30, %v17933_v3  ;;  %v11482_v3 = vsel %vm435_vm0, %v11481_v57, %v11474_v58  ;;  %v13998_v17 = vsel %vm19212_vm1, %v17563_v32, %v17964_v5 }
 0x6d7   : > { %13648 = vrot.lane.b32.xlu0 %v18276_v13, %s19835_s5  ;;  %v11490_v24 = vsel %vm435_vm0, %v11489_v41, %v19883_v56  ;;  %v12666_v58 = vperm.slane %v11482_v3, %v14768_v61  ;;  %v19884_v41 = vld [vmem:[#allocation80_spill] sm:$0xff]  ;;  %v12661_v43 = vrot.slane %v11482_v3, 4  ;;  %v12432_v3 = vsel %vm435_vm0, 0.0, %v12431_v31 }
 0x6d8   : > { %13656 = vrot.lane.b32.xlu1 %v12638_v6, %s19727_s27  ;;  %v19882_v6 = vld [vmem:[#allocation26_spill] sm:$0xff]  ;;  %v11494_v57 = vperm.slane %v11490_v24, %v14768_v61 }
 0x6d9   : > { %13472 = vrot.lane.b32.xlu2 %v12426_v29, %s19693_s3  ;;  %v18296_v53 = vpop.permute.xlu0 %13480  ;;  %v12656_v29 = vsel %vm435_vm0, 0.0, %v12655_v11  ;;  %v11483_v30 = vrot.slane %v19882_v6, 4  ;;  %v18340_v6 = vperm.slane %v12666_v58, %v14780_v1 }
 0x6da   : > { %v18292_v2 = vpop.permute.xlu1 %13488  ;;  %v11507_v5 = vrot.slane %v11494_v57, 4 }
 0x6db   : > { %v13341_v33 = vpop.permute.xlu2 %13340 }
 0x6dc   : > { %v18304_v47 = vsel %vm19207_vm13, %v13995_v18, %v13341_v33  ;;  %v11513_v33 = vrot.slane %v11506_v20, 4  ;;  %v12644_v18 = vsel %vm435_vm0, 0.0, %v12643_v49  ;;  %v11484_v20 = vsel %vm435_vm0, %v11483_v30, %v19884_v41 }
 0x6dd   : > { %19880 = vst [vmem:[#allocation168_spill] sm:$0xff] %v18304_v47  ;;  %v12652_v49 = vperm.slane %v12644_v18, %v14780_v1  ;;  %v11488_v32 = vperm.slane %v11484_v20, %v14768_v61  ;;  %v19885_v20 = vld [vmem:[#allocation28_spill] sm:$0xff]  ;;  %vm19894_vm13 = vcmask 424960  }
 0x6df   : > { %13660 = vrot.lane.b32.xlu0 %v12654_v10, %s19839_s9  ;;  %v18337_v10 = vperm.slane %v12632_v51, %v14780_v1  ;;  %v12662_v51 = vsel %vm435_vm0, 0.0, %v12661_v43  ;;  %v12659_v57 = vrot.slane %v12652_v49, 4 }
 0x6e0   : > { %13668 = vrot.lane.b32.xlu1 %v12656_v29, %s19735_s29  ;;  %v11514_v29 = vsel %vm435_vm0, %v11513_v33, %v11500_v62  ;;  %v12691_v62 = vrot.slane %v18340_v6, 4  ;;  %v11508_v33 = vsel %vm435_vm0, %v11507_v5, %v11488_v32  ;;  %v12671_v32 = vrot.slane %v12666_v58, 4 }
 0x6e1   : > { %13484 = vrot.lane.b32.xlu2 %v17847_v45, %s19703_s13  ;;  %v18322_v11 = vpop.permute.xlu0 %13492  ;;  %v11518_v30 = vperm.slane %v11514_v29, %v14780_v1  ;;  %v11512_v31 = vperm.slane %v11508_v33, %v14780_v1  ;;  %v12660_v29 = vsel %vm435_vm0, 0.0, %v12659_v57 }
 0x6e2   : > { %v18320_v39 = vpop.permute.xlu1 %13500  ;;  %v12692_v43 = vsel %vm435_vm0, 0.0, %v12691_v62 }
 0x6e3   : > { %v13353_v63 = vpop.permute.xlu2 %13352 }
 0x6e4   : > { %v13999_v45 = vsel %vm19211_vm2, %v13998_v17, %v13353_v63  ;;  %v12670_v17 = vperm.slane %v12662_v51, %v14768_v61  ;;  %v11519_v63 = vrot.slane %v11518_v30, 4 }
 0x6e5   : > { %v14000_v50 = vsel %vm13847_vm3, %v13999_v45, %v17962_v54  ;;  %v11539_v45 = vrot.slane %v19885_v20, 4 }
 0x6e6   : > { %v14001_v54 = vsel %vm13849_vm4, %v14000_v50, %v17987_v26  ;;  %v12681_v5 = vrot.slane %v12670_v17, 4  ;;  %v11520_v30 = vsel %vm435_vm0, %v11519_v63, %v11512_v31  ;;  %v19887_v50 = vld [vmem:[#allocation85_spill] sm:$0xff]  ;;  %v19889_v31 = vld [vmem:[#allocation87_spill] sm:$0xff] }
 0x6e7   : > { %13672 = vrot.lane.b32.xlu0 %v18337_v10, %s19670_s24  ;;  %v11533_v51 = vrot.slane %v19887_v50, 4  ;;  %v11540_v62 = vsel %vm435_vm0, %v11539_v45, %v16981_v21  ;;  %v12704_v63 = vperm.slane %v11520_v30, %v14768_v61  ;;  %v12467_v45 = vrot.slane %v17947_v27, 4 }
 0x6e8   : > { %13680 = vrot.lane.b32.xlu1 %v12652_v49, %s19742_s2  ;;  %v12682_v57 = vsel %vm435_vm0, 0.0, %v12681_v5  ;;  %v11544_v20 = vperm.slane %v11540_v62, %v14768_v61  ;;  %v19891_v62 = vld [vmem:[#allocation90_spill] sm:$0xff] }
 0x6e9   : > { %13496 = vrot.lane.b32.xlu2 %v12432_v3, %s19708_s16  ;;  %v18354_v24 = vpop.permute.xlu0 %13504  ;;  %v19886_v3 = vld [vmem:[#allocation63_spill] sm:$0xff] }
 0x6ea   : > { %v18352_v56 = vpop.permute.xlu1 %13512  ;;  %v11527_v26 = vrot.slane %v19886_v3, 4  ;;  %v18399_v3 = vperm.slane %v12682_v57, %v14780_v1  ;;  %v11551_v50 = vrot.slane %v11544_v20, 4  ;;  %v12699_v20 = vrot.slane %v11520_v30, 4 }
 0x6eb   : > { %v13365_v18 = vpop.permute.xlu2 %13364  ;;  %v18431_v30 = vperm.slane %v12704_v63, %v14780_v1 }
 0x6ec   : > { %v14002_v41 = vsel %vm13851_vm5, %v14001_v54, %v13365_v18  ;;  %v12672_v54 = vsel %vm435_vm0, 0.0, %v12671_v32  ;;  %v12686_v32 = vperm.slane %v12670_v17, %v14780_v1  ;;  %v12468_v17 = vsel %vm435_vm0, 0.0, %v12467_v45 }
 0x6ed   : > { %v14003_v49 = vsel %vm13853_vm6, %v14002_v41, %v17985_v44  ;;  %v19888_v41 = vld [vmem:[#allocation82_spill] sm:$0xff]  ;;  %v18396_v5 = vperm.slane %v12672_v54, %v14780_v1  ;;  %v12697_v57 = vrot.slane %v18399_v3, 4  ;;  %19892 = vst [vmem:[#allocation78_spill] sm:$0xff] %v18431_v30 }
 0x6ee   : > { %v14004_v44 = vsel %vm13855_vm7, %v14003_v49, %v18020_v12  ;;  %v11528_v21 = vsel %vm435_vm0, %v11527_v26, %v19888_v41  ;;  %v12709_v49 = vrot.slane %v12704_v63, 4 }
 0x6ef   : > { %13684 = vrot.lane.b32.xlu0 %v12660_v29, %s19675_s26  ;;  %v19890_v29 = vld [vmem:[#allocation36_spill] sm:$0xff]  ;;  %v11532_v26 = vperm.slane %v11528_v21, %v14768_v61  ;;  %v12695_v21 = vrot.slane %v12686_v32, 4 }
 0x6f0   : > { %13692 = vrot.lane.b32.xlu1 %v12692_v43, %s19747_s22  ;;  %v11534_v43 = vsel %vm435_vm0, %v11533_v51, %v19889_v31  ;;  %v11521_v12 = vrot.slane %v19890_v29, 4 }
 0x6f1   : > { %13508 = vrot.lane.b32.xlu2 %v17899_v37, %s19713_s18  ;;  %v18379_v58 = vpop.permute.xlu0 %13516  ;;  %v11538_v27 = vperm.slane %v11534_v43, %v14768_v61  ;;  %v11545_v45 = vrot.slane %v11532_v26, 4 }
 0x6f2   : > { %v18377_v33 = vpop.permute.xlu1 %13524 }
 0x6f3   : > { %v13377_v18 = vpop.permute.xlu2 %13376  ;;  %v11552_v43 = vsel %vm435_vm0, %v11551_v50, %v11538_v27  ;;  %v19893_v27 = vld [vmem:[#allocation52_spill] sm:$0xff] }
 0x6f4   : > { %v14005_v37 = vsel %vm13857_vm8, %v14004_v44, %v13377_v18  ;;  %v11522_v18 = vsel %vm435_vm0, %v11521_v12, %v19891_v62  ;;  %v12698_v12 = vsel %vm435_vm0, 0.0, %v12697_v57  ;;  %v11556_v62 = vperm.slane %v11552_v43, %v14780_v1 }
 0x6f5   : > { %v14006_v51 = vsel %vm13859_vm9, %v14005_v37, %v18018_v46  ;;  %v12710_v37 = vsel %vm435_vm0, 0.0, %v12709_v49  ;;  %v11526_v31 = vperm.slane %v11522_v18, %v14768_v61 }
 0x6f6   : > { %v14007_v46 = vsel %vm13861_vm10, %v14006_v51, %v18045_v36  ;;  %v12696_v36 = vsel %vm435_vm0, 0.0, %v12695_v21  ;;  %v12729_v21 = vrot.slane %v18431_v30, 4 }
 0x6f7   : > { %13696 = vrot.lane.b32.xlu0 %v18396_v5, %s19679_s28  ;;  %v11546_v26 = vsel %vm435_vm0, %v11545_v45, %v11526_v31  ;;  %v19896_v45 = vld [vmem:[#allocation21_spill] sm:$0xff] }
 0x6f8   : > { %13704 = vrot.lane.b32.xlu1 %v12686_v32, %s19806_s20  ;;  %v12700_v32 = vsel %vm435_vm0, 0.0, %v12699_v20  ;;  %v11550_v57 = vperm.slane %v11546_v26, %v14780_v1  ;;  %v11577_v31 = vrot.slane %v19896_v45, 4  ;;  %v19899_v26 = vld [vmem:[#allocation103_spill] sm:$0xff] }
 0x6f9   : > { %13520 = vrot.lane.b32.xlu2 %v12468_v17, %s19721_s25  ;;  %v18414_v54 = vpop.permute.xlu0 %13528  ;;  %v18425_v17 = vperm.slane %v12710_v37, %v14780_v1  ;;  %v12708_v63 = vperm.slane %v12700_v32, %v14768_v61  ;;  %v12503_v37 = vrot.slane %v18003_v28, 4  ;;  %v12730_v32 = vsel %vm435_vm0, 0.0, %v12729_v21 }
 0x6fa   : > { %v18412_v44 = vpop.permute.xlu1 %13536 }
 0x6fb   : > { %v13389_v41 = vpop.permute.xlu2 %13388  ;;  %v12731_v18 = vrot.slane %v18425_v17, 4  ;;  %v12504_v28 = vsel %vm435_vm0, 0.0, %v12503_v37 }
 0x6fc   : > { %v14008_v29 = vsel %vm19213_vm11, %v14007_v46, %v13389_v41  ;;  %v11557_v41 = vrot.slane %v11556_v62, 4 }
 0x6fd   : > { %v14009_v49 = vsel %vm19208_vm12, %v14008_v29, %v18041_v23  ;;  %vm19895_vm12 = vcmask 457728   ;;  %v12732_v43 = vsel %vm435_vm0, 0.0, %v12731_v18  ;;  %v12719_v29 = vrot.slane %v12708_v63, 4 }
 0x6fe   : > { %v14010_v23 = vsel %vm19894_vm13, %v14009_v49, %v18076_v15  ;;  %v11558_v62 = vsel %vm435_vm0, %v11557_v41, %v11550_v57  ;;  %vm19898_vm13 = vcmask 490496   ;;  %v11578_v49 = vsel %vm435_vm0, %v11577_v31, %v19899_v26 }
 0x6ff   : > { %13708 = vrot.lane.b32.xlu0 %v12696_v36, %s19687_s30  ;;  %v12720_v57 = vsel %vm435_vm0, 0.0, %v12719_v29  ;;  %v12742_v41 = vperm.slane %v11558_v62, %v14768_v61 }
 0x700   : > { %13716 = vrot.lane.b32.xlu1 %v12698_v12, %s19809_s7  ;;  %v19897_v12 = vld [vmem:[#allocation123_spill] sm:$0xff]  ;;  %v12728_v29 = vperm.slane %v12720_v57, %v14780_v1 }
 0x701   : > { %13532 = vrot.lane.b32.xlu2 %v19893_v27, %s19727_s27  ;;  %v18442_v51 = vpop.permute.xlu0 %13540  ;;  %v11565_v36 = vrot.slane %v19897_v12, 4  ;;  %v19900_v27 = vld [vmem:[#allocation116_spill] sm:$0xff] }
 0x702   : > { %v18440_v50 = vpop.permute.xlu1 %13548  ;;  %v11571_v18 = vrot.slane %v19900_v27, 4 }
 0x703   : > { %v13401_v46 = vpop.permute.xlu2 %13400 }
 0x704   : > { %v14011_v20 = vsel %vm19895_vm12, %v14010_v23, %v13401_v46  ;;  %vm19903_vm12 = vcmask 523264  }
 0x705   : > { %v14012_v15 = vsel %vm19898_vm13, %v14011_v20, %v18073_v0  ;;  %v19901_v0 = vld [vmem:[#allocation88_spill] sm:$0xff]  ;;  %v19902_v20 = vld [vmem:[#allocation29_spill] sm:$0xff]  ;;  %vm19904_vm13 = vcmask 556032  }
 0x706   : > { %v11559_v21 = vrot.slane %v19901_v0, 4  ;;  %v11566_v37 = vsel %vm435_vm0, %v11565_v36, %v19902_v20  ;;  %v14013_v31 = vsel %vm19903_vm12, %v14012_v15, %v18111_v38  ;;  %v18484_v0 = vperm.slane %v12708_v63, %v14780_v1  ;;  %v19906_v20 = vld [vmem:[#allocation32_spill] sm:$0xff] }
 0x707   : > { %13720 = vrot.lane.b32.xlu0 %v12730_v32, %s19693_s3  ;;  %v12737_v32 = vrot.slane %v11558_v62, 4  ;;  %v11570_v27 = vperm.slane %v11566_v37, %v14768_v61  ;;  %v18487_v36 = vperm.slane %v12742_v41, %v14780_v1  ;;  %vm19907_vm12 = vcmask 588800  }
 0x708   : > { %13728 = vrot.lane.b32.xlu1 %v12732_v43, %s19818_s21  ;;  %v11582_v43 = vperm.slane %v11578_v49, %v14768_v61  ;;  %v11560_v38 = vsel %vm435_vm0, %v11559_v21, %v19906_v20 }
 0x709   : > { %13544 = vrot.lane.b32.xlu2 %v12504_v28, %s19735_s29  ;;  %v18468_v23 = vpop.permute.xlu0 %13552  ;;  %v19905_v28 = vld [vmem:[#allocation108_spill] sm:$0xff]  ;;  %v12738_v63 = vsel %vm435_vm0, 0.0, %v12737_v32  ;;  %v11583_v57 = vrot.slane %v11570_v27, 4  ;;  %v12767_v37 = vrot.slane %v18487_v36, 4  ;;  %v19909_v27 = vld [vmem:[#allocation114_spill] sm:$0xff] }
 0x70a   : > { %v18466_v46 = vpop.permute.xlu1 %13560  ;;  %v11572_v26 = vsel %vm435_vm0, %v11571_v18, %v19905_v28  ;;  %v11589_v15 = vrot.slane %v11582_v43, 4  ;;  %v11564_v18 = vperm.slane %v11560_v38, %v14768_v61  ;;  %v12735_v43 = vrot.slane %v12728_v29, 4 }
 0x70b   : > { %v13413_v45 = vpop.permute.xlu2 %13412  ;;  %v11576_v62 = vperm.slane %v11572_v26, %v14768_v61  ;;  %v12539_v28 = vrot.slane %v18057_v8, 4  ;;  %v11615_v20 = vrot.slane %v19909_v27, 4  ;;  %v12768_v38 = vsel %vm435_vm0, 0.0, %v12767_v37 }
 0x70c   : > { %v14014_v12 = vsel %vm19904_vm13, %v14013_v31, %v13413_v45  ;;  %vm19908_vm13 = vcmask 621568   ;;  %v11584_v26 = vsel %vm435_vm0, %v11583_v57, %v11564_v18  ;;  %v12736_v30 = vsel %vm435_vm0, 0.0, %v12735_v43  ;;  %v19912_v18 = vld [vmem:[#allocation104_spill] sm:$0xff] }
 0x70d   : > { %v14015_v49 = vsel %vm19907_vm12, %v14014_v12, %v18107_v35  ;;  %v12746_v12 = vperm.slane %v12738_v63, %v14768_v61  ;;  %v11590_v32 = vsel %vm435_vm0, %v11589_v15, %v11576_v62  ;;  %vm19910_vm12 = vcmask 687104   ;;  %v19911_v62 = vld [vmem:[#allocation25_spill] sm:$0xff]  ;;  %v19914_v43 = vld [vmem:[#allocation20_spill] sm:$0xff] }
 0x70e   : > { %v14016_v35 = vsel %vm19908_vm13, %v14015_v49, %v18142_v42  ;;  %v11594_v47 = vperm.slane %v11590_v32, %v14780_v1  ;;  %v12747_v42 = vrot.slane %v12742_v41, 4  ;;  %v12540_v8 = vsel %vm435_vm0, 0.0, %v12539_v28 }
 0x70f   : > { %13732 = vrot.lane.b32.xlu0 %v18484_v0, %s19703_s13  ;;  %v11609_v49 = vrot.slane %v19911_v62, 4  ;;  %v11588_v63 = vperm.slane %v11584_v26, %v14780_v1  ;;  %v11616_v57 = vsel %vm435_vm0, %v11615_v20, %v19912_v18  ;;  %vm19913_vm13 = vcmask 719872   ;;  %v19916_v20 = vld [vmem:[#allocation117_spill] sm:$0xff] }
 0x710   : > { %13740 = vrot.lane.b32.xlu1 %v12728_v29, %s19822_s19  ;;  %v12757_v29 = vrot.slane %v12746_v12, 4  ;;  %v11595_v41 = vrot.slane %v11594_v47, 4  ;;  %v11603_v32 = vrot.slane %v19914_v43, 4  ;;  %v11620_v28 = vperm.slane %v11616_v57, %v14768_v61  ;;  %v19921_v57 = vld [vmem:[#allocation175_spill] sm:$0xff] }
 0x711   : > { %13556 = vrot.lane.b32.xlu2 %v18006_v48, %s19742_s2  ;;  %v18501_v21 = vpop.permute.xlu0 %13564  ;;  %v12762_v27 = vperm.slane %v12746_v12, %v14780_v1  ;;  %v11610_v47 = vsel %vm435_vm0, %v11609_v49, %v19916_v20  ;;  %v12545_v20 = vrot.slane %v18124_v9, 4 }
 0x712   : > { %v18504_v45 = vpop.permute.xlu1 %13572  ;;  %v11614_v49 = vperm.slane %v11610_v47, %v14768_v61  ;;  %v11627_v18 = vrot.slane %v11620_v28, 4 }
 0x713   : > { %v13425_v31 = vpop.permute.xlu2 %13424 }
 0x714   : > { %v14017_v48 = vsel %vm19214_vm15, %v14016_v35, %v13425_v31  ;;  %v12758_v35 = vsel %vm435_vm0, 0.0, %v12757_v29  ;;  %v19918_v29 = vld [vmem:[#allocation61_spill] sm:$0xff]  ;;  %v11628_v47 = vsel %vm435_vm0, %v11627_v18, %v11614_v49 }
 0x715   : > { %v14018_v15 = vsel %vm19910_vm12, %v14017_v48, %v18137_v55  ;;  %vm19915_vm12 = vcmask 752640  }
 0x716   : > { %v14019_v55 = vsel %vm19913_vm13, %v14018_v15, %v18177_v14  ;;  %v18545_v14 = vperm.slane %v12758_v35, %v14780_v1  ;;  %v11597_v15 = vrot.slane %v19918_v29, 4  ;;  %vm19920_vm13 = vcmask 785408  }
 0x717   : > { %13744 = vrot.lane.b32.xlu0 %v12736_v30, %s19708_s16  ;;  %v12748_v30 = vsel %vm435_vm0, 0.0, %v12747_v42  ;;  %v11596_v42 = vsel %vm435_vm0, %v11595_v41, %v11588_v63  ;;  %v12771_v35 = vrot.slane %v12762_v27, 4 }
 0x718   : > { %13752 = vrot.lane.b32.xlu1 %v12768_v38, %s19800_s0  ;;  %v18542_v38 = vperm.slane %v12748_v30, %v14780_v1  ;;  %19917 = vst [vmem:[#allocation159_spill] sm:$0xff] %v18545_v14  ;;  %v12773_v63 = vrot.slane %v18545_v14, 4  ;;  %v12780_v41 = vperm.slane %v11596_v42, %v14768_v61  ;;  %v12775_v43 = vrot.slane %v11596_v42, 4 }
 0x719   : > { %13568 = vrot.lane.b32.xlu2 %v12540_v8, %s19747_s22  ;;  %v18527_v37 = vpop.permute.xlu0 %13576  ;;  %v19919_v8 = vld [vmem:[#allocation31_spill] sm:$0xff]  ;;  %v11632_v42 = vperm.slane %v11628_v47, %v14780_v1 }
 0x71a   : > { %v18536_v26 = vpop.permute.xlu1 %13584  ;;  %v11604_v62 = vsel %vm435_vm0, %v11603_v32, %v19919_v8  ;;  %v19923_v32 = vld [vmem:[#allocation54_spill] sm:$0xff]  ;;  %v12774_v29 = vsel %vm435_vm0, 0.0, %v12773_v63  ;;  %v12785_v8 = vrot.slane %v12780_v41, 4 }
 0x71b   : > { %v13437_v31 = vpop.permute.xlu2 %13436 }
 0x71c   : > { %v14020_v48 = vsel %vm19915_vm12, %v14019_v55, %v13437_v31  ;;  %v11608_v55 = vperm.slane %v11604_v62, %v14768_v61  ;;  %vm19922_vm12 = vcmask 818176   ;;  %v12786_v63 = vsel %vm435_vm0, 0.0, %v12785_v8 }
 0x71d   : > { %v14021_v12 = vsel %vm19920_vm13, %v14020_v48, %v18173_v34  ;;  %v11598_v48 = vsel %vm435_vm0, %v11597_v15, %v19923_v32  ;;  %vm19924_vm13 = vcmask 850944   ;;  %v12546_v15 = vsel %vm435_vm0, 0.0, %v12545_v20 }
 0x71e   : > { %v14022_v34 = vsel %vm19922_vm12, %v14021_v12, %v18200_v19  ;;  %v11602_v62 = vperm.slane %v11598_v48, %v14768_v61  ;;  %v12772_v19 = vsel %vm435_vm0, 0.0, %v12771_v35  ;;  %vm19925_vm12 = vcmask 883712   ;;  %v19926_v12 = vld [vmem:[#allocation157_spill] sm:$0xff] }
 0x71f   : > { %13756 = vrot.lane.b32.xlu0 %v18542_v38, %s19713_s18  ;;  %v12794_v48 = vperm.slane %v12786_v63, %v14780_v1  ;;  %v18599_v20 = vperm.slane %v12780_v41, %v14780_v1 }
 0x720   : > { %13764 = vrot.lane.b32.xlu1 %v12762_v27, %s19781_s17  ;;  %v12776_v27 = vsel %vm435_vm0, 0.0, %v12775_v43  ;;  %v11633_v43 = vrot.slane %v11632_v42, 4 }
 0x721   : > { %13580 = vrot.lane.b32.xlu2 %v19921_v57, %s19806_s20  ;;  %v18559_v31 = vpop.permute.xlu0 %13588  ;;  %v11621_v57 = vrot.slane %v11608_v55, 4  ;;  %v12784_v55 = vperm.slane %v12776_v27, %v14768_v61 }
 0x722   : > { %v13597_v14 = vpop.permute.xlu1 %13596 }
 0x723   : > { %v13449_v30 = vpop.permute.xlu2 %13448  ;;  %v14060_v49 = vsel %vm19212_vm1, %v19926_v12, %v13597_v14  ;;  %v12579_v14 = vrot.slane %v18158_v52, 4  ;;  %v18602_v47 = vperm.slane %v12784_v55, %v14780_v1  ;;  %v12795_v42 = vrot.slane %v12784_v55, 4 }
 0x724   : > { %v14023_v28 = vsel %vm19924_vm13, %v14022_v34, %v13449_v30  ;;  %v11622_v30 = vsel %vm435_vm0, %v11621_v57, %v11602_v62  ;;  %vm19927_vm13 = vcmask 916480   ;;  %v12807_v62 = vrot.slane %v12794_v48, 4 }
 0x725   : > { %v14024_v9 = vsel %vm19925_vm12, %v14023_v28, %v18198_v60  ;;  %v11626_v28 = vperm.slane %v11622_v30, %v14780_v1  ;;  %v12809_v52 = vrot.slane %v18602_v47, 4  ;;  %v12615_v30 = vrot.slane %v18212_v59, 4 }
 0x726   : > { %v14025_v35 = vsel %vm19927_vm13, %v14024_v9, %v18234_v16  ;;  %v12580_v16 = vsel %vm435_vm0, 0.0, %v12579_v14  ;;  %v12808_v27 = vsel %vm435_vm0, 0.0, %v12807_v62  ;;  %vm19929_vm12 = vcmask 392192  }
 0x727   : > { %13768 = vrot.lane.b32.xlu0 %v12772_v19, %s19721_s25  ;;  %v12810_v19 = vsel %vm435_vm0, 0.0, %v12809_v52  ;;  %v12616_v59 = vsel %vm435_vm0, 0.0, %v12615_v30  ;;  %vm19930_vm13 = vcmask 424960  }
 0x728   : > { %13776 = vrot.lane.b32.xlu1 %v12774_v29, %s19786_s12  ;;  %v11634_v29 = vsel %vm435_vm0, %v11633_v43, %v11626_v28 }
 0x729   : > { %13592 = vrot.lane.b32.xlu2 %v12546_v15, %s19809_s7  ;;  %v13601_v18 = vpop.permute.xlu0 %13600  ;;  %v12818_v41 = vperm.slane %v11634_v29, %v14768_v61 }
 0x72a   : > { %v18588_v34 = vsel %vm19211_vm2, %v14060_v49, %v13601_v18  ;;  %v12796_v49 = vsel %vm435_vm0, 0.0, %v12795_v42  ;;  %v12813_v18 = vrot.slane %v11634_v29, 4 }
 0x72b   : > { %v13461_v60 = vpop.permute.xlu2 %13460  ;;  %v12823_v9 = vrot.slane %v12818_v41, 4 }
 0x72c   : > { %v18593_v32 = vsel %vm13899_vm14, %v14025_v35, %v13461_v60  ;;  %v18630_v60 = vperm.slane %v12796_v49, %v14780_v1 }
 0x72d   : > { %v12824_v63 = vsel %vm435_vm0, 0.0, %v12823_v9 }
 0x72f   : > { %13780 = vrot.lane.b32.xlu0 %v18599_v20, %s19727_s27 }
 0x730   : > { %13788 = vrot.lane.b32.xlu1 %v12794_v48, %s19789_s15 }
 0x731   : > { %13604 = vrot.lane.b32.xlu2 %v12580_v16, %s19818_s21 }
 0x733   : > { %v13473_v8 = vpop.permute.xlu2 %13472 }
 0x734   : > { %v14029_v57 = vsel %vm19212_vm1, %v18257_v4, %v13473_v8  ;;  %vm19932_vm1 = vcmask 490496  }
 0x735   : > { %v14030_v15 = vsel %vm19211_vm2, %v14029_v57, %v18260_v25  ;;  %v12828_v25 = vperm.slane %v12818_v41, %v14780_v1  ;;  %vm19931_vm2 = vcmask 457728  }
 0x736   : > { %v14031_v4 = vsel %vm13847_vm3, %v14030_v15, %v18296_v53  ;;  %v12814_v53 = vsel %vm435_vm0, 0.0, %v12813_v18 }
 0x737   : > { %13792 = vrot.lane.b32.xlu0 %v12808_v27, %s19735_s29  ;;  %v12822_v14 = vperm.slane %v12814_v53, %v14768_v61  ;;  %v12843_v16 = vrot.slane %v12828_v25, 4  ;;  %v19928_v61 = vld [vmem:[#allocation163_spill] sm:$0xff]  ;;  %v12621_v27 = vrot.slane %v18276_v13, 4  ;;  %v13609_v53 = vpop.permute.xlu1 %13608 }
 0x738   : > { %13800 = vrot.lane.b32.xlu1 %v12810_v19, %s19795_s4 }
 0x739   : > { %13616 = vrot.lane.b32.xlu2 %v18161_v7, %s19822_s19  ;;  %v18633_v7 = vperm.slane %v12824_v63, %v14780_v1  ;;  %v12833_v52 = vrot.slane %v12822_v14, 4  ;;  %v12844_v8 = vsel %vm435_vm0, 0.0, %v12843_v16  ;;  %v18663_v9 = vperm.slane %v12822_v14, %v14780_v1 }
 0x73a   : > { %v12622_v15 = vsel %vm435_vm0, 0.0, %v12621_v27 }
 0x73b   : > { %v13485_v12 = vpop.permute.xlu2 %13484  ;;  %v12845_v43 = vrot.slane %v18633_v7, 4 }
 0x73c   : > { %v14032_v55 = vsel %vm13849_vm4, %v14031_v4, %v13485_v12 }
 0x73d   : > { %v14033_v35 = vsel %vm13851_vm5, %v14032_v55, %v18292_v2  ;;  %v12846_v2 = vsel %vm435_vm0, 0.0, %v12845_v43  ;;  %v12693_v43 = vrot.slane %v18396_v5, 4 }
 0x73e   : > { %v14034_v28 = vsel %vm13853_vm6, %v14033_v35, %v18322_v11  ;;  %v12834_v11 = vsel %vm435_vm0, 0.0, %v12833_v52  ;;  %v13613_v35 = vpop.permute.xlu0 %13612 }
 0x73f   : > { %13804 = vrot.lane.b32.xlu0 %v18630_v60, %s19742_s2  ;;  %v12842_v42 = vperm.slane %v12834_v11, %v14780_v1  ;;  %v13621_v14 = vpop.permute.xlu1 %13620 }
 0x740   : > { %13812 = vrot.lane.b32.xlu1 %v12828_v25, %s19798_s23 }
 0x741   : > { %13628 = vrot.lane.b32.xlu2 %v12616_v59, %s19800_s0  ;;  %v12849_v12 = vrot.slane %v12842_v42, 4  ;;  %s20126_s0 = sld [smem:[#allocation11_spill]] }
 0x743   : > { %v13497_v48 = vpop.permute.xlu2 %13496  ;;  %v12850_v4 = vsel %vm435_vm0, 0.0, %v12849_v12 }
 0x744   : > { %v14035_v29 = vsel %vm13855_vm7, %v14034_v28, %v13497_v48  ;;  %v12694_v48 = vsel %vm435_vm0, 0.0, %v12693_v43 }
 0x745   : > { %v14036_v62 = vsel %vm13857_vm8, %v14035_v29, %v18320_v39 }
 0x746   : > { %v14037_v57 = vsel %vm13859_vm9, %v14036_v62, %v18354_v24  ;;  %v13625_v28 = vpop.permute.xlu0 %13624 }
 0x747   : > { %13816 = vrot.lane.b32.xlu0 %v12844_v8, %s19747_s22  ;;  %v13633_v5 = vpop.permute.xlu1 %13632  ;;  %v19945_v8 = vld [vmem:[#allocation166_spill] sm:$0xff] }
 0x748   : > { %13824 = vrot.lane.b32.xlu1 %v12846_v2, %s19803_s14 }
 0x749   : > { %13640 = vrot.lane.b32.xlu2 %v19928_v61, %s19781_s17 }
 0x74b   : > { %v13509_v41 = vpop.permute.xlu2 %13508 }
 0x74c   : > { %v14038_v19 = vsel %vm13861_vm10, %v14037_v57, %v13509_v41 }
 0x74d   : > { %v14039_v39 = vsel %vm19213_vm11, %v14038_v19, %v18352_v56  ;;  %vm19933_vm11 = vcmask 523264  }
 0x74e   : > { %v14040_v13 = vsel %vm19929_vm12, %v14039_v39, %v18379_v58  ;;  %v12657_v58 = vrot.slane %v18337_v10, 4  ;;  %vm19934_vm12 = vcmask 556032   ;;  %v13637_v29 = vpop.permute.xlu0 %13636 }
 0x74f   : > { %13828 = vrot.lane.b32.xlu0 %v18663_v9, %s19806_s20  ;;  %v13645_v61 = vpop.permute.xlu1 %13644 }
 0x750   : > { %13836 = vrot.lane.b32.xlu1 %v12842_v42, %s19805_s10  ;;  %v12658_v30 = vsel %vm435_vm0, 0.0, %v12657_v58 }
 0x751   : > { %13652 = vrot.lane.b32.xlu2 %v12622_v15, %s19786_s12 }
 0x753   : > { %v13521_v24 = vpop.permute.xlu2 %13520 }
 0x754   : > { %v14041_v1 = vsel %vm19930_vm13, %v14040_v13, %v13521_v24  ;;  %vm19936_vm13 = vcmask 621568   ;;  %v12769_v13 = vrot.slane %v18542_v38, 4 }
 0x755   : > { %v14042_v49 = vsel %vm19931_vm2, %v14041_v1, %v18377_v33  ;;  %vm19935_vm2 = vcmask 588800  }
 0x756   : > { %v14043_v18 = vsel %vm19932_vm1, %v14042_v49, %v18414_v54  ;;  %vm19937_vm1 = vcmask 687104   ;;  %v13649_v57 = vpop.permute.xlu0 %13648 }
 0x757   : > { %13840 = vrot.lane.b32.xlu0 %v12850_v4, %s19809_s7  ;;  %v12770_v4 = vsel %vm435_vm0, 0.0, %v12769_v13 }
 0x759   : > { %13664 = vrot.lane.b32.xlu2 %v18279_v40, %s19789_s15 }
 0x75b   : > { %v13533_v56 = vpop.permute.xlu2 %13532 }
 0x75c   : > { %v14044_v63 = vsel %vm19933_vm11, %v14043_v18, %v13533_v56  ;;  %vm19938_vm11 = vcmask 719872  }
 0x75d   : > { %v14045_v55 = vsel %vm19934_vm12, %v14044_v63, %v18412_v44  ;;  %vm19939_vm12 = vcmask 752640   ;;  %v19948_v63 = vld [vmem:[#allocation159_spill] sm:$0xff] }
 0x75e   : > { %v14046_v25 = vsel %vm19935_vm2, %v14045_v55, %v18442_v51  ;;  %vm19940_vm2 = vcmask 785408   ;;  %v13661_v42 = vpop.permute.xlu0 %13660 }
 0x761   : > { %13676 = vrot.lane.b32.xlu2 %v12658_v30, %s19795_s4 }
 0x763   : > { %v13545_v33 = vpop.permute.xlu2 %13544 }
 0x764   : > { %v14047_v40 = vsel %vm19936_vm13, %v14046_v25, %v13545_v33  ;;  %vm19941_vm13 = vcmask 818176   ;;  %v12805_v25 = vrot.slane %v18599_v20, 4 }
 0x765   : > { %v14048_v54 = vsel %vm19214_vm15, %v14047_v40, %v18440_v50  ;;  %vm19946_vm15 = vcmask 982016  }
 0x766   : > { %v14049_v44 = vsel %vm19937_vm1, %v14048_v54, %v18468_v23  ;;  %vm19942_vm1 = vcmask 850944  }
 0x769   : > { %13688 = vrot.lane.b32.xlu2 %v18340_v6, %s19798_s23 }
 0x76b   : > { %v13557_v10 = vpop.permute.xlu2 %13556 }
 0x76c   : > { %v14050_v59 = vsel %vm19938_vm11, %v14049_v44, %v13557_v10  ;;  %vm19943_vm11 = vcmask 883712  }
 0x76d   : > { %v14051_v51 = vsel %vm19939_vm12, %v14050_v59, %v18466_v46  ;;  %vm19944_vm12 = vcmask 916480  }
 0x76e   : > { %v14052_v6 = vsel %vm19940_vm2, %v14051_v51, %v18501_v21  ;;  %v14027_v21 = vsel %vm19946_vm15, %v18593_v32, %v19945_v8  ;;  %vm19215_vm2 = vcmask 1014784   ;;  %v12733_v32 = vrot.slane %v18484_v0, 4 }
 0x771   : > { %13700 = vrot.lane.b32.xlu2 %v12694_v48, %s19803_s14  ;;  %v12811_v48 = vrot.slane %v18630_v60, 4 }
 0x773   : > { %v13569_v50 = vpop.permute.xlu2 %13568 }
 0x774   : > { %v14053_v16 = vsel %vm19941_vm13, %v14052_v6, %v13569_v50  ;;  %vm19947_vm13 = vmmov %vm19946_vm15  ;;  %vm19949_vm15 = vcmask 359424  }
 0x775   : > { %v14054_v23 = vsel %vm19942_vm1, %v14053_v16, %v18504_v45  ;;  %vm14143_vm1 = vcmask 1044484   ;;  %v12812_v16 = vsel %vm435_vm0, 0.0, %v12811_v48 }
 0x776   : > { %v14055_v2 = vsel %vm19943_vm11, %v14054_v23, %v18527_v37  ;;  %vm19950_vm11 = vcmask 392192  }
 0x779   : > { %13712 = vrot.lane.b32.xlu2 %v18399_v3, %s19805_s10  ;;  %v14028_v3 = vsel %vm19215_vm2, %v14027_v21, %v18263_v22  ;;  %v12847_v21 = vrot.slane %v18663_v9, 4 }
 0x77a   : > { %v14133_v41 = vrot.slane %v14028_v3, 4 }
 0x77b   : > { %v13581_v46 = vpop.permute.xlu2 %13580  ;;  %v12848_v3 = vsel %vm435_vm0, 0.0, %v12847_v21 }
 0x77c   : > { %v14056_v52 = vsel %vm19944_vm12, %v14055_v2, %v13581_v46  ;;  %vm19951_vm12 = vcmask 424960  }
 0x77d   : > { %v14057_v62 = vsel %vm13899_vm14, %v14056_v52, %v18536_v26 }
 0x77e   : > { %v14058_v37 = vsel %vm19947_vm13, %v14057_v62, %v18559_v31  ;;  %v13657_v31 = vpop.permute.xlu1 %13656  ;;  %vm19952_vm13 = vcmask 457728  }
 0x781   : > { %13724 = vrot.lane.b32.xlu2 %v18425_v17, %s19808_s8  ;;  %v12734_v17 = vsel %vm435_vm0, 0.0, %v12733_v32 }
 0x783   : > { %v13593_v45 = vpop.permute.xlu2 %13592 }
 0x784   : > { %v14059_v11 = vsel %vm19215_vm2, %v14058_v37, %v13593_v45  ;;  %vm19954_vm2 = vcmask 523264  }
 0x785   : > { %v14134_v26 = vrot.slane %v14059_v11, 3 }
 0x786   : > { %v13669_v12 = vpop.permute.xlu1 %13668 }
 0x787   : > { %v18727_v19 = vsel %vm14143_vm1, %v14133_v41, %v14134_v26  ;;  %vm19953_vm1 = vcmask 490496  }
 0x789   : > { %13736 = vrot.lane.b32.xlu2 %v12734_v17, %s19817_s11 }
 0x78b   : > { %v13605_v22 = vpop.permute.xlu2 %13604 }
 0x78c   : > { %v14062_v27 = vsel %vm13847_vm3, %v18588_v34, %v13605_v22  ;;  %v13673_v34 = vpop.permute.xlu0 %13672  ;;  %v19968_v22 = vld [vmem:[#allocation153_spill] sm:$0xff] }
 0x78d   : > { %v14063_v39 = vsel %vm13849_vm4, %v14062_v27, %v13609_v53  ;;  %v12806_v53 = vsel %vm435_vm0, 0.0, %v12805_v25  ;;  %v19969_v27 = vld [vmem:[#allocation67_spill] sm:$0xff]  ;;  %vm19970_vm0 = vcmask 31744  }
 0x78e   : > { %v14064_v15 = vsel %vm13851_vm5, %v14063_v39, %v13613_v35  ;;  %v13681_v58 = vpop.permute.xlu1 %13680  ;;  %v19971_v39 = vld [vmem:[#allocation120_spill] sm:$0xff] }
 0x791   : > { %13748 = vrot.lane.b32.xlu2 %v18487_v36, %s19821_s6  ;;  %s20152_s6 = sld [smem:[#allocation18_spill]] }
 0x793   : > { %v13617_v0 = vpop.permute.xlu2 %13616 }
 0x794   : > { %v14065_v24 = vsel %vm13853_vm6, %v14064_v15, %v13617_v0  ;;  %v13685_v38 = vpop.permute.xlu0 %13684  ;;  %v19972_v0 = vld [vmem:[#allocation97_spill] sm:$0xff] }
 0x795   : > { %v14066_v1 = vsel %vm13855_vm7, %v14065_v24, %v13621_v14  ;;  %v19974_v24 = vld [vmem:[#allocation42_spill] sm:$0xff] }
 0x796   : > { %v14067_v56 = vsel %vm13857_vm8, %v14066_v1, %v13625_v28  ;;  %v13693_v10 = vpop.permute.xlu1 %13692 }
 0x797   : > { %s20159_s11 = sshll.u32 %s20152_s6, 3  ;;  %s14154_s12 = scalar_lea.sflag [#allocation4], %s20152_s6 }
 0x798   : > { %s153_s19 = scalar_lea.vmem [#allocation5], %s20159_s11 }
 0x799   : > { %13760 = vrot.lane.b32.xlu2 %v12770_v4, %s19825_s1  ;;  %s14263_s1 = sshll.u32 %s20126_s0, 3  ;;  %s14168_s20 = sshll.u32 %s153_s19, 4  ;;  %s14169_s20 = int_to_ptr.vmem [resolvable:$true] %s14168_s20 }
 0x79b   : > { %v13629_v49 = vpop.permute.xlu2 %13628 }
 0x79c   : > { %v14068_v36 = vsel %vm13859_vm9, %v14067_v56, %v13629_v49  ;;  %v13697_v59 = vpop.permute.xlu0 %13696  ;;  %v19978_v49 = vld [vmem:[#allocation33_spill] sm:$0xff] }
 0x79d   : > { %v14069_v18 = vsel %vm13861_vm10, %v14068_v36, %v13633_v5  ;;  %v19979_v36 = vld [vmem:[#allocation137_spill] sm:$0xff] }
 0x79e   : > { %v14070_v30 = vsel %vm19949_vm15, %v14069_v18, %v13637_v29  ;;  %vm19955_vm15 = vcmask 556032   ;;  %v13705_v28 = vpop.permute.xlu1 %13704 }
 0x7a1   : > { %13772 = vrot.lane.b32.xlu2 %v19948_v63, %s19835_s5  ;;  %v19980_v63 = vld [vmem:[#allocation98_spill] sm:$0xff] }
 0x7a3   : > { %v13641_v55 = vpop.permute.xlu2 %13640 }
 0x7a4   : > { %v14071_v33 = vsel %vm19950_vm11, %v14070_v30, %v13641_v55  ;;  %vm19956_vm11 = vcmask 588800   ;;  %v13709_v50 = vpop.permute.xlu0 %13708  ;;  %v19983_v55 = vld [vmem:[#allocation154_spill] sm:$0xff] }
 0x7a5   : > { %v14072_v40 = vsel %vm19951_vm12, %v14071_v33, %v13645_v61  ;;  %vm19957_vm12 = vcmask 621568   ;;  %v19984_v33 = vld [vmem:[#allocation64_spill] sm:$0xff] }
 0x7a6   : > { %v14073_v54 = vsel %vm19952_vm13, %v14072_v40, %v13649_v57  ;;  %vm19959_vm13 = vcmask 687104   ;;  %v18766_v29 = vpop.permute.xlu1 %13716 }
 0x7a9   : > { %13784 = vrot.lane.b32.xlu2 %v12806_v53, %s19839_s9  ;;  %v19985_v53 = vld [vmem:[#allocation186_spill] sm:$0xff]  ;;  %s20153_s9 = sld [smem:[#allocation191_spill]] }
 0x7ab   : > { %v13653_v35 = vpop.permute.xlu2 %13652 }
 0x7ac   : > { %v14074_v44 = vsel %vm19953_vm1, %v14073_v54, %v13653_v35  ;;  %vm19960_vm1 = vcmask 719872   ;;  %v13721_v2 = vpop.permute.xlu0 %13720  ;;  %v19986_v54 = vld [vmem:[#allocation78_spill] sm:$0xff] }
 0x7ad   : > { %v14075_v43 = vsel %vm19954_vm2, %v14074_v44, %v13657_v31  ;;  %vm19958_vm2 = vcmask 654336   ;;  %v13936_v31 = vsel %vm19970_vm0, %v19969_v27, %v19968_v22  ;;  %v19988_v44 = vld [vmem:[#allocation23_spill] sm:$0xff] }
 0x7ae   : > { %v14076_v20 = vsel %vm19955_vm15, %v14075_v43, %v13661_v42  ;;  %vm19961_vm15 = vcmask 752640   ;;  %v13729_v45 = vpop.permute.xlu1 %13728  ;;  %v19990_v43 = vld [vmem:[#allocation49_spill] sm:$0xff]  ;;  %v20001_v22 = vld [vmem:[#allocation35_spill] sm:$0xff] }
 0x7af   : > { %s20154_s14 = smov %s20153_s9  ;;  %s14166_s10 = scalar_lea.hbm %s20153_s9, %s14263_s1 }
 0x7b0   : > { %s14170_s21 = sshll.u32 %s14166_s10, 4  ;;  %s14414_s23 = scalar_lea.hbm %s20154_s14, 16  ;;  %s14171_s21 = int_to_ptr.hbm [resolvable:$true] %s14170_s21 }
 0x7b1   : > { %13796 = vrot.lane.b32.xlu2 %v18602_v47, %s19670_s24  ;;  %s14408_s16 = sshra.s32 %s14171_s21, 4  ;;  %s14409_s16 = int_to_ptr.hbm [resolvable:$true] %s14408_s16 }
 0x7b2   : > { %s14410_s17 = scalar_lea.hbm %s14409_s16, 8  ;;  %p14415_p7 = scmp.lt.s32.totalorder %s14409_s16, %s20154_s14 }
 0x7b3   : > { %v13665_v14 = vpop.permute.xlu2 %13664  ;;  %p14411_p4 = scmp.ne.s32.totalorder %s14409_s16, %s14410_s17  ;;  %p14416_p8 = scmp.lt.s32.totalorder %s14414_s23, %s14410_s17 }
 0x7b4   : > { %v14077_v51 = vsel %vm19956_vm11, %v14076_v20, %v13665_v14  ;;  %vm19962_vm11 = vcmask 785408   ;;  %v13733_v37 = vpop.permute.xlu0 %13732 }
 0x7b5   : > { %v14078_v6 = vsel %vm19957_vm12, %v14077_v51, %v13669_v12  ;;  %vm19963_vm12 = vcmask 818176   ;;  %v19976_v12 = vld [vmem:[#allocation40_spill] sm:$0xff]  ;;  %v19992_v51 = vld [vmem:[#allocation38_spill] sm:$0xff]  ;;  %p14412_p5 = pnand %p14411_p4, %p14574_p9  ;;  %p14417_p10 = por %p14416_p8, %p14415_p7 }
 0x7b6   : > { %v14079_v5 = vsel %vm19958_vm2, %v14078_v6, %v13673_v34  ;;  %vm19964_vm2 = vcmask 850944   ;;  %v13741_v26 = vpop.permute.xlu1 %13740  ;;  %v19994_v6 = vld [vmem:[#allocation73_spill] sm:$0xff] }
 0x7b7   : > { %p14413_p6 = pneg %p14412_p5 }
 0x7b9   : > { %13808 = vrot.lane.b32.xlu2 %v12812_v16, %s19675_s26  ;;  %p14418_p13 = pnand %p14417_p10, %p14413_p6 }
 0x7bb   : > { %v13677_v23 = vpop.permute.xlu2 %13676 }
 0x7bc   : > { %v14080_v47 = vsel %vm19959_vm13, %v14079_v5, %v13677_v23  ;;  %vm19965_vm13 = vcmask 883712   ;;  %v13745_v17 = vpop.permute.xlu0 %13744 }
 0x7bd   : > { %v14081_v46 = vsel %vm19960_vm1, %v14080_v47, %v13681_v58  ;;  %vm19966_vm1 = vcmask 916480   ;;  %v19981_v58 = vld [vmem:[#allocation56_spill] sm:$0xff] }
 0x7be   : > { %v14082_v52 = vsel %vm19961_vm15, %v14081_v46, %v13685_v38  ;;  %vm19967_vm15 = vcmask 982016   ;;  %v13753_v4 = vpop.permute.xlu1 %13752  ;;  %v19995_v47 = vld [vmem:[#allocation100_spill] sm:$0xff] }
 0x7c1   : > { %13820 = vrot.lane.b32.xlu2 %v18633_v7, %s19679_s28 }
 0x7c3   : > { %v13689_v60 = vpop.permute.xlu2 %13688 }
 0x7c4   : > { %v14083_v8 = vsel %vm19962_vm11, %v14082_v52, %v13689_v60  ;;  %vm19973_vm11 = vmmov %vm19970_vm0  ;;  %v13757_v34 = vpop.permute.xlu0 %13756 }
 0x7c5   : > { %v14084_v62 = vsel %vm19963_vm12, %v14083_v8, %v13693_v10  ;;  %v13905_v15 = vsel %vm19973_vm11, %v19972_v0, %v19971_v39  ;;  %vm19975_vm12 = vcmask 64512   ;;  %v19997_v8 = vld [vmem:[#allocation34_spill] sm:$0xff]  ;;  %v20003_v39 = vld [vmem:[#allocation133_spill] sm:$0xff]  ;;  %vm20023_vm11 = vcmask 457728  }
 0x7c6   : > { %v14085_v11 = vsel %vm19964_vm2, %v14084_v62, %v13697_v59  ;;  %v13906_v13 = vsel %vm19975_vm12, %v13905_v15, %v19974_v24  ;;  %vm19977_vm2 = vmmov %vm19975_vm12  ;;  %v13765_v23 = vpop.permute.xlu1 %13764  ;;  %v19998_v62 = vld [vmem:[#allocation144_spill] sm:$0xff]  ;;  %v20004_v15 = vld [vmem:[#allocation115_spill] sm:$0xff] }
 0x7c7   : > { %v13937_v1 = vsel %vm19977_vm2, %v13936_v31, %v19976_v12  ;;  %v13907_v56 = vsel %vm13847_vm3, %v13906_v13, %v19978_v49  ;;  %v20002_v31 = vld [vmem:[#allocation132_spill] sm:$0xff] }
 0x7c8   : > { %v13938_v18 = vsel %vm13847_vm3, %v13937_v1, %v19979_v36  ;;  %v13908_v25 = vsel %vm13849_vm4, %v13907_v56, %v19984_v33  ;;  %v20005_v13 = vld [vmem:[#allocation48_spill] sm:$0xff]  ;;  %v20006_v1 = vld [vmem:[#allocation65_spill] sm:$0xff]  ;;  %v20007_v56 = vld [vmem:[#allocation138_spill] sm:$0xff] }
 0x7c9   : > { %13832 = vrot.lane.b32.xlu2 %v12848_v3, %s19687_s30  ;;  %v13939_v30 = vsel %vm13849_vm4, %v13938_v18, %v19983_v55  ;;  %v13909_v35 = vsel %vm13851_vm5, %v13908_v25, %v19985_v53  ;;  %v20010_v55 = vld [vmem:[#allocation151_spill] sm:$0xff] }
 0x7ca   : > { %v13940_v14 = vsel %vm13851_vm5, %v13939_v30, %v19990_v43 }
 0x7cb   : > { %v13701_v61 = vpop.permute.xlu2 %13700  ;;  %v13941_v16 = vsel %vm13853_vm6, %v13940_v14, %v19994_v6  ;;  %v20018_v14 = vld [vmem:[#allocation150_spill] sm:$0xff] }
 0x7cc   : > { %v14086_v7 = vsel %vm19965_vm13, %v14085_v11, %v13701_v61  ;;  %vm19982_vm13 = vmmov %vm19970_vm0  ;;  %v13769_v52 = vpop.permute.xlu0 %13768 }
 0x7cd   : > { %v14087_v32 = vsel %vm19966_vm1, %v14086_v7, %v13705_v28  ;;  %v13844_v38 = vsel %vm19982_vm13, %v19981_v58, %v19980_v63  ;;  %vm19987_vm1 = vmmov %vm19970_vm0  ;;  %v19993_v28 = vld [vmem:[#allocation43_spill] sm:$0xff]  ;;  %v19999_v7 = vld [vmem:[#allocation101_spill] sm:$0xff] }
 0x7ce   : > { %v14088_v57 = vsel %vm13899_vm14, %v14087_v32, %v13709_v50  ;;  %v14091_v10 = vsel %vm19987_vm1, %v19986_v54, %v13721_v2  ;;  %vm19991_vm0 = vmmov %vm19977_vm2  ;;  %v13910_v50 = vsel %vm13853_vm6, %v13909_v35, %v19993_v28  ;;  %v19996_v2 = vld [vmem:[#allocation72_spill] sm:$0xff]  ;;  %v13777_v18 = vpop.permute.xlu1 %13776  ;;  %v20009_v58 = vld [vmem:[#allocation62_spill] sm:$0xff]  ;;  %vm20032_vm1 = vcmask 490496  }
 0x7cf   : > { %v13942_v60 = vsel %vm13855_vm7, %v13941_v16, %v19996_v2  ;;  %v13911_v21 = vsel %vm13855_vm7, %v13910_v50, %v19997_v8  ;;  %v20013_v35 = vld [vmem:[#allocation118_spill] sm:$0xff]  ;;  %v20022_v28 = vld [vmem:[#allocation187_spill] sm:$0xff]  ;;  %v20029_v2 = vld [vmem:[#allocation37_spill] sm:$0xff] }
 0x7d0   : > { %v13912_v3 = vsel %vm13857_vm8, %v13911_v21, %v19998_v62  ;;  %v20024_v16 = vld [vmem:[#allocation102_spill] sm:$0xff]  ;;  %v20031_v21 = vld [vmem:[#allocation124_spill] sm:$0xff] }
 0x7d3   : > { %v13713_v41 = vpop.permute.xlu2 %13712 }
 0x7d4   : > { %v18782_v9 = vsel %vm19967_vm15, %v14088_v57, %v13713_v41  ;;  %vm19989_vm15 = vmmov %vm19977_vm2  ;;  %v13781_v30 = vpop.permute.xlu0 %13780 }
 0x7d5   : > { %v13846_v59 = vsel %vm19989_vm15, %v13844_v38, %v19988_v44  ;;  %vm20027_vm2 = vmmov %vm20023_vm11 }
 0x7d6   : > { %v13848_v48 = vsel %vm13847_vm3, %v13846_v59, %v19992_v51  ;;  %v20017_v59 = vld [vmem:[#allocation106_spill] sm:$0xff]  ;;  %v20020_v51 = vld [vmem:[#allocation135_spill] sm:$0xff]  ;;  %vm20034_vm15 = vmmov %vm20032_vm1 }
 0x7d7   : > { %v13850_v46 = vsel %vm13849_vm4, %v13848_v48, %v19995_v47  ;;  %v20026_v47 = vld [vmem:[#allocation140_spill] sm:$0xff] }
 0x7d8   : > { %v13852_v32 = vsel %vm13851_vm5, %v13850_v46, %v19999_v7 }
 0x7d9   : > { %v13854_v27 = vsel %vm13853_vm6, %v13852_v32, %v20001_v22  ;;  %v20036_v32 = vld [vmem:[#allocation58_spill] sm:$0xff] }
 0x7da   : > { %v13856_v24 = vsel %vm13855_vm7, %v13854_v27, %v20004_v15  ;;  %v20040_v22 = vld [vmem:[#allocation122_spill] sm:$0xff]  ;;  %v20047_v15 = vld [vmem:[#allocation57_spill] sm:$0xff] }
 0x7db   : > { %v13725_v42 = vpop.permute.xlu2 %13724  ;;  %v13858_v38 = vsel %vm13857_vm8, %v13856_v24, %v20009_v58  ;;  %v20057_v58 = vld [vmem:[#allocation119_spill] sm:$0xff] }
 0x7dc   : > { %v14092_v20 = vsel %vm19991_vm0, %v14091_v10, %v13725_v42  ;;  %v13913_v42 = vsel %vm13859_vm9, %v13912_v3, %v20002_v31  ;;  %v20015_v10 = vld [vmem:[#allocation44_spill] sm:$0xff]  ;;  %v13789_v3 = vpop.permute.xlu1 %13788 }
 0x7dd   : > { %v14093_v5 = vsel %vm13847_vm3, %v14092_v20, %v13729_v45  ;;  %v20000_v45 = vld [vmem:[#allocation134_spill] sm:$0xff]  ;;  %v13914_v49 = vsel %vm13861_vm10, %v13913_v42, %v20006_v1  ;;  %vm20008_vm3 = vcmask 359424   ;;  %v20042_v31 = vld [vmem:[#allocation188_spill] sm:$0xff] }
 0x7de   : > { %v14094_v61 = vsel %vm13849_vm4, %v14093_v5, %v13733_v37  ;;  %v13943_v41 = vsel %vm13857_vm8, %v13942_v60, %v20000_v45  ;;  %v13915_v36 = vsel %vm20008_vm3, %v13914_v49, %v20007_v56  ;;  %vm20011_vm4 = vmmov %vm20008_vm3  ;;  %v20052_v1 = vld [vmem:[#allocation128_spill] sm:$0xff] }
 0x7df   : > { %v13944_v0 = vsel %vm13859_vm9, %v13943_v41, %v20003_v39  ;;  %vm20025_vm12 = vmmov %vm20008_vm3  ;;  %v20038_v41 = vld [vmem:[#allocation55_spill] sm:$0xff] }
 0x7e0   : > { %v13945_v12 = vsel %vm13861_vm10, %v13944_v0, %v20005_v13  ;;  %v20045_v0 = vld [vmem:[#allocation27_spill] sm:$0xff]  ;;  %v20050_v13 = vld [vmem:[#allocation130_spill] sm:$0xff] }
 0x7e3   : > { %v13737_v40 = vpop.permute.xlu2 %13736 }
 0x7e4   : > { %v14095_v57 = vsel %vm13851_vm5, %v14094_v61, %v13737_v40  ;;  %v20012_v40 = vld [vmem:[#allocation125_spill] sm:$0xff]  ;;  %vm20014_vm5 = vcmask 392192   ;;  %v20033_v61 = vld [vmem:[#allocation70_spill] sm:$0xff] }
 0x7e5   : > { %v14096_v37 = vsel %vm13853_vm6, %v14095_v57, %v13741_v26  ;;  %v13946_v26 = vsel %vm20011_vm4, %v13945_v12, %v20010_v55  ;;  %v13860_v53 = vsel %vm13859_vm9, %v13858_v38, %v20012_v40  ;;  %v13916_v54 = vsel %vm20014_vm5, %v13915_v36, %v20013_v35  ;;  %vm20016_vm6 = vmmov %vm20014_vm5  ;;  %v20054_v36 = vld [vmem:[#allocation47_spill] sm:$0xff]  ;;  %v13801_v40 = vpop.permute.xlu1 %13800 }
 0x7e6   : > { %v14097_v63 = vsel %vm13855_vm7, %v14096_v37, %v13745_v17  ;;  %v13947_v44 = vsel %vm20016_vm6, %v13946_v26, %v20015_v10  ;;  %v13862_v43 = vsel %vm13861_vm10, %v13860_v53, %v20017_v59  ;;  %vm20019_vm7 = vcmask 424960   ;;  %vm20030_vm13 = vmmov %vm20014_vm5  ;;  %v20059_v55 = vld [vmem:[#allocation155_spill] sm:$0xff] }
 0x7e7   : > { %v13948_v20 = vsel %vm20019_vm7, %v13947_v44, %v20018_v14  ;;  %v13864_v5 = vsel %vm20025_vm12, %v13862_v43, %v20024_v16  ;;  %vm20037_vm0 = vmmov %vm20019_vm7  ;;  %v20063_v53 = vld [vmem:[#allocation147_spill] sm:$0xff]  ;;  %v20066_v44 = vld [vmem:[#allocation60_spill] sm:$0xff] }
 0x7e8   : > { %v13866_v60 = vsel %vm20030_vm13, %v13864_v5, %v20029_v2  ;;  %vm20044_vm6 = vmmov %vm20037_vm0  ;;  %v20071_v14 = vld [vmem:[#allocation66_spill] sm:$0xff]  ;;  %v20078_v16 = vld [vmem:[#allocation107_spill] sm:$0xff] }
 0x7e9   : > { %v13868_v45 = vsel %vm20037_vm0, %v13866_v60, %v20036_v32  ;;  %vm20051_vm12 = vmmov %vm20032_vm1  ;;  %vm20064_vm0 = vcmask 654336   ;;  %v20084_v60 = vld [vmem:[#allocation152_spill] sm:$0xff]  ;;  %v20092_v32 = vld [vmem:[#allocation41_spill] sm:$0xff] }
 0x7ea   : > { %vm20056_vm13 = vmmov %vm20032_vm1 }
 0x7eb   : > { %v13749_v11 = vpop.permute.xlu2 %13748 }
 0x7ec   : > { %v14098_v33 = vsel %vm13857_vm8, %v14097_v63, %v13749_v11  ;;  %vm20021_vm8 = vmmov %vm20019_vm7 }
 0x7ed   : > { %v14099_v17 = vsel %vm13859_vm9, %v14098_v33, %v13753_v4  ;;  %v13917_v48 = vsel %vm20021_vm8, %v13916_v54, %v20020_v51  ;;  %v13949_v4 = vsel %vm20027_vm2, %v13948_v20, %v20026_v47  ;;  %vm20028_vm9 = vmmov %vm20008_vm3  ;;  %vm20039_vm3 = vcmask 523264   ;;  %v20061_v33 = vld [vmem:[#allocation129_spill] sm:$0xff]  ;;  %v20080_v47 = vld [vmem:[#allocation71_spill] sm:$0xff] }
 0x7ee   : > { %v13918_v50 = vsel %vm20023_vm11, %v13917_v48, %v20022_v28  ;;  %v14100_v6 = vsel %vm13861_vm10, %v14099_v17, %v13757_v34  ;;  %v13950_v11 = vsel %vm20034_vm15, %v13949_v4, %v20033_v61  ;;  %v13793_v34 = vpop.permute.xlu0 %13792  ;;  %vm20035_vm10 = vmmov %vm20014_vm5  ;;  %vm20043_vm5 = vcmask 556032   ;;  %v20073_v51 = vld [vmem:[#allocation121_spill] sm:$0xff]  ;;  %v20075_v28 = vld [vmem:[#allocation142_spill] sm:$0xff] }
 0x7ef   : > { %v13919_v62 = vsel %vm20032_vm1, %v13918_v50, %v20031_v21  ;;  %v13951_v57 = vsel %vm20039_vm3, %v13950_v11, %v20038_v41  ;;  %vm20041_vm4 = vmmov %vm20039_vm3  ;;  %vm20060_vm15 = vcmask 621568   ;;  %v20089_v11 = vld [vmem:[#allocation53_spill] sm:$0xff]  ;;  %v13813_v41 = vpop.permute.xlu1 %13812 }
 0x7f0   : > { %v13920_v27 = vsel %vm20041_vm4, %v13919_v62, %v20040_v22  ;;  %vm20046_vm7 = vmmov %vm20027_vm2  ;;  %v20087_v62 = vld [vmem:[#allocation112_spill] sm:$0xff] }
 0x7f1   : > { %v13921_v42 = vsel %vm20043_vm5, %v13920_v27, %v20042_v31  ;;  %v13870_v37 = vsel %vm20046_vm7, %v13868_v45, %v20045_v0  ;;  %vm20048_vm8 = vmmov %vm20043_vm5  ;;  %v20096_v31 = vld [vmem:[#allocation46_spill] sm:$0xff] }
 0x7f2   : > { %vm20049_vm11 = vmmov %vm20027_vm2  ;;  %v13872_v12 = vsel %vm20051_vm12, %v13870_v37, %v20050_v13  ;;  %vm20053_vm2 = vcmask 588800   ;;  %v20101_v37 = vld [vmem:[#allocation162_spill] sm:$0xff] }
 0x7f3   : > { %v13761_v25 = vpop.permute.xlu2 %13760  ;;  %v13922_v49 = vsel %vm20053_vm2, %v13921_v42, %v20052_v1  ;;  %vm20058_vm1 = vmmov %vm20039_vm3 }
 0x7f4   : > { %v14101_v46 = vsel %vm20028_vm9, %v14100_v6, %v13761_v25  ;;  %vm20055_vm9 = vmmov %vm20053_vm2  ;;  %v13874_v38 = vsel %vm20058_vm1, %v13872_v12, %v20057_v58  ;;  %v20105_v12 = vld [vmem:[#allocation149_spill] sm:$0xff] }
 0x7f5   : > { %v14102_v7 = vsel %vm20035_vm10, %v14101_v46, %v13765_v23  ;;  %v13952_v23 = vsel %vm20048_vm8, %v13951_v57, %v20047_v15  ;;  %vm20062_vm10 = vmmov %vm20060_vm15  ;;  %vm20074_vm8 = vcmask 687104   ;;  %v20082_v46 = vld [vmem:[#allocation50_spill] sm:$0xff]  ;;  %v20094_v57 = vld [vmem:[#allocation68_spill] sm:$0xff] }
 0x7f6   : > { %v14103_v39 = vsel %vm20044_vm6, %v14102_v7, %v13769_v52  ;;  %v13953_v63 = vsel %vm20055_vm9, %v13952_v23, %v20054_v36  ;;  %v13923_v25 = vsel %vm20062_vm10, %v13922_v49, %v20061_v33  ;;  %v13805_v54 = vpop.permute.xlu0 %13804  ;;  %vm20065_vm3 = vmmov %vm20058_vm1  ;;  %vm20081_vm9 = vcmask 719872  }
 0x7f7   : > { %v13954_v26 = vsel %vm20060_vm15, %v13953_v63, %v20059_v55  ;;  %v13924_v35 = vsel %vm20064_vm0, %v13923_v25, %v20063_v53  ;;  %vm20067_vm4 = vmmov %vm20043_vm5  ;;  %vm20085_vm1 = vcmask 752640   ;;  %v20110_v63 = vld [vmem:[#allocation141_spill] sm:$0xff]  ;;  %v20117_v25 = vld [vmem:[#allocation148_spill] sm:$0xff] }
 0x7f8   : > { %v13876_v17 = vsel %vm20067_vm4, %v13874_v38, %v20066_v44  ;;  %vm20069_vm5 = vmmov %vm20064_vm0  ;;  %v13925_v48 = vsel %vm20074_vm8, %v13924_v35, %v20073_v51  ;;  %v20113_v38 = vld [vmem:[#allocation184_spill] sm:$0xff]  ;;  %v20120_v35 = vld [vmem:[#allocation39_spill] sm:$0xff] }
 0x7f9   : > { %vm20070_vm6 = vmmov %vm20067_vm4 }
 0x7fa   : > { %vm20072_vm7 = vmmov %vm20053_vm2 }
 0x7fb   : > { %v13773_v8 = vpop.permute.xlu2 %13772  ;;  %v13878_v20 = vsel %vm20072_vm7, %v13876_v17, %v20071_v14  ;;  %vm20077_vm12 = vmmov %vm20053_vm2  ;;  %v13825_v17 = vpop.permute.xlu1 %13824 }
 0x7fc   : > { %v14104_v24 = vsel %vm20049_vm11, %v14103_v39, %v13773_v8  ;;  %vm20076_vm11 = vmmov %vm20074_vm8  ;;  %v20099_v39 = vld [vmem:[#allocation30_spill] sm:$0xff] }
 0x7fd   : > { %v14105_v52 = vsel %vm20056_vm13, %v14104_v24, %v13777_v18  ;;  %v20068_v18 = vld [vmem:[#allocation156_spill] sm:$0xff]  ;;  %vm20079_vm2 = vmmov %vm20062_vm10  ;;  %v20103_v24 = vld [vmem:[#allocation143_spill] sm:$0xff] }
 0x7fe   : > { %v14106_v10 = vsel %vm20065_vm3, %v14105_v52, %v13781_v30  ;;  %v13955_v59 = vsel %vm20069_vm5, %v13954_v26, %v20068_v18  ;;  %v13880_v5 = vsel %vm20079_vm2, %v13878_v20, %v20078_v16  ;;  %vm20083_vm13 = vmmov %vm20081_vm9  ;;  %v13817_v27 = vpop.permute.xlu0 %13816  ;;  %v20115_v26 = vld [vmem:[#allocation126_spill] sm:$0xff]  ;;  %v20124_v18 = vld [vmem:[#allocation131_spill] sm:$0xff] }
 0x7ff   : > { %v13956_v50 = vsel %vm20076_vm11, %v13955_v59, %v20075_v28  ;;  %v13926_v2 = vsel %vm20083_vm13, %v13925_v48, %v20082_v46  ;;  %vm20086_vm15 = vmmov %vm20079_vm2  ;;  %vm20102_vm11 = vcmask 818176   ;;  %vm20106_vm2 = vcmask 850944   ;;  %v20127_v20 = vld [vmem:[#allocation145_spill] sm:$0xff] }
 0x800   : > { %v13957_v4 = vsel %vm20081_vm9, %v13956_v50, %v20080_v47  ;;  %v13927_v8 = vsel %vm20085_vm1, %v13926_v2, %v20084_v60  ;;  %vm20088_vm10 = vmmov %vm20064_vm0  ;;  %v20129_v28 = vld [vmem:[#allocation69_spill] sm:$0xff]  ;;  %v20137_v2 = vld [vmem:[#allocation158_spill] sm:$0xff] }
 0x801   : > { %v13882_v61 = vsel %vm20088_vm10, %v13880_v5, %v20087_v62  ;;  %vm20090_vm0 = vmmov %vm20085_vm1  ;;  %v20133_v5 = vld [vmem:[#allocation185_spill] sm:$0xff]  ;;  %v20138_v60 = vld [vmem:[#allocation168_spill] sm:$0xff] }
 0x802   : > { %vm20091_vm3 = vmmov %vm20069_vm5  ;;  %vm20095_vm5 = vcmask 785408  }
 0x803   : > { %v13785_v56 = vpop.permute.xlu2 %13784  ;;  %vm20093_vm4 = vmmov %vm20074_vm8  ;;  %v13928_v22 = vsel %vm20095_vm5, %v13927_v8, %v20094_v57 }
 0x804   : > { %v14107_v43 = vsel %vm20070_vm6, %v14106_v10, %v13785_v56  ;;  %v13884_v45 = vsel %vm20093_vm4, %v13882_v61, %v20092_v32  ;;  %vm20097_vm6 = vmmov %vm20095_vm5  ;;  %v20108_v56 = vld [vmem:[#allocation113_spill] sm:$0xff]  ;;  %v20122_v10 = vld [vmem:[#allocation178_spill] sm:$0xff] }
 0x805   : > { %v14108_v6 = vsel %vm20077_vm12, %v14107_v43, %v13789_v3  ;;  %v13958_v3 = vsel %vm20090_vm0, %v13957_v4, %v20089_v11  ;;  %vm20098_vm7 = vmmov %vm20093_vm4  ;;  %v20135_v4 = vld [vmem:[#allocation45_spill] sm:$0xff]  ;;  %v20143_v11 = vld [vmem:[#allocation110_spill] sm:$0xff] }
 0x806   : > { %v14109_v21 = vsel %vm20086_vm15, %v14108_v6, %v13793_v34  ;;  %v13959_v42 = vsel %vm20097_vm6, %v13958_v3, %v20096_v31  ;;  %vm20100_vm8 = vmmov %vm20081_vm9  ;;  %vm20123_vm6 = vcmask 916480   ;;  %v13829_v43 = vpop.permute.xlu0 %13828  ;;  %v20131_v6 = vld [vmem:[#allocation189_spill] sm:$0xff] }
 0x807   : > { %v13886_v0 = vsel %vm20100_vm8, %v13884_v45, %v20099_v39  ;;  %v13960_v15 = vsel %vm20102_vm11, %v13959_v42, %v20101_v37  ;;  %vm20104_vm12 = vmmov %vm20102_vm11  ;;  %v20147_v45 = vld [vmem:[#allocation136_spill] sm:$0xff]  ;;  %v20150_v31 = vld [vmem:[#allocation109_spill] sm:$0xff]  ;;  %v13837_v39 = vpop.permute.xlu1 %13836 }
 0x808   : > { %v13929_v13 = vsel %vm20104_vm12, %v13928_v22, %v20103_v24  ;;  %vm20107_vm9 = vmmov %vm20100_vm8 }
 0x809   : > { %v13930_v1 = vsel %vm20106_vm2, %v13929_v13, %v20105_v12  ;;  %vm20109_vm13 = vmmov %vm20090_vm0 }
 0x80a   : > { %v13888_v36 = vsel %vm20109_vm13, %v13886_v0, %v20108_v56  ;;  %vm20111_vm1 = vmmov %vm20106_vm2  ;;  %vm20139_vm13 = vcmask 1014784  }
 0x80b   : > { %v13797_v30 = vpop.permute.xlu2 %13796  ;;  %v13961_v52 = vsel %vm20111_vm1, %v13960_v15, %v20110_v63  ;;  %vm20112_vm15 = vmmov %vm20090_vm0  ;;  %vm20116_vm0 = vcmask 883712   ;;  %v13997_v8 = vsel %vm20139_vm13, %v20138_v60, %v20137_v2  ;;  %v20155_v15 = vld [vmem:[#allocation139_spill] sm:$0xff] }
 0x80c   : > { %v14110_v7 = vsel %vm20091_vm3, %v14109_v21, %v13797_v30  ;;  %vm20114_vm10 = vmmov %vm20095_vm5  ;;  %v13931_v33 = vsel %vm20116_vm0, %v13930_v1, %v20115_v26  ;;  %v20140_v21 = vld [vmem:[#allocation146_spill] sm:$0xff]  ;;  %v14132_v57 = vrot.slane %v13997_v8, 5 }
 0x80d   : > { %v14111_v34 = vsel %vm20098_vm7, %v14110_v7, %v13801_v40  ;;  %v13890_v55 = vsel %vm20114_vm10, %v13888_v36, %v20113_v38  ;;  %vm20118_vm3 = vmmov %vm20116_vm0  ;;  %v20145_v7 = vld [vmem:[#allocation160_spill] sm:$0xff] }
 0x80e   : > { %v14112_v49 = vsel %vm20107_vm9, %v14111_v34, %v13805_v54  ;;  %v13962_v40 = vsel %vm20118_vm3, %v13961_v52, %v20117_v25  ;;  %vm20119_vm4 = vmmov %vm20095_vm5  ;;  %vm20136_vm9 = vcmask 982016   ;;  %v13841_v13 = vpop.permute.xlu0 %13840 }
 0x80f   : > { %vm20121_vm5 = vmmov %vm20102_vm11  ;;  %v13963_v44 = vsel %vm20123_vm6, %v13962_v40, %v20122_v10 }
 0x810   : > { %v13892_v54 = vsel %vm20121_vm5, %v13890_v55, %v20120_v35  ;;  %vm20125_vm7 = vmmov %vm20123_vm6  ;;  %v13964_v30 = vsel %vm13899_vm14, %v13963_v44, %v20131_v6 }
 0x811   : > { %v13932_v59 = vsel %vm20125_vm7, %v13931_v33, %v20124_v18  ;;  %vm20128_vm8 = vmmov %vm20121_vm5 }
 0x812   : > { %v13933_v51 = vsel %vm13899_vm14, %v13932_v59, %v20127_v20  ;;  %vm20130_vm11 = vmmov %vm20111_vm1 }
 0x813   : > { %v13809_v23 = vpop.permute.xlu2 %13808  ;;  %v13894_v50 = vsel %vm20130_vm11, %v13892_v54, %v20129_v28  ;;  %vm20132_vm12 = vmmov %vm20111_vm1  ;;  %v13934_v46 = vsel %vm20136_vm9, %v13933_v51, %v20135_v4  ;;  %vm14137_vm11 = vcmask 1040384  }
 0x814   : > { %v14113_v58 = vsel %vm20112_vm15, %v14112_v49, %v13809_v23  ;;  %vm20134_vm2 = vmmov %vm20116_vm0 }
 0x815   : > { %v14114_v53 = vsel %vm20119_vm4, %v14113_v58, %v13813_v41  ;;  %v13896_v47 = vsel %vm20134_vm2, %v13894_v50, %v20133_v5  ;;  %vm20141_vm1 = vmmov %vm20136_vm9  ;;  %vm14139_vm4 = vcmask 1042434   ;;  %vm14147_vm9 = vcmask 1045508  }
 0x816   : > { %v14115_v48 = vsel %vm20128_vm8, %v14114_v53, %v13817_v27  ;;  %v13965_v62 = vsel %vm20141_vm1, %v13964_v30, %v20140_v21  ;;  %vm20142_vm15 = vmmov %vm20116_vm0 }
 0x817   : > { %vm20144_vm10 = vmmov %vm20123_vm6 }
 0x818   : > { %v13898_v3 = vsel %vm20144_vm10, %v13896_v47, %v20143_v11  ;;  %vm20146_vm0 = vmmov %vm20139_vm13 }
 0x819   : > { %v13966_v32 = vsel %vm20146_vm0, %v13965_v62, %v20145_v7  ;;  %vm20148_vm3 = vmmov %vm20146_vm0  ;;  %v13900_v42 = vsel %vm13899_vm14, %v13898_v3, %v20150_v31 }
 0x81a   : > { %v13935_v41 = vsel %vm20148_vm3, %v13934_v46, %v20147_v45  ;;  %vm20149_vm5 = vmmov %vm20123_vm6  ;;  %v14131_v34 = vrot.slane %v13966_v32, 6 }
 0x81b   : > { %v13821_v14 = vpop.permute.xlu2 %13820  ;;  %vm20151_vm6 = vmmov %vm20146_vm0  ;;  %v14130_v24 = vrot.slane %v13935_v41, 7 }
 0x81c   : > { %v14116_v16 = vsel %vm20132_vm12, %v14115_v48, %v13821_v14  ;;  %v14090_v0 = vsel %vm20151_vm6, %v18782_v9, %v18766_v29  ;;  %vm20156_vm7 = vmmov %vm20141_vm1  ;;  %v14140_v1 = vsel %vm14139_vm4, %v14131_v34, %v14132_v57  ;;  %vm14145_vm12 = vcmask 1046534   ;;  %v20160_v9 = vld [vmem:[#allocation127_spill] sm:$0xff] }
 0x81d   : > { %v14117_v61 = vsel %vm20142_vm15, %v14116_v16, %v13825_v17  ;;  %v13902_v23 = vsel %vm20156_vm7, %v13900_v42, %v20155_v15  ;;  %vm20157_vm8 = vmmov %vm20141_vm1  ;;  %v14135_v56 = vrot.slane %v14090_v0, 2  ;;  %vm14149_vm1 = vcmask 1043456  }
 0x81e   : > { %v14118_v27 = vsel %vm20149_vm5, %v14117_v61, %v13829_v43  ;;  %vm20158_vm2 = vmmov %vm20146_vm0 }
 0x81f   : > { %vm20161_vm13 = vmmov %vm20146_vm0 }
 0x820   : > { %v13904_v36 = vsel %vm20161_vm13, %v13902_v23, %v20160_v9 }
 0x821   : > { %v14138_v63 = vsel %vm14137_vm11, %v13904_v36, %v14130_v24 }
 0x823   : > { %v13833_v22 = vpop.permute.xlu2 %13832 }
 0x824   : > { %v14119_v37 = vsel %vm13899_vm14, %v14118_v27, %v13833_v22  ;;  %vm14141_vm14 = vcmask 1041408  }
 0x825   : > { %v14120_v12 = vsel %vm20157_vm8, %v14119_v37, %v13837_v39  ;;  %v14142_v58 = vsel %vm14141_vm14, %v14138_v63, %v14140_v1 }
 0x826   : > { %v14121_v49 = vsel %vm20158_vm2, %v14120_v12, %v13841_v13 }
 0x827   : > { %v14136_v29 = vrot.slane %v14121_v49, 1 }
 0x829   : > { %v14146_v52 = vsel %vm14145_vm12, %v14135_v56, %v14136_v29 }
 0x82a   : > { %v14148_v38 = vsel %vm14147_vm9, %v18727_v19, %v14146_v52 }
 0x82b   : > { %v14150_v55 = vsel %vm14149_vm1, %v14142_v58, %v14148_v38 }
 0x82c   : > { %14152 = vst [vmem:[%s153_s19] sm:$0xff] %v14150_v55 }
 0x82d   : > { %14421 = shalt.err (!%p14418_p13)
}
 0x82e   : > { %14268 = dma.vmem_to_hbm [thread:$0]  (%p14574_p9), %s14169_s20, 128, %s14171_s21, %s14154_s12  }
 0x82f PF: > { %s20163_s26 = sld [smem:[#allocation8_spill]]  ;;  %p14275_p0 = pnand %p14256_p12, %p14581_p11 }
 0x830   : > { %s20165_s28 = sld [smem:[#allocation13_spill]] }
 0x831   : > { %p14276_p1 = pneg %p14275_p0 }
 0x835   : > { %s14182_s29 = sand.u32 1, %s20163_s26  }
 0x836   : > { %s14183_s30 = scalar_lea.sflag [#allocation4], %s14182_s29 }
 0x837   : > { %14451 = dma.done.wait (%p14276_p1), %s14183_s30, 128  }
 0x838   : > { %14453 = vsyncadd (%p14276_p1), %s14183_s30, 4294967168  ;;  %s17_s11 = sadd.s32 1, %s20165_s28   ;;  %s20166_s6 = sld [smem:[#allocation9_spill]] }
 0x839   : > { %p14_p2 = scmp.ge.s32.totalorder %s17_s11, 4   ;;  %s20167_s7 = sld [smem:[#allocation10_spill]] }
 0x83a   : > { %s20168_s8 = sld [smem:[#allocation16_spill]] }
 0x83b   : > { %s20169_s9 = sld [smem:[#allocation12_spill]]  ;;  %16 = sbr.rel (!%p14_p2) target bundleno = 9 (0x9), region = 69 }
 0x83c   : > { %s20170_s10 = sld [smem:[#allocation14_spill]] }
 0x840   :  { %14189 = vsyncpa [#allocation3], 1 }
 0x841   :  { %14191 = vsyncpa [#allocation3 + $0x1], 1 }
 0x842   :  { %14192 = vsyncpa [#allocation4], 1 }
 0x843   :  { %14194 = vsyncpa [#allocation4 + $0x1], 1 }

</bundles_post_ra>
